<compile_context>
chip_gen: v7x
topology: tpu7x:2x2x1
jax: 0.10.0
libtpu: 0.0.40
codegen_flags: <defaults>
</compile_context>

<pallas_src>
import jax
import jax.numpy as jnp
from jax.experimental import pallas as pl
from jax.experimental.pallas import tpu as pltpu

EPS = 1e-5     # PyTorch BatchNorm2d default
SLOTS = 8      # conv2 taps packed per lane group (8 taps * 16 conv1 ch = 128 lanes)


def _pow2_at_least(v):
    return max(8, 1 << (int(v) - 1).bit_length())


# ------------------------------ Pallas kernel -------------------------------

def make_kernel(nb, p2, p2pad, n_groups, c1, c2):
    assert p2pad & (p2pad - 1) == 0 and c2 & (c2 - 1) == 0
    c2_shift = c2.bit_length() - 1
    p_mask = p2pad - 1
    mrows = nb * p2pad                      # conv2 output rows incl. spatial pad

    def kernel(pstat_ref, ptap_ref, whf_hbm, w1blk_ref, w2s_ref,
               g1_ref, be1_ref, g2_ref, be2_ref, hb_ref,
               o_ref, whf_vmem, dma_sem):
        f32 = jnp.float32
        bf16 = jnp.bfloat16
        k1p = w1blk_ref.shape[0] // SLOTS

        # Head weight (~1 MB) is only needed at the very end: start its DMA now
        # so it rides under all of the conv compute.            [review item 5]
        head_cp = pltpu.make_async_copy(whf_hbm, whf_vmem, dma_sem)
        head_cp.start()

        # ---------------- conv1 + BN1 (training-mode batch stats) ------------
        w1 = w1blk_ref[0:k1p, 0:c1]                       # top-left block = w1
        a_stat = jnp.dot(pstat_ref[...], w1, preferred_element_type=f32)
        inv_ns = 1.0 / pstat_ref.shape[0]
        mean1 = jnp.sum(a_stat, axis=0, keepdims=True) * inv_ns
        d1 = a_stat - mean1
        var1 = jnp.sum(d1 * d1, axis=0, keepdims=True) * inv_ns   # biased, 2-pass
        s1 = jax.lax.rsqrt(var1 + EPS) * g1_ref[...]
        t1 = be1_ref[...] - mean1 * s1        # conv1 bias cancels under BN1

        # All 32 (padded) conv2 taps in ONE lane-packed MXU op: rows are
        # (group, n, p), input lanes (slot, k-feature); the block-diagonal w1
        # maps them to output lanes (slot, conv1-channel).     [review item 3/4]
        a_tap = jnp.dot(ptap_ref[...], w1blk_ref[...], preferred_element_type=f32)
        s1w = jnp.concatenate([s1] * SLOTS, axis=-1)      # (1, 128)
        t1w = jnp.concatenate([t1] * SLOTS, axis=-1)
        y1 = jnp.maximum(a_tap * s1w + t1w, 0.0).astype(bf16)   # (256, 128)

        # ---------------- conv2: one matmul over the (tap, c1) axis ----------
        ycat = jnp.concatenate(
            [y1[g * mrows:(g + 1) * mrows, :] for g in range(n_groups)], axis=-1)
        z2 = jnp.dot(ycat, w2s_ref[...], preferred_element_type=f32)  # (64, 32)

        # ---------------- BN2 over the nb*p2 real rows only -------------------
        row = jax.lax.broadcasted_iota(jnp.int32, (mrows, 1), 0)
        real = (jnp.bitwise_and(row, p_mask) < p2).astype(f32)        # (64, 1)
        inv_m = 1.0 / (nb * p2)
        mean2 = jnp.sum(z2 * real, axis=0, keepdims=True) * inv_m
        d2 = (z2 - mean2) * real
        var2 = jnp.sum(d2 * d2, axis=0, keepdims=True) * inv_m
        s2 = jax.lax.rsqrt(var2 + EPS) * g2_ref[...]
        t2 = be2_ref[...] - mean2 * s2        # conv2 bias cancels under BN2
        y2 = (jnp.maximum(z2 * s2 + t2, 0.0) * real).astype(bf16)     # (64, 32)

        # ---------------- head: one (64,1024)x(1024,512) MXU op ---------------
        # Scatter each row's c2 channels to lane block p*c2 with an iota mask
        # (this replaces the NCHW-flatten relayout), matmul against the
        # pre-permuted head weight, then sum the p2pad rows of each sample.
        wide = jnp.concatenate([y2] * p2pad, axis=-1)                 # (64, 1024)
        lane = jax.lax.broadcasted_iota(jnp.int32, wide.shape, 1)
        rr = jax.lax.broadcasted_iota(jnp.int32, wide.shape, 0)
        keep = jnp.right_shift(lane, c2_shift) == jnp.bitwise_and(rr, p_mask)
        lm = jnp.where(keep, wide, jnp.zeros_like(wide))

        head_cp.wait()                         # head weights now resident in VMEM
        part = jnp.dot(lm, whf_vmem[...], preferred_element_type=f32)  # (64, 512)
        outs = [jnp.sum(part[i * p2pad:(i + 1) * p2pad, :], axis=0, keepdims=True)
                for i in range(nb)]
        o_ref[...] = jnp.concatenate(outs, axis=0) + hb_ref[...]

    return kernel


# ----------------------------- parameter prep -------------------------------

def prepare_params(params):
    """One-time, kernel-ready weight layouts (transpose / pad / pack / bf16)."""
    c1 = params['conv1_w'].shape[0]               # 16
    cin = params['conv1_w'].shape[1]
    c2 = params['conv2_w'].shape[0]               # 32
    n_out = params['head_w'].shape[0]             # 512
    p2 = params['head_w'].shape[1] // c2          # OH2*OW2
    p2pad = _pow2_at_least(p2)
    k1 = 25 * cin
    k1p = ((k1 + 127) // 128) * 128
    n_tap_pad = ((25 + SLOTS - 1) // SLOTS) * SLOTS

    # conv1 weight -> (k1p, c1), then block-diagonal over the SLOTS lane groups
    w1 = jnp.transpose(params['conv1_w'], (2, 3, 1, 0)).reshape(k1, c1)
    w1 = jnp.pad(w1, ((0, k1p - k1), (0, 0)))
    w1blk = jnp.kron(jnp.eye(SLOTS, dtype=w1.dtype), w1).astype(jnp.bfloat16)

    # conv2 weight -> stacked rows (tap, c1); zero rows for the pad taps
    w2 = jnp.transpose(params['conv2_w'], (2, 3, 1, 0)).reshape(25, c1, c2)
    w2 = jnp.pad(w2, ((0, n_tap_pad - 25), (0, 0), (0, 0)))
    w2s = w2.reshape(n_tap_pad * c1, c2).astype(jnp.bfloat16)

    # head weight: NCHW-flatten column (c*p2 + p) -> row (p*c2 + c), pad p zeroed
    wh = jnp.transpose(params['head_w'].reshape(n_out, c2, p2), (2, 1, 0))
    wh = jnp.pad(wh, ((0, p2pad - p2), (0, 0), (0, 0)))
    whf = wh.reshape(p2pad * c2, n_out).astype(jnp.bfloat16)

    row = lambda v: v.reshape(1, -1).astype(jnp.float32)
    return {'w1blk': w1blk, 'w2s': w2s, 'whf': whf,
            'g1': row(params['bn1_g']), 'be1': row(params['bn1_b']),
            'g2': row(params['bn2_g']), 'be2': row(params['bn2_b']),
            'hb': row(params['head_b'])}


# ------------------------------- forward pass -------------------------------

@jax.jit
def conv_feature_extract(x_nchw, prep):
    n, cin, h, w = x_nchw.shape
    oh1, ow1 = (h - 5) // 2 + 1, (w - 5) // 2 + 1
    oh2, ow2 = (oh1 - 5) // 2 + 1, (ow1 - 5) // 2 + 1
    p2 = oh2 * ow2
    k1 = 25 * cin

    w1blk, whf, w2s = prep['w1blk'], prep['whf'], prep['w2s']
    c1 = w1blk.shape[1] // SLOTS
    k1p = w1blk.shape[0] // SLOTS
    c2 = w2s.shape[1]
    p2pad = whf.shape[0] // c2
    n_out = whf.shape[1]
    n_tap_pad = w2s.shape[0] // c1
    n_groups = n_tap_pad // SLOTS

    # im2col in bf16 (the MXU operand dtype), NHWC, feature order (kh, kw, cin)
    x = jnp.transpose(x_nchw, (0, 2, 3, 1)).astype(jnp.bfloat16)
    cols = [x[:, kh:kh + 2 * oh1:2, kw:kw + 2 * ow1:2, :]
            for kh in range(5) for kw in range(5)]
    pat1 = jnp.stack(cols, axis=3).reshape(n, oh1, ow1, k1)

    # (a) every conv1 output position once, for BN1 batch statistics
    pstat = jnp.pad(pat1.reshape(n * oh1 * ow1, k1), ((0, 0), (0, k1p - k1)))

    # (b) conv1 patches feeding each conv2 tap: rows n-major with the p2 spatial
    #     positions padded to p2pad, then SLOTS taps lane-packed per group.
    blocks = []
    for kh in range(5):
        for kw in range(5):
            s = pat1[:, kh:kh + 2 * oh2:2, kw:kw + 2 * ow2:2, :].reshape(n, p2, k1)
            s = jnp.pad(s, ((0, 0), (0, p2pad - p2), (0, k1p - k1)))
            blocks.append(s.reshape(n * p2pad, k1p))
    blocks += [jnp.zeros_like(blocks[0])] * (n_tap_pad - len(blocks))
    ptap = jnp.concatenate(
        [jnp.concatenate(blocks[g * SLOTS:(g + 1) * SLOTS], axis=-1)
         for g in range(n_groups)], axis=0)       # (n_groups*n*p2pad, SLOTS*k1p)

    vmem = pl.BlockSpec(memory_space=pltpu.MemorySpace.VMEM)
    return pl.pallas_call(
        make_kernel(n, p2, p2pad, n_groups, c1, c2),
        out_shape=jax.ShapeDtypeStruct((n, n_out), jnp.float32),
        in_specs=[vmem, vmem, pl.BlockSpec(memory_space=pl.ANY),
                  vmem, vmem, vmem, vmem, vmem, vmem, vmem],
        out_specs=vmem,
        scratch_shapes=[pltpu.VMEM(whf.shape, jnp.bfloat16),
                        pltpu.SemaphoreType.DMA],
    )(pstat, ptap, whf, w1blk, w2s,
      prep['g1'], prep['be1'], prep['g2'], prep['be2'], prep['hb'])


# -------------------------- deterministic params ----------------------------

def init_params(key, cin, feat_size):
    ks = jax.random.split(key, 6)

    def u(k, shape, fan_in):
        bound = 1.0 / jnp.sqrt(jnp.float32(fan_in))
        return jax.random.uniform(k, shape, jnp.float32, -bound, bound)

    return {
        'conv1_w': u(ks[0], (16, cin, 5, 5), cin * 25),
        'conv1_b': u(ks[1], (16,), cin * 25),
        'bn1_g': jnp.ones((16,), jnp.float32),
        'bn1_b': jnp.zeros((16,), jnp.float32),
        'conv2_w': u(ks[2], (32, 16, 5, 5), 16 * 25),
        'conv2_b': u(ks[3], (32,), 16 * 25),
        'bn2_g': jnp.ones((32,), jnp.float32),
        'bn2_b': jnp.zeros((32,), jnp.float32),
        'head_w': u(ks[4], (512, feat_size), feat_size),
        'head_b': u(ks[5], (512,), feat_size),
    }


# ------------------------------ f32 reference --------------------------------

def reference(x, params):
    def conv(x, w, b, s):
        y = jax.lax.conv_general_dilated(
            x, w, (s, s), 'VALID',
            dimension_numbers=('NCHW', 'OIHW', 'NCHW'),
            precision=jax.lax.Precision.HIGHEST)
        return y + b[None, :, None, None]

    def bn(y, g, b):
        mean = jnp.mean(y, axis=(0, 2, 3), keepdims=True)
        var = jnp.mean(jnp.square(y - mean), axis=(0, 2, 3), keepdims=True)
        return ((y - mean) * jax.lax.rsqrt(var + EPS)
                * g[None, :, None, None] + b[None, :, None, None])

    y = jax.nn.relu(bn(conv(x, params['conv1_w'], params['conv1_b'], 2),
                       params['bn1_g'], params['bn1_b']))
    y = jax.nn.relu(bn(conv(y, params['conv2_w'], params['conv2_b'], 2),
                       params['bn2_g'], params['bn2_b']))
    f = y.reshape(y.shape[0], -1)
    return f @ params['head_w'].T + params['head_b']


# --------------------------------- main --------------------------------------

if __name__ == "__main__":
    N, C, H, W = 2, 4, 32, 32            # input_shape = (4, 32, 32)

    def conv_out(s):
        return (s - 5) // 2 + 1

    feat_size = 32 * conv_out(conv_out(H)) * conv_out(conv_out(W))   # 800

    key = jax.random.PRNGKey(0)
    kx, kp = jax.random.split(key)
    x = jax.random.normal(kx, (N, C, H, W), jnp.float32)
    params = init_params(kp, C, feat_size)
    prep = prepare_params(params)

    out = jax.block_until_ready(conv_feature_extract(x, prep))
    assert out.shape == (N, 512), out.shape

    ref = jax.block_until_ready(reference(x, params))
    # bf16-operand MXU math vs f32 HIGHEST reference -> allow ~2e-2.
    err = float(jnp.max(jnp.abs(out - ref)))
    assert jnp.allclose(out, ref, rtol=2e-2, atol=2e-2), err

    print("KERNEL_OK")
</pallas_src>

<mosaic_0001>
module attributes {stable_mosaic.version = 11 : i64} {
  func.func @kernel(%arg0: memref<392x128xbf16, #tpu.memory_space<vmem>>, %arg1: memref<256x1024xbf16, #tpu.memory_space<vmem>>, %arg2: memref<1024x512xbf16, #tpu.memory_space<any>>, %arg3: memref<1024x128xbf16, #tpu.memory_space<vmem>>, %arg4: memref<512x32xbf16, #tpu.memory_space<vmem>>, %arg5: memref<1x16xf32, #tpu.memory_space<vmem>>, %arg6: memref<1x16xf32, #tpu.memory_space<vmem>>, %arg7: memref<1x32xf32, #tpu.memory_space<vmem>>, %arg8: memref<1x32xf32, #tpu.memory_space<vmem>>, %arg9: memref<1x512xf32, #tpu.memory_space<vmem>>, %arg10: memref<2x512xf32, #tpu.memory_space<vmem>>, %arg11: memref<1024x512xbf16, #tpu.memory_space<vmem>>, %arg12: memref<!tpu.dma_semaphore, #tpu.memory_space<semaphore_mem>>) attributes {dimension_semantics = [], scalar_prefetch = 0 : i64, scratch_operands = 2 : i64, tpu.core_type = #tpu.core_type<tc>} {
    tpu.enqueue_dma source(%arg2 : memref<1024x512xbf16, #tpu.memory_space<any>>) target(%arg11 : memref<1024x512xbf16, #tpu.memory_space<vmem>>) target_semaphore(%arg12 : memref<!tpu.dma_semaphore, #tpu.memory_space<semaphore_mem>>)
    %c0 = arith.constant 0 : index
    %c0_0 = arith.constant 0 : index
    %0 = vector.load %arg3[%c0, %c0_0] : memref<1024x128xbf16, #tpu.memory_space<vmem>>, vector<128x16xbf16>
    %c0_1 = arith.constant 0 : index
    %c0_2 = arith.constant 0 : index
    %1 = vector.load %arg0[%c0_1, %c0_2] : memref<392x128xbf16, #tpu.memory_space<vmem>>, vector<392x128xbf16>
    %cst = arith.constant dense<0.000000e+00> : vector<392x16xf32>
    %2 = tpu.matmul %1, %0, %cst {dimension_numbers = #tpu.dot_dimension_numbers<[1], [0], [0], [1], [0, 0, 1, 1], [], []>} : vector<392x128xbf16>, vector<128x16xbf16>, vector<392x16xf32> -> vector<392x16xf32>
    %cst_3 = arith.constant dense<0.000000e+00> : vector<16xf32>
    %3 = vector.multi_reduction <add>, %2, %cst_3 [0] : vector<392x16xf32> to vector<16xf32>
    %4 = vector.shape_cast %3 : vector<16xf32> to vector<1x16xf32>
    %cst_4 = arith.constant 0.00255102036 : f32
    %5 = vector.broadcast %cst_4 : f32 to vector<1x16xf32>
    %6 = arith.mulf %4, %5 : vector<1x16xf32>
    %7 = vector.broadcast %6 : vector<1x16xf32> to vector<392x16xf32>
    %8 = arith.subf %2, %7 : vector<392x16xf32>
    %9 = arith.mulf %8, %8 : vector<392x16xf32>
    %cst_5 = arith.constant dense<0.000000e+00> : vector<16xf32>
    %10 = vector.multi_reduction <add>, %9, %cst_5 [0] : vector<392x16xf32> to vector<16xf32>
    %11 = vector.shape_cast %10 : vector<16xf32> to vector<1x16xf32>
    %cst_6 = arith.constant 0.00255102036 : f32
    %12 = vector.broadcast %cst_6 : f32 to vector<1x16xf32>
    %13 = arith.mulf %11, %12 : vector<1x16xf32>
    %cst_7 = arith.constant 9.99999974E-6 : f32
    %14 = vector.broadcast %cst_7 : f32 to vector<1x16xf32>
    %15 = arith.addf %13, %14 : vector<1x16xf32>
    %16 = math.rsqrt %15 : vector<1x16xf32>
    %c0_8 = arith.constant 0 : index
    %c0_9 = arith.constant 0 : index
    %17 = vector.load %arg5[%c0_8, %c0_9] : memref<1x16xf32, #tpu.memory_space<vmem>>, vector<1x16xf32>
    %18 = arith.mulf %16, %17 : vector<1x16xf32>
    %c0_10 = arith.constant 0 : index
    %c0_11 = arith.constant 0 : index
    %19 = vector.load %arg6[%c0_10, %c0_11] : memref<1x16xf32, #tpu.memory_space<vmem>>, vector<1x16xf32>
    %20 = arith.mulf %6, %18 : vector<1x16xf32>
    %21 = arith.subf %19, %20 : vector<1x16xf32>
    %c0_12 = arith.constant 0 : index
    %c0_13 = arith.constant 0 : index
    %22 = vector.load %arg1[%c0_12, %c0_13] : memref<256x1024xbf16, #tpu.memory_space<vmem>>, vector<256x1024xbf16>
    %c0_14 = arith.constant 0 : index
    %c0_15 = arith.constant 0 : index
    %23 = vector.load %arg3[%c0_14, %c0_15] : memref<1024x128xbf16, #tpu.memory_space<vmem>>, vector<1024x128xbf16>
    %cst_16 = arith.constant dense<0.000000e+00> : vector<256x128xf32>
    %24 = tpu.matmul %22, %23, %cst_16 {dimension_numbers = #tpu.dot_dimension_numbers<[1], [0], [0], [1], [0, 0, 1, 1], [], []>} : vector<256x1024xbf16>, vector<1024x128xbf16>, vector<256x128xf32> -> vector<256x128xf32>
    %25 = tpu.concatenate %18, %18, %18, %18, %18, %18, %18, %18 in 1 : vector<1x16xf32>, vector<1x16xf32>, vector<1x16xf32>, vector<1x16xf32>, vector<1x16xf32>, vector<1x16xf32>, vector<1x16xf32>, vector<1x16xf32> -> vector<1x128xf32>
    %26 = tpu.concatenate %21, %21, %21, %21, %21, %21, %21, %21 in 1 : vector<1x16xf32>, vector<1x16xf32>, vector<1x16xf32>, vector<1x16xf32>, vector<1x16xf32>, vector<1x16xf32>, vector<1x16xf32>, vector<1x16xf32> -> vector<1x128xf32>
    %27 = vector.broadcast %25 : vector<1x128xf32> to vector<256x128xf32>
    %28 = arith.mulf %24, %27 : vector<256x128xf32>
    %29 = vector.broadcast %26 : vector<1x128xf32> to vector<256x128xf32>
    %30 = arith.addf %28, %29 : vector<256x128xf32>
    %cst_17 = arith.constant 0.000000e+00 : f32
    %31 = vector.broadcast %cst_17 : f32 to vector<256x128xf32>
    %32 = arith.maximumf %30, %31 : vector<256x128xf32>
    %33 = arith.truncf %32 : vector<256x128xf32> to vector<256x128xbf16>
    %34 = vector.extract_strided_slice %33 {offsets = [0, 0], sizes = [64, 128], strides = [1, 1]} : vector<256x128xbf16> to vector<64x128xbf16>
    %35 = vector.extract_strided_slice %33 {offsets = [64, 0], sizes = [64, 128], strides = [1, 1]} : vector<256x128xbf16> to vector<64x128xbf16>
    %36 = vector.extract_strided_slice %33 {offsets = [128, 0], sizes = [64, 128], strides = [1, 1]} : vector<256x128xbf16> to vector<64x128xbf16>
    %37 = vector.extract_strided_slice %33 {offsets = [192, 0], sizes = [64, 128], strides = [1, 1]} : vector<256x128xbf16> to vector<64x128xbf16>
    %38 = tpu.concatenate %34, %35, %36, %37 in 1 : vector<64x128xbf16>, vector<64x128xbf16>, vector<64x128xbf16>, vector<64x128xbf16> -> vector<64x512xbf16>
    %c0_18 = arith.constant 0 : index
    %c0_19 = arith.constant 0 : index
    %39 = vector.load %arg4[%c0_18, %c0_19] : memref<512x32xbf16, #tpu.memory_space<vmem>>, vector<512x32xbf16>
    %cst_20 = arith.constant dense<0.000000e+00> : vector<64x32xf32>
    %40 = tpu.matmul %38, %39, %cst_20 {dimension_numbers = #tpu.dot_dimension_numbers<[1], [0], [0], [1], [0, 0, 1, 1], [], []>} : vector<64x512xbf16>, vector<512x32xbf16>, vector<64x32xf32> -> vector<64x32xf32>
    %41 = tpu.iota {dimensions = array<i32: 0>} : vector<64x1xi32>
    %c31_i32 = arith.constant 31 : i32
    %42 = vector.broadcast %c31_i32 : i32 to vector<64x1xi32>
    %43 = arith.andi %41, %42 : vector<64x1xi32>
    %c25_i32 = arith.constant 25 : i32
    %44 = vector.broadcast %c25_i32 : i32 to vector<64x1xi32>
    %45 = arith.cmpi slt, %43, %44 : vector<64x1xi32>
    %46 = arith.extui %45 : vector<64x1xi1> to vector<64x1xi32>
    %47 = arith.sitofp %46 : vector<64x1xi32> to vector<64x1xf32>
    %48 = vector.broadcast %47 : vector<64x1xf32> to vector<64x32xf32>
    %49 = arith.mulf %40, %48 : vector<64x32xf32>
    %cst_21 = arith.constant dense<0.000000e+00> : vector<32xf32>
    %50 = vector.multi_reduction <add>, %49, %cst_21 [0] : vector<64x32xf32> to vector<32xf32>
    %51 = vector.shape_cast %50 : vector<32xf32> to vector<1x32xf32>
    %cst_22 = arith.constant 2.000000e-02 : f32
    %52 = vector.broadcast %cst_22 : f32 to vector<1x32xf32>
    %53 = arith.mulf %51, %52 : vector<1x32xf32>
    %54 = vector.broadcast %53 : vector<1x32xf32> to vector<64x32xf32>
    %55 = arith.subf %40, %54 : vector<64x32xf32>
    %56 = vector.broadcast %47 : vector<64x1xf32> to vector<64x32xf32>
    %57 = arith.mulf %55, %56 : vector<64x32xf32>
    %58 = arith.mulf %57, %57 : vector<64x32xf32>
    %cst_23 = arith.constant dense<0.000000e+00> : vector<32xf32>
    %59 = vector.multi_reduction <add>, %58, %cst_23 [0] : vector<64x32xf32> to vector<32xf32>
    %60 = vector.shape_cast %59 : vector<32xf32> to vector<1x32xf32>
    %cst_24 = arith.constant 2.000000e-02 : f32
    %61 = vector.broadcast %cst_24 : f32 to vector<1x32xf32>
    %62 = arith.mulf %60, %61 : vector<1x32xf32>
    %cst_25 = arith.constant 9.99999974E-6 : f32
    %63 = vector.broadcast %cst_25 : f32 to vector<1x32xf32>
    %64 = arith.addf %62, %63 : vector<1x32xf32>
    %65 = math.rsqrt %64 : vector<1x32xf32>
    %c0_26 = arith.constant 0 : index
    %c0_27 = arith.constant 0 : index
    %66 = vector.load %arg7[%c0_26, %c0_27] : memref<1x32xf32, #tpu.memory_space<vmem>>, vector<1x32xf32>
    %67 = arith.mulf %65, %66 : vector<1x32xf32>
    %c0_28 = arith.constant 0 : index
    %c0_29 = arith.constant 0 : index
    %68 = vector.load %arg8[%c0_28, %c0_29] : memref<1x32xf32, #tpu.memory_space<vmem>>, vector<1x32xf32>
    %69 = arith.mulf %53, %67 : vector<1x32xf32>
    %70 = arith.subf %68, %69 : vector<1x32xf32>
    %71 = vector.broadcast %67 : vector<1x32xf32> to vector<64x32xf32>
    %72 = arith.mulf %40, %71 : vector<64x32xf32>
    %73 = vector.broadcast %70 : vector<1x32xf32> to vector<64x32xf32>
    %74 = arith.addf %72, %73 : vector<64x32xf32>
    %cst_30 = arith.constant 0.000000e+00 : f32
    %75 = vector.broadcast %cst_30 : f32 to vector<64x32xf32>
    %76 = arith.maximumf %74, %75 : vector<64x32xf32>
    %77 = vector.broadcast %47 : vector<64x1xf32> to vector<64x32xf32>
    %78 = arith.mulf %76, %77 : vector<64x32xf32>
    %79 = arith.truncf %78 : vector<64x32xf32> to vector<64x32xbf16>
    %80 = tpu.concatenate %79, %79, %79, %79, %79, %79, %79, %79, %79, %79, %79, %79, %79, %79, %79, %79 in 1 : vector<64x32xbf16>, vector<64x32xbf16>, vector<64x32xbf16>, vector<64x32xbf16>, vector<64x32xbf16>, vector<64x32xbf16>, vector<64x32xbf16>, vector<64x32xbf16>, vector<64x32xbf16>, vector<64x32xbf16>, vector<64x32xbf16>, vector<64x32xbf16>, vector<64x32xbf16>, vector<64x32xbf16>, vector<64x32xbf16>, vector<64x32xbf16> -> vector<64x512xbf16>
    %81 = tpu.concatenate %79, %79, %79, %79, %79, %79, %79, %79, %79, %79, %79, %79, %79, %79, %79, %79 in 1 : vector<64x32xbf16>, vector<64x32xbf16>, vector<64x32xbf16>, vector<64x32xbf16>, vector<64x32xbf16>, vector<64x32xbf16>, vector<64x32xbf16>, vector<64x32xbf16>, vector<64x32xbf16>, vector<64x32xbf16>, vector<64x32xbf16>, vector<64x32xbf16>, vector<64x32xbf16>, vector<64x32xbf16>, vector<64x32xbf16>, vector<64x32xbf16> -> vector<64x512xbf16>
    %82 = tpu.concatenate %80, %81 in 1 : vector<64x512xbf16>, vector<64x512xbf16> -> vector<64x1024xbf16>
    %83 = tpu.iota {dimensions = array<i32: 1>} : vector<64x1024xi32>
    %84 = tpu.iota {dimensions = array<i32: 0>} : vector<64x1024xi32>
    %c5_i32 = arith.constant 5 : i32
    %85 = vector.broadcast %c5_i32 : i32 to vector<64x1024xi32>
    %86 = arith.shrsi %83, %85 : vector<64x1024xi32>
    %c31_i32_31 = arith.constant 31 : i32
    %87 = vector.broadcast %c31_i32_31 : i32 to vector<64x1024xi32>
    %88 = arith.andi %84, %87 : vector<64x1024xi32>
    %89 = arith.cmpi eq, %86, %88 : vector<64x1024xi32>
    %cst_32 = arith.constant 0.000000e+00 : bf16
    %90 = vector.broadcast %cst_32 : bf16 to vector<64x1024xbf16>
    %91 = arith.select %89, %82, %90 : vector<64x1024xi1>, vector<64x1024xbf16>
    tpu.wait_dma2 semaphore(%arg12 : memref<!tpu.dma_semaphore, #tpu.memory_space<semaphore_mem>>) src(%arg2 : memref<1024x512xbf16, #tpu.memory_space<any>>) dst(%arg11 : memref<1024x512xbf16, #tpu.memory_space<vmem>>)
    %c0_33 = arith.constant 0 : index
    %c0_34 = arith.constant 0 : index
    %92 = vector.load %arg11[%c0_33, %c0_34] : memref<1024x512xbf16, #tpu.memory_space<vmem>>, vector<1024x512xbf16>
    %cst_35 = arith.constant dense<0.000000e+00> : vector<64x512xf32>
    %93 = tpu.matmul %91, %92, %cst_35 {dimension_numbers = #tpu.dot_dimension_numbers<[1], [0], [0], [1], [0, 0, 1, 1], [], []>} : vector<64x1024xbf16>, vector<1024x512xbf16>, vector<64x512xf32> -> vector<64x512xf32>
    %94 = vector.extract_strided_slice %93 {offsets = [0, 0], sizes = [32, 512], strides = [1, 1]} : vector<64x512xf32> to vector<32x512xf32>
    %cst_36 = arith.constant dense<0.000000e+00> : vector<512xf32>
    %95 = vector.multi_reduction <add>, %94, %cst_36 [0] : vector<32x512xf32> to vector<512xf32>
    %96 = vector.shape_cast %95 : vector<512xf32> to vector<1x512xf32>
    %97 = vector.extract_strided_slice %93 {offsets = [32, 0], sizes = [32, 512], strides = [1, 1]} : vector<64x512xf32> to vector<32x512xf32>
    %cst_37 = arith.constant dense<0.000000e+00> : vector<512xf32>
    %98 = vector.multi_reduction <add>, %97, %cst_37 [0] : vector<32x512xf32> to vector<512xf32>
    %99 = vector.shape_cast %98 : vector<512xf32> to vector<1x512xf32>
    %100 = tpu.concatenate %96, %99 in 0 : vector<1x512xf32>, vector<1x512xf32> -> vector<2x512xf32>
    %c0_38 = arith.constant 0 : index
    %c0_39 = arith.constant 0 : index
    %101 = vector.load %arg9[%c0_38, %c0_39] : memref<1x512xf32, #tpu.memory_space<vmem>>, vector<1x512xf32>
    %102 = vector.broadcast %101 : vector<1x512xf32> to vector<2x512xf32>
    %103 = arith.addf %100, %102 : vector<2x512xf32>
    %c0_40 = arith.constant 0 : index
    %c0_41 = arith.constant 0 : index
    %104 = vector.load %arg10[%c0_40, %c0_41] : memref<2x512xf32, #tpu.memory_space<vmem>>, vector<2x512xf32>
    tpu.vector_store %arg10[%c0_40, %c0_41], %103 {strides = array<i32>} : memref<2x512xf32, #tpu.memory_space<vmem>>, vector<2x512xf32>,
    return
  }
}

</mosaic_0001>

<bundles_post_ra>
// kernel: conv_feature_extract.1
= control target key start
LH: loop header
LB: loop body
LE: loop exit
PB: predicated region body
PF: predicated region fallthrough
CT: control target
= control target key end

     0   :  { %15 = vsyncpa [#allocation5], 0  ;;  %s14162_s0 = inlined_call_operand.vmem [shape: bf16[392,128], index: 0, kind: input, shape index: {}]   ;;  %s14163_s1 = inlined_call_operand.vmem [shape: bf16[256,1024], index: 1, kind: input, shape index: {}]   ;;  %s14164_s2 = inlined_call_operand.vmem [shape: bf16[1024,512], index: 2, kind: input, shape index: {}]   ;;  %s14165_s3 = inlined_call_operand.vmem [shape: bf16[1024,128], index: 3, kind: input, shape index: {}]   ;;  %s14166_s4 = inlined_call_operand.vmem [shape: bf16[512,32], index: 4, kind: input, shape index: {}]   ;;  %s14167_s5 = inlined_call_operand.vmem [shape: f32[1,16], index: 5, kind: input, shape index: {}]   ;;  %s14168_s6 = inlined_call_operand.vmem [shape: f32[1,16], index: 6, kind: input, shape index: {}]   ;;  %s14169_s7 = inlined_call_operand.vmem [shape: f32[1,32], index: 7, kind: input, shape index: {}]   ;;  %s14170_s8 = inlined_call_operand.vmem [shape: f32[1,32], index: 8, kind: input, shape index: {}]   ;;  %s14171_s9 = inlined_call_operand.vmem [shape: f32[1,512], index: 9, kind: input, shape index: {}]   ;;  %s14172_s10 = inlined_call_operand.hbm [shape: f32[2,512], index: 10, kind: output, shape index: {}]  }
   0x1   :  { %v52_v0 = vld [vmem:[%s14164_s2] sm:$0xf]  ;;  %v54_v1 = vld [vmem:[%s14164_s2 + $0x10] sm:$0xf]  ;;  %v56_v2 = vld [vmem:[%s14164_s2 + $0x4] sm:$0xf] }
   0x2   :  { %53 = vst [vmem:[#allocation2] sm:$0xf] %v52_v0  ;;  %55 = vst [vmem:[#allocation2 + $0x4] sm:$0xf] %v54_v1  ;;  %v58_v3 = vld [vmem:[%s14164_s2 + $0x14] sm:$0xf] }
   0x3   :  { %v60_v4 = vld [vmem:[%s14164_s2 + $0x8] sm:$0xf]  ;;  %57 = vst [vmem:[#allocation2 + $0x8] sm:$0xf] %v56_v2  ;;  %59 = vst [vmem:[#allocation2 + $0xc] sm:$0xf] %v58_v3 }
   0x4   :  { %61 = vst [vmem:[#allocation2 + $0x10] sm:$0xf] %v60_v4  ;;  %v62_v5 = vld [vmem:[%s14164_s2 + $0x18] sm:$0xf]  ;;  %v64_v6 = vld [vmem:[%s14164_s2 + $0xc] sm:$0xf] }
   0x5   :  { %v66_v7 = vld [vmem:[%s14164_s2 + $0x1c] sm:$0xff]   ;;  %63 = vst [vmem:[#allocation2 + $0x14] sm:$0xf] %v62_v5  ;;  %65 = vst [vmem:[#allocation2 + $0x18] sm:$0xf] %v64_v6 }
   0x6   :  { %67 = vst [vmem:[#allocation2 + $0x1c] sm:$0xff] %v66_v7   ;;  %v70_v8 = vld [vmem:[%s14164_s2 + $0x30] sm:$0xf]  ;;  %v72_v9 = vld [vmem:[%s14164_s2 + $0x24] sm:$0xf]  ;;  %v82_v14 = vld [vmem:[%s14164_s2 + $0x3c] sm:$0xff]  }
   0x7   :  { %v74_v10 = vld [vmem:[%s14164_s2 + $0x34] sm:$0xf]  ;;  %71 = vst [vmem:[#allocation2 + $0x24] sm:$0xf] %v70_v8  ;;  %73 = vst [vmem:[#allocation2 + $0x28] sm:$0xf] %v72_v9 }
   0x8   :  { %75 = vst [vmem:[#allocation2 + $0x2c] sm:$0xf] %v74_v10  ;;  %v76_v11 = vld [vmem:[%s14164_s2 + $0x28] sm:$0xf]  ;;  %v78_v12 = vld [vmem:[%s14164_s2 + $0x38] sm:$0xf] }
   0x9   :  { %v80_v13 = vld [vmem:[%s14164_s2 + $0x2c] sm:$0xf]  ;;  %77 = vst [vmem:[#allocation2 + $0x30] sm:$0xf] %v76_v11  ;;  %79 = vst [vmem:[#allocation2 + $0x34] sm:$0xf] %v78_v12 }
   0xa   :  { %81 = vst [vmem:[#allocation2 + $0x38] sm:$0xf] %v80_v13  ;;  %v86_v15 = vld [vmem:[%s14164_s2 + $0x50] sm:$0xf]  ;;  %v88_v16 = vld [vmem:[%s14164_s2 + $0x44] sm:$0xf] }
   0xb   :  { %83 = vst [vmem:[#allocation2 + $0x3c] sm:$0xff] %v82_v14   ;;  %87 = vst [vmem:[#allocation2 + $0x44] sm:$0xf] %v86_v15  ;;  %v90_v17 = vld [vmem:[%s14164_s2 + $0x54] sm:$0xf]  ;;  %v98_v21 = vld [vmem:[%s14164_s2 + $0x5c] sm:$0xff]  }
   0xc   :  { %89 = vst [vmem:[#allocation2 + $0x48] sm:$0xf] %v88_v16  ;;  %v92_v18 = vld [vmem:[%s14164_s2 + $0x48] sm:$0xf]  ;;  %v94_v19 = vld [vmem:[%s14164_s2 + $0x58] sm:$0xf] }
   0xd   :  { %91 = vst [vmem:[#allocation2 + $0x4c] sm:$0xf] %v90_v17  ;;  %93 = vst [vmem:[#allocation2 + $0x50] sm:$0xf] %v92_v18  ;;  %v96_v20 = vld [vmem:[%s14164_s2 + $0x4c] sm:$0xf] }
   0xe   :  { %95 = vst [vmem:[#allocation2 + $0x54] sm:$0xf] %v94_v19  ;;  %v102_v22 = vld [vmem:[%s14164_s2 + $0x70] sm:$0xf]  ;;  %97 = vst [vmem:[#allocation2 + $0x58] sm:$0xf] %v96_v20 }
   0xf   :  { %99 = vst [vmem:[#allocation2 + $0x5c] sm:$0xff] %v98_v21   ;;  %103 = vst [vmem:[#allocation2 + $0x64] sm:$0xf] %v102_v22  ;;  %v104_v23 = vld [vmem:[%s14164_s2 + $0x64] sm:$0xf]  ;;  %v114_v28 = vld [vmem:[%s14164_s2 + $0x7c] sm:$0xff]  }
  0x10   :  { %v106_v24 = vld [vmem:[%s14164_s2 + $0x74] sm:$0xf]  ;;  %v108_v25 = vld [vmem:[%s14164_s2 + $0x68] sm:$0xf]  ;;  %105 = vst [vmem:[#allocation2 + $0x68] sm:$0xf] %v104_v23 }
  0x11   :  { %107 = vst [vmem:[#allocation2 + $0x6c] sm:$0xf] %v106_v24  ;;  %109 = vst [vmem:[#allocation2 + $0x70] sm:$0xf] %v108_v25  ;;  %v110_v26 = vld [vmem:[%s14164_s2 + $0x78] sm:$0xf] }
  0x12   :  { %v112_v27 = vld [vmem:[%s14164_s2 + $0x6c] sm:$0xf]  ;;  %111 = vst [vmem:[#allocation2 + $0x74] sm:$0xf] %v110_v26  ;;  %115 = vst [vmem:[#allocation2 + $0x7c] sm:$0xff] %v114_v28   ;;  %v130_v35 = vld [vmem:[%s14164_s2 + $0x9c] sm:$0xff]  }
  0x13   :  { %113 = vst [vmem:[#allocation2 + $0x78] sm:$0xf] %v112_v27  ;;  %v118_v29 = vld [vmem:[%s14164_s2 + $0x90] sm:$0xf]  ;;  %v120_v30 = vld [vmem:[%s14164_s2 + $0x84] sm:$0xf] }
  0x14   :  { %v122_v31 = vld [vmem:[%s14164_s2 + $0x94] sm:$0xf]  ;;  %119 = vst [vmem:[#allocation2 + $0x84] sm:$0xf] %v118_v29  ;;  %121 = vst [vmem:[#allocation2 + $0x88] sm:$0xf] %v120_v30 }
  0x15   :  { %123 = vst [vmem:[#allocation2 + $0x8c] sm:$0xf] %v122_v31  ;;  %v124_v32 = vld [vmem:[%s14164_s2 + $0x88] sm:$0xf]  ;;  %v126_v33 = vld [vmem:[%s14164_s2 + $0x98] sm:$0xf] }
  0x16   :  { %v128_v34 = vld [vmem:[%s14164_s2 + $0x8c] sm:$0xf]  ;;  %125 = vst [vmem:[#allocation2 + $0x90] sm:$0xf] %v124_v32  ;;  %127 = vst [vmem:[#allocation2 + $0x94] sm:$0xf] %v126_v33 }
  0x17   :  { %129 = vst [vmem:[#allocation2 + $0x98] sm:$0xf] %v128_v34  ;;  %v134_v36 = vld [vmem:[%s14164_s2 + $0xb0] sm:$0xf]  ;;  %v136_v37 = vld [vmem:[%s14164_s2 + $0xa4] sm:$0xf] }
  0x18   :  { %131 = vst [vmem:[#allocation2 + $0x9c] sm:$0xff] %v130_v35   ;;  %135 = vst [vmem:[#allocation2 + $0xa4] sm:$0xf] %v134_v36  ;;  %v138_v38 = vld [vmem:[%s14164_s2 + $0xb4] sm:$0xf]  ;;  %v146_v42 = vld [vmem:[%s14164_s2 + $0xbc] sm:$0xff]  }
  0x19   :  { %137 = vst [vmem:[#allocation2 + $0xa8] sm:$0xf] %v136_v37  ;;  %v140_v39 = vld [vmem:[%s14164_s2 + $0xa8] sm:$0xf]  ;;  %v142_v40 = vld [vmem:[%s14164_s2 + $0xb8] sm:$0xf] }
  0x1a   :  { %139 = vst [vmem:[#allocation2 + $0xac] sm:$0xf] %v138_v38  ;;  %141 = vst [vmem:[#allocation2 + $0xb0] sm:$0xf] %v140_v39  ;;  %v144_v41 = vld [vmem:[%s14164_s2 + $0xac] sm:$0xf] }
  0x1b   :  { %143 = vst [vmem:[#allocation2 + $0xb4] sm:$0xf] %v142_v40  ;;  %v150_v43 = vld [vmem:[%s14164_s2 + $0xd0] sm:$0xf]  ;;  %145 = vst [vmem:[#allocation2 + $0xb8] sm:$0xf] %v144_v41 }
  0x1c   :  { %147 = vst [vmem:[#allocation2 + $0xbc] sm:$0xff] %v146_v42   ;;  %151 = vst [vmem:[#allocation2 + $0xc4] sm:$0xf] %v150_v43  ;;  %v152_v44 = vld [vmem:[%s14164_s2 + $0xc4] sm:$0xf]  ;;  %v162_v49 = vld [vmem:[%s14164_s2 + $0xdc] sm:$0xff]  }
  0x1d   :  { %v154_v45 = vld [vmem:[%s14164_s2 + $0xd4] sm:$0xf]  ;;  %v156_v46 = vld [vmem:[%s14164_s2 + $0xc8] sm:$0xf]  ;;  %153 = vst [vmem:[#allocation2 + $0xc8] sm:$0xf] %v152_v44 }
  0x1e   :  { %155 = vst [vmem:[#allocation2 + $0xcc] sm:$0xf] %v154_v45  ;;  %157 = vst [vmem:[#allocation2 + $0xd0] sm:$0xf] %v156_v46  ;;  %v158_v47 = vld [vmem:[%s14164_s2 + $0xd8] sm:$0xf] }
  0x1f   :  { %v160_v48 = vld [vmem:[%s14164_s2 + $0xcc] sm:$0xf]  ;;  %159 = vst [vmem:[#allocation2 + $0xd4] sm:$0xf] %v158_v47  ;;  %163 = vst [vmem:[#allocation2 + $0xdc] sm:$0xff] %v162_v49   ;;  %v178_v56 = vld [vmem:[%s14164_s2 + $0xfc] sm:$0xff]  }
  0x20   :  { %161 = vst [vmem:[#allocation2 + $0xd8] sm:$0xf] %v160_v48  ;;  %v166_v50 = vld [vmem:[%s14164_s2 + $0xf0] sm:$0xf]  ;;  %v168_v51 = vld [vmem:[%s14164_s2 + $0xe4] sm:$0xf] }
  0x21   :  { %v170_v52 = vld [vmem:[%s14164_s2 + $0xf4] sm:$0xf]  ;;  %167 = vst [vmem:[#allocation2 + $0xe4] sm:$0xf] %v166_v50  ;;  %169 = vst [vmem:[#allocation2 + $0xe8] sm:$0xf] %v168_v51 }
  0x22   :  { %171 = vst [vmem:[#allocation2 + $0xec] sm:$0xf] %v170_v52  ;;  %v172_v53 = vld [vmem:[%s14164_s2 + $0xe8] sm:$0xf]  ;;  %v174_v54 = vld [vmem:[%s14164_s2 + $0xf8] sm:$0xf] }
  0x23   :  { %v176_v55 = vld [vmem:[%s14164_s2 + $0xec] sm:$0xf]  ;;  %173 = vst [vmem:[#allocation2 + $0xf0] sm:$0xf] %v172_v53  ;;  %175 = vst [vmem:[#allocation2 + $0xf4] sm:$0xf] %v174_v54 }
  0x24   :  { %177 = vst [vmem:[#allocation2 + $0xf8] sm:$0xf] %v176_v55  ;;  %v182_v57 = vld [vmem:[%s14164_s2 + $0x110] sm:$0xf]  ;;  %v184_v58 = vld [vmem:[%s14164_s2 + $0x104] sm:$0xf] }
  0x25   :  { %179 = vst [vmem:[#allocation2 + $0xfc] sm:$0xff] %v178_v56   ;;  %183 = vst [vmem:[#allocation2 + $0x104] sm:$0xf] %v182_v57  ;;  %v186_v59 = vld [vmem:[%s14164_s2 + $0x114] sm:$0xf]  ;;  %v194_v63 = vld [vmem:[%s14164_s2 + $0x11c] sm:$0xff]  }
  0x26   :  { %185 = vst [vmem:[#allocation2 + $0x108] sm:$0xf] %v184_v58  ;;  %v188_v60 = vld [vmem:[%s14164_s2 + $0x108] sm:$0xf]  ;;  %v190_v61 = vld [vmem:[%s14164_s2 + $0x118] sm:$0xf] }
  0x27   :  { %187 = vst [vmem:[#allocation2 + $0x10c] sm:$0xf] %v186_v59  ;;  %189 = vst [vmem:[#allocation2 + $0x110] sm:$0xf] %v188_v60  ;;  %v192_v62 = vld [vmem:[%s14164_s2 + $0x10c] sm:$0xf] }
  0x28   :  { %191 = vst [vmem:[#allocation2 + $0x114] sm:$0xf] %v190_v61  ;;  %v198_v0 = vld [vmem:[%s14164_s2 + $0x130] sm:$0xf]  ;;  %193 = vst [vmem:[#allocation2 + $0x118] sm:$0xf] %v192_v62 }
  0x29   :  { %195 = vst [vmem:[#allocation2 + $0x11c] sm:$0xff] %v194_v63   ;;  %199 = vst [vmem:[#allocation2 + $0x124] sm:$0xf] %v198_v0  ;;  %v200_v1 = vld [vmem:[%s14164_s2 + $0x124] sm:$0xf]  ;;  %v210_v6 = vld [vmem:[%s14164_s2 + $0x13c] sm:$0xff]  }
  0x2a   :  { %v202_v2 = vld [vmem:[%s14164_s2 + $0x134] sm:$0xf]  ;;  %v204_v3 = vld [vmem:[%s14164_s2 + $0x128] sm:$0xf]  ;;  %201 = vst [vmem:[#allocation2 + $0x128] sm:$0xf] %v200_v1 }
  0x2b   :  { %203 = vst [vmem:[#allocation2 + $0x12c] sm:$0xf] %v202_v2  ;;  %205 = vst [vmem:[#allocation2 + $0x130] sm:$0xf] %v204_v3  ;;  %v206_v4 = vld [vmem:[%s14164_s2 + $0x138] sm:$0xf] }
  0x2c   :  { %v208_v5 = vld [vmem:[%s14164_s2 + $0x12c] sm:$0xf]  ;;  %207 = vst [vmem:[#allocation2 + $0x134] sm:$0xf] %v206_v4  ;;  %211 = vst [vmem:[#allocation2 + $0x13c] sm:$0xff] %v210_v6   ;;  %v226_v13 = vld [vmem:[%s14164_s2 + $0x15c] sm:$0xff]  }
  0x2d   :  { %209 = vst [vmem:[#allocation2 + $0x138] sm:$0xf] %v208_v5  ;;  %v214_v7 = vld [vmem:[%s14164_s2 + $0x150] sm:$0xf]  ;;  %v216_v8 = vld [vmem:[%s14164_s2 + $0x144] sm:$0xf] }
  0x2e   :  { %v218_v9 = vld [vmem:[%s14164_s2 + $0x154] sm:$0xf]  ;;  %215 = vst [vmem:[#allocation2 + $0x144] sm:$0xf] %v214_v7  ;;  %217 = vst [vmem:[#allocation2 + $0x148] sm:$0xf] %v216_v8 }
  0x2f   :  { %219 = vst [vmem:[#allocation2 + $0x14c] sm:$0xf] %v218_v9  ;;  %v220_v10 = vld [vmem:[%s14164_s2 + $0x148] sm:$0xf]  ;;  %v222_v11 = vld [vmem:[%s14164_s2 + $0x158] sm:$0xf] }
  0x30   :  { %v224_v12 = vld [vmem:[%s14164_s2 + $0x14c] sm:$0xf]  ;;  %221 = vst [vmem:[#allocation2 + $0x150] sm:$0xf] %v220_v10  ;;  %223 = vst [vmem:[#allocation2 + $0x154] sm:$0xf] %v222_v11 }
  0x31   :  { %225 = vst [vmem:[#allocation2 + $0x158] sm:$0xf] %v224_v12  ;;  %v230_v14 = vld [vmem:[%s14164_s2 + $0x170] sm:$0xf]  ;;  %v232_v15 = vld [vmem:[%s14164_s2 + $0x164] sm:$0xf] }
  0x32   :  { %227 = vst [vmem:[#allocation2 + $0x15c] sm:$0xff] %v226_v13   ;;  %231 = vst [vmem:[#allocation2 + $0x164] sm:$0xf] %v230_v14  ;;  %v234_v16 = vld [vmem:[%s14164_s2 + $0x174] sm:$0xf]  ;;  %v242_v20 = vld [vmem:[%s14164_s2 + $0x17c] sm:$0xff]  }
  0x33   :  { %233 = vst [vmem:[#allocation2 + $0x168] sm:$0xf] %v232_v15  ;;  %v236_v17 = vld [vmem:[%s14164_s2 + $0x168] sm:$0xf]  ;;  %v238_v18 = vld [vmem:[%s14164_s2 + $0x178] sm:$0xf] }
  0x34   :  { %235 = vst [vmem:[#allocation2 + $0x16c] sm:$0xf] %v234_v16  ;;  %237 = vst [vmem:[#allocation2 + $0x170] sm:$0xf] %v236_v17  ;;  %v240_v19 = vld [vmem:[%s14164_s2 + $0x16c] sm:$0xf] }
  0x35   :  { %239 = vst [vmem:[#allocation2 + $0x174] sm:$0xf] %v238_v18  ;;  %v246_v21 = vld [vmem:[%s14164_s2 + $0x190] sm:$0xf]  ;;  %241 = vst [vmem:[#allocation2 + $0x178] sm:$0xf] %v240_v19 }
  0x36   :  { %243 = vst [vmem:[#allocation2 + $0x17c] sm:$0xff] %v242_v20   ;;  %247 = vst [vmem:[#allocation2 + $0x184] sm:$0xf] %v246_v21  ;;  %v248_v22 = vld [vmem:[%s14164_s2 + $0x184] sm:$0xf]  ;;  %v258_v27 = vld [vmem:[%s14164_s2 + $0x19c] sm:$0xff]  }
  0x37   :  { %v250_v23 = vld [vmem:[%s14164_s2 + $0x194] sm:$0xf]  ;;  %v252_v24 = vld [vmem:[%s14164_s2 + $0x188] sm:$0xf]  ;;  %249 = vst [vmem:[#allocation2 + $0x188] sm:$0xf] %v248_v22 }
  0x38   :  { %251 = vst [vmem:[#allocation2 + $0x18c] sm:$0xf] %v250_v23  ;;  %253 = vst [vmem:[#allocation2 + $0x190] sm:$0xf] %v252_v24  ;;  %v254_v25 = vld [vmem:[%s14164_s2 + $0x198] sm:$0xf] }
  0x39   :  { %v256_v26 = vld [vmem:[%s14164_s2 + $0x18c] sm:$0xf]  ;;  %255 = vst [vmem:[#allocation2 + $0x194] sm:$0xf] %v254_v25  ;;  %259 = vst [vmem:[#allocation2 + $0x19c] sm:$0xff] %v258_v27   ;;  %v274_v34 = vld [vmem:[%s14164_s2 + $0x1bc] sm:$0xff]  }
  0x3a   :  { %257 = vst [vmem:[#allocation2 + $0x198] sm:$0xf] %v256_v26  ;;  %v262_v28 = vld [vmem:[%s14164_s2 + $0x1b0] sm:$0xf]  ;;  %v264_v29 = vld [vmem:[%s14164_s2 + $0x1a4] sm:$0xf] }
  0x3b   :  { %v266_v30 = vld [vmem:[%s14164_s2 + $0x1b4] sm:$0xf]  ;;  %263 = vst [vmem:[#allocation2 + $0x1a4] sm:$0xf] %v262_v28  ;;  %265 = vst [vmem:[#allocation2 + $0x1a8] sm:$0xf] %v264_v29 }
  0x3c   :  { %267 = vst [vmem:[#allocation2 + $0x1ac] sm:$0xf] %v266_v30  ;;  %v268_v31 = vld [vmem:[%s14164_s2 + $0x1a8] sm:$0xf]  ;;  %v270_v32 = vld [vmem:[%s14164_s2 + $0x1b8] sm:$0xf] }
  0x3d   :  { %v272_v33 = vld [vmem:[%s14164_s2 + $0x1ac] sm:$0xf]  ;;  %269 = vst [vmem:[#allocation2 + $0x1b0] sm:$0xf] %v268_v31  ;;  %271 = vst [vmem:[#allocation2 + $0x1b4] sm:$0xf] %v270_v32 }
  0x3e   :  { %273 = vst [vmem:[#allocation2 + $0x1b8] sm:$0xf] %v272_v33  ;;  %v278_v35 = vld [vmem:[%s14164_s2 + $0x1d0] sm:$0xf]  ;;  %v280_v36 = vld [vmem:[%s14164_s2 + $0x1c4] sm:$0xf] }
  0x3f   :  { %275 = vst [vmem:[#allocation2 + $0x1bc] sm:$0xff] %v274_v34   ;;  %279 = vst [vmem:[#allocation2 + $0x1c4] sm:$0xf] %v278_v35  ;;  %v282_v37 = vld [vmem:[%s14164_s2 + $0x1d4] sm:$0xf]  ;;  %v290_v41 = vld [vmem:[%s14164_s2 + $0x1dc] sm:$0xff]  }
  0x40   :  { %281 = vst [vmem:[#allocation2 + $0x1c8] sm:$0xf] %v280_v36  ;;  %v284_v38 = vld [vmem:[%s14164_s2 + $0x1c8] sm:$0xf]  ;;  %v286_v39 = vld [vmem:[%s14164_s2 + $0x1d8] sm:$0xf] }
  0x41   :  { %283 = vst [vmem:[#allocation2 + $0x1cc] sm:$0xf] %v282_v37  ;;  %285 = vst [vmem:[#allocation2 + $0x1d0] sm:$0xf] %v284_v38  ;;  %v288_v40 = vld [vmem:[%s14164_s2 + $0x1cc] sm:$0xf] }
  0x42   :  { %287 = vst [vmem:[#allocation2 + $0x1d4] sm:$0xf] %v286_v39  ;;  %v294_v42 = vld [vmem:[%s14164_s2 + $0x1f0] sm:$0xf]  ;;  %289 = vst [vmem:[#allocation2 + $0x1d8] sm:$0xf] %v288_v40 }
  0x43   :  { %291 = vst [vmem:[#allocation2 + $0x1dc] sm:$0xff] %v290_v41   ;;  %295 = vst [vmem:[#allocation2 + $0x1e4] sm:$0xf] %v294_v42  ;;  %v296_v43 = vld [vmem:[%s14164_s2 + $0x1e4] sm:$0xf]  ;;  %v306_v48 = vld [vmem:[%s14164_s2 + $0x1fc] sm:$0xff]  }
  0x44   :  { %v298_v44 = vld [vmem:[%s14164_s2 + $0x1f4] sm:$0xf]  ;;  %v300_v45 = vld [vmem:[%s14164_s2 + $0x1e8] sm:$0xf]  ;;  %297 = vst [vmem:[#allocation2 + $0x1e8] sm:$0xf] %v296_v43 }
  0x45   :  { %299 = vst [vmem:[#allocation2 + $0x1ec] sm:$0xf] %v298_v44  ;;  %301 = vst [vmem:[#allocation2 + $0x1f0] sm:$0xf] %v300_v45  ;;  %v302_v46 = vld [vmem:[%s14164_s2 + $0x1f8] sm:$0xf] }
  0x46   :  { %v304_v47 = vld [vmem:[%s14164_s2 + $0x1ec] sm:$0xf]  ;;  %303 = vst [vmem:[#allocation2 + $0x1f4] sm:$0xf] %v302_v46  ;;  %307 = vst [vmem:[#allocation2 + $0x1fc] sm:$0xff] %v306_v48   ;;  %v322_v55 = vld [vmem:[%s14164_s2 + $0x21c] sm:$0xff]  }
  0x47   :  { %305 = vst [vmem:[#allocation2 + $0x1f8] sm:$0xf] %v304_v47  ;;  %v310_v49 = vld [vmem:[%s14164_s2 + $0x210] sm:$0xf]  ;;  %v312_v50 = vld [vmem:[%s14164_s2 + $0x204] sm:$0xf] }
  0x48   :  { %v314_v51 = vld [vmem:[%s14164_s2 + $0x214] sm:$0xf]  ;;  %311 = vst [vmem:[#allocation2 + $0x204] sm:$0xf] %v310_v49  ;;  %313 = vst [vmem:[#allocation2 + $0x208] sm:$0xf] %v312_v50 }
  0x49   :  { %315 = vst [vmem:[#allocation2 + $0x20c] sm:$0xf] %v314_v51  ;;  %v316_v52 = vld [vmem:[%s14164_s2 + $0x208] sm:$0xf]  ;;  %v318_v53 = vld [vmem:[%s14164_s2 + $0x218] sm:$0xf] }
  0x4a   :  { %v320_v54 = vld [vmem:[%s14164_s2 + $0x20c] sm:$0xf]  ;;  %317 = vst [vmem:[#allocation2 + $0x210] sm:$0xf] %v316_v52  ;;  %319 = vst [vmem:[#allocation2 + $0x214] sm:$0xf] %v318_v53 }
  0x4b   :  { %321 = vst [vmem:[#allocation2 + $0x218] sm:$0xf] %v320_v54  ;;  %v326_v56 = vld [vmem:[%s14164_s2 + $0x230] sm:$0xf]  ;;  %v328_v57 = vld [vmem:[%s14164_s2 + $0x224] sm:$0xf] }
  0x4c   :  { %323 = vst [vmem:[#allocation2 + $0x21c] sm:$0xff] %v322_v55   ;;  %327 = vst [vmem:[#allocation2 + $0x224] sm:$0xf] %v326_v56  ;;  %v330_v58 = vld [vmem:[%s14164_s2 + $0x234] sm:$0xf]  ;;  %v338_v62 = vld [vmem:[%s14164_s2 + $0x23c] sm:$0xff]  }
  0x4d   :  { %329 = vst [vmem:[#allocation2 + $0x228] sm:$0xf] %v328_v57  ;;  %v332_v59 = vld [vmem:[%s14164_s2 + $0x228] sm:$0xf]  ;;  %v334_v60 = vld [vmem:[%s14164_s2 + $0x238] sm:$0xf] }
  0x4e   :  { %331 = vst [vmem:[#allocation2 + $0x22c] sm:$0xf] %v330_v58  ;;  %333 = vst [vmem:[#allocation2 + $0x230] sm:$0xf] %v332_v59  ;;  %v336_v61 = vld [vmem:[%s14164_s2 + $0x22c] sm:$0xf] }
  0x4f   :  { %335 = vst [vmem:[#allocation2 + $0x234] sm:$0xf] %v334_v60  ;;  %v342_v63 = vld [vmem:[%s14164_s2 + $0x250] sm:$0xf]  ;;  %337 = vst [vmem:[#allocation2 + $0x238] sm:$0xf] %v336_v61 }
  0x50   :  { %339 = vst [vmem:[#allocation2 + $0x23c] sm:$0xff] %v338_v62   ;;  %343 = vst [vmem:[#allocation2 + $0x244] sm:$0xf] %v342_v63  ;;  %v344_v0 = vld [vmem:[%s14164_s2 + $0x244] sm:$0xf]  ;;  %v354_v5 = vld [vmem:[%s14164_s2 + $0x25c] sm:$0xff]  }
  0x51   :  { %v346_v1 = vld [vmem:[%s14164_s2 + $0x254] sm:$0xf]  ;;  %v348_v2 = vld [vmem:[%s14164_s2 + $0x248] sm:$0xf]  ;;  %345 = vst [vmem:[#allocation2 + $0x248] sm:$0xf] %v344_v0 }
  0x52   :  { %347 = vst [vmem:[#allocation2 + $0x24c] sm:$0xf] %v346_v1  ;;  %349 = vst [vmem:[#allocation2 + $0x250] sm:$0xf] %v348_v2  ;;  %v350_v3 = vld [vmem:[%s14164_s2 + $0x258] sm:$0xf] }
  0x53   :  { %v352_v4 = vld [vmem:[%s14164_s2 + $0x24c] sm:$0xf]  ;;  %351 = vst [vmem:[#allocation2 + $0x254] sm:$0xf] %v350_v3  ;;  %355 = vst [vmem:[#allocation2 + $0x25c] sm:$0xff] %v354_v5   ;;  %v370_v12 = vld [vmem:[%s14164_s2 + $0x27c] sm:$0xff]  }
  0x54   :  { %353 = vst [vmem:[#allocation2 + $0x258] sm:$0xf] %v352_v4  ;;  %v358_v6 = vld [vmem:[%s14164_s2 + $0x270] sm:$0xf]  ;;  %v360_v7 = vld [vmem:[%s14164_s2 + $0x264] sm:$0xf] }
  0x55   :  { %v362_v8 = vld [vmem:[%s14164_s2 + $0x274] sm:$0xf]  ;;  %359 = vst [vmem:[#allocation2 + $0x264] sm:$0xf] %v358_v6  ;;  %361 = vst [vmem:[#allocation2 + $0x268] sm:$0xf] %v360_v7 }
  0x56   :  { %363 = vst [vmem:[#allocation2 + $0x26c] sm:$0xf] %v362_v8  ;;  %v364_v9 = vld [vmem:[%s14164_s2 + $0x268] sm:$0xf]  ;;  %v366_v10 = vld [vmem:[%s14164_s2 + $0x278] sm:$0xf] }
  0x57   :  { %v368_v11 = vld [vmem:[%s14164_s2 + $0x26c] sm:$0xf]  ;;  %365 = vst [vmem:[#allocation2 + $0x270] sm:$0xf] %v364_v9  ;;  %367 = vst [vmem:[#allocation2 + $0x274] sm:$0xf] %v366_v10 }
  0x58   :  { %369 = vst [vmem:[#allocation2 + $0x278] sm:$0xf] %v368_v11  ;;  %v374_v13 = vld [vmem:[%s14164_s2 + $0x290] sm:$0xf]  ;;  %v376_v14 = vld [vmem:[%s14164_s2 + $0x284] sm:$0xf] }
  0x59   :  { %371 = vst [vmem:[#allocation2 + $0x27c] sm:$0xff] %v370_v12   ;;  %375 = vst [vmem:[#allocation2 + $0x284] sm:$0xf] %v374_v13  ;;  %v378_v15 = vld [vmem:[%s14164_s2 + $0x294] sm:$0xf]  ;;  %v386_v19 = vld [vmem:[%s14164_s2 + $0x29c] sm:$0xff]  }
  0x5a   :  { %377 = vst [vmem:[#allocation2 + $0x288] sm:$0xf] %v376_v14  ;;  %v380_v16 = vld [vmem:[%s14164_s2 + $0x288] sm:$0xf]  ;;  %v382_v17 = vld [vmem:[%s14164_s2 + $0x298] sm:$0xf] }
  0x5b   :  { %379 = vst [vmem:[#allocation2 + $0x28c] sm:$0xf] %v378_v15  ;;  %381 = vst [vmem:[#allocation2 + $0x290] sm:$0xf] %v380_v16  ;;  %v384_v18 = vld [vmem:[%s14164_s2 + $0x28c] sm:$0xf] }
  0x5c   :  { %383 = vst [vmem:[#allocation2 + $0x294] sm:$0xf] %v382_v17  ;;  %v390_v20 = vld [vmem:[%s14164_s2 + $0x2b0] sm:$0xf]  ;;  %385 = vst [vmem:[#allocation2 + $0x298] sm:$0xf] %v384_v18 }
  0x5d   :  { %387 = vst [vmem:[#allocation2 + $0x29c] sm:$0xff] %v386_v19   ;;  %391 = vst [vmem:[#allocation2 + $0x2a4] sm:$0xf] %v390_v20  ;;  %v392_v21 = vld [vmem:[%s14164_s2 + $0x2a4] sm:$0xf]  ;;  %v402_v26 = vld [vmem:[%s14164_s2 + $0x2bc] sm:$0xff]  }
  0x5e   :  { %v394_v22 = vld [vmem:[%s14164_s2 + $0x2b4] sm:$0xf]  ;;  %v396_v23 = vld [vmem:[%s14164_s2 + $0x2a8] sm:$0xf]  ;;  %393 = vst [vmem:[#allocation2 + $0x2a8] sm:$0xf] %v392_v21 }
  0x5f   :  { %395 = vst [vmem:[#allocation2 + $0x2ac] sm:$0xf] %v394_v22  ;;  %397 = vst [vmem:[#allocation2 + $0x2b0] sm:$0xf] %v396_v23  ;;  %v398_v24 = vld [vmem:[%s14164_s2 + $0x2b8] sm:$0xf] }
  0x60   :  { %v400_v25 = vld [vmem:[%s14164_s2 + $0x2ac] sm:$0xf]  ;;  %399 = vst [vmem:[#allocation2 + $0x2b4] sm:$0xf] %v398_v24  ;;  %403 = vst [vmem:[#allocation2 + $0x2bc] sm:$0xff] %v402_v26   ;;  %v418_v33 = vld [vmem:[%s14164_s2 + $0x2dc] sm:$0xff]  }
  0x61   :  { %401 = vst [vmem:[#allocation2 + $0x2b8] sm:$0xf] %v400_v25  ;;  %v406_v27 = vld [vmem:[%s14164_s2 + $0x2d0] sm:$0xf]  ;;  %v408_v28 = vld [vmem:[%s14164_s2 + $0x2c4] sm:$0xf] }
  0x62   :  { %v410_v29 = vld [vmem:[%s14164_s2 + $0x2d4] sm:$0xf]  ;;  %407 = vst [vmem:[#allocation2 + $0x2c4] sm:$0xf] %v406_v27  ;;  %409 = vst [vmem:[#allocation2 + $0x2c8] sm:$0xf] %v408_v28 }
  0x63   :  { %411 = vst [vmem:[#allocation2 + $0x2cc] sm:$0xf] %v410_v29  ;;  %v412_v30 = vld [vmem:[%s14164_s2 + $0x2c8] sm:$0xf]  ;;  %v414_v31 = vld [vmem:[%s14164_s2 + $0x2d8] sm:$0xf] }
  0x64   :  { %v416_v32 = vld [vmem:[%s14164_s2 + $0x2cc] sm:$0xf]  ;;  %413 = vst [vmem:[#allocation2 + $0x2d0] sm:$0xf] %v412_v30  ;;  %415 = vst [vmem:[#allocation2 + $0x2d4] sm:$0xf] %v414_v31 }
  0x65   :  { %417 = vst [vmem:[#allocation2 + $0x2d8] sm:$0xf] %v416_v32  ;;  %v422_v34 = vld [vmem:[%s14164_s2 + $0x2f0] sm:$0xf]  ;;  %v424_v35 = vld [vmem:[%s14164_s2 + $0x2e4] sm:$0xf] }
  0x66   :  { %419 = vst [vmem:[#allocation2 + $0x2dc] sm:$0xff] %v418_v33   ;;  %423 = vst [vmem:[#allocation2 + $0x2e4] sm:$0xf] %v422_v34  ;;  %v426_v36 = vld [vmem:[%s14164_s2 + $0x2f4] sm:$0xf]  ;;  %v434_v40 = vld [vmem:[%s14164_s2 + $0x2fc] sm:$0xff]  }
  0x67   :  { %425 = vst [vmem:[#allocation2 + $0x2e8] sm:$0xf] %v424_v35  ;;  %v428_v37 = vld [vmem:[%s14164_s2 + $0x2e8] sm:$0xf]  ;;  %v430_v38 = vld [vmem:[%s14164_s2 + $0x2f8] sm:$0xf] }
  0x68   :  { %427 = vst [vmem:[#allocation2 + $0x2ec] sm:$0xf] %v426_v36  ;;  %429 = vst [vmem:[#allocation2 + $0x2f0] sm:$0xf] %v428_v37  ;;  %v432_v39 = vld [vmem:[%s14164_s2 + $0x2ec] sm:$0xf] }
  0x69   :  { %431 = vst [vmem:[#allocation2 + $0x2f4] sm:$0xf] %v430_v38  ;;  %v438_v41 = vld [vmem:[%s14164_s2 + $0x310] sm:$0xf]  ;;  %433 = vst [vmem:[#allocation2 + $0x2f8] sm:$0xf] %v432_v39 }
  0x6a   :  { %435 = vst [vmem:[#allocation2 + $0x2fc] sm:$0xff] %v434_v40   ;;  %439 = vst [vmem:[#allocation2 + $0x304] sm:$0xf] %v438_v41  ;;  %v440_v42 = vld [vmem:[%s14164_s2 + $0x304] sm:$0xf]  ;;  %v450_v47 = vld [vmem:[%s14164_s2 + $0x31c] sm:$0xff]  }
  0x6b   :  { %v442_v43 = vld [vmem:[%s14164_s2 + $0x314] sm:$0xf]  ;;  %v444_v44 = vld [vmem:[%s14164_s2 + $0x308] sm:$0xf]  ;;  %441 = vst [vmem:[#allocation2 + $0x308] sm:$0xf] %v440_v42 }
  0x6c   :  { %443 = vst [vmem:[#allocation2 + $0x30c] sm:$0xf] %v442_v43  ;;  %445 = vst [vmem:[#allocation2 + $0x310] sm:$0xf] %v444_v44  ;;  %v446_v45 = vld [vmem:[%s14164_s2 + $0x318] sm:$0xf] }
  0x6d   :  { %v448_v46 = vld [vmem:[%s14164_s2 + $0x30c] sm:$0xf]  ;;  %447 = vst [vmem:[#allocation2 + $0x314] sm:$0xf] %v446_v45  ;;  %451 = vst [vmem:[#allocation2 + $0x31c] sm:$0xff] %v450_v47   ;;  %v466_v54 = vld [vmem:[%s14164_s2 + $0x33c] sm:$0xff]  }
  0x6e   :  { %449 = vst [vmem:[#allocation2 + $0x318] sm:$0xf] %v448_v46  ;;  %v454_v48 = vld [vmem:[%s14164_s2 + $0x330] sm:$0xf]  ;;  %v456_v49 = vld [vmem:[%s14164_s2 + $0x324] sm:$0xf] }
  0x6f   :  { %v458_v50 = vld [vmem:[%s14164_s2 + $0x334] sm:$0xf]  ;;  %455 = vst [vmem:[#allocation2 + $0x324] sm:$0xf] %v454_v48  ;;  %457 = vst [vmem:[#allocation2 + $0x328] sm:$0xf] %v456_v49 }
  0x70   :  { %459 = vst [vmem:[#allocation2 + $0x32c] sm:$0xf] %v458_v50  ;;  %v460_v51 = vld [vmem:[%s14164_s2 + $0x328] sm:$0xf]  ;;  %v462_v52 = vld [vmem:[%s14164_s2 + $0x338] sm:$0xf] }
  0x71   :  { %v464_v53 = vld [vmem:[%s14164_s2 + $0x32c] sm:$0xf]  ;;  %461 = vst [vmem:[#allocation2 + $0x330] sm:$0xf] %v460_v51  ;;  %463 = vst [vmem:[#allocation2 + $0x334] sm:$0xf] %v462_v52 }
  0x72   :  { %465 = vst [vmem:[#allocation2 + $0x338] sm:$0xf] %v464_v53  ;;  %v470_v55 = vld [vmem:[%s14164_s2 + $0x350] sm:$0xf]  ;;  %v472_v56 = vld [vmem:[%s14164_s2 + $0x344] sm:$0xf] }
  0x73   :  { %467 = vst [vmem:[#allocation2 + $0x33c] sm:$0xff] %v466_v54   ;;  %471 = vst [vmem:[#allocation2 + $0x344] sm:$0xf] %v470_v55  ;;  %v474_v57 = vld [vmem:[%s14164_s2 + $0x354] sm:$0xf]  ;;  %v482_v61 = vld [vmem:[%s14164_s2 + $0x35c] sm:$0xff]  }
  0x74   :  { %473 = vst [vmem:[#allocation2 + $0x348] sm:$0xf] %v472_v56  ;;  %v476_v58 = vld [vmem:[%s14164_s2 + $0x348] sm:$0xf]  ;;  %v478_v59 = vld [vmem:[%s14164_s2 + $0x358] sm:$0xf] }
  0x75   :  { %475 = vst [vmem:[#allocation2 + $0x34c] sm:$0xf] %v474_v57  ;;  %477 = vst [vmem:[#allocation2 + $0x350] sm:$0xf] %v476_v58  ;;  %v480_v60 = vld [vmem:[%s14164_s2 + $0x34c] sm:$0xf] }
  0x76   :  { %479 = vst [vmem:[#allocation2 + $0x354] sm:$0xf] %v478_v59  ;;  %v486_v62 = vld [vmem:[%s14164_s2 + $0x370] sm:$0xf]  ;;  %481 = vst [vmem:[#allocation2 + $0x358] sm:$0xf] %v480_v60 }
  0x77   :  { %483 = vst [vmem:[#allocation2 + $0x35c] sm:$0xff] %v482_v61   ;;  %487 = vst [vmem:[#allocation2 + $0x364] sm:$0xf] %v486_v62  ;;  %v488_v63 = vld [vmem:[%s14164_s2 + $0x364] sm:$0xf]  ;;  %v498_v4 = vld [vmem:[%s14164_s2 + $0x37c] sm:$0xff]  }
  0x78   :  { %v490_v0 = vld [vmem:[%s14164_s2 + $0x374] sm:$0xf]  ;;  %v492_v1 = vld [vmem:[%s14164_s2 + $0x368] sm:$0xf]  ;;  %489 = vst [vmem:[#allocation2 + $0x368] sm:$0xf] %v488_v63 }
  0x79   :  { %491 = vst [vmem:[#allocation2 + $0x36c] sm:$0xf] %v490_v0  ;;  %493 = vst [vmem:[#allocation2 + $0x370] sm:$0xf] %v492_v1  ;;  %v494_v2 = vld [vmem:[%s14164_s2 + $0x378] sm:$0xf] }
  0x7a   :  { %v496_v3 = vld [vmem:[%s14164_s2 + $0x36c] sm:$0xf]  ;;  %495 = vst [vmem:[#allocation2 + $0x374] sm:$0xf] %v494_v2  ;;  %499 = vst [vmem:[#allocation2 + $0x37c] sm:$0xff] %v498_v4   ;;  %v514_v11 = vld [vmem:[%s14164_s2 + $0x39c] sm:$0xff]  }
  0x7b   :  { %497 = vst [vmem:[#allocation2 + $0x378] sm:$0xf] %v496_v3  ;;  %v502_v5 = vld [vmem:[%s14164_s2 + $0x390] sm:$0xf]  ;;  %v504_v6 = vld [vmem:[%s14164_s2 + $0x384] sm:$0xf] }
  0x7c   :  { %v506_v7 = vld [vmem:[%s14164_s2 + $0x394] sm:$0xf]  ;;  %503 = vst [vmem:[#allocation2 + $0x384] sm:$0xf] %v502_v5  ;;  %505 = vst [vmem:[#allocation2 + $0x388] sm:$0xf] %v504_v6 }
  0x7d   :  { %507 = vst [vmem:[#allocation2 + $0x38c] sm:$0xf] %v506_v7  ;;  %v508_v8 = vld [vmem:[%s14164_s2 + $0x388] sm:$0xf]  ;;  %v510_v9 = vld [vmem:[%s14164_s2 + $0x398] sm:$0xf] }
  0x7e   :  { %v512_v10 = vld [vmem:[%s14164_s2 + $0x38c] sm:$0xf]  ;;  %509 = vst [vmem:[#allocation2 + $0x390] sm:$0xf] %v508_v8  ;;  %511 = vst [vmem:[#allocation2 + $0x394] sm:$0xf] %v510_v9 }
  0x7f   :  { %513 = vst [vmem:[#allocation2 + $0x398] sm:$0xf] %v512_v10  ;;  %v518_v12 = vld [vmem:[%s14164_s2 + $0x3b0] sm:$0xf]  ;;  %v520_v13 = vld [vmem:[%s14164_s2 + $0x3a4] sm:$0xf] }
  0x80   :  { %515 = vst [vmem:[#allocation2 + $0x39c] sm:$0xff] %v514_v11   ;;  %519 = vst [vmem:[#allocation2 + $0x3a4] sm:$0xf] %v518_v12  ;;  %v522_v14 = vld [vmem:[%s14164_s2 + $0x3b4] sm:$0xf]  ;;  %v530_v18 = vld [vmem:[%s14164_s2 + $0x3bc] sm:$0xff]  }
  0x81   :  { %521 = vst [vmem:[#allocation2 + $0x3a8] sm:$0xf] %v520_v13  ;;  %v524_v15 = vld [vmem:[%s14164_s2 + $0x3a8] sm:$0xf]  ;;  %v526_v16 = vld [vmem:[%s14164_s2 + $0x3b8] sm:$0xf] }
  0x82   :  { %523 = vst [vmem:[#allocation2 + $0x3ac] sm:$0xf] %v522_v14  ;;  %525 = vst [vmem:[#allocation2 + $0x3b0] sm:$0xf] %v524_v15  ;;  %v528_v17 = vld [vmem:[%s14164_s2 + $0x3ac] sm:$0xf] }
  0x83   :  { %527 = vst [vmem:[#allocation2 + $0x3b4] sm:$0xf] %v526_v16  ;;  %v534_v19 = vld [vmem:[%s14164_s2 + $0x3d0] sm:$0xf]  ;;  %529 = vst [vmem:[#allocation2 + $0x3b8] sm:$0xf] %v528_v17 }
  0x84   :  { %531 = vst [vmem:[#allocation2 + $0x3bc] sm:$0xff] %v530_v18   ;;  %535 = vst [vmem:[#allocation2 + $0x3c4] sm:$0xf] %v534_v19  ;;  %v536_v20 = vld [vmem:[%s14164_s2 + $0x3c4] sm:$0xf]  ;;  %v546_v25 = vld [vmem:[%s14164_s2 + $0x3dc] sm:$0xff]  }
  0x85   :  { %v538_v21 = vld [vmem:[%s14164_s2 + $0x3d4] sm:$0xf]  ;;  %v540_v22 = vld [vmem:[%s14164_s2 + $0x3c8] sm:$0xf]  ;;  %537 = vst [vmem:[#allocation2 + $0x3c8] sm:$0xf] %v536_v20 }
  0x86   :  { %539 = vst [vmem:[#allocation2 + $0x3cc] sm:$0xf] %v538_v21  ;;  %541 = vst [vmem:[#allocation2 + $0x3d0] sm:$0xf] %v540_v22  ;;  %v542_v23 = vld [vmem:[%s14164_s2 + $0x3d8] sm:$0xf] }
  0x87   :  { %v544_v24 = vld [vmem:[%s14164_s2 + $0x3cc] sm:$0xf]  ;;  %543 = vst [vmem:[#allocation2 + $0x3d4] sm:$0xf] %v542_v23  ;;  %547 = vst [vmem:[#allocation2 + $0x3dc] sm:$0xff] %v546_v25   ;;  %v562_v32 = vld [vmem:[%s14164_s2 + $0x3fc] sm:$0xff]  }
  0x88   :  { %545 = vst [vmem:[#allocation2 + $0x3d8] sm:$0xf] %v544_v24  ;;  %v550_v26 = vld [vmem:[%s14164_s2 + $0x3f0] sm:$0xf]  ;;  %v552_v27 = vld [vmem:[%s14164_s2 + $0x3e4] sm:$0xf] }
  0x89   :  { %v554_v28 = vld [vmem:[%s14164_s2 + $0x3f4] sm:$0xf]  ;;  %551 = vst [vmem:[#allocation2 + $0x3e4] sm:$0xf] %v550_v26  ;;  %553 = vst [vmem:[#allocation2 + $0x3e8] sm:$0xf] %v552_v27 }
  0x8a   :  { %555 = vst [vmem:[#allocation2 + $0x3ec] sm:$0xf] %v554_v28  ;;  %v556_v29 = vld [vmem:[%s14164_s2 + $0x3e8] sm:$0xf]  ;;  %v558_v30 = vld [vmem:[%s14164_s2 + $0x3f8] sm:$0xf] }
  0x8b   :  { %v560_v31 = vld [vmem:[%s14164_s2 + $0x3ec] sm:$0xf]  ;;  %557 = vst [vmem:[#allocation2 + $0x3f0] sm:$0xf] %v556_v29  ;;  %559 = vst [vmem:[#allocation2 + $0x3f4] sm:$0xf] %v558_v30 }
  0x8c   :  { %561 = vst [vmem:[#allocation2 + $0x3f8] sm:$0xf] %v560_v31  ;;  %v566_v33 = vld [vmem:[%s14164_s2 + $0x410] sm:$0xf]  ;;  %v568_v34 = vld [vmem:[%s14164_s2 + $0x404] sm:$0xf] }
  0x8d   :  { %563 = vst [vmem:[#allocation2 + $0x3fc] sm:$0xff] %v562_v32   ;;  %567 = vst [vmem:[#allocation2 + $0x404] sm:$0xf] %v566_v33  ;;  %v570_v35 = vld [vmem:[%s14164_s2 + $0x414] sm:$0xf]  ;;  %v578_v39 = vld [vmem:[%s14164_s2 + $0x41c] sm:$0xff]  }
  0x8e   :  { %569 = vst [vmem:[#allocation2 + $0x408] sm:$0xf] %v568_v34  ;;  %v572_v36 = vld [vmem:[%s14164_s2 + $0x408] sm:$0xf]  ;;  %v574_v37 = vld [vmem:[%s14164_s2 + $0x418] sm:$0xf] }
  0x8f   :  { %571 = vst [vmem:[#allocation2 + $0x40c] sm:$0xf] %v570_v35  ;;  %573 = vst [vmem:[#allocation2 + $0x410] sm:$0xf] %v572_v36  ;;  %v576_v38 = vld [vmem:[%s14164_s2 + $0x40c] sm:$0xf] }
  0x90   :  { %575 = vst [vmem:[#allocation2 + $0x414] sm:$0xf] %v574_v37  ;;  %v582_v40 = vld [vmem:[%s14164_s2 + $0x430] sm:$0xf]  ;;  %577 = vst [vmem:[#allocation2 + $0x418] sm:$0xf] %v576_v38 }
  0x91   :  { %579 = vst [vmem:[#allocation2 + $0x41c] sm:$0xff] %v578_v39   ;;  %583 = vst [vmem:[#allocation2 + $0x424] sm:$0xf] %v582_v40  ;;  %v584_v41 = vld [vmem:[%s14164_s2 + $0x424] sm:$0xf]  ;;  %v594_v46 = vld [vmem:[%s14164_s2 + $0x43c] sm:$0xff]  }
  0x92   :  { %v586_v42 = vld [vmem:[%s14164_s2 + $0x434] sm:$0xf]  ;;  %v588_v43 = vld [vmem:[%s14164_s2 + $0x428] sm:$0xf]  ;;  %585 = vst [vmem:[#allocation2 + $0x428] sm:$0xf] %v584_v41 }
  0x93   :  { %587 = vst [vmem:[#allocation2 + $0x42c] sm:$0xf] %v586_v42  ;;  %589 = vst [vmem:[#allocation2 + $0x430] sm:$0xf] %v588_v43  ;;  %v590_v44 = vld [vmem:[%s14164_s2 + $0x438] sm:$0xf] }
  0x94   :  { %v592_v45 = vld [vmem:[%s14164_s2 + $0x42c] sm:$0xf]  ;;  %591 = vst [vmem:[#allocation2 + $0x434] sm:$0xf] %v590_v44  ;;  %595 = vst [vmem:[#allocation2 + $0x43c] sm:$0xff] %v594_v46   ;;  %v610_v53 = vld [vmem:[%s14164_s2 + $0x45c] sm:$0xff]  }
  0x95   :  { %593 = vst [vmem:[#allocation2 + $0x438] sm:$0xf] %v592_v45  ;;  %v598_v47 = vld [vmem:[%s14164_s2 + $0x450] sm:$0xf]  ;;  %v600_v48 = vld [vmem:[%s14164_s2 + $0x444] sm:$0xf] }
  0x96   :  { %v602_v49 = vld [vmem:[%s14164_s2 + $0x454] sm:$0xf]  ;;  %599 = vst [vmem:[#allocation2 + $0x444] sm:$0xf] %v598_v47  ;;  %601 = vst [vmem:[#allocation2 + $0x448] sm:$0xf] %v600_v48 }
  0x97   :  { %603 = vst [vmem:[#allocation2 + $0x44c] sm:$0xf] %v602_v49  ;;  %v604_v50 = vld [vmem:[%s14164_s2 + $0x448] sm:$0xf]  ;;  %v606_v51 = vld [vmem:[%s14164_s2 + $0x458] sm:$0xf] }
  0x98   :  { %v608_v52 = vld [vmem:[%s14164_s2 + $0x44c] sm:$0xf]  ;;  %605 = vst [vmem:[#allocation2 + $0x450] sm:$0xf] %v604_v50  ;;  %607 = vst [vmem:[#allocation2 + $0x454] sm:$0xf] %v606_v51 }
  0x99   :  { %609 = vst [vmem:[#allocation2 + $0x458] sm:$0xf] %v608_v52  ;;  %v614_v54 = vld [vmem:[%s14164_s2 + $0x470] sm:$0xf]  ;;  %v616_v55 = vld [vmem:[%s14164_s2 + $0x464] sm:$0xf] }
  0x9a   :  { %611 = vst [vmem:[#allocation2 + $0x45c] sm:$0xff] %v610_v53   ;;  %615 = vst [vmem:[#allocation2 + $0x464] sm:$0xf] %v614_v54  ;;  %v618_v56 = vld [vmem:[%s14164_s2 + $0x474] sm:$0xf]  ;;  %v626_v60 = vld [vmem:[%s14164_s2 + $0x47c] sm:$0xff]  }
  0x9b   :  { %617 = vst [vmem:[#allocation2 + $0x468] sm:$0xf] %v616_v55  ;;  %v620_v57 = vld [vmem:[%s14164_s2 + $0x468] sm:$0xf]  ;;  %v622_v58 = vld [vmem:[%s14164_s2 + $0x478] sm:$0xf] }
  0x9c   :  { %619 = vst [vmem:[#allocation2 + $0x46c] sm:$0xf] %v618_v56  ;;  %621 = vst [vmem:[#allocation2 + $0x470] sm:$0xf] %v620_v57  ;;  %v624_v59 = vld [vmem:[%s14164_s2 + $0x46c] sm:$0xf] }
  0x9d   :  { %623 = vst [vmem:[#allocation2 + $0x474] sm:$0xf] %v622_v58  ;;  %v630_v61 = vld [vmem:[%s14164_s2 + $0x490] sm:$0xf]  ;;  %625 = vst [vmem:[#allocation2 + $0x478] sm:$0xf] %v624_v59 }
  0x9e   :  { %627 = vst [vmem:[#allocation2 + $0x47c] sm:$0xff] %v626_v60   ;;  %631 = vst [vmem:[#allocation2 + $0x484] sm:$0xf] %v630_v61  ;;  %v632_v62 = vld [vmem:[%s14164_s2 + $0x484] sm:$0xf]  ;;  %v642_v3 = vld [vmem:[%s14164_s2 + $0x49c] sm:$0xff]  }
  0x9f   :  { %v634_v63 = vld [vmem:[%s14164_s2 + $0x494] sm:$0xf]  ;;  %v636_v0 = vld [vmem:[%s14164_s2 + $0x488] sm:$0xf]  ;;  %633 = vst [vmem:[#allocation2 + $0x488] sm:$0xf] %v632_v62 }
  0xa0   :  { %635 = vst [vmem:[#allocation2 + $0x48c] sm:$0xf] %v634_v63  ;;  %637 = vst [vmem:[#allocation2 + $0x490] sm:$0xf] %v636_v0  ;;  %v638_v1 = vld [vmem:[%s14164_s2 + $0x498] sm:$0xf] }
  0xa1   :  { %v640_v2 = vld [vmem:[%s14164_s2 + $0x48c] sm:$0xf]  ;;  %639 = vst [vmem:[#allocation2 + $0x494] sm:$0xf] %v638_v1  ;;  %643 = vst [vmem:[#allocation2 + $0x49c] sm:$0xff] %v642_v3   ;;  %v658_v10 = vld [vmem:[%s14164_s2 + $0x4bc] sm:$0xff]  }
  0xa2   :  { %641 = vst [vmem:[#allocation2 + $0x498] sm:$0xf] %v640_v2  ;;  %v646_v4 = vld [vmem:[%s14164_s2 + $0x4b0] sm:$0xf]  ;;  %v648_v5 = vld [vmem:[%s14164_s2 + $0x4a4] sm:$0xf] }
  0xa3   :  { %v650_v6 = vld [vmem:[%s14164_s2 + $0x4b4] sm:$0xf]  ;;  %647 = vst [vmem:[#allocation2 + $0x4a4] sm:$0xf] %v646_v4  ;;  %649 = vst [vmem:[#allocation2 + $0x4a8] sm:$0xf] %v648_v5 }
  0xa4   :  { %651 = vst [vmem:[#allocation2 + $0x4ac] sm:$0xf] %v650_v6  ;;  %v652_v7 = vld [vmem:[%s14164_s2 + $0x4a8] sm:$0xf]  ;;  %v654_v8 = vld [vmem:[%s14164_s2 + $0x4b8] sm:$0xf] }
  0xa5   :  { %v656_v9 = vld [vmem:[%s14164_s2 + $0x4ac] sm:$0xf]  ;;  %653 = vst [vmem:[#allocation2 + $0x4b0] sm:$0xf] %v652_v7  ;;  %655 = vst [vmem:[#allocation2 + $0x4b4] sm:$0xf] %v654_v8 }
  0xa6   :  { %657 = vst [vmem:[#allocation2 + $0x4b8] sm:$0xf] %v656_v9  ;;  %v662_v11 = vld [vmem:[%s14164_s2 + $0x4d0] sm:$0xf]  ;;  %v664_v12 = vld [vmem:[%s14164_s2 + $0x4c4] sm:$0xf] }
  0xa7   :  { %659 = vst [vmem:[#allocation2 + $0x4bc] sm:$0xff] %v658_v10   ;;  %663 = vst [vmem:[#allocation2 + $0x4c4] sm:$0xf] %v662_v11  ;;  %v666_v13 = vld [vmem:[%s14164_s2 + $0x4d4] sm:$0xf]  ;;  %v674_v17 = vld [vmem:[%s14164_s2 + $0x4dc] sm:$0xff]  }
  0xa8   :  { %665 = vst [vmem:[#allocation2 + $0x4c8] sm:$0xf] %v664_v12  ;;  %v668_v14 = vld [vmem:[%s14164_s2 + $0x4c8] sm:$0xf]  ;;  %v670_v15 = vld [vmem:[%s14164_s2 + $0x4d8] sm:$0xf] }
  0xa9   :  { %667 = vst [vmem:[#allocation2 + $0x4cc] sm:$0xf] %v666_v13  ;;  %669 = vst [vmem:[#allocation2 + $0x4d0] sm:$0xf] %v668_v14  ;;  %v672_v16 = vld [vmem:[%s14164_s2 + $0x4cc] sm:$0xf] }
  0xaa   :  { %671 = vst [vmem:[#allocation2 + $0x4d4] sm:$0xf] %v670_v15  ;;  %v678_v18 = vld [vmem:[%s14164_s2 + $0x4f0] sm:$0xf]  ;;  %673 = vst [vmem:[#allocation2 + $0x4d8] sm:$0xf] %v672_v16 }
  0xab   :  { %675 = vst [vmem:[#allocation2 + $0x4dc] sm:$0xff] %v674_v17   ;;  %679 = vst [vmem:[#allocation2 + $0x4e4] sm:$0xf] %v678_v18  ;;  %v680_v19 = vld [vmem:[%s14164_s2 + $0x4e4] sm:$0xf]  ;;  %v690_v24 = vld [vmem:[%s14164_s2 + $0x4fc] sm:$0xff]  }
  0xac   :  { %v682_v20 = vld [vmem:[%s14164_s2 + $0x4f4] sm:$0xf]  ;;  %v684_v21 = vld [vmem:[%s14164_s2 + $0x4e8] sm:$0xf]  ;;  %681 = vst [vmem:[#allocation2 + $0x4e8] sm:$0xf] %v680_v19 }
  0xad   :  { %683 = vst [vmem:[#allocation2 + $0x4ec] sm:$0xf] %v682_v20  ;;  %685 = vst [vmem:[#allocation2 + $0x4f0] sm:$0xf] %v684_v21  ;;  %v686_v22 = vld [vmem:[%s14164_s2 + $0x4f8] sm:$0xf] }
  0xae   :  { %v688_v23 = vld [vmem:[%s14164_s2 + $0x4ec] sm:$0xf]  ;;  %687 = vst [vmem:[#allocation2 + $0x4f4] sm:$0xf] %v686_v22  ;;  %691 = vst [vmem:[#allocation2 + $0x4fc] sm:$0xff] %v690_v24   ;;  %v706_v31 = vld [vmem:[%s14164_s2 + $0x51c] sm:$0xff]  }
  0xaf   :  { %689 = vst [vmem:[#allocation2 + $0x4f8] sm:$0xf] %v688_v23  ;;  %v694_v25 = vld [vmem:[%s14164_s2 + $0x510] sm:$0xf]  ;;  %v696_v26 = vld [vmem:[%s14164_s2 + $0x504] sm:$0xf] }
  0xb0   :  { %v698_v27 = vld [vmem:[%s14164_s2 + $0x514] sm:$0xf]  ;;  %695 = vst [vmem:[#allocation2 + $0x504] sm:$0xf] %v694_v25  ;;  %697 = vst [vmem:[#allocation2 + $0x508] sm:$0xf] %v696_v26 }
  0xb1   :  { %699 = vst [vmem:[#allocation2 + $0x50c] sm:$0xf] %v698_v27  ;;  %v700_v28 = vld [vmem:[%s14164_s2 + $0x508] sm:$0xf]  ;;  %v702_v29 = vld [vmem:[%s14164_s2 + $0x518] sm:$0xf] }
  0xb2   :  { %v704_v30 = vld [vmem:[%s14164_s2 + $0x50c] sm:$0xf]  ;;  %701 = vst [vmem:[#allocation2 + $0x510] sm:$0xf] %v700_v28  ;;  %703 = vst [vmem:[#allocation2 + $0x514] sm:$0xf] %v702_v29 }
  0xb3   :  { %705 = vst [vmem:[#allocation2 + $0x518] sm:$0xf] %v704_v30  ;;  %v710_v32 = vld [vmem:[%s14164_s2 + $0x530] sm:$0xf]  ;;  %v712_v33 = vld [vmem:[%s14164_s2 + $0x524] sm:$0xf] }
  0xb4   :  { %707 = vst [vmem:[#allocation2 + $0x51c] sm:$0xff] %v706_v31   ;;  %711 = vst [vmem:[#allocation2 + $0x524] sm:$0xf] %v710_v32  ;;  %v714_v34 = vld [vmem:[%s14164_s2 + $0x534] sm:$0xf]  ;;  %v722_v38 = vld [vmem:[%s14164_s2 + $0x53c] sm:$0xff]  }
  0xb5   :  { %713 = vst [vmem:[#allocation2 + $0x528] sm:$0xf] %v712_v33  ;;  %v716_v35 = vld [vmem:[%s14164_s2 + $0x528] sm:$0xf]  ;;  %v718_v36 = vld [vmem:[%s14164_s2 + $0x538] sm:$0xf] }
  0xb6   :  { %715 = vst [vmem:[#allocation2 + $0x52c] sm:$0xf] %v714_v34  ;;  %717 = vst [vmem:[#allocation2 + $0x530] sm:$0xf] %v716_v35  ;;  %v720_v37 = vld [vmem:[%s14164_s2 + $0x52c] sm:$0xf] }
  0xb7   :  { %719 = vst [vmem:[#allocation2 + $0x534] sm:$0xf] %v718_v36  ;;  %v726_v39 = vld [vmem:[%s14164_s2 + $0x550] sm:$0xf]  ;;  %721 = vst [vmem:[#allocation2 + $0x538] sm:$0xf] %v720_v37 }
  0xb8   :  { %723 = vst [vmem:[#allocation2 + $0x53c] sm:$0xff] %v722_v38   ;;  %727 = vst [vmem:[#allocation2 + $0x544] sm:$0xf] %v726_v39  ;;  %v728_v40 = vld [vmem:[%s14164_s2 + $0x544] sm:$0xf]  ;;  %v738_v45 = vld [vmem:[%s14164_s2 + $0x55c] sm:$0xff]  }
  0xb9   :  { %v730_v41 = vld [vmem:[%s14164_s2 + $0x554] sm:$0xf]  ;;  %v732_v42 = vld [vmem:[%s14164_s2 + $0x548] sm:$0xf]  ;;  %729 = vst [vmem:[#allocation2 + $0x548] sm:$0xf] %v728_v40 }
  0xba   :  { %731 = vst [vmem:[#allocation2 + $0x54c] sm:$0xf] %v730_v41  ;;  %733 = vst [vmem:[#allocation2 + $0x550] sm:$0xf] %v732_v42  ;;  %v734_v43 = vld [vmem:[%s14164_s2 + $0x558] sm:$0xf] }
  0xbb   :  { %v736_v44 = vld [vmem:[%s14164_s2 + $0x54c] sm:$0xf]  ;;  %735 = vst [vmem:[#allocation2 + $0x554] sm:$0xf] %v734_v43  ;;  %739 = vst [vmem:[#allocation2 + $0x55c] sm:$0xff] %v738_v45   ;;  %v754_v52 = vld [vmem:[%s14164_s2 + $0x57c] sm:$0xff]  }
  0xbc   :  { %737 = vst [vmem:[#allocation2 + $0x558] sm:$0xf] %v736_v44  ;;  %v742_v46 = vld [vmem:[%s14164_s2 + $0x570] sm:$0xf]  ;;  %v744_v47 = vld [vmem:[%s14164_s2 + $0x564] sm:$0xf] }
  0xbd   :  { %v746_v48 = vld [vmem:[%s14164_s2 + $0x574] sm:$0xf]  ;;  %743 = vst [vmem:[#allocation2 + $0x564] sm:$0xf] %v742_v46  ;;  %745 = vst [vmem:[#allocation2 + $0x568] sm:$0xf] %v744_v47 }
  0xbe   :  { %747 = vst [vmem:[#allocation2 + $0x56c] sm:$0xf] %v746_v48  ;;  %v748_v49 = vld [vmem:[%s14164_s2 + $0x568] sm:$0xf]  ;;  %v750_v50 = vld [vmem:[%s14164_s2 + $0x578] sm:$0xf] }
  0xbf   :  { %v752_v51 = vld [vmem:[%s14164_s2 + $0x56c] sm:$0xf]  ;;  %749 = vst [vmem:[#allocation2 + $0x570] sm:$0xf] %v748_v49  ;;  %751 = vst [vmem:[#allocation2 + $0x574] sm:$0xf] %v750_v50 }
  0xc0   :  { %753 = vst [vmem:[#allocation2 + $0x578] sm:$0xf] %v752_v51  ;;  %v758_v53 = vld [vmem:[%s14164_s2 + $0x590] sm:$0xf]  ;;  %v760_v54 = vld [vmem:[%s14164_s2 + $0x584] sm:$0xf] }
  0xc1   :  { %755 = vst [vmem:[#allocation2 + $0x57c] sm:$0xff] %v754_v52   ;;  %759 = vst [vmem:[#allocation2 + $0x584] sm:$0xf] %v758_v53  ;;  %v762_v55 = vld [vmem:[%s14164_s2 + $0x594] sm:$0xf]  ;;  %v770_v59 = vld [vmem:[%s14164_s2 + $0x59c] sm:$0xff]  }
  0xc2   :  { %761 = vst [vmem:[#allocation2 + $0x588] sm:$0xf] %v760_v54  ;;  %v764_v56 = vld [vmem:[%s14164_s2 + $0x588] sm:$0xf]  ;;  %v766_v57 = vld [vmem:[%s14164_s2 + $0x598] sm:$0xf] }
  0xc3   :  { %763 = vst [vmem:[#allocation2 + $0x58c] sm:$0xf] %v762_v55  ;;  %765 = vst [vmem:[#allocation2 + $0x590] sm:$0xf] %v764_v56  ;;  %v768_v58 = vld [vmem:[%s14164_s2 + $0x58c] sm:$0xf] }
  0xc4   :  { %767 = vst [vmem:[#allocation2 + $0x594] sm:$0xf] %v766_v57  ;;  %v774_v60 = vld [vmem:[%s14164_s2 + $0x5b0] sm:$0xf]  ;;  %769 = vst [vmem:[#allocation2 + $0x598] sm:$0xf] %v768_v58 }
  0xc5   :  { %771 = vst [vmem:[#allocation2 + $0x59c] sm:$0xff] %v770_v59   ;;  %775 = vst [vmem:[#allocation2 + $0x5a4] sm:$0xf] %v774_v60  ;;  %v776_v61 = vld [vmem:[%s14164_s2 + $0x5a4] sm:$0xf]  ;;  %v786_v2 = vld [vmem:[%s14164_s2 + $0x5bc] sm:$0xff]  }
  0xc6   :  { %v778_v62 = vld [vmem:[%s14164_s2 + $0x5b4] sm:$0xf]  ;;  %v780_v63 = vld [vmem:[%s14164_s2 + $0x5a8] sm:$0xf]  ;;  %777 = vst [vmem:[#allocation2 + $0x5a8] sm:$0xf] %v776_v61 }
  0xc7   :  { %779 = vst [vmem:[#allocation2 + $0x5ac] sm:$0xf] %v778_v62  ;;  %781 = vst [vmem:[#allocation2 + $0x5b0] sm:$0xf] %v780_v63  ;;  %v782_v0 = vld [vmem:[%s14164_s2 + $0x5b8] sm:$0xf] }
  0xc8   :  { %v784_v1 = vld [vmem:[%s14164_s2 + $0x5ac] sm:$0xf]  ;;  %783 = vst [vmem:[#allocation2 + $0x5b4] sm:$0xf] %v782_v0  ;;  %787 = vst [vmem:[#allocation2 + $0x5bc] sm:$0xff] %v786_v2   ;;  %v802_v9 = vld [vmem:[%s14164_s2 + $0x5dc] sm:$0xff]  }
  0xc9   :  { %785 = vst [vmem:[#allocation2 + $0x5b8] sm:$0xf] %v784_v1  ;;  %v790_v3 = vld [vmem:[%s14164_s2 + $0x5d0] sm:$0xf]  ;;  %v792_v4 = vld [vmem:[%s14164_s2 + $0x5c4] sm:$0xf] }
  0xca   :  { %v794_v5 = vld [vmem:[%s14164_s2 + $0x5d4] sm:$0xf]  ;;  %791 = vst [vmem:[#allocation2 + $0x5c4] sm:$0xf] %v790_v3  ;;  %793 = vst [vmem:[#allocation2 + $0x5c8] sm:$0xf] %v792_v4 }
  0xcb   :  { %795 = vst [vmem:[#allocation2 + $0x5cc] sm:$0xf] %v794_v5  ;;  %v796_v6 = vld [vmem:[%s14164_s2 + $0x5c8] sm:$0xf]  ;;  %v798_v7 = vld [vmem:[%s14164_s2 + $0x5d8] sm:$0xf] }
  0xcc   :  { %v800_v8 = vld [vmem:[%s14164_s2 + $0x5cc] sm:$0xf]  ;;  %797 = vst [vmem:[#allocation2 + $0x5d0] sm:$0xf] %v796_v6  ;;  %799 = vst [vmem:[#allocation2 + $0x5d4] sm:$0xf] %v798_v7 }
  0xcd   :  { %801 = vst [vmem:[#allocation2 + $0x5d8] sm:$0xf] %v800_v8  ;;  %v806_v10 = vld [vmem:[%s14164_s2 + $0x5f0] sm:$0xf]  ;;  %v808_v11 = vld [vmem:[%s14164_s2 + $0x5e4] sm:$0xf] }
  0xce   :  { %803 = vst [vmem:[#allocation2 + $0x5dc] sm:$0xff] %v802_v9   ;;  %807 = vst [vmem:[#allocation2 + $0x5e4] sm:$0xf] %v806_v10  ;;  %v810_v12 = vld [vmem:[%s14164_s2 + $0x5f4] sm:$0xf]  ;;  %v818_v16 = vld [vmem:[%s14164_s2 + $0x5fc] sm:$0xff]  }
  0xcf   :  { %809 = vst [vmem:[#allocation2 + $0x5e8] sm:$0xf] %v808_v11  ;;  %v812_v13 = vld [vmem:[%s14164_s2 + $0x5e8] sm:$0xf]  ;;  %v814_v14 = vld [vmem:[%s14164_s2 + $0x5f8] sm:$0xf] }
  0xd0   :  { %811 = vst [vmem:[#allocation2 + $0x5ec] sm:$0xf] %v810_v12  ;;  %813 = vst [vmem:[#allocation2 + $0x5f0] sm:$0xf] %v812_v13  ;;  %v816_v15 = vld [vmem:[%s14164_s2 + $0x5ec] sm:$0xf] }
  0xd1   :  { %815 = vst [vmem:[#allocation2 + $0x5f4] sm:$0xf] %v814_v14  ;;  %v822_v17 = vld [vmem:[%s14164_s2 + $0x610] sm:$0xf]  ;;  %817 = vst [vmem:[#allocation2 + $0x5f8] sm:$0xf] %v816_v15 }
  0xd2   :  { %819 = vst [vmem:[#allocation2 + $0x5fc] sm:$0xff] %v818_v16   ;;  %823 = vst [vmem:[#allocation2 + $0x604] sm:$0xf] %v822_v17  ;;  %v824_v18 = vld [vmem:[%s14164_s2 + $0x604] sm:$0xf]  ;;  %v834_v23 = vld [vmem:[%s14164_s2 + $0x61c] sm:$0xff]  }
  0xd3   :  { %v826_v19 = vld [vmem:[%s14164_s2 + $0x614] sm:$0xf]  ;;  %v828_v20 = vld [vmem:[%s14164_s2 + $0x608] sm:$0xf]  ;;  %825 = vst [vmem:[#allocation2 + $0x608] sm:$0xf] %v824_v18 }
  0xd4   :  { %827 = vst [vmem:[#allocation2 + $0x60c] sm:$0xf] %v826_v19  ;;  %829 = vst [vmem:[#allocation2 + $0x610] sm:$0xf] %v828_v20  ;;  %v830_v21 = vld [vmem:[%s14164_s2 + $0x618] sm:$0xf] }
  0xd5   :  { %v832_v22 = vld [vmem:[%s14164_s2 + $0x60c] sm:$0xf]  ;;  %831 = vst [vmem:[#allocation2 + $0x614] sm:$0xf] %v830_v21  ;;  %835 = vst [vmem:[#allocation2 + $0x61c] sm:$0xff] %v834_v23   ;;  %v850_v30 = vld [vmem:[%s14164_s2 + $0x63c] sm:$0xff]  }
  0xd6   :  { %833 = vst [vmem:[#allocation2 + $0x618] sm:$0xf] %v832_v22  ;;  %v838_v24 = vld [vmem:[%s14164_s2 + $0x630] sm:$0xf]  ;;  %v840_v25 = vld [vmem:[%s14164_s2 + $0x624] sm:$0xf] }
  0xd7   :  { %v842_v26 = vld [vmem:[%s14164_s2 + $0x634] sm:$0xf]  ;;  %839 = vst [vmem:[#allocation2 + $0x624] sm:$0xf] %v838_v24  ;;  %841 = vst [vmem:[#allocation2 + $0x628] sm:$0xf] %v840_v25 }
  0xd8   :  { %843 = vst [vmem:[#allocation2 + $0x62c] sm:$0xf] %v842_v26  ;;  %v844_v27 = vld [vmem:[%s14164_s2 + $0x628] sm:$0xf]  ;;  %v846_v28 = vld [vmem:[%s14164_s2 + $0x638] sm:$0xf] }
  0xd9   :  { %v848_v29 = vld [vmem:[%s14164_s2 + $0x62c] sm:$0xf]  ;;  %845 = vst [vmem:[#allocation2 + $0x630] sm:$0xf] %v844_v27  ;;  %847 = vst [vmem:[#allocation2 + $0x634] sm:$0xf] %v846_v28 }
  0xda   :  { %849 = vst [vmem:[#allocation2 + $0x638] sm:$0xf] %v848_v29  ;;  %v854_v31 = vld [vmem:[%s14164_s2 + $0x650] sm:$0xf]  ;;  %v856_v32 = vld [vmem:[%s14164_s2 + $0x644] sm:$0xf] }
  0xdb   :  { %851 = vst [vmem:[#allocation2 + $0x63c] sm:$0xff] %v850_v30   ;;  %855 = vst [vmem:[#allocation2 + $0x644] sm:$0xf] %v854_v31  ;;  %v858_v33 = vld [vmem:[%s14164_s2 + $0x654] sm:$0xf]  ;;  %v866_v37 = vld [vmem:[%s14164_s2 + $0x65c] sm:$0xff]  }
  0xdc   :  { %857 = vst [vmem:[#allocation2 + $0x648] sm:$0xf] %v856_v32  ;;  %v860_v34 = vld [vmem:[%s14164_s2 + $0x648] sm:$0xf]  ;;  %v862_v35 = vld [vmem:[%s14164_s2 + $0x658] sm:$0xf] }
  0xdd   :  { %859 = vst [vmem:[#allocation2 + $0x64c] sm:$0xf] %v858_v33  ;;  %861 = vst [vmem:[#allocation2 + $0x650] sm:$0xf] %v860_v34  ;;  %v864_v36 = vld [vmem:[%s14164_s2 + $0x64c] sm:$0xf] }
  0xde   :  { %863 = vst [vmem:[#allocation2 + $0x654] sm:$0xf] %v862_v35  ;;  %v870_v38 = vld [vmem:[%s14164_s2 + $0x670] sm:$0xf]  ;;  %865 = vst [vmem:[#allocation2 + $0x658] sm:$0xf] %v864_v36 }
  0xdf   :  { %867 = vst [vmem:[#allocation2 + $0x65c] sm:$0xff] %v866_v37   ;;  %871 = vst [vmem:[#allocation2 + $0x664] sm:$0xf] %v870_v38  ;;  %v872_v39 = vld [vmem:[%s14164_s2 + $0x664] sm:$0xf]  ;;  %v882_v44 = vld [vmem:[%s14164_s2 + $0x67c] sm:$0xff]  }
  0xe0   :  { %v874_v40 = vld [vmem:[%s14164_s2 + $0x674] sm:$0xf]  ;;  %v876_v41 = vld [vmem:[%s14164_s2 + $0x668] sm:$0xf]  ;;  %873 = vst [vmem:[#allocation2 + $0x668] sm:$0xf] %v872_v39 }
  0xe1   :  { %875 = vst [vmem:[#allocation2 + $0x66c] sm:$0xf] %v874_v40  ;;  %877 = vst [vmem:[#allocation2 + $0x670] sm:$0xf] %v876_v41  ;;  %v878_v42 = vld [vmem:[%s14164_s2 + $0x678] sm:$0xf] }
  0xe2   :  { %v880_v43 = vld [vmem:[%s14164_s2 + $0x66c] sm:$0xf]  ;;  %879 = vst [vmem:[#allocation2 + $0x674] sm:$0xf] %v878_v42  ;;  %883 = vst [vmem:[#allocation2 + $0x67c] sm:$0xff] %v882_v44   ;;  %v898_v51 = vld [vmem:[%s14164_s2 + $0x69c] sm:$0xff]  }
  0xe3   :  { %881 = vst [vmem:[#allocation2 + $0x678] sm:$0xf] %v880_v43  ;;  %v886_v45 = vld [vmem:[%s14164_s2 + $0x690] sm:$0xf]  ;;  %v888_v46 = vld [vmem:[%s14164_s2 + $0x684] sm:$0xf] }
  0xe4   :  { %v890_v47 = vld [vmem:[%s14164_s2 + $0x694] sm:$0xf]  ;;  %887 = vst [vmem:[#allocation2 + $0x684] sm:$0xf] %v886_v45  ;;  %889 = vst [vmem:[#allocation2 + $0x688] sm:$0xf] %v888_v46 }
  0xe5   :  { %891 = vst [vmem:[#allocation2 + $0x68c] sm:$0xf] %v890_v47  ;;  %v892_v48 = vld [vmem:[%s14164_s2 + $0x688] sm:$0xf]  ;;  %v894_v49 = vld [vmem:[%s14164_s2 + $0x698] sm:$0xf] }
  0xe6   :  { %v896_v50 = vld [vmem:[%s14164_s2 + $0x68c] sm:$0xf]  ;;  %893 = vst [vmem:[#allocation2 + $0x690] sm:$0xf] %v892_v48  ;;  %895 = vst [vmem:[#allocation2 + $0x694] sm:$0xf] %v894_v49 }
  0xe7   :  { %897 = vst [vmem:[#allocation2 + $0x698] sm:$0xf] %v896_v50  ;;  %v902_v52 = vld [vmem:[%s14164_s2 + $0x6b0] sm:$0xf]  ;;  %v904_v53 = vld [vmem:[%s14164_s2 + $0x6a4] sm:$0xf] }
  0xe8   :  { %899 = vst [vmem:[#allocation2 + $0x69c] sm:$0xff] %v898_v51   ;;  %903 = vst [vmem:[#allocation2 + $0x6a4] sm:$0xf] %v902_v52  ;;  %v906_v54 = vld [vmem:[%s14164_s2 + $0x6b4] sm:$0xf]  ;;  %v914_v58 = vld [vmem:[%s14164_s2 + $0x6bc] sm:$0xff]  }
  0xe9   :  { %905 = vst [vmem:[#allocation2 + $0x6a8] sm:$0xf] %v904_v53  ;;  %v908_v55 = vld [vmem:[%s14164_s2 + $0x6a8] sm:$0xf]  ;;  %v910_v56 = vld [vmem:[%s14164_s2 + $0x6b8] sm:$0xf] }
  0xea   :  { %907 = vst [vmem:[#allocation2 + $0x6ac] sm:$0xf] %v906_v54  ;;  %909 = vst [vmem:[#allocation2 + $0x6b0] sm:$0xf] %v908_v55  ;;  %v912_v57 = vld [vmem:[%s14164_s2 + $0x6ac] sm:$0xf] }
  0xeb   :  { %911 = vst [vmem:[#allocation2 + $0x6b4] sm:$0xf] %v910_v56  ;;  %v918_v59 = vld [vmem:[%s14164_s2 + $0x6d0] sm:$0xf]  ;;  %913 = vst [vmem:[#allocation2 + $0x6b8] sm:$0xf] %v912_v57 }
  0xec   :  { %915 = vst [vmem:[#allocation2 + $0x6bc] sm:$0xff] %v914_v58   ;;  %919 = vst [vmem:[#allocation2 + $0x6c4] sm:$0xf] %v918_v59  ;;  %v920_v60 = vld [vmem:[%s14164_s2 + $0x6c4] sm:$0xf]  ;;  %v930_v1 = vld [vmem:[%s14164_s2 + $0x6dc] sm:$0xff]  }
  0xed   :  { %v922_v61 = vld [vmem:[%s14164_s2 + $0x6d4] sm:$0xf]  ;;  %v924_v62 = vld [vmem:[%s14164_s2 + $0x6c8] sm:$0xf]  ;;  %921 = vst [vmem:[#allocation2 + $0x6c8] sm:$0xf] %v920_v60 }
  0xee   :  { %923 = vst [vmem:[#allocation2 + $0x6cc] sm:$0xf] %v922_v61  ;;  %925 = vst [vmem:[#allocation2 + $0x6d0] sm:$0xf] %v924_v62  ;;  %v926_v63 = vld [vmem:[%s14164_s2 + $0x6d8] sm:$0xf] }
  0xef   :  { %v928_v0 = vld [vmem:[%s14164_s2 + $0x6cc] sm:$0xf]  ;;  %927 = vst [vmem:[#allocation2 + $0x6d4] sm:$0xf] %v926_v63  ;;  %931 = vst [vmem:[#allocation2 + $0x6dc] sm:$0xff] %v930_v1   ;;  %v946_v8 = vld [vmem:[%s14164_s2 + $0x6fc] sm:$0xff]  }
  0xf0   :  { %929 = vst [vmem:[#allocation2 + $0x6d8] sm:$0xf] %v928_v0  ;;  %v934_v2 = vld [vmem:[%s14164_s2 + $0x6f0] sm:$0xf]  ;;  %v936_v3 = vld [vmem:[%s14164_s2 + $0x6e4] sm:$0xf] }
  0xf1   :  { %v938_v4 = vld [vmem:[%s14164_s2 + $0x6f4] sm:$0xf]  ;;  %935 = vst [vmem:[#allocation2 + $0x6e4] sm:$0xf] %v934_v2  ;;  %937 = vst [vmem:[#allocation2 + $0x6e8] sm:$0xf] %v936_v3 }
  0xf2   :  { %939 = vst [vmem:[#allocation2 + $0x6ec] sm:$0xf] %v938_v4  ;;  %v940_v5 = vld [vmem:[%s14164_s2 + $0x6e8] sm:$0xf]  ;;  %v942_v6 = vld [vmem:[%s14164_s2 + $0x6f8] sm:$0xf] }
  0xf3   :  { %v944_v7 = vld [vmem:[%s14164_s2 + $0x6ec] sm:$0xf]  ;;  %941 = vst [vmem:[#allocation2 + $0x6f0] sm:$0xf] %v940_v5  ;;  %943 = vst [vmem:[#allocation2 + $0x6f4] sm:$0xf] %v942_v6 }
  0xf4   :  { %945 = vst [vmem:[#allocation2 + $0x6f8] sm:$0xf] %v944_v7  ;;  %v950_v9 = vld [vmem:[%s14164_s2 + $0x710] sm:$0xf]  ;;  %v952_v10 = vld [vmem:[%s14164_s2 + $0x704] sm:$0xf] }
  0xf5   :  { %947 = vst [vmem:[#allocation2 + $0x6fc] sm:$0xff] %v946_v8   ;;  %951 = vst [vmem:[#allocation2 + $0x704] sm:$0xf] %v950_v9  ;;  %v954_v11 = vld [vmem:[%s14164_s2 + $0x714] sm:$0xf]  ;;  %v962_v15 = vld [vmem:[%s14164_s2 + $0x71c] sm:$0xff]  }
  0xf6   :  { %953 = vst [vmem:[#allocation2 + $0x708] sm:$0xf] %v952_v10  ;;  %v956_v12 = vld [vmem:[%s14164_s2 + $0x708] sm:$0xf]  ;;  %v958_v13 = vld [vmem:[%s14164_s2 + $0x718] sm:$0xf] }
  0xf7   :  { %955 = vst [vmem:[#allocation2 + $0x70c] sm:$0xf] %v954_v11  ;;  %957 = vst [vmem:[#allocation2 + $0x710] sm:$0xf] %v956_v12  ;;  %v960_v14 = vld [vmem:[%s14164_s2 + $0x70c] sm:$0xf] }
  0xf8   :  { %959 = vst [vmem:[#allocation2 + $0x714] sm:$0xf] %v958_v13  ;;  %v966_v16 = vld [vmem:[%s14164_s2 + $0x730] sm:$0xf]  ;;  %961 = vst [vmem:[#allocation2 + $0x718] sm:$0xf] %v960_v14 }
  0xf9   :  { %963 = vst [vmem:[#allocation2 + $0x71c] sm:$0xff] %v962_v15   ;;  %967 = vst [vmem:[#allocation2 + $0x724] sm:$0xf] %v966_v16  ;;  %v968_v17 = vld [vmem:[%s14164_s2 + $0x724] sm:$0xf]  ;;  %v978_v22 = vld [vmem:[%s14164_s2 + $0x73c] sm:$0xff]  }
  0xfa   :  { %v970_v18 = vld [vmem:[%s14164_s2 + $0x734] sm:$0xf]  ;;  %v972_v19 = vld [vmem:[%s14164_s2 + $0x728] sm:$0xf]  ;;  %969 = vst [vmem:[#allocation2 + $0x728] sm:$0xf] %v968_v17 }
  0xfb   :  { %971 = vst [vmem:[#allocation2 + $0x72c] sm:$0xf] %v970_v18  ;;  %973 = vst [vmem:[#allocation2 + $0x730] sm:$0xf] %v972_v19  ;;  %v974_v20 = vld [vmem:[%s14164_s2 + $0x738] sm:$0xf] }
  0xfc   :  { %v976_v21 = vld [vmem:[%s14164_s2 + $0x72c] sm:$0xf]  ;;  %975 = vst [vmem:[#allocation2 + $0x734] sm:$0xf] %v974_v20  ;;  %979 = vst [vmem:[#allocation2 + $0x73c] sm:$0xff] %v978_v22   ;;  %v994_v29 = vld [vmem:[%s14164_s2 + $0x75c] sm:$0xff]  }
  0xfd   :  { %977 = vst [vmem:[#allocation2 + $0x738] sm:$0xf] %v976_v21  ;;  %v982_v23 = vld [vmem:[%s14164_s2 + $0x750] sm:$0xf]  ;;  %v984_v24 = vld [vmem:[%s14164_s2 + $0x744] sm:$0xf] }
  0xfe   :  { %v986_v25 = vld [vmem:[%s14164_s2 + $0x754] sm:$0xf]  ;;  %983 = vst [vmem:[#allocation2 + $0x744] sm:$0xf] %v982_v23  ;;  %985 = vst [vmem:[#allocation2 + $0x748] sm:$0xf] %v984_v24 }
  0xff   :  { %987 = vst [vmem:[#allocation2 + $0x74c] sm:$0xf] %v986_v25  ;;  %v988_v26 = vld [vmem:[%s14164_s2 + $0x748] sm:$0xf]  ;;  %v990_v27 = vld [vmem:[%s14164_s2 + $0x758] sm:$0xf] }
 0x100   :  { %v992_v28 = vld [vmem:[%s14164_s2 + $0x74c] sm:$0xf]  ;;  %989 = vst [vmem:[#allocation2 + $0x750] sm:$0xf] %v988_v26  ;;  %991 = vst [vmem:[#allocation2 + $0x754] sm:$0xf] %v990_v27 }
 0x101   :  { %993 = vst [vmem:[#allocation2 + $0x758] sm:$0xf] %v992_v28  ;;  %v998_v30 = vld [vmem:[%s14164_s2 + $0x770] sm:$0xf]  ;;  %v1000_v31 = vld [vmem:[%s14164_s2 + $0x764] sm:$0xf] }
 0x102   :  { %995 = vst [vmem:[#allocation2 + $0x75c] sm:$0xff] %v994_v29   ;;  %999 = vst [vmem:[#allocation2 + $0x764] sm:$0xf] %v998_v30  ;;  %v1002_v32 = vld [vmem:[%s14164_s2 + $0x774] sm:$0xf]  ;;  %v1010_v36 = vld [vmem:[%s14164_s2 + $0x77c] sm:$0xff]  }
 0x103   :  { %1001 = vst [vmem:[#allocation2 + $0x768] sm:$0xf] %v1000_v31  ;;  %v1004_v33 = vld [vmem:[%s14164_s2 + $0x768] sm:$0xf]  ;;  %v1006_v34 = vld [vmem:[%s14164_s2 + $0x778] sm:$0xf] }
 0x104   :  { %1003 = vst [vmem:[#allocation2 + $0x76c] sm:$0xf] %v1002_v32  ;;  %1005 = vst [vmem:[#allocation2 + $0x770] sm:$0xf] %v1004_v33  ;;  %v1008_v35 = vld [vmem:[%s14164_s2 + $0x76c] sm:$0xf] }
 0x105   :  { %1007 = vst [vmem:[#allocation2 + $0x774] sm:$0xf] %v1006_v34  ;;  %v1014_v37 = vld [vmem:[%s14164_s2 + $0x790] sm:$0xf]  ;;  %1009 = vst [vmem:[#allocation2 + $0x778] sm:$0xf] %v1008_v35 }
 0x106   :  { %1011 = vst [vmem:[#allocation2 + $0x77c] sm:$0xff] %v1010_v36   ;;  %1015 = vst [vmem:[#allocation2 + $0x784] sm:$0xf] %v1014_v37  ;;  %v1016_v38 = vld [vmem:[%s14164_s2 + $0x784] sm:$0xf]  ;;  %v1026_v43 = vld [vmem:[%s14164_s2 + $0x79c] sm:$0xff]  }
 0x107   :  { %v1018_v39 = vld [vmem:[%s14164_s2 + $0x794] sm:$0xf]  ;;  %v1020_v40 = vld [vmem:[%s14164_s2 + $0x788] sm:$0xf]  ;;  %1017 = vst [vmem:[#allocation2 + $0x788] sm:$0xf] %v1016_v38 }
 0x108   :  { %1019 = vst [vmem:[#allocation2 + $0x78c] sm:$0xf] %v1018_v39  ;;  %1021 = vst [vmem:[#allocation2 + $0x790] sm:$0xf] %v1020_v40  ;;  %v1022_v41 = vld [vmem:[%s14164_s2 + $0x798] sm:$0xf] }
 0x109   :  { %v1024_v42 = vld [vmem:[%s14164_s2 + $0x78c] sm:$0xf]  ;;  %1023 = vst [vmem:[#allocation2 + $0x794] sm:$0xf] %v1022_v41  ;;  %1027 = vst [vmem:[#allocation2 + $0x79c] sm:$0xff] %v1026_v43   ;;  %v1042_v50 = vld [vmem:[%s14164_s2 + $0x7bc] sm:$0xff]  }
 0x10a   :  { %1025 = vst [vmem:[#allocation2 + $0x798] sm:$0xf] %v1024_v42  ;;  %v1030_v44 = vld [vmem:[%s14164_s2 + $0x7b0] sm:$0xf]  ;;  %v1032_v45 = vld [vmem:[%s14164_s2 + $0x7a4] sm:$0xf] }
 0x10b   :  { %v1034_v46 = vld [vmem:[%s14164_s2 + $0x7b4] sm:$0xf]  ;;  %1031 = vst [vmem:[#allocation2 + $0x7a4] sm:$0xf] %v1030_v44  ;;  %1033 = vst [vmem:[#allocation2 + $0x7a8] sm:$0xf] %v1032_v45 }
 0x10c   :  { %1035 = vst [vmem:[#allocation2 + $0x7ac] sm:$0xf] %v1034_v46  ;;  %v1036_v47 = vld [vmem:[%s14164_s2 + $0x7a8] sm:$0xf]  ;;  %v1038_v48 = vld [vmem:[%s14164_s2 + $0x7b8] sm:$0xf] }
 0x10d   :  { %v1040_v49 = vld [vmem:[%s14164_s2 + $0x7ac] sm:$0xf]  ;;  %1037 = vst [vmem:[#allocation2 + $0x7b0] sm:$0xf] %v1036_v47  ;;  %1039 = vst [vmem:[#allocation2 + $0x7b4] sm:$0xf] %v1038_v48 }
 0x10e   :  { %1041 = vst [vmem:[#allocation2 + $0x7b8] sm:$0xf] %v1040_v49  ;;  %v1046_v51 = vld [vmem:[%s14164_s2 + $0x7d0] sm:$0xf]  ;;  %v1048_v52 = vld [vmem:[%s14164_s2 + $0x7c4] sm:$0xf] }
 0x10f   :  { %1043 = vst [vmem:[#allocation2 + $0x7bc] sm:$0xff] %v1042_v50   ;;  %1047 = vst [vmem:[#allocation2 + $0x7c4] sm:$0xf] %v1046_v51  ;;  %v1050_v53 = vld [vmem:[%s14164_s2 + $0x7d4] sm:$0xf]  ;;  %v1058_v57 = vld [vmem:[%s14164_s2 + $0x7dc] sm:$0xff]  }
 0x110   :  { %1049 = vst [vmem:[#allocation2 + $0x7c8] sm:$0xf] %v1048_v52  ;;  %v1052_v54 = vld [vmem:[%s14164_s2 + $0x7c8] sm:$0xf]  ;;  %v1054_v55 = vld [vmem:[%s14164_s2 + $0x7d8] sm:$0xf] }
 0x111   :  { %1051 = vst [vmem:[#allocation2 + $0x7cc] sm:$0xf] %v1050_v53  ;;  %1053 = vst [vmem:[#allocation2 + $0x7d0] sm:$0xf] %v1052_v54  ;;  %v1056_v56 = vld [vmem:[%s14164_s2 + $0x7cc] sm:$0xf] }
 0x112   :  { %1055 = vst [vmem:[#allocation2 + $0x7d4] sm:$0xf] %v1054_v55  ;;  %v1062_v58 = vld [vmem:[%s14164_s2 + $0x7f0] sm:$0xf]  ;;  %1057 = vst [vmem:[#allocation2 + $0x7d8] sm:$0xf] %v1056_v56 }
 0x113   :  { %1059 = vst [vmem:[#allocation2 + $0x7dc] sm:$0xff] %v1058_v57   ;;  %1063 = vst [vmem:[#allocation2 + $0x7e4] sm:$0xf] %v1062_v58  ;;  %v1064_v59 = vld [vmem:[%s14164_s2 + $0x7e4] sm:$0xf] }
 0x114   :  { %v1066_v60 = vld [vmem:[%s14164_s2 + $0x7f4] sm:$0xf]  ;;  %v1068_v61 = vld [vmem:[%s14164_s2 + $0x7e8] sm:$0xf]  ;;  %1065 = vst [vmem:[#allocation2 + $0x7e8] sm:$0xf] %v1064_v59 }
 0x115   :  { %1067 = vst [vmem:[#allocation2 + $0x7ec] sm:$0xf] %v1066_v60  ;;  %1069 = vst [vmem:[#allocation2 + $0x7f0] sm:$0xf] %v1068_v61  ;;  %v1070_v62 = vld [vmem:[%s14164_s2 + $0x7f8] sm:$0xf] }
 0x116   :  { %v1072_v63 = vld [vmem:[%s14164_s2 + $0x7ec] sm:$0xf]  ;;  %v1074_v0 = vld [vmem:[%s14164_s2 + $0x7fc] sm:$0xf]  ;;  %1071 = vst [vmem:[#allocation2 + $0x7f4] sm:$0xf] %v1070_v62 }
 0x117   :  { %1073 = vst [vmem:[#allocation2 + $0x7f8] sm:$0xf] %v1072_v63  ;;  %1075 = vst [vmem:[#allocation2 + $0x7fc] sm:$0xf] %v1074_v0 }
 0x118   :  { %4211 = vsyncadd [#allocation3], 32768  ;;  %v9976_v1 = vld [vmem:[%s14165_s3] sm:$0xff]   ;;  %v14173_v2 = vmov 0.0   ;;  %vm10136_vm0 = vmmov 0   ;;  %v9979_v5 = vld [vmem:[%s14165_s3 + $0x8] sm:$0xff]  }
 0x119   :  { %9753 = vmatprep.subr.bf16.mxu0 %v14173_v2  ;;  %v9977_v3 = vld [vmem:[%s14165_s3 + $0x40] sm:$0xff]   ;;  %9769 = vmatprep.mubr.msk.bf16.mxu0 %vm10136_vm0, %v14173_v2  ;;  %v9980_v6 = vld [vmem:[%s14165_s3 + $0x48] sm:$0xff]   ;;  %v9982_v8 = vld [vmem:[%s14165_s3 + $0x10] sm:$0xff]   ;;  %vm4705_vm1 = vcmask 130048   ;;  %s10138_s12 = smov 16   ;;  %s10140_s14 = smov 64  }
 0x11a   :  { %9754 = vmatpush3.bf16.msra.mxu0 %v9976_v1  ;;  %v9978_v4 = vld [vmem:[%s14165_s3] sm:$0xff]   ;;  %9225 = vmatprep.subr.bf16.mxu1 %v9977_v3  ;;  %v9981_v7 = vld [vmem:[%s14165_s3 + $0x8] sm:$0xff]   ;;  %v9983_v9 = vld [vmem:[%s14165_s3 + $0x50] sm:$0xff]   ;;  %s10141_s15 = smov 80   ;;  %s10142_s16 = smov 96   ;;  %vm14205_vm2 = vcmask 261120  }
 0x11b   :  { %9755 = vmatprep.subr.bf16.mxu0 %v14173_v2  ;;  %9226 = vmatpush3.bf16.msra.mxu1 %v9978_v4  ;;  %v9984_v10 = vld [vmem:[%s14165_s3 + $0x10] sm:$0xff]   ;;  %v9985_v11 = vld [vmem:[%s14165_s3 + $0x18] sm:$0xff]   ;;  %v9988_v14 = vld [vmem:[%s14165_s3 + $0x20] sm:$0xff]   ;;  %s10143_s18 = smov 112   ;;  %vm6968_vm3 = vcmask 392192   ;;  %vm14204_vm4 = vcmask 523264  }
 0x11c   :  { %9227 = vmatprep.subr.bf16.mxu1 %v9980_v6  ;;  %v9986_v12 = vld [vmem:[%s14165_s3 + $0x58] sm:$0xff]   ;;  %v9989_v15 = vld [vmem:[%s14165_s3 + $0x60] sm:$0xff]   ;;  %v9991_v17 = vld [vmem:[%s14165_s3 + $0x28] sm:$0xff]   ;;  %vm6972_vm5 = vcmask 654336   ;;  %vm14203_vm6 = vcmask 785408   ;;  %vm6976_vm7 = vcmask 916480  }
 0x11d   :  { %v9987_v13 = vld [vmem:[%s14165_s3 + $0x18] sm:$0xff]   ;;  %v9990_v16 = vld [vmem:[%s14165_s3 + $0x20] sm:$0xff]   ;;  %v9992_v18 = vld [vmem:[%s14165_s3 + $0x68] sm:$0xff]  }
 0x11e   :  { %9756 = vmatpush3.bf16.msra.mxu0 %v9979_v5  ;;  %v9993_v19 = vld [vmem:[%s14165_s3 + $0x28] sm:$0xff]   ;;  %v9994_v20 = vld [vmem:[%s14165_s3 + $0x30] sm:$0xff]   ;;  %v9997_v23 = vld [vmem:[%s14165_s3 + $0x38] sm:$0xff]  }
 0x11f   :  { %9757 = vmatprep.subr.bf16.mxu0 %v14173_v2  ;;  %9228 = vmatpush3.bf16.msra.mxu1 %v9981_v7  ;;  %v9995_v21 = vld [vmem:[%s14165_s3 + $0x70] sm:$0xff]   ;;  %v5019_v24 = vld [vmem:[%s14163_s1] sm:$0xff]  ;;  %v9998_v26 = vld [vmem:[%s14165_s3 + $0x78] sm:$0xff]  }
 0x120   :  { %9229 = vmatprep.subr.bf16.mxu1 %v9983_v9  ;;  %v9996_v22 = vld [vmem:[%s14165_s3 + $0x30] sm:$0xff]   ;;  %v5023_v25 = vld [vmem:[%s14163_s1 + $0x20] sm:$0xff]  ;;  %v9999_v28 = vld [vmem:[%s14165_s3 + $0x38] sm:$0xff]  }
 0x121   :  { %v8966_v27 = vcombine.high %v5019_v24, %v5023_v25  ;;  %v10000_v29 = vld [vmem:[%s14162_s0] sm:$0xff]   ;;  %v8965_v32 = vcombine.low %v5019_v24, %v5023_v25  ;;  %v10001_v34 = vld [vmem:[%s14162_s0 + $0x8] sm:$0xff]   ;;  %v10002_v39 = vld [vmem:[%s14162_s0 + $0x10] sm:$0xff]  }
 0x122   :  { %9758 = vmatpush3.bf16.msra.mxu0 %v9982_v8  ;;  %v5027_v30 = vld [vmem:[%s14163_s1 + $0x40] sm:$0xff]  ;;  %v10015_v45 = vld [vmem:[%s14165_s3 + $0xc8] sm:$0xff]   ;;  %v10003_v48 = vld [vmem:[%s14162_s0 + $0x18] sm:$0xff]  }
 0x123   :  { %9759 = vmatprep.subr.bf16.mxu0 %v14173_v2  ;;  %9230 = vmatpush3.bf16.msra.mxu1 %v9984_v10  ;;  %v5031_v31 = vld [vmem:[%s14163_s1 + $0x60] sm:$0xff]  ;;  %v10016_v47 = vld [vmem:[%s14165_s3 + $0x88] sm:$0xff]   ;;  %v10018_v51 = vld [vmem:[%s14165_s3 + $0xd0] sm:$0xff]  }
 0x124   :  { %9231 = vmatprep.subr.bf16.mxu1 %v9986_v12  ;;  %6331 = vmatprep.mubr.bf16.mxu1 %v8966_v27  ;;  %v8974_v33 = vcombine.high %v5027_v30, %v5031_v31  ;;  %v5035_v35 = vld [vmem:[%s14163_s1 + $0x80] sm:$0xff]  ;;  %v8973_v37 = vcombine.low %v5027_v30, %v5031_v31  ;;  %v10019_v52 = vld [vmem:[%s14165_s3 + $0x90] sm:$0xff]   ;;  %v10020_v53 = vld [vmem:[%s14165_s3 + $0xd8] sm:$0xff]  }
 0x125   :  { %v5039_v36 = vld [vmem:[%s14163_s1 + $0xa0] sm:$0xff]  ;;  %v10021_v56 = vld [vmem:[%s14165_s3 + $0x98] sm:$0xff]   ;;  %v10025_v62 = vld [vmem:[%s14165_s3 + $0xe8] sm:$0xff]  }
 0x126   :  { %9760 = vmatpush3.bf16.msra.mxu0 %v9985_v11  ;;  %v8982_v38 = vcombine.high %v5035_v35, %v5039_v36  ;;  %v5043_v40 = vld [vmem:[%s14163_s1 + $0xc0] sm:$0xff]  ;;  %v8981_v44 = vcombine.low %v5035_v35, %v5039_v36  ;;  %v10026_v1 = vld [vmem:[%s14165_s3 + $0xa8] sm:$0xff]   ;;  %v10028_v3 = vld [vmem:[%s14165_s3 + $0xf0] sm:$0xff]  }
 0x127   :  { %9761 = vmatprep.subr.bf16.mxu0 %v14173_v2  ;;  %9232 = vmatpush3.bf16.msra.mxu1 %v9987_v13  ;;  %v5047_v41 = vld [vmem:[%s14163_s1 + $0xe0] sm:$0xff]  ;;  %v10005_v4 = vld [vmem:[%s14162_s0 + $0x28] sm:$0xff]   ;;  %v10029_v7 = vld [vmem:[%s14165_s3 + $0xb0] sm:$0xff]  }
 0x128   :  { %9233 = vmatprep.subr.bf16.mxu1 %v9989_v15  ;;  %v10013_v42 = vld [vmem:[%s14165_s3 + $0xc0] sm:$0xff]   ;;  %v8990_v46 = vcombine.high %v5043_v40, %v5047_v41  ;;  %v8989_v54 = vcombine.low %v5043_v40, %v5047_v41  ;;  %v10030_v8 = vld [vmem:[%s14165_s3 + $0xf8] sm:$0xff]   ;;  %v10006_v12 = vld [vmem:[%s14162_s0 + $0x30] sm:$0xff]  }
 0x129   :  { %v10014_v43 = vld [vmem:[%s14165_s3 + $0x80] sm:$0xff]   ;;  %v10031_v11 = vld [vmem:[%s14165_s3 + $0xb8] sm:$0xff]   ;;  %v10044_v24 = vld [vmem:[%s14165_s3 + $0x110] sm:$0xff]  }
 0x12a   :  { %9762 = vmatpush3.bf16.msra.mxu0 %v9988_v14  ;;  %v5051_v49 = vld [vmem:[%s14163_s1 + $0x100] sm:$0xff]  ;;  %v10045_v25 = vld [vmem:[%s14165_s3 + $0x158] sm:$0xff]   ;;  %v10050_v35 = vld [vmem:[%s14165_s3 + $0x168] sm:$0xff]  }
 0x12b   :  { %9763 = vmatprep.subr.bf16.mxu0 %v14173_v2  ;;  %9234 = vmatpush3.bf16.msra.mxu1 %v9990_v16  ;;  %v5055_v50 = vld [vmem:[%s14163_s1 + $0x120] sm:$0xff]  ;;  %v10009_v40 = vld [vmem:[%s14162_s0 + $0x48] sm:$0xff]   ;;  %v10054_v41 = vld [vmem:[%s14165_s3 + $0x130] sm:$0xff]  }
 0x12c   :  { %9235 = vmatprep.subr.bf16.mxu1 %v9992_v18  ;;  %v8998_v55 = vcombine.high %v5051_v49, %v5055_v50  ;;  %v10023_v57 = vld [vmem:[%s14165_s3 + $0xe0] sm:$0xff]   ;;  %v8997_v63 = vcombine.low %v5051_v49, %v5055_v50 }
 0x12d   :  { %v10004_v58 = vld [vmem:[%s14162_s0 + $0x20] sm:$0xff]  }
 0x12e   :  { %9764 = vmatpush3.bf16.msra.mxu0 %v9991_v17  ;;  %v10024_v59 = vld [vmem:[%s14165_s3 + $0xa0] sm:$0xff]   ;;  %v10040_v17 = vld [vmem:[%s14165_s3 + $0x148] sm:$0xff]  }
 0x12f   :  { %9765 = vmatprep.subr.bf16.mxu0 %v14173_v2  ;;  %9236 = vmatpush3.bf16.msra.mxu1 %v9993_v19  ;;  %v5059_v60 = vld [vmem:[%s14163_s1 + $0x140] sm:$0xff]  ;;  %v10041_v19 = vld [vmem:[%s14165_s3 + $0x108] sm:$0xff]  }
 0x130   :  { %9237 = vmatprep.subr.bf16.mxu1 %v9995_v21  ;;  %v5063_v61 = vld [vmem:[%s14163_s1 + $0x160] sm:$0xff]  ;;  %v10007_v21 = vld [vmem:[%s14162_s0 + $0x38] sm:$0xff]  }
 0x131   :  { %v9006_v0 = vcombine.high %v5059_v60, %v5063_v61  ;;  %v5067_v5 = vld [vmem:[%s14163_s1 + $0x180] sm:$0xff]  ;;  %v9005_v9 = vcombine.low %v5059_v60, %v5063_v61 }
 0x132   :  { %9766 = vmatpush3.bf16.msra.mxu0 %v9994_v20  ;;  %v5071_v6 = vld [vmem:[%s14163_s1 + $0x1a0] sm:$0xff] }
 0x133   :  { %9767 = vmatprep.subr.bf16.mxu0 %v14173_v2  ;;  %9238 = vmatpush3.bf16.msra.mxu1 %v9996_v22  ;;  %v9014_v10 = vcombine.high %v5067_v5, %v5071_v6  ;;  %v5075_v13 = vld [vmem:[%s14163_s1 + $0x1c0] sm:$0xff]  ;;  %v9013_v18 = vcombine.low %v5067_v5, %v5071_v6  ;;  %v10043_v22 = vld [vmem:[%s14165_s3 + $0x150] sm:$0xff]  }
 0x134   :  { %9239 = vmatprep.subr.bf16.mxu1 %v9998_v26  ;;  %v5079_v14 = vld [vmem:[%s14163_s1 + $0x1e0] sm:$0xff]  ;;  %v10022_v6 = vld [vmem:[%s14162_s0 + $0x70] sm:$0xff]  }
 0x135   :  { %v10038_v15 = vld [vmem:[%s14165_s3 + $0x140] sm:$0xff]   ;;  %v9022_v20 = vcombine.high %v5075_v13, %v5079_v14  ;;  %v9021_v27 = vcombine.low %v5075_v13, %v5079_v14  ;;  %v5024_v13 = vld [vmem:[%s14163_s1 + $0x28] sm:$0xff] }
 0x136   :  { %9768 = vmatpush3.bf16.msra.mxu0 %v9997_v23  ;;  %v10039_v16 = vld [vmem:[%s14165_s3 + $0x100] sm:$0xff]  }
 0x137   :  { %9240 = vmatpush3.bf16.msra.mxu1 %v9999_v28  ;;  %9449 = vmatprep.subr.bf16.mxu0 %v10038_v15  ;;  %v5083_v23 = vld [vmem:[%s14163_s1 + $0x200] sm:$0xff]  ;;  %v10046_v28 = vld [vmem:[%s14165_s3 + $0x118] sm:$0xff]  }
 0x138   :  { %9337 = vmatprep.subr.bf16.mxu1 %v10013_v42  ;;  %v5087_v26 = vld [vmem:[%s14163_s1 + $0x220] sm:$0xff] }
 0x139   :  { %9770 = vmatmul.mubr.bf16.vlgmr.msra.gmra.mrb[0].mxu0 %v10000_v29  ;;  %v9030_v29 = vcombine.high %v5083_v23, %v5087_v26  ;;  %v10048_v30 = vld [vmem:[%s14165_s3 + $0x160] sm:$0xff]   ;;  %v9029_v36 = vcombine.low %v5083_v23, %v5087_v26  ;;  %v10033_v23 = vld [vmem:[%s14162_s0 + $0x88] sm:$0xff]  }
 0x13a   :  { %9773 = vmatprep.mubr.msk.bf16.mxu0 %vm10136_vm0, %v14173_v2  ;;  %6332 = vmatmul.mubr.bf16.vlgmr.msra.gmra.mrb[0].mxu1 %v8965_v32  ;;  %v10008_v31 = vld [vmem:[%s14162_s0 + $0x40] sm:$0xff]   ;;  %v5040_v26 = vld [vmem:[%s14163_s1 + $0xa8] sm:$0xff] }
 0x13b   :  { %6339 = vmatprep.mubr.bf16.mxu1 %v8974_v33  ;;  %9338 = vmatpush3.bf16.msra.mxu1 %v10014_v43  ;;  %v5091_v32 = vld [vmem:[%s14163_s1 + $0x240] sm:$0xff] }
 0x13c   :  { %9339 = vmatprep.subr.bf16.mxu1 %v10015_v45  ;;  %9450 = vmatpush3.bf16.msra.mxu0 %v10039_v16  ;;  %v5095_v33 = vld [vmem:[%s14163_s1 + $0x260] sm:$0xff]  ;;  %v10056_v45 = vld [vmem:[%s14165_s3 + $0x138] sm:$0xff]  }
 0x13d   :  { %9451 = vmatprep.subr.bf16.mxu0 %v10040_v17  ;;  %v5099_v42 = vld [vmem:[%s14163_s1 + $0x280] sm:$0xff]  ;;  %v5028_v17 = vld [vmem:[%s14163_s1 + $0x48] sm:$0xff] }
 0x13e   :  { %v5103_v43 = vld [vmem:[%s14163_s1 + $0x2a0] sm:$0xff] }
 0x13f   :  { %9340 = vmatpush3.bf16.msra.mxu1 %v10016_v47  ;;  %v9046_v47 = vcombine.high %v5099_v42, %v5103_v43  ;;  %v5107_v49 = vld [vmem:[%s14163_s1 + $0x2c0] sm:$0xff] }
 0x140   :  { %9341 = vmatprep.subr.bf16.mxu1 %v10018_v51  ;;  %9452 = vmatpush3.bf16.msra.mxu0 %v10041_v19  ;;  %v5111_v50 = vld [vmem:[%s14163_s1 + $0x2e0] sm:$0xff]  ;;  %v9045_v51 = vcombine.low %v5099_v42, %v5103_v43  ;;  %v10068_v42 = vld [vmem:[%s14165_s3 + $0x1a8] sm:$0xff]  }
 0x141   :  { %9774 = vmatmul.mubr.bf16.gmra.mrb[4].mxu0 %v10001_v34  ;;  %9453 = vmatprep.subr.bf16.mxu0 %v10043_v22  ;;  %v10049_v34 = vld [vmem:[%s14165_s3 + $0x120] sm:$0xff]   ;;  %v10059_v22 = vld [vmem:[%s14165_s3 + $0x1c8] sm:$0xff]  }
 0x142   :  { %9777 = vmatprep.mubr.msk.bf16.mxu0 %vm10136_vm0, %v14173_v2  ;;  %6340 = vmatmul.mubr.bf16.gmra.mrb[4].mxu1 %v8973_v37  ;;  %v10051_v37 = vld [vmem:[%s14165_s3 + $0x128] sm:$0xff]   ;;  %v5127_v60 = vld [vmem:[%s14163_s1 + $0x360] sm:$0xff] }
 0x143   :  { %6347 = vmatprep.mubr.bf16.mxu1 %v8982_v38  ;;  %9342 = vmatpush3.bf16.msra.mxu1 %v10019_v52  ;;  %v9038_v38 = vcombine.high %v5091_v32, %v5095_v33  ;;  %v9054_v52 = vcombine.high %v5107_v49, %v5111_v50  ;;  %v10032_v16 = vld [vmem:[%s14162_s0 + $0x80] sm:$0xff]   ;;  %v5052_v43 = vld [vmem:[%s14163_s1 + $0x108] sm:$0xff] }
 0x144   :  { %9343 = vmatprep.subr.bf16.mxu1 %v10020_v53  ;;  %9454 = vmatpush3.bf16.msra.mxu0 %v10044_v24  ;;  %v10011_v53 = vld [vmem:[%s14162_s0 + $0x58] sm:$0xff]   ;;  %v10060_v24 = vld [vmem:[%s14165_s3 + $0x188] sm:$0xff]  }
 0x145   :  { %9455 = vmatprep.subr.bf16.mxu0 %v10045_v25  ;;  %v5036_v25 = vld [vmem:[%s14163_s1 + $0x88] sm:$0xff] }
 0x147   :  { %9344 = vmatpush3.bf16.msra.mxu1 %v10021_v56  ;;  %v9053_v56 = vcombine.low %v5107_v49, %v5111_v50  ;;  %v10071_v49 = vld [vmem:[%s14165_s3 + $0x1f8] sm:$0xff]   ;;  %v10036_v50 = vld [vmem:[%s14162_s0 + $0xa0] sm:$0xff]  }
 0x148   :  { %9345 = vmatprep.subr.bf16.mxu1 %v10023_v57  ;;  %9456 = vmatpush3.bf16.msra.mxu0 %v10046_v28 }
 0x149   :  { %9778 = vmatmul.mubr.bf16.gmra.mrb[8].mxu0 %v10002_v39  ;;  %9457 = vmatprep.subr.bf16.mxu0 %v10048_v30  ;;  %v10053_v39 = vld [vmem:[%s14165_s3 + $0x170] sm:$0xff]  }
 0x14a   :  { %9781 = vmatprep.mubr.msk.bf16.mxu0 %vm10136_vm0, %v14173_v2  ;;  %6348 = vmatmul.mubr.bf16.gmra.mrb[8].mxu1 %v8981_v44  ;;  %v10055_v44 = vld [vmem:[%s14165_s3 + $0x178] sm:$0xff]   ;;  %v10062_v30 = vld [vmem:[%s14165_s3 + $0x190] sm:$0xff]  }
 0x14b   :  { %6355 = vmatprep.mubr.bf16.mxu1 %v8990_v46  ;;  %9346 = vmatpush3.bf16.msra.mxu1 %v10024_v59  ;;  %v9037_v46 = vcombine.low %v5091_v32, %v5095_v33  ;;  %v5123_v59 = vld [vmem:[%s14163_s1 + $0x340] sm:$0xff]  ;;  %v10034_v32 = vld [vmem:[%s14162_s0 + $0x90] sm:$0xff]   ;;  %v10064_v33 = vld [vmem:[%s14165_s3 + $0x198] sm:$0xff]  }
 0x14c   :  { %9347 = vmatprep.subr.bf16.mxu1 %v10025_v62  ;;  %9458 = vmatpush3.bf16.msra.mxu0 %v10049_v34  ;;  %v9070_v62 = vcombine.high %v5123_v59, %v5127_v60  ;;  %v5044_v34 = vld [vmem:[%s14163_s1 + $0xc8] sm:$0xff] }
 0x14d   :  { %9459 = vmatprep.subr.bf16.mxu0 %v10050_v35  ;;  %v5048_v35 = vld [vmem:[%s14163_s1 + $0xe8] sm:$0xff] }
 0x14f   :  { %9348 = vmatpush3.bf16.msra.mxu1 %v10026_v1  ;;  %v5131_v1 = vld [vmem:[%s14163_s1 + $0x380] sm:$0xff] }
 0x150   :  { %9349 = vmatprep.subr.bf16.mxu1 %v10028_v3  ;;  %9460 = vmatpush3.bf16.msra.mxu0 %v10051_v37  ;;  %v5135_v3 = vld [vmem:[%s14163_s1 + $0x3a0] sm:$0xff]  ;;  %v8983_v37 = vcombine.low %v5036_v25, %v5040_v26 }
 0x151   :  { %9782 = vmatmul.mubr.bf16.gmra.mrb[12].mxu0 %v10003_v48  ;;  %9461 = vmatprep.subr.bf16.mxu0 %v10053_v39  ;;  %v10010_v48 = vld [vmem:[%s14162_s0 + $0x50] sm:$0xff]   ;;  %v9078_v5 = vcombine.high %v5131_v1, %v5135_v3  ;;  %v10066_v39 = vld [vmem:[%s14165_s3 + $0x1a0] sm:$0xff]  }
 0x152   :  { %9785 = vmatprep.mubr.msk.bf16.mxu0 %vm10136_vm0, %v14173_v2  ;;  %6356 = vmatmul.mubr.bf16.gmra.mrb[12].mxu1 %v8989_v54  ;;  %v5115_v54 = vld [vmem:[%s14163_s1 + $0x300] sm:$0xff] }
 0x153   :  { %6363 = vmatprep.mubr.bf16.mxu1 %v8998_v55  ;;  %9350 = vmatpush3.bf16.msra.mxu1 %v10029_v7  ;;  %v5119_v55 = vld [vmem:[%s14163_s1 + $0x320] sm:$0xff] }
 0x154   :  { %9351 = vmatprep.subr.bf16.mxu1 %v10030_v8  ;;  %9462 = vmatpush3.bf16.msra.mxu0 %v10054_v41  ;;  %v9062_v57 = vcombine.high %v5115_v54, %v5119_v55  ;;  %v9061_v61 = vcombine.low %v5115_v54, %v5119_v55  ;;  %v5139_v7 = vld [vmem:[%s14163_s1 + $0x3c0] sm:$0xff]  ;;  %v10035_v41 = vld [vmem:[%s14162_s0 + $0x98] sm:$0xff]  }
 0x155   :  { %9463 = vmatprep.subr.bf16.mxu0 %v10055_v44  ;;  %v5143_v8 = vld [vmem:[%s14163_s1 + $0x3e0] sm:$0xff]  ;;  %v5056_v44 = vld [vmem:[%s14163_s1 + $0x128] sm:$0xff] }
 0x156   :  { %v9085_v14 = vcombine.low %v5139_v7, %v5143_v8  ;;  %v8999_v54 = vcombine.low %v5052_v43, %v5056_v44 }
 0x157   :  { %9352 = vmatpush3.bf16.msra.mxu1 %v10031_v11  ;;  %v10027_v11 = vld [vmem:[%s14162_s0 + $0x78] sm:$0xff]  }
 0x158   :  { %9464 = vmatpush3.bf16.msra.mxu0 %v10056_v45  ;;  %v10069_v45 = vld [vmem:[%s14165_s3 + $0x1f0] sm:$0xff]  }
 0x159   :  { %9786 = vmatmul.mubr.bf16.gmra.mrb[16].mxu0 %v10004_v58  ;;  %v10012_v58 = vld [vmem:[%s14162_s0 + $0x60] sm:$0xff]  }
 0x15a   :  { %9789 = vmatprep.mubr.msk.bf16.mxu0 %vm10136_vm0, %v14173_v2  ;;  %6364 = vmatmul.mubr.bf16.gmra.mrb[16].mxu1 %v8997_v63  ;;  %v10057_v63 = vld [vmem:[%s14165_s3 + $0x1c0] sm:$0xff]  }
 0x15b   :  { %6371 = vmatprep.mubr.bf16.mxu1 %v9006_v0  ;;  %v10017_v0 = vld [vmem:[%s14162_s0 + $0x68] sm:$0xff]   ;;  %9561 = vmatprep.subr.bf16.mxu1 %v10057_v63 }
 0x15c   :  { %v5080_v63 = vld [vmem:[%s14163_s1 + $0x1e8] sm:$0xff] }
 0x161   :  { %9790 = vmatmul.mubr.bf16.gmra.mrb[20].mxu0 %v10005_v4  ;;  %v9069_v4 = vcombine.low %v5123_v59, %v5127_v60 }
 0x162   :  { %9793 = vmatprep.mubr.msk.bf16.mxu0 %vm10136_vm0, %v14173_v2  ;;  %6372 = vmatmul.mubr.bf16.gmra.mrb[20].mxu1 %v9005_v9  ;;  %v9077_v9 = vcombine.low %v5131_v1, %v5135_v3  ;;  %v10047_v3 = vld [vmem:[%s14162_s0 + $0xb8] sm:$0xff]  }
 0x163   :  { %6379 = vmatprep.mubr.bf16.mxu1 %v9014_v10  ;;  %v9086_v10 = vcombine.high %v5139_v7, %v5143_v8  ;;  %v5021_v8 = vld [vmem:[%s14163_s1 + $0x10] sm:$0xff] }
 0x169   :  { %9794 = vmatmul.mubr.bf16.gmra.mrb[24].mxu0 %v10006_v12  ;;  %v5020_v12 = vld [vmem:[%s14163_s1 + $0x8] sm:$0xff] }
 0x16a   :  { %9797 = vmatprep.mubr.msk.bf16.mxu0 %vm10136_vm0, %v14173_v2  ;;  %6380 = vmatmul.mubr.bf16.gmra.mrb[24].mxu1 %v9013_v18  ;;  %v8968_v15 = vcombine.high %v5020_v12, %v5024_v13  ;;  %v5032_v18 = vld [vmem:[%s14163_s1 + $0x68] sm:$0xff]  ;;  %v8967_v19 = vcombine.low %v5020_v12, %v5024_v13 }
 0x16b   :  { %6387 = vmatprep.mubr.bf16.mxu1 %v9022_v20  ;;  %v8976_v20 = vcombine.high %v5028_v17, %v5032_v18  ;;  %v8975_v28 = vcombine.low %v5028_v17, %v5032_v18  ;;  %v5092_v12 = vld [vmem:[%s14163_s1 + $0x248] sm:$0xff]  ;;  %v5033_v17 = vld [vmem:[%s14163_s1 + $0x70] sm:$0xff] }
 0x16c   :  { %v5096_v13 = vld [vmem:[%s14163_s1 + $0x268] sm:$0xff] }
 0x171   :  { %9798 = vmatmul.mubr.bf16.gmra.mrb[28].mxu0 %v10007_v21  ;;  %v10058_v21 = vld [vmem:[%s14165_s3 + $0x180] sm:$0xff]  }
 0x172   :  { %9801 = vmatprep.mubr.msk.bf16.mxu0 %vm10136_vm0, %v14173_v2  ;;  %6388 = vmatmul.mubr.bf16.gmra.mrb[28].mxu1 %v9021_v27  ;;  %v10061_v27 = vld [vmem:[%s14165_s3 + $0x1d0] sm:$0xff]  }
 0x173   :  { %6395 = vmatprep.mubr.bf16.mxu1 %v9030_v29  ;;  %v8984_v29 = vcombine.high %v5036_v25, %v5040_v26  ;;  %v5041_v25 = vld [vmem:[%s14163_s1 + $0xb0] sm:$0xff] }
 0x179   :  { %9802 = vmatmul.mubr.bf16.gmra.mrb[32].mxu0 %v10008_v31  ;;  %v10063_v31 = vld [vmem:[%s14165_s3 + $0x1d8] sm:$0xff]  }
 0x17a   :  { %9805 = vmatprep.mubr.msk.bf16.mxu0 %vm10136_vm0, %v14173_v2  ;;  %6396 = vmatmul.mubr.bf16.gmra.mrb[32].mxu1 %v9029_v36  ;;  %v10065_v36 = vld [vmem:[%s14165_s3 + $0x1e0] sm:$0xff]  }
 0x17b   :  { %6403 = vmatprep.mubr.bf16.mxu1 %v9038_v38  ;;  %v8992_v38 = vcombine.high %v5044_v34, %v5048_v35 }
 0x181   :  { %9806 = vmatmul.mubr.bf16.gmra.mrb[36].mxu0 %v10009_v40  ;;  %v10067_v40 = vld [vmem:[%s14165_s3 + $0x1e8] sm:$0xff]  }
 0x182   :  { %9809 = vmatprep.mubr.msk.bf16.mxu0 %vm10136_vm0, %v14173_v2  ;;  %6404 = vmatmul.mubr.bf16.gmra.mrb[36].mxu1 %v9037_v46  ;;  %v8991_v46 = vcombine.low %v5044_v34, %v5048_v35 }
 0x183   :  { %6411 = vmatprep.mubr.bf16.mxu1 %v9046_v47  ;;  %v9000_v47 = vcombine.high %v5052_v43, %v5056_v44 }
 0x189   :  { %9810 = vmatmul.mubr.bf16.gmra.mrb[40].mxu0 %v10010_v48  ;;  %v10070_v48 = vld [vmem:[%s14165_s3 + $0x1b0] sm:$0xff]  }
 0x18a   :  { %9813 = vmatprep.mubr.msk.bf16.mxu0 %vm10136_vm0, %v14173_v2  ;;  %6412 = vmatmul.mubr.bf16.gmra.mrb[40].mxu1 %v9045_v51  ;;  %v10072_v51 = vld [vmem:[%s14165_s3 + $0x1b8] sm:$0xff]  }
 0x18b   :  { %6419 = vmatprep.mubr.bf16.mxu1 %v9054_v52  ;;  %v5060_v52 = vld [vmem:[%s14163_s1 + $0x148] sm:$0xff] }
 0x191   :  { %9814 = vmatmul.mubr.bf16.gmra.mrb[44].mxu0 %v10011_v53  ;;  %v5064_v53 = vld [vmem:[%s14163_s1 + $0x168] sm:$0xff] }
 0x192   :  { %9817 = vmatprep.mubr.msk.bf16.mxu0 %vm10136_vm0, %v14173_v2  ;;  %6420 = vmatmul.mubr.bf16.gmra.mrb[44].mxu1 %v9053_v56  ;;  %v9008_v55 = vcombine.high %v5060_v52, %v5064_v53  ;;  %v10037_v56 = vld [vmem:[%s14162_s0 + $0xa8] sm:$0xff]   ;;  %v9007_v59 = vcombine.low %v5060_v52, %v5064_v53  ;;  %v5053_v52 = vld [vmem:[%s14163_s1 + $0x110] sm:$0xff] }
 0x193   :  { %6427 = vmatprep.mubr.bf16.mxu1 %v9062_v57  ;;  %v5068_v57 = vld [vmem:[%s14163_s1 + $0x188] sm:$0xff]  ;;  %v5057_v53 = vld [vmem:[%s14163_s1 + $0x130] sm:$0xff] }
 0x199   :  { %9818 = vmatmul.mubr.bf16.gmra.mrb[48].mxu0 %v10012_v58  ;;  %v5072_v58 = vld [vmem:[%s14163_s1 + $0x1a8] sm:$0xff] }
 0x19a   :  { %9821 = vmatprep.mubr.msk.bf16.mxu0 %vm10136_vm0, %v14173_v2  ;;  %6428 = vmatmul.mubr.bf16.gmra.mrb[48].mxu1 %v9061_v61  ;;  %v9016_v60 = vcombine.high %v5068_v57, %v5072_v58  ;;  %v10042_v61 = vld [vmem:[%s14162_s0 + $0xb0] sm:$0xff]  }
 0x19b   :  { %6435 = vmatprep.mubr.bf16.mxu1 %v9070_v62  ;;  %v5076_v62 = vld [vmem:[%s14163_s1 + $0x1c8] sm:$0xff] }
 0x19c   :  { %v9024_v1 = vcombine.high %v5076_v62, %v5080_v63 }
 0x1a1   :  { %9822 = vmatmul.mubr.bf16.gmra.mrb[52].mxu0 %v10017_v0  ;;  %v9015_v0 = vcombine.low %v5068_v57, %v5072_v58 }
 0x1a2   :  { %9825 = vmatprep.mubr.msk.bf16.mxu0 %vm10136_vm0, %v14173_v2  ;;  %6436 = vmatmul.mubr.bf16.gmra.mrb[52].mxu1 %v9069_v4  ;;  %v5084_v4 = vld [vmem:[%s14163_s1 + $0x208] sm:$0xff] }
 0x1a3   :  { %6443 = vmatprep.mubr.bf16.mxu1 %v9078_v5  ;;  %v5088_v5 = vld [vmem:[%s14163_s1 + $0x228] sm:$0xff] }
 0x1a4   :  { %v9032_v7 = vcombine.high %v5084_v4, %v5088_v5 }
 0x1a9   :  { %9826 = vmatmul.mubr.bf16.gmra.mrb[56].mxu0 %v10022_v6  ;;  %v9023_v6 = vcombine.low %v5076_v62, %v5080_v63  ;;  %v5124_v62 = vld [vmem:[%s14163_s1 + $0x348] sm:$0xff] }
 0x1aa   :  { %9829 = vmatprep.mubr.msk.bf16.mxu0 %vm10136_vm0, %v14173_v2  ;;  %6444 = vmatmul.mubr.bf16.gmra.mrb[56].mxu1 %v9077_v9  ;;  %v5025_v9 = vld [vmem:[%s14163_s1 + $0x30] sm:$0xff]  ;;  %v5128_v63 = vld [vmem:[%s14163_s1 + $0x368] sm:$0xff] }
 0x1ab   :  { %6451 = vmatprep.mubr.bf16.mxu1 %v9086_v10  ;;  %v10052_v10 = vld [vmem:[%s14162_s0 + $0xc0] ss:$0 sps:$4 sm:$0xff]   ;;  %v8969_v18 = vcombine.low %v5021_v8, %v5025_v9 }
 0x1b1   :  { %9830 = vmatmul.mubr.bf16.gmra.mrb[60].mxu0 %v10027_v11  ;;  %v8970_v11 = vcombine.high %v5021_v8, %v5025_v9 }
 0x1b2   :  { %9833 = vmatprep.mubr.msk.bf16.mxu0 %vm10136_vm0, %v14173_v2  ;;  %6452 = vmatmul.mubr.bf16.gmra.mrb[60].mxu1 %v9085_v14  ;;  %v9031_v14 = vcombine.low %v5084_v4, %v5088_v5 }
 0x1b3   :  { %6492 = vmatprep.mubr.bf16.mxu1 %v8968_v15  ;;  %v9040_v15 = vcombine.high %v5092_v12, %v5096_v13 }
 0x1b9   :  { %9834 = vmatmul.mubr.bf16.gmra.mrb[64].mxu0 %v10032_v16  ;;  %v5029_v16 = vld [vmem:[%s14163_s1 + $0x50] sm:$0xff] }
 0x1ba   :  { %9837 = vmatprep.mubr.msk.bf16.mxu0 %vm10136_vm0, %v14173_v2  ;;  %6493 = vmatmul.mubr.bf16.vlgmr.msra.gmra.mrb[64].mxu1 %v8967_v19  ;;  %v8978_v19 = vcombine.high %v5029_v16, %v5033_v17  ;;  %v8977_v26 = vcombine.low %v5029_v16, %v5033_v17  ;;  %v9001_v17 = vcombine.low %v5053_v52, %v5057_v53 }
 0x1bb   :  { %6500 = vmatprep.mubr.bf16.mxu1 %v8976_v20  ;;  %9562 = vmatpush3.bf16.msra.mxu1 %v10058_v21  ;;  %v5100_v20 = vld [vmem:[%s14163_s1 + $0x288] sm:$0xff] }
 0x1bc   :  { %9563 = vmatprep.subr.bf16.mxu1 %v10059_v22  ;;  %v5104_v21 = vld [vmem:[%s14163_s1 + $0x2a8] sm:$0xff]  ;;  %v9039_v22 = vcombine.low %v5092_v12, %v5096_v13  ;;  %v5065_v12 = vld [vmem:[%s14163_s1 + $0x170] sm:$0xff] }
 0x1bf   :  { %9564 = vmatpush3.bf16.msra.mxu1 %v10060_v24  ;;  %v5037_v24 = vld [vmem:[%s14163_s1 + $0x90] sm:$0xff] }
 0x1c0   :  { %9565 = vmatprep.subr.bf16.mxu1 %v10061_v27  ;;  %v8986_v27 = vcombine.high %v5037_v24, %v5041_v25 }
 0x1c1   :  { %9838 = vmatmul.mubr.bf16.gmra.mrb[68].mxu0 %v10033_v23  ;;  %v9048_v23 = vcombine.high %v5100_v20, %v5104_v21 }
 0x1c2   :  { %9841 = vmatprep.mubr.msk.bf16.mxu0 %vm10136_vm0, %v14173_v2  ;;  %6501 = vmatmul.mubr.bf16.gmra.mrb[68].mxu1 %v8975_v28  ;;  %v5108_v28 = vld [vmem:[%s14163_s1 + $0x2c8] sm:$0xff] }
 0x1c3   :  { %6508 = vmatprep.mubr.bf16.mxu1 %v8984_v29  ;;  %9566 = vmatpush3.bf16.msra.mxu1 %v10062_v30  ;;  %v5112_v29 = vld [vmem:[%s14163_s1 + $0x2e8] sm:$0xff]  ;;  %v9047_v30 = vcombine.low %v5100_v20, %v5104_v21 }
 0x1c4   :  { %9567 = vmatprep.subr.bf16.mxu1 %v10063_v31  ;;  %v9056_v31 = vcombine.high %v5108_v28, %v5112_v29  ;;  %v5132_v21 = vld [vmem:[%s14163_s1 + $0x388] sm:$0xff] }
 0x1c7   :  { %9568 = vmatpush3.bf16.msra.mxu1 %v10064_v33  ;;  %v5049_v33 = vld [vmem:[%s14163_s1 + $0xf0] sm:$0xff] }
 0x1c8   :  { %9569 = vmatprep.subr.bf16.mxu1 %v10065_v36  ;;  %v8985_v36 = vcombine.low %v5037_v24, %v5041_v25 }
 0x1c9   :  { %9842 = vmatmul.mubr.bf16.gmra.mrb[72].mxu0 %v10034_v32  ;;  %v5045_v32 = vld [vmem:[%s14163_s1 + $0xd0] sm:$0xff] }
 0x1ca   :  { %9845 = vmatprep.mubr.msk.bf16.mxu0 %vm10136_vm0, %v14173_v2  ;;  %6509 = vmatmul.mubr.bf16.gmra.mrb[72].mxu1 %v8983_v37  ;;  %v8993_v58 = vcombine.low %v5045_v32, %v5049_v33 }
 0x1cb   :  { %6516 = vmatprep.mubr.bf16.mxu1 %v8992_v38  ;;  %9570 = vmatpush3.bf16.msra.mxu1 %v10066_v39  ;;  %v8994_v38 = vcombine.high %v5045_v32, %v5049_v33  ;;  %v5116_v39 = vld [vmem:[%s14163_s1 + $0x308] sm:$0xff]  ;;  %v5069_v33 = vld [vmem:[%s14163_s1 + $0x190] sm:$0xff] }
 0x1cc   :  { %9571 = vmatprep.subr.bf16.mxu1 %v10067_v40  ;;  %v5120_v40 = vld [vmem:[%s14163_s1 + $0x328] sm:$0xff] }
 0x1cd   :  { %v9063_v5 = vcombine.low %v5116_v39, %v5120_v40 }
 0x1cf   :  { %9572 = vmatpush3.bf16.msra.mxu1 %v10068_v42 }
 0x1d0   :  { %9573 = vmatprep.subr.bf16.mxu1 %v10069_v45 }
 0x1d1   :  { %9846 = vmatmul.mubr.bf16.gmra.mrb[76].mxu0 %v10035_v41 }
 0x1d2   :  { %9849 = vmatprep.mubr.msk.bf16.mxu0 %vm10136_vm0, %v14173_v2  ;;  %6517 = vmatmul.mubr.bf16.gmra.mrb[76].mxu1 %v8991_v46  ;;  %v9055_v46 = vcombine.low %v5108_v28, %v5112_v29 }
 0x1d3   :  { %6524 = vmatprep.mubr.bf16.mxu1 %v9000_v47  ;;  %9574 = vmatpush3.bf16.msra.mxu1 %v10070_v48  ;;  %v9064_v48 = vcombine.high %v5116_v39, %v5120_v40 }
 0x1d4   :  { %9575 = vmatprep.subr.bf16.mxu1 %v10071_v49 }
 0x1d7   :  { %9576 = vmatpush3.bf16.msra.mxu1 %v10072_v51 }
 0x1d9   :  { %9850 = vmatmul.mubr.bf16.gmra.mrb[80].mxu0 %v10036_v50 }
 0x1da   :  { %9853 = vmatprep.mubr.msk.bf16.mxu0 %vm10136_vm0, %v14173_v2  ;;  %6525 = vmatmul.mubr.bf16.gmra.mrb[80].mxu1 %v8999_v54 }
 0x1db   :  { %6532 = vmatprep.mubr.bf16.mxu1 %v9008_v55 }
 0x1e1   :  { %9854 = vmatmul.mubr.bf16.gmra.mrb[84].mxu0 %v10037_v56 }
 0x1e2   :  { %9857 = vmatprep.mubr.msk.bf16.mxu0 %vm10136_vm0, %v14173_v2  ;;  %6533 = vmatmul.mubr.bf16.gmra.mrb[84].mxu1 %v9007_v59 }
 0x1e3   :  { %6540 = vmatprep.mubr.bf16.mxu1 %v9016_v60 }
 0x1e9   :  { %9858 = vmatmul.mubr.bf16.gmra.mrb[88].mxu0 %v10042_v61  ;;  %v9002_v61 = vcombine.high %v5053_v52, %v5057_v53 }
 0x1ea   :  { %9861 = vmatprep.mubr.msk.bf16.mxu0 %vm10136_vm0, %v14173_v2  ;;  %6541 = vmatmul.mubr.bf16.gmra.mrb[88].mxu1 %v9015_v0 }
 0x1eb   :  { %6548 = vmatprep.mubr.bf16.mxu1 %v9024_v1 }
 0x1f1   :  { %9862 = vmatmul.mubr.bf16.gmra.mrb[92].mxu0 %v10047_v3 }
 0x1f2   :  { %9865 = vmatprep.mubr.msk.bf16.mxu0 %vm10136_vm0, %v14173_v2  ;;  %6549 = vmatmul.mubr.bf16.gmra.mrb[92].mxu1 %v9023_v6 }
 0x1f3   :  { %6556 = vmatprep.mubr.bf16.mxu1 %v9032_v7  ;;  %v9072_v7 = vcombine.high %v5124_v62, %v5128_v63 }
 0x1f9   :  { %9866 = vmatmul.mubr.bf16.gmra.mrb[96].mxu0 %v10052_v10 }
 0x1fa   :  { %6653 = vmatprep.mubr.bf16.mxu0 %v8970_v11  ;;  %6557 = vmatmul.mubr.bf16.gmra.mrb[96].mxu1 %v9031_v14  ;;  %v5061_v11 = vld [vmem:[%s14163_s1 + $0x150] sm:$0xff] }
 0x1fb   :  { %6564 = vmatprep.mubr.bf16.mxu1 %v9040_v15  ;;  %v9010_v20 = vcombine.high %v5061_v11, %v5065_v12 }
 0x201   :  { %6654 = vmatmul.mubr.bf16.vlgmr.msra.gmra.mrb[100].mxu0 %v8969_v18 }
 0x202   :  { %6661 = vmatprep.mubr.bf16.mxu0 %v8978_v19  ;;  %6565 = vmatmul.mubr.bf16.gmra.mrb[100].mxu1 %v9039_v22  ;;  %v5136_v22 = vld [vmem:[%s14163_s1 + $0x3a8] sm:$0xff] }
 0x203   :  { %6572 = vmatprep.mubr.bf16.mxu1 %v9048_v23  ;;  %v9080_v29 = vcombine.high %v5132_v21, %v5136_v22  ;;  %v9079_v52 = vcombine.low %v5132_v21, %v5136_v22 }
 0x209   :  { %6662 = vmatmul.mubr.bf16.gmra.mrb[104].mxu0 %v8977_v26 }
 0x20a   :  { %6669 = vmatprep.mubr.bf16.mxu0 %v8986_v27  ;;  %6573 = vmatmul.mubr.bf16.gmra.mrb[104].mxu1 %v9047_v30  ;;  %v9071_v27 = vcombine.low %v5124_v62, %v5128_v63  ;;  %v5081_v62 = vld [vmem:[%s14163_s1 + $0x1f0] sm:$0xff] }
 0x20b   :  { %6580 = vmatprep.mubr.bf16.mxu1 %v9056_v31 }
 0x20c   :  { %v12089_v34 = vpop.f32.mrb[0].mxu0 }
 0x20d   :  { %v9771_v35 = vpop.f32.mrb[1].mxu0  ;;  %v4706_v41 = vsel %vm4705_vm1, %v12089_v34, 0.0  ;;  %v9241_v44 = vpop.f32.mrb[0].mxu1 }
 0x20e   :  { %v12091_v37 = vpop.f32.mrb[2].mxu0  ;;  %v9242_v47 = vpop.f32.mrb[1].mxu1  ;;  %v5073_v35 = vld [vmem:[%s14163_s1 + $0x1b0] sm:$0xff] }
 0x20f   :  { %v4707_v42 = vsel %vm4705_vm1, %v12091_v37, 0.0  ;;  %v9772_v43 = vpop.f32.mrb[3].mxu0  ;;  %v12103_v49 = vadd.f32 %v9242_v47, %v9241_v44  ;;  %v9244_v50 = vpop.f32.mrb[2].mxu1  ;;  %v9018_v44 = vcombine.high %v5069_v33, %v5073_v35 }
 0x210   :  { %v4708_v45 = vadd.f32 %v4707_v42, %v4706_v41  ;;  %v9245_v51 = vpop.f32.mrb[3].mxu1  ;;  %v9009_v41 = vcombine.low %v5061_v11, %v5065_v12 }
 0x211   :  { %6670 = vmatmul.mubr.bf16.gmra.mrb[108].mxu0 %v8985_v36  ;;  %v12111_v54 = vadd.f32 %v9245_v51, %v9244_v50 }
 0x212   :  { %6677 = vmatprep.mubr.bf16.mxu0 %v8994_v38  ;;  %6581 = vmatmul.mubr.bf16.gmra.mrb[108].mxu1 %v9055_v46  ;;  %v5144_v46 = vld [vmem:[%s14163_s1 + $0x3e8] sm:$0xff] }
 0x213   :  { %6588 = vmatprep.mubr.bf16.mxu1 %v9064_v48 }
 0x214   :  { %v12113_v55 = vpop.f32.mrb[4].mxu0 }
 0x215   :  { %v4709_v56 = vsel %vm4705_vm1, %v12113_v55, 0.0  ;;  %v9775_v57 = vpop.f32.mrb[5].mxu0  ;;  %v9247_v3 = vpop.f32.mrb[4].mxu1 }
 0x216   :  { %v4710_v59 = vadd.f32 %v4709_v56, %v4708_v45  ;;  %v12117_v60 = vpop.f32.mrb[6].mxu0  ;;  %v9248_v6 = vpop.f32.mrb[5].mxu1  ;;  %v5140_v45 = vld [vmem:[%s14163_s1 + $0x3c8] sm:$0xff] }
 0x217   :  { %v4711_v0 = vsel %vm4705_vm1, %v12117_v60, 0.0  ;;  %v9776_v1 = vpop.f32.mrb[7].mxu0  ;;  %v12127_v8 = vadd.f32 %v9248_v6, %v9247_v3  ;;  %v9250_v9 = vpop.f32.mrb[6].mxu1  ;;  %v9088_v56 = vcombine.high %v5140_v45, %v5144_v46 }
 0x218   :  { %v4712_v4 = vadd.f32 %v4711_v0, %v4710_v59  ;;  %v9251_v10 = vpop.f32.mrb[7].mxu1 }
 0x219   :  { %6678 = vmatmul.mubr.bf16.gmra.mrb[112].mxu0 %v8993_v58  ;;  %v12135_v13 = vadd.f32 %v9251_v10, %v9250_v9  ;;  %v5022_v9 = vld [vmem:[%s14163_s1 + $0x18] sm:$0xff] }
 0x21a   :  { %6685 = vmatprep.mubr.bf16.mxu0 %v9002_v61  ;;  %6589 = vmatmul.mubr.bf16.gmra.mrb[112].mxu1 %v9063_v5  ;;  %v5077_v61 = vld [vmem:[%s14163_s1 + $0x1d0] sm:$0xff]  ;;  %v5026_v10 = vld [vmem:[%s14163_s1 + $0x38] sm:$0xff] }
 0x21b   :  { %6596 = vmatprep.mubr.bf16.mxu1 %v9072_v7  ;;  %v9026_v7 = vcombine.high %v5077_v61, %v5081_v62 }
 0x21c   :  { %v12137_v14 = vpop.f32.mrb[8].mxu0 }
 0x21d   :  { %v4713_v15 = vsel %vm4705_vm1, %v12137_v14, 0.0  ;;  %v9779_v16 = vpop.f32.mrb[9].mxu0  ;;  %v9253_v25 = vpop.f32.mrb[8].mxu1 }
 0x21e   :  { %v4714_v18 = vadd.f32 %v4713_v15, %v4712_v4  ;;  %v12141_v19 = vpop.f32.mrb[10].mxu0  ;;  %v9254_v28 = vpop.f32.mrb[9].mxu1  ;;  %v9017_v4 = vcombine.low %v5069_v33, %v5073_v35 }
 0x21f   :  { %v4715_v23 = vsel %vm4705_vm1, %v12141_v19, 0.0  ;;  %v9780_v24 = vpop.f32.mrb[11].mxu0  ;;  %v12151_v30 = vadd.f32 %v9254_v28, %v9253_v25  ;;  %v9256_v31 = vpop.f32.mrb[10].mxu1  ;;  %v5089_v25 = vld [vmem:[%s14163_s1 + $0x230] sm:$0xff] }
 0x220   :  { %v4716_v26 = vadd.f32 %v4715_v23, %v4714_v18  ;;  %v9257_v32 = vpop.f32.mrb[11].mxu1  ;;  %v5085_v24 = vld [vmem:[%s14163_s1 + $0x210] sm:$0xff] }
 0x221   :  { %6686 = vmatmul.mubr.bf16.gmra.mrb[116].mxu0 %v9001_v17  ;;  %v12159_v36 = vadd.f32 %v9257_v32, %v9256_v31  ;;  %v9087_v17 = vcombine.low %v5140_v45, %v5144_v46  ;;  %v9025_v31 = vcombine.low %v5077_v61, %v5081_v62  ;;  %v9034_v35 = vcombine.high %v5085_v24, %v5089_v25 }
 0x222   :  { %6693 = vmatprep.mubr.bf16.mxu0 %v9010_v20  ;;  %6597 = vmatmul.mubr.bf16.gmra.mrb[116].mxu1 %v9071_v27  ;;  %v8972_v20 = vcombine.high %v5022_v9, %v5026_v10  ;;  %v8971_v46 = vcombine.low %v5022_v9, %v5026_v10  ;;  %v5042_v9 = vld [vmem:[%s14163_s1 + $0xb8] sm:$0xff] }
 0x223   :  { %6604 = vmatprep.mubr.bf16.mxu1 %v9080_v29 }
 0x224   :  { %v12161_v38 = vpop.f32.mrb[12].mxu0 }
 0x225   :  { %v4717_v39 = vsel %vm4705_vm1, %v12161_v38, 0.0  ;;  %v9783_v40 = vpop.f32.mrb[13].mxu0  ;;  %v9259_v50 = vpop.f32.mrb[12].mxu1 }
 0x226   :  { %v4718_v42 = vadd.f32 %v4717_v39, %v4716_v26  ;;  %v12165_v43 = vpop.f32.mrb[14].mxu0  ;;  %v9260_v53 = vpop.f32.mrb[13].mxu1  ;;  %v5030_v39 = vld [vmem:[%s14163_s1 + $0x58] sm:$0xff] }
 0x227   :  { %v4719_v47 = vsel %vm4705_vm1, %v12165_v43, 0.0  ;;  %v9784_v48 = vpop.f32.mrb[15].mxu0  ;;  %v12175_v57 = vadd.f32 %v9260_v53, %v9259_v50  ;;  %v9262_v58 = vpop.f32.mrb[14].mxu1  ;;  %v5034_v40 = vld [vmem:[%s14163_s1 + $0x78] sm:$0xff]  ;;  %v5093_v53 = vld [vmem:[%s14163_s1 + $0x250] sm:$0xff] }
 0x228   :  { %v4720_v51 = vadd.f32 %v4719_v47, %v4718_v42  ;;  %v9263_v59 = vpop.f32.mrb[15].mxu1  ;;  %v8980_v48 = vcombine.high %v5030_v39, %v5034_v40 }
 0x229   :  { %6694 = vmatmul.mubr.bf16.gmra.mrb[120].mxu0 %v9009_v41  ;;  %v12183_v63 = vadd.f32 %v9263_v59, %v9262_v58 }
 0x22a   :  { %6701 = vmatprep.mubr.bf16.mxu0 %v9018_v44  ;;  %6605 = vmatmul.mubr.bf16.gmra.mrb[120].mxu1 %v9079_v52 }
 0x22b   :  { %6612 = vmatprep.mubr.bf16.mxu1 %v9088_v56  ;;  %v5097_v56 = vld [vmem:[%s14163_s1 + $0x270] sm:$0xff] }
 0x22c   :  { %v12185_v0 = vpop.f32.mrb[16].mxu0 }
 0x22d   :  { %v4721_v1 = vsel %vm4705_vm1, %v12185_v0, 0.0  ;;  %v9787_v3 = vpop.f32.mrb[17].mxu0  ;;  %v9265_v15 = vpop.f32.mrb[16].mxu1 }
 0x22e   :  { %v4722_v5 = vadd.f32 %v4721_v1, %v4720_v51  ;;  %v12189_v6 = vpop.f32.mrb[18].mxu0  ;;  %v9266_v18 = vpop.f32.mrb[17].mxu1  ;;  %v9033_v1 = vcombine.low %v5085_v24, %v5089_v25  ;;  %v5101_v24 = vld [vmem:[%s14163_s1 + $0x290] sm:$0xff] }
 0x22f   :  { %v4723_v11 = vsel %vm4705_vm1, %v12189_v6, 0.0  ;;  %v9788_v12 = vpop.f32.mrb[19].mxu0  ;;  %v12199_v21 = vadd.f32 %v9266_v18, %v9265_v15  ;;  %v9268_v22 = vpop.f32.mrb[18].mxu1  ;;  %v5105_v25 = vld [vmem:[%s14163_s1 + $0x2b0] sm:$0xff] }
 0x230   :  { %v4724_v16 = vadd.f32 %v4723_v11, %v4722_v5  ;;  %v9269_v23 = vpop.f32.mrb[19].mxu1  ;;  %v9042_v5 = vcombine.high %v5093_v53, %v5097_v56 }
 0x231   :  { %6702 = vmatmul.mubr.bf16.gmra.mrb[124].mxu0 %v9017_v4  ;;  %v12207_v26 = vadd.f32 %v9269_v23, %v9268_v22 }
 0x232   :  { %6709 = vmatprep.mubr.bf16.mxu0 %v9026_v7  ;;  %6613 = vmatmul.mubr.bf16.gmra.mrb[124].mxu1 %v9087_v17  ;;  %v5038_v7 = vld [vmem:[%s14163_s1 + $0x98] sm:$0xff] }
 0x233   :  { %6814 = vmatprep.mubr.bf16.mxu1 %v8972_v20  ;;  %v8988_v18 = vcombine.high %v5038_v7, %v5042_v9 }
 0x234   :  { %v12209_v27 = vpop.f32.mrb[20].mxu0 }
 0x235   :  { %v4725_v28 = vsel %vm4705_vm1, %v12209_v27, 0.0  ;;  %v9791_v29 = vpop.f32.mrb[21].mxu0  ;;  %v9271_v44 = vpop.f32.mrb[20].mxu1 }
 0x236   :  { %v4726_v32 = vadd.f32 %v4725_v28, %v4724_v16  ;;  %v12213_v33 = vpop.f32.mrb[22].mxu0  ;;  %v9272_v47 = vpop.f32.mrb[21].mxu1  ;;  %v8979_v16 = vcombine.low %v5030_v39, %v5034_v40 }
 0x237   :  { %v4727_v41 = vsel %vm4705_vm1, %v12213_v33, 0.0  ;;  %v9792_v42 = vpop.f32.mrb[23].mxu0  ;;  %v12223_v50 = vadd.f32 %v9272_v47, %v9271_v44  ;;  %v9274_v51 = vpop.f32.mrb[22].mxu1  ;;  %v5050_v44 = vld [vmem:[%s14163_s1 + $0xf8] sm:$0xff] }
 0x238   :  { %v4728_v45 = vadd.f32 %v4727_v41, %v4726_v32  ;;  %v9275_v52 = vpop.f32.mrb[23].mxu1  ;;  %v9050_v41 = vcombine.high %v5101_v24, %v5105_v25  ;;  %v5046_v42 = vld [vmem:[%s14163_s1 + $0xd8] sm:$0xff] }
 0x239   :  { %6710 = vmatmul.mubr.bf16.gmra.mrb[128].mxu0 %v9025_v31  ;;  %v12231_v58 = vadd.f32 %v9275_v52, %v9274_v51  ;;  %v8987_v51 = vcombine.low %v5038_v7, %v5042_v9 }
 0x23a   :  { %6717 = vmatprep.mubr.bf16.mxu0 %v9034_v35  ;;  %6815 = vmatmul.mubr.bf16.vlgmr.msra.gmra.mrb[128].mxu1 %v8971_v46  ;;  %v9041_v35 = vcombine.low %v5093_v53, %v5097_v56  ;;  %v8996_v53 = vcombine.high %v5046_v42, %v5050_v44 }
 0x23b   :  { %6822 = vmatprep.mubr.bf16.mxu1 %v8980_v48 }
 0x23c   :  { %v12233_v59 = vpop.f32.mrb[24].mxu0 }
 0x23d   :  { %v4729_v61 = vsel %vm4705_vm1, %v12233_v59, 0.0  ;;  %v9795_v62 = vpop.f32.mrb[25].mxu0  ;;  %v9277_v12 = vpop.f32.mrb[24].mxu1 }
 0x23e   :  { %v4730_v3 = vadd.f32 %v4729_v61, %v4728_v45  ;;  %v12237_v4 = vpop.f32.mrb[26].mxu0  ;;  %v9278_v17 = vpop.f32.mrb[25].mxu1 }
 0x23f   :  { %v4731_v10 = vsel %vm4705_vm1, %v12237_v4, 0.0  ;;  %v9796_v11 = vpop.f32.mrb[27].mxu0  ;;  %v12247_v20 = vadd.f32 %v9278_v17, %v9277_v12  ;;  %v9280_v22 = vpop.f32.mrb[26].mxu1  ;;  %v5054_v17 = vld [vmem:[%s14163_s1 + $0x118] sm:$0xff] }
 0x240   :  { %v4732_v15 = vadd.f32 %v4731_v10, %v4730_v3  ;;  %v9281_v23 = vpop.f32.mrb[27].mxu1  ;;  %v5113_v3 = vld [vmem:[%s14163_s1 + $0x2f0] sm:$0xff]  ;;  %v9049_v11 = vcombine.low %v5101_v24, %v5105_v25  ;;  %v8995_v24 = vcombine.low %v5046_v42, %v5050_v44 }
 0x241   :  { %6718 = vmatmul.mubr.bf16.gmra.mrb[132].mxu0 %v9033_v1  ;;  %v12255_v28 = vadd.f32 %v9281_v23, %v9280_v22  ;;  %v5109_v1 = vld [vmem:[%s14163_s1 + $0x2d0] sm:$0xff] }
 0x242   :  { %6725 = vmatprep.mubr.bf16.mxu0 %v9042_v5  ;;  %6823 = vmatmul.mubr.bf16.gmra.mrb[132].mxu1 %v8979_v16  ;;  %v9058_v16 = vcombine.high %v5109_v1, %v5113_v3 }
 0x243   :  { %6830 = vmatprep.mubr.bf16.mxu1 %v8988_v18  ;;  %v5058_v18 = vld [vmem:[%s14163_s1 + $0x138] sm:$0xff] }
 0x244   :  { %v12257_v29 = vpop.f32.mrb[28].mxu0 }
 0x245   :  { %v4733_v31 = vsel %vm4705_vm1, %v12257_v29, 0.0  ;;  %v9799_v32 = vpop.f32.mrb[29].mxu0  ;;  %v9283_v47 = vpop.f32.mrb[28].mxu1 }
 0x246   :  { %v4734_v39 = vadd.f32 %v4733_v31, %v4732_v15  ;;  %v12261_v40 = vpop.f32.mrb[30].mxu0  ;;  %v9284_v52 = vpop.f32.mrb[29].mxu1 }
 0x247   :  { %v4735_v45 = vsel %vm4705_vm1, %v12261_v40, 0.0  ;;  %v9800_v46 = vpop.f32.mrb[31].mxu0  ;;  %v12271_v56 = vadd.f32 %v9284_v52, %v9283_v47  ;;  %v9286_v61 = vpop.f32.mrb[30].mxu1  ;;  %v5121_v47 = vld [vmem:[%s14163_s1 + $0x330] sm:$0xff]  ;;  %v9057_v52 = vcombine.low %v5109_v1, %v5113_v3  ;;  %v9003_v1 = vcombine.low %v5054_v17, %v5058_v18 }
 0x248   :  { %v4736_v48 = vadd.f32 %v4735_v45, %v4734_v39  ;;  %v9287_v62 = vpop.f32.mrb[31].mxu1  ;;  %v5117_v46 = vld [vmem:[%s14163_s1 + $0x310] sm:$0xff] }
 0x249   :  { %6726 = vmatmul.mubr.bf16.gmra.mrb[136].mxu0 %v9041_v35  ;;  %v12279_v5 = vadd.f32 %v9287_v62, %v9286_v61  ;;  %v9004_v35 = vcombine.high %v5054_v17, %v5058_v18  ;;  %v9066_v62 = vcombine.high %v5117_v46, %v5121_v47 }
 0x24a   :  { %6733 = vmatprep.mubr.bf16.mxu0 %v9050_v41  ;;  %6831 = vmatmul.mubr.bf16.gmra.mrb[136].mxu1 %v8987_v51 }
 0x24b   :  { %6838 = vmatprep.mubr.bf16.mxu1 %v8996_v53 }
 0x24c   :  { %v12281_v7 = vpop.f32.mrb[32].mxu0 }
 0x24d   :  { %v4737_v9 = vsel %vm4705_vm1, %v12281_v7, 0.0  ;;  %v9803_v10 = vpop.f32.mrb[33].mxu0  ;;  %v9289_v31 = vpop.f32.mrb[32].mxu1 }
 0x24e   :  { %v4738_v12 = vadd.f32 %v4737_v9, %v4736_v48  ;;  %v12285_v15 = vpop.f32.mrb[34].mxu0  ;;  %v9290_v25 = vpop.f32.mrb[33].mxu1  ;;  %v5062_v9 = vld [vmem:[%s14163_s1 + $0x158] sm:$0xff] }
 0x24f   :  { %v4739_v22 = vsel %vm4705_vm1, %v12285_v15, 0.0  ;;  %v9804_v23 = vpop.f32.mrb[35].mxu0  ;;  %v12295_v39 = vadd.f32 %v9290_v25, %v9289_v31  ;;  %v9292_v41 = vpop.f32.mrb[34].mxu1  ;;  %v5066_v10 = vld [vmem:[%s14163_s1 + $0x178] sm:$0xff]  ;;  %v5125_v25 = vld [vmem:[%s14163_s1 + $0x350] sm:$0xff] }
 0x250   :  { %v4740_v32 = vadd.f32 %v4739_v22, %v4738_v12  ;;  %v9293_v45 = vpop.f32.mrb[35].mxu1  ;;  %v9012_v23 = vcombine.high %v5062_v9, %v5066_v10 }
 0x251   :  { %6734 = vmatmul.mubr.bf16.gmra.mrb[140].mxu0 %v9049_v11  ;;  %v12303_v48 = vadd.f32 %v9293_v45, %v9292_v41 }
 0x252   :  { %6741 = vmatprep.mubr.bf16.mxu0 %v9058_v16  ;;  %6839 = vmatmul.mubr.bf16.gmra.mrb[140].mxu1 %v8995_v24 }
 0x253   :  { %6846 = vmatprep.mubr.bf16.mxu1 %v9004_v35  ;;  %v5129_v35 = vld [vmem:[%s14163_s1 + $0x370] sm:$0xff] }
 0x254   :  { %v12305_v42 = vpop.f32.mrb[36].mxu0 }
 0x255   :  { %v4741_v44 = vsel %vm4705_vm1, %v12305_v42, 0.0  ;;  %v9807_v51 = vpop.f32.mrb[37].mxu0  ;;  %v9295_v16 = vpop.f32.mrb[36].mxu1 }
 0x256   :  { %v4742_v53 = vadd.f32 %v4741_v44, %v4740_v32  ;;  %v12309_v61 = vpop.f32.mrb[38].mxu0  ;;  %v9296_v3 = vpop.f32.mrb[37].mxu1  ;;  %v9065_v44 = vcombine.low %v5117_v46, %v5121_v47  ;;  %v9011_v46 = vcombine.low %v5062_v9, %v5066_v10 }
 0x257   :  { %v4743_v11 = vsel %vm4705_vm1, %v12309_v61, 0.0  ;;  %v9808_v12 = vpop.f32.mrb[39].mxu0  ;;  %v12319_v31 = vadd.f32 %v9296_v3, %v9295_v16  ;;  %v9298_v32 = vpop.f32.mrb[38].mxu1 }
 0x258   :  { %v4744_v22 = vadd.f32 %v4743_v11, %v4742_v53  ;;  %v9299_v24 = vpop.f32.mrb[39].mxu1  ;;  %v9074_v53 = vcombine.high %v5125_v25, %v5129_v35  ;;  %v5074_v11 = vld [vmem:[%s14163_s1 + $0x1b8] sm:$0xff] }
 0x259   :  { %6742 = vmatmul.mubr.bf16.gmra.mrb[144].mxu0 %v9057_v52  ;;  %v12327_v41 = vadd.f32 %v9299_v24, %v9298_v32 }
 0x25a   :  { %6749 = vmatprep.mubr.bf16.mxu0 %v9066_v62  ;;  %6847 = vmatmul.mubr.bf16.gmra.mrb[144].mxu1 %v9003_v1  ;;  %v5070_v62 = vld [vmem:[%s14163_s1 + $0x198] sm:$0xff] }
 0x25b   :  { %6854 = vmatprep.mubr.bf16.mxu1 %v9012_v23 }
 0x25c   :  { %v12329_v17 = vpop.f32.mrb[40].mxu0 }
 0x25d   :  { %v4745_v18 = vsel %vm4705_vm1, %v12329_v17, 0.0  ;;  %v9811_v45 = vpop.f32.mrb[41].mxu0  ;;  %v9301_v1 = vpop.f32.mrb[40].mxu1 }
 0x25e   :  { %v4746_v51 = vadd.f32 %v4745_v18, %v4744_v22  ;;  %v12333_v52 = vpop.f32.mrb[42].mxu0  ;;  %v9302_v47 = vpop.f32.mrb[41].mxu1  ;;  %v9020_v22 = vcombine.high %v5070_v62, %v5074_v11  ;;  %v5133_v18 = vld [vmem:[%s14163_s1 + $0x390] sm:$0xff] }
 0x25f   :  { %14206 = vst [vmem:[#allocation9_spill] sm:$0xff] %v12333_v52  ;;  %v4747_v12 = vsel %vm4705_vm1, %v12333_v52, 0.0  ;;  %v9812_v16 = vpop.f32.mrb[43].mxu0  ;;  %v12343_v23 = vadd.f32 %v9302_v47, %v9301_v1  ;;  %v9304_v32 = vpop.f32.mrb[42].mxu1  ;;  %v5137_v45 = vld [vmem:[%s14163_s1 + $0x3b0] sm:$0xff]  ;;  %v5078_v47 = vld [vmem:[%s14163_s1 + $0x1d8] sm:$0xff] }
 0x260   :  { %v4748_v3 = vadd.f32 %v4747_v12, %v4746_v51  ;;  %v9305_v24 = vpop.f32.mrb[43].mxu1  ;;  %v9073_v51 = vcombine.low %v5125_v25, %v5129_v35  ;;  %v9082_v1 = vcombine.high %v5133_v18, %v5137_v45  ;;  %v9019_v25 = vcombine.low %v5070_v62, %v5074_v11  ;;  %v5141_v52 = vld [vmem:[%s14163_s1 + $0x3d0] sm:$0xff] }
 0x261   :  { %6750 = vmatmul.mubr.bf16.gmra.mrb[148].mxu0 %v9065_v44  ;;  %14207 = vst [vmem:[#allocation10_spill] sm:$0xff] %v12343_v23  ;;  %v12351_v16 = vadd.f32 %v9305_v24, %v9304_v32 }
 0x262   :  { %6757 = vmatprep.mubr.bf16.mxu0 %v9074_v53  ;;  %6855 = vmatmul.mubr.bf16.gmra.mrb[148].mxu1 %v9011_v46  ;;  %v5082_v46 = vld [vmem:[%s14163_s1 + $0x1f8] sm:$0xff] }
 0x263   :  { %14208 = vst [vmem:[#allocation11_spill] sm:$0xff] %v12351_v16  ;;  %6862 = vmatprep.mubr.bf16.mxu1 %v9020_v22 }
 0x264   :  { %v12353_v9 = vpop.f32.mrb[44].mxu0 }
 0x265   :  { %14209 = vst [vmem:[#allocation12_spill] sm:$0xff] %v12353_v9  ;;  %v4749_v10 = vsel %vm4705_vm1, %v12353_v9, 0.0  ;;  %v9815_v44 = vpop.f32.mrb[45].mxu0  ;;  %v9307_v2 = vpop.f32.mrb[44].mxu1 }
 0x266   :  { %v4750_v53 = vadd.f32 %v4749_v10, %v4748_v3  ;;  %v12357_v12 = vpop.f32.mrb[46].mxu0  ;;  %v9308_v35 = vpop.f32.mrb[45].mxu1  ;;  %v9028_v3 = vcombine.high %v5078_v47, %v5082_v46 }
 0x267   :  { %14210 = vst [vmem:[#allocation13_spill] sm:$0xff] %v12357_v12  ;;  %v4751_v32 = vsel %vm4705_vm1, %v12357_v12, 0.0  ;;  %v9816_v24 = vpop.f32.mrb[47].mxu0  ;;  %v12367_v22 = vadd.f32 %v9308_v35, %v9307_v2  ;;  %v9310_v10 = vpop.f32.mrb[46].mxu1  ;;  %v5145_v12 = vld [vmem:[%s14163_s1 + $0x3f0] sm:$0xff]  ;;  %v5086_v35 = vld [vmem:[%s14163_s1 + $0x218] sm:$0xff] }
 0x268   :  { %v4752_v44 = vadd.f32 %v4751_v32, %v4750_v53  ;;  %v9311_v9 = vpop.f32.mrb[47].mxu1  ;;  %v9090_v32 = vcombine.high %v5141_v52, %v5145_v12  ;;  %v9089_v23 = vcombine.low %v5141_v52, %v5145_v12 }
 0x269   :  { %6758 = vmatmul.mubr.bf16.gmra.mrb[152].mxu0 %v9073_v51  ;;  %14211 = vst [vmem:[#allocation14_spill] sm:$0xff] %v12367_v22  ;;  %v12375_v24 = vadd.f32 %v9311_v9, %v9310_v10  ;;  %v9081_v51 = vcombine.low %v5133_v18, %v5137_v45  ;;  %v5090_v9 = vld [vmem:[%s14163_s1 + $0x238] sm:$0xff]  ;;  %v9027_v18 = vcombine.low %v5078_v47, %v5082_v46 }
 0x26a   :  { %6765 = vmatprep.mubr.bf16.mxu0 %v9082_v1  ;;  %6863 = vmatmul.mubr.bf16.gmra.mrb[152].mxu1 %v9019_v25 }
 0x26b   :  { %14212 = vst [vmem:[#allocation15_spill] sm:$0xff] %v12375_v24  ;;  %6870 = vmatprep.mubr.bf16.mxu1 %v9028_v3 }
 0x26c   :  { %v12377_v62 = vpop.f32.mrb[48].mxu0 }
 0x26d   :  { %14213 = vst [vmem:[#allocation16_spill] sm:$0xff] %v12377_v62  ;;  %v4753_v2 = vsel %vm4705_vm1, %v12377_v62, 0.0  ;;  %v9819_v11 = vpop.f32.mrb[49].mxu0  ;;  %v9313_v62 = vpop.f32.mrb[48].mxu1 }
 0x26e   :  { %v4754_v53 = vadd.f32 %v4753_v2, %v4752_v44  ;;  %v12381_v1 = vpop.f32.mrb[50].mxu0  ;;  %v9314_v45 = vpop.f32.mrb[49].mxu1  ;;  %v9036_v44 = vcombine.high %v5086_v35, %v5090_v9 }
 0x26f   :  { %14214 = vst [vmem:[#allocation17_spill] sm:$0xff] %v12381_v1  ;;  %v4755_v25 = vsel %vm4705_vm1, %v12381_v1, 0.0  ;;  %v9820_v10 = vpop.f32.mrb[51].mxu0  ;;  %v12391_v3 = vadd.f32 %v9314_v45, %v9313_v62  ;;  %v9316_v2 = vpop.f32.mrb[50].mxu1  ;;  %v5094_v62 = vld [vmem:[%s14163_s1 + $0x258] sm:$0xff] }
 0x270   :  { %v4756_v11 = vadd.f32 %v4755_v25, %v4754_v53  ;;  %v9317_v24 = vpop.f32.mrb[51].mxu1 }
 0x271   :  { %6766 = vmatmul.mubr.bf16.gmra.mrb[156].mxu0 %v9081_v51  ;;  %14215 = vst [vmem:[#allocation18_spill] sm:$0xff] %v12391_v3  ;;  %v12393_v22 = vadd.f32 %v9317_v24, %v9316_v2  ;;  %v5098_v24 = vld [vmem:[%s14163_s1 + $0x278] sm:$0xff] }
 0x272   :  { %6773 = vmatprep.mubr.bf16.mxu0 %v9090_v32  ;;  %6871 = vmatmul.mubr.bf16.gmra.mrb[156].mxu1 %v9027_v18  ;;  %v9035_v18 = vcombine.low %v5086_v35, %v5090_v9  ;;  %v9044_v12 = vcombine.high %v5094_v62, %v5098_v24  ;;  %v5106_v35 = vld [vmem:[%s14163_s1 + $0x2b8] sm:$0xff] }
 0x273   :  { %14216 = vst [vmem:[#allocation19_spill] sm:$0xff] %v12393_v22  ;;  %6878 = vmatprep.mubr.bf16.mxu1 %v9036_v44 }
 0x274   :  { %v12395_v16 = vpop.f32.mrb[52].mxu0 }
 0x275   :  { %14217 = vst [vmem:[#allocation20_spill] sm:$0xff] %v12395_v16  ;;  %v4757_v1 = vsel %vm4705_vm1, %v12395_v16, 0.0  ;;  %v9823_v10 = vpop.f32.mrb[53].mxu0  ;;  %v9319_v32 = vpop.f32.mrb[52].mxu1 }
 0x276   :  { %v4758_v47 = vadd.f32 %v4757_v1, %v4756_v11  ;;  %v12399_v46 = vpop.f32.mrb[54].mxu0  ;;  %v9320_v52 = vpop.f32.mrb[53].mxu1 }
 0x277   :  { %14218 = vst [vmem:[#allocation21_spill] sm:$0xff] %v12399_v46  ;;  %v4759_v51 = vsel %vm4705_vm1, %v12399_v46, 0.0  ;;  %v9824_v53 = vpop.f32.mrb[55].mxu0  ;;  %v12409_v1 = vadd.f32 %v9320_v52, %v9319_v32  ;;  %v9322_v11 = vpop.f32.mrb[54].mxu1  ;;  %v9043_v52 = vcombine.low %v5094_v62, %v5098_v24  ;;  %v5110_v62 = vld [vmem:[%s14163_s1 + $0x2d8] sm:$0xff] }
 0x278   :  { %v4760_v25 = vadd.f32 %v4759_v51, %v4758_v47  ;;  %v9323_v45 = vpop.f32.mrb[55].mxu1  ;;  %v5114_v24 = vld [vmem:[%s14163_s1 + $0x2f8] sm:$0xff] }
 0x279   :  { %6774 = vmatmul.mubr.bf16.gmra.mrb[160].mxu0 %v9089_v23  ;;  %14219 = vst [vmem:[#allocation22_spill] sm:$0xff] %v12409_v1  ;;  %v12411_v44 = vadd.f32 %v9323_v45, %v9322_v11  ;;  %v5102_v23 = vld [vmem:[%s14163_s1 + $0x298] sm:$0xff] }
 0x27a   :  { %6879 = vmatmul.mubr.bf16.gmra.mrb[160].mxu1 %v9035_v18 }
 0x27b   :  { %14220 = vst [vmem:[#allocation23_spill] sm:$0xff] %v12411_v44  ;;  %6886 = vmatprep.mubr.bf16.mxu1 %v9044_v12  ;;  %v9052_v12 = vcombine.high %v5102_v23, %v5106_v35 }
 0x27c   :  { %v12413_v2 = vpop.f32.mrb[56].mxu0 }
 0x27d   :  { %14221 = vst [vmem:[#allocation24_spill] sm:$0xff] %v12413_v2  ;;  %v4761_v10 = vsel %vm4705_vm1, %v12413_v2, 0.0  ;;  %v9827_v46 = vpop.f32.mrb[57].mxu0  ;;  %v9325_v32 = vpop.f32.mrb[56].mxu1 }
 0x27e   :  { %v4762_v53 = vadd.f32 %v4761_v10, %v4760_v25  ;;  %v12417_v47 = vpop.f32.mrb[58].mxu0  ;;  %v9326_v46 = vpop.f32.mrb[57].mxu1 }
 0x27f   :  { %14222 = vst [vmem:[#allocation25_spill] sm:$0xff] %v12417_v47  ;;  %v4763_v9 = vsel %vm4705_vm1, %v12417_v47, 0.0  ;;  %v9828_v51 = vpop.f32.mrb[59].mxu0  ;;  %v12427_v25 = vadd.f32 %v9326_v46, %v9325_v32  ;;  %v9328_v11 = vpop.f32.mrb[58].mxu1  ;;  %v9051_v46 = vcombine.low %v5102_v23, %v5106_v35  ;;  %v5118_v23 = vld [vmem:[%s14163_s1 + $0x318] sm:$0xff] }
 0x280   :  { %v4764_v18 = vadd.f32 %v4763_v9, %v4762_v53  ;;  %v9329_v45 = vpop.f32.mrb[59].mxu1  ;;  %v5122_v35 = vld [vmem:[%s14163_s1 + $0x338] sm:$0xff] }
 0x281   :  { %14223 = vst [vmem:[#allocation26_spill] sm:$0xff] %v12427_v25  ;;  %v12429_v10 = vadd.f32 %v9329_v45, %v9328_v11 }
 0x282   :  { %6887 = vmatmul.mubr.bf16.gmra.mrb[164].mxu1 %v9043_v52 }
 0x283   :  { %14224 = vst [vmem:[#allocation27_spill] sm:$0xff] %v12429_v10  ;;  %6894 = vmatprep.mubr.bf16.mxu1 %v9052_v12  ;;  %v9060_v12 = vcombine.high %v5110_v62, %v5114_v24 }
 0x284   :  { %v12431_v2 = vpop.f32.mrb[60].mxu0 }
 0x285   :  { %14225 = vst [vmem:[#allocation28_spill] sm:$0xff] %v12431_v2  ;;  %v4765_v16 = vsel %vm4705_vm1, %v12431_v2, 0.0  ;;  %v9831_v44 = vpop.f32.mrb[61].mxu0  ;;  %v9331_v32 = vpop.f32.mrb[60].mxu1 }
 0x286   :  { %v4766_v51 = vadd.f32 %v4765_v16, %v4764_v18  ;;  %v12435_v47 = vpop.f32.mrb[62].mxu0  ;;  %v9332_v44 = vpop.f32.mrb[61].mxu1 }
 0x287   :  { %14226 = vst [vmem:[#allocation29_spill] sm:$0xff] %v12435_v47  ;;  %v4767_v53 = vsel %vm4705_vm1, %v12435_v47, 0.0  ;;  %v9832_v9 = vpop.f32.mrb[63].mxu0  ;;  %v12445_v16 = vadd.f32 %v9332_v44, %v9331_v32  ;;  %v9334_v18 = vpop.f32.mrb[62].mxu1  ;;  %v9059_v44 = vcombine.low %v5110_v62, %v5114_v24 }
 0x288   :  { %v4768_v52 = vadd.f32 %v4767_v53, %v4766_v51  ;;  %v9335_v11 = vpop.f32.mrb[63].mxu1 }
 0x289   :  { %14227 = vst [vmem:[#allocation30_spill] sm:$0xff] %v12445_v16  ;;  %v12447_v45 = vadd.f32 %v9335_v11, %v9334_v18 }
 0x28a   :  { %6895 = vmatmul.mubr.bf16.gmra.mrb[168].mxu1 %v9051_v46 }
 0x28b   :  { %14228 = vst [vmem:[#allocation31_spill] sm:$0xff] %v12447_v45  ;;  %6902 = vmatprep.mubr.bf16.mxu1 %v9060_v12  ;;  %v9068_v12 = vcombine.high %v5118_v23, %v5122_v35 }
 0x28c   :  { %v12449_v2 = vpop.f32.mrb[64].mxu0 }
 0x28d   :  { %14229 = vst [vmem:[#allocation32_spill] sm:$0xff] %v12449_v2  ;;  %v4769_v10 = vsel %vm4705_vm1, %v12449_v2, 0.0  ;;  %v9835_v25 = vpop.f32.mrb[65].mxu0  ;;  %v9353_v32 = vpop.f32.mrb[64].mxu1 }
 0x28e   :  { %v4770_v9 = vadd.f32 %v4769_v10, %v4768_v52  ;;  %v12453_v47 = vpop.f32.mrb[66].mxu0  ;;  %v9354_v25 = vpop.f32.mrb[65].mxu1 }
 0x28f   :  { %14230 = vst [vmem:[#allocation33_spill] sm:$0xff] %v12453_v47  ;;  %v4771_v51 = vsel %vm4705_vm1, %v12453_v47, 0.0  ;;  %v9836_v53 = vpop.f32.mrb[67].mxu0  ;;  %v9355_v10 = vadd.f32 %v9354_v25, %v9353_v32  ;;  %v9356_v52 = vpop.f32.mrb[66].mxu1  ;;  %v9067_v25 = vcombine.low %v5118_v23, %v5122_v35 }
 0x290   :  { %v4772_v46 = vadd.f32 %v4771_v51, %v4770_v9  ;;  %v9357_v18 = vpop.f32.mrb[67].mxu1  ;;  %v5130_v51 = vld [vmem:[%s14163_s1 + $0x378] sm:$0xff] }
 0x291   :  { %v12464_v11 = vadd.f32 %v9355_v10, %v12103_v49  ;;  %v9358_v2 = vadd.f32 %v9357_v18, %v9356_v52  ;;  %v5126_v49 = vld [vmem:[%s14163_s1 + $0x358] sm:$0xff] }
 0x292   :  { %6903 = vmatmul.mubr.bf16.gmra.mrb[172].mxu1 %v9059_v44 }
 0x293   :  { %6910 = vmatprep.mubr.bf16.mxu1 %v9068_v12  ;;  %v12471_v9 = vadd.f32 %v9358_v2, %v12111_v54  ;;  %v9076_v2 = vcombine.high %v5126_v49, %v5130_v51 }
 0x294   :  { %v12466_v45 = vpop.f32.mrb[68].mxu0 }
 0x295   :  { %14231 = vst [vmem:[#allocation34_spill] sm:$0xff] %v12466_v45  ;;  %v4773_v16 = vsel %vm4705_vm1, %v12466_v45, 0.0  ;;  %v9839_v47 = vpop.f32.mrb[69].mxu0 }
 0x296   :  { %v4774_v62 = vadd.f32 %v4773_v16, %v4772_v46  ;;  %v12473_v24 = vpop.f32.mrb[70].mxu0  ;;  %v9359_v47 = vpop.f32.mrb[68].mxu1 }
 0x297   :  { %14232 = vst [vmem:[#allocation35_spill] sm:$0xff] %v12473_v24  ;;  %v4775_v53 = vsel %vm4705_vm1, %v12473_v24, 0.0  ;;  %v9840_v32 = vpop.f32.mrb[71].mxu0  ;;  %v9360_v54 = vpop.f32.mrb[69].mxu1 }
 0x298   :  { %v4776_v44 = vadd.f32 %v4775_v53, %v4774_v62  ;;  %v9361_v16 = vadd.f32 %v9360_v54, %v9359_v47  ;;  %v9362_v46 = vpop.f32.mrb[70].mxu1  ;;  %v5138_v53 = vld [vmem:[%s14163_s1 + $0x3b8] sm:$0xff]  ;;  %v9075_v54 = vcombine.low %v5126_v49, %v5130_v51 }
 0x299   :  { %v9363_v12 = vpop.f32.mrb[71].mxu1 }
 0x29a   :  { %v12484_v10 = vadd.f32 %v9361_v16, %v12127_v8  ;;  %v9364_v52 = vadd.f32 %v9363_v12, %v9362_v46  ;;  %6911 = vmatmul.mubr.bf16.gmra.mrb[176].mxu1 %v9067_v25  ;;  %v5134_v8 = vld [vmem:[%s14163_s1 + $0x398] sm:$0xff] }
 0x29b   :  { %6918 = vmatprep.mubr.bf16.mxu1 %v9076_v2  ;;  %v9084_v2 = vcombine.high %v5134_v8, %v5138_v53 }
 0x29c   :  { %v12486_v18 = vpop.f32.mrb[72].mxu0  ;;  %v12491_v62 = vadd.f32 %v9364_v52, %v12135_v13 }
 0x29d   :  { %14233 = vst [vmem:[#allocation36_spill] sm:$0xff] %v12486_v18  ;;  %v4777_v45 = vsel %vm4705_vm1, %v12486_v18, 0.0  ;;  %v9843_v24 = vpop.f32.mrb[73].mxu0 }
 0x29e   :  { %v4778_v23 = vadd.f32 %v4777_v45, %v4776_v44  ;;  %v12493_v35 = vpop.f32.mrb[74].mxu0  ;;  %v9365_v24 = vpop.f32.mrb[72].mxu1 }
 0x29f   :  { %14234 = vst [vmem:[#allocation37_spill] sm:$0xff] %v12493_v35  ;;  %v4779_v32 = vsel %vm4705_vm1, %v12493_v35, 0.0  ;;  %v9844_v47 = vpop.f32.mrb[75].mxu0  ;;  %v9366_v13 = vpop.f32.mrb[73].mxu1 }
 0x2a0   :  { %v4780_v25 = vadd.f32 %v4779_v32, %v4778_v23  ;;  %v9367_v45 = vadd.f32 %v9366_v13, %v9365_v24  ;;  %v9368_v44 = vpop.f32.mrb[74].mxu1  ;;  %v5146_v32 = vld [vmem:[%s14163_s1 + $0x3f8] sm:$0xff]  ;;  %v9083_v13 = vcombine.low %v5134_v8, %v5138_v53 }
 0x2a1   :  { %v9369_v16 = vpop.f32.mrb[75].mxu1 }
 0x2a2   :  { %v12504_v46 = vadd.f32 %v9367_v45, %v12151_v30  ;;  %v9370_v12 = vadd.f32 %v9369_v16, %v9368_v44  ;;  %6919 = vmatmul.mubr.bf16.gmra.mrb[180].mxu1 %v9075_v54  ;;  %v5142_v30 = vld [vmem:[%s14163_s1 + $0x3d8] sm:$0xff] }
 0x2a3   :  { %6926 = vmatprep.mubr.bf16.mxu1 %v9084_v2  ;;  %v9092_v2 = vcombine.high %v5142_v30, %v5146_v32 }
 0x2a4   :  { %v12506_v52 = vpop.f32.mrb[76].mxu0  ;;  %v12511_v23 = vadd.f32 %v9370_v12, %v12159_v36 }
 0x2a5   :  { %14235 = vst [vmem:[#allocation38_spill] sm:$0xff] %v12506_v52  ;;  %v4781_v18 = vsel %vm4705_vm1, %v12506_v52, 0.0  ;;  %v9847_v35 = vpop.f32.mrb[77].mxu0 }
 0x2a6   :  { %v4782_v49 = vadd.f32 %v4781_v18, %v4780_v25  ;;  %v12513_v51 = vpop.f32.mrb[78].mxu0  ;;  %v9371_v35 = vpop.f32.mrb[76].mxu1 }
 0x2a7   :  { %14236 = vst [vmem:[#allocation39_spill] sm:$0xff] %v12513_v51  ;;  %v4783_v47 = vsel %vm4705_vm1, %v12513_v51, 0.0  ;;  %v9848_v24 = vpop.f32.mrb[79].mxu0  ;;  %v9372_v36 = vpop.f32.mrb[77].mxu1 }
 0x2a8   :  { %v4784_v54 = vadd.f32 %v4783_v47, %v4782_v49  ;;  %v9373_v18 = vadd.f32 %v9372_v36, %v9371_v35  ;;  %v9374_v25 = vpop.f32.mrb[78].mxu1 }
 0x2a9   :  { %v9375_v45 = vpop.f32.mrb[79].mxu1 }
 0x2aa   :  { %v12524_v44 = vadd.f32 %v9373_v18, %v12175_v57  ;;  %v9376_v16 = vadd.f32 %v9375_v45, %v9374_v25  ;;  %6927 = vmatmul.mubr.bf16.gmra.mrb[184].mxu1 %v9083_v13  ;;  %v9091_v13 = vcombine.low %v5142_v30, %v5146_v32 }
 0x2ab   :  { %6934 = vmatprep.mubr.bf16.mxu1 %v9092_v2 }
 0x2ac   :  { %v12526_v12 = vpop.f32.mrb[80].mxu0  ;;  %v12531_v49 = vadd.f32 %v9376_v16, %v12183_v63 }
 0x2ad   :  { %14237 = vst [vmem:[#allocation40_spill] sm:$0xff] %v12526_v12  ;;  %v4785_v52 = vsel %vm4705_vm1, %v12526_v12, 0.0  ;;  %v9851_v51 = vpop.f32.mrb[81].mxu0  ;;  %v9377_v24 = vpop.f32.mrb[80].mxu1 }
 0x2ae   :  { %v4786_v8 = vadd.f32 %v4785_v52, %v4784_v54  ;;  %v12533_v53 = vpop.f32.mrb[82].mxu0  ;;  %v9378_v36 = vpop.f32.mrb[81].mxu1 }
 0x2af   :  { %14238 = vst [vmem:[#allocation41_spill] sm:$0xff] %v12533_v53  ;;  %v4787_v47 = vsel %vm4705_vm1, %v12533_v53, 0.0  ;;  %v9852_v57 = vpop.f32.mrb[83].mxu0  ;;  %v9379_v18 = vadd.f32 %v9378_v36, %v9377_v24  ;;  %v9380_v25 = vpop.f32.mrb[82].mxu1 }
 0x2b0   :  { %v4788_v35 = vadd.f32 %v4787_v47, %v4786_v8  ;;  %v9381_v45 = vpop.f32.mrb[83].mxu1 }
 0x2b1   :  { %v12538_v51 = vadd.f32 %v9379_v18, %v12199_v21  ;;  %v9382_v2 = vadd.f32 %v9381_v45, %v9380_v25 }
 0x2b2   :  { %6935 = vmatmul.mubr.bf16.gmra.mrb[188].mxu1 %v9091_v13 }
 0x2b3   :  { %v12545_v16 = vadd.f32 %v9382_v2, %v12207_v26 }
 0x2b4   :  { %v12540_v63 = vpop.f32.mrb[84].mxu0 }
 0x2b5   :  { %14239 = vst [vmem:[#allocation42_spill] sm:$0xff] %v12540_v63  ;;  %v4789_v52 = vsel %vm4705_vm1, %v12540_v63, 0.0  ;;  %v9855_v54 = vpop.f32.mrb[85].mxu0  ;;  %14240 = vst [vmem:[#allocation43_spill] sm:$0xff] %v12545_v16  ;;  %v9383_v21 = vpop.f32.mrb[84].mxu1 }
 0x2b6   :  { %v4790_v8 = vadd.f32 %v4789_v52, %v4788_v35  ;;  %v12547_v30 = vpop.f32.mrb[86].mxu0  ;;  %v9384_v24 = vpop.f32.mrb[85].mxu1 }
 0x2b7   :  { %14241 = vst [vmem:[#allocation44_spill] sm:$0xff] %v12547_v30  ;;  %v4791_v32 = vsel %vm4705_vm1, %v12547_v30, 0.0  ;;  %v9856_v47 = vpop.f32.mrb[87].mxu0  ;;  %v9385_v13 = vadd.f32 %v9384_v24, %v9383_v21  ;;  %v9386_v36 = vpop.f32.mrb[86].mxu1 }
 0x2b8   :  { %v4792_v57 = vadd.f32 %v4791_v32, %v4790_v8  ;;  %v9387_v18 = vpop.f32.mrb[87].mxu1 }
 0x2b9   :  { %v12552_v25 = vadd.f32 %v9385_v13, %v12223_v50  ;;  %v9388_v45 = vadd.f32 %v9387_v18, %v9386_v36 }
 0x2bb   :  { %14242 = vst [vmem:[#allocation45_spill] sm:$0xff] %v12552_v25  ;;  %v12559_v2 = vadd.f32 %v9388_v45, %v12231_v58 }
 0x2bc   :  { %v12554_v54 = vpop.f32.mrb[88].mxu0 }
 0x2bd   :  { %14243 = vst [vmem:[#allocation46_spill] sm:$0xff] %v12554_v54  ;;  %v4793_v26 = vsel %vm4705_vm1, %v12554_v54, 0.0  ;;  %v9859_v35 = vpop.f32.mrb[89].mxu0  ;;  %14244 = vst [vmem:[#allocation47_spill] sm:$0xff] %v12559_v2  ;;  %v9389_v21 = vpop.f32.mrb[88].mxu1 }
 0x2be   :  { %v4794_v52 = vadd.f32 %v4793_v26, %v4792_v57  ;;  %v12561_v47 = vpop.f32.mrb[90].mxu0  ;;  %v9390_v24 = vpop.f32.mrb[89].mxu1 }
 0x2bf   :  { %14245 = vst [vmem:[#allocation48_spill] sm:$0xff] %v12561_v47  ;;  %v4795_v8 = vsel %vm4705_vm1, %v12561_v47, 0.0  ;;  %v9860_v32 = vpop.f32.mrb[91].mxu0  ;;  %v9391_v13 = vadd.f32 %v9390_v24, %v9389_v21  ;;  %v9392_v36 = vpop.f32.mrb[90].mxu1 }
 0x2c0   :  { %v4796_v50 = vadd.f32 %v4795_v8, %v4794_v52  ;;  %v9393_v18 = vpop.f32.mrb[91].mxu1 }
 0x2c1   :  { %v12566_v30 = vadd.f32 %v9391_v13, %v12247_v20  ;;  %v9394_v35 = vadd.f32 %v9393_v18, %v9392_v36 }
 0x2c3   :  { %14246 = vst [vmem:[#allocation49_spill] sm:$0xff] %v12566_v30  ;;  %v12573_v45 = vadd.f32 %v9394_v35, %v12255_v28 }
 0x2c4   :  { %v12568_v54 = vpop.f32.mrb[92].mxu0 }
 0x2c5   :  { %14247 = vst [vmem:[#allocation50_spill] sm:$0xff] %v12568_v54  ;;  %v4797_v58 = vsel %vm4705_vm1, %v12568_v54, 0.0  ;;  %v9863_v57 = vpop.f32.mrb[93].mxu0  ;;  %14248 = vst [vmem:[#allocation51_spill] sm:$0xff] %v12573_v45  ;;  %v9395_v21 = vpop.f32.mrb[92].mxu1 }
 0x2c6   :  { %v4798_v26 = vadd.f32 %v4797_v58, %v4796_v50  ;;  %v12575_v32 = vpop.f32.mrb[94].mxu0  ;;  %v9396_v24 = vpop.f32.mrb[93].mxu1 }
 0x2c7   :  { %14249 = vst [vmem:[#allocation52_spill] sm:$0xff] %v12575_v32  ;;  %v4799_v52 = vsel %vm4705_vm1, %v12575_v32, 0.0  ;;  %v9864_v8 = vpop.f32.mrb[95].mxu0  ;;  %v9397_v13 = vadd.f32 %v9396_v24, %v9395_v21  ;;  %v9398_v36 = vpop.f32.mrb[94].mxu1 }
 0x2c8   :  { %v4800_v20 = vadd.f32 %v4799_v52, %v4798_v26  ;;  %v9399_v18 = vpop.f32.mrb[95].mxu1 }
 0x2c9   :  { %v12580_v47 = vadd.f32 %v9397_v13, %v12271_v56  ;;  %v9400_v57 = vadd.f32 %v9399_v18, %v9398_v36 }
 0x2cb   :  { %14250 = vst [vmem:[#allocation53_spill] sm:$0xff] %v12580_v47  ;;  %v12587_v35 = vadd.f32 %v9400_v57, %v12279_v5 }
 0x2cc   :  { %v12582_v54 = vpop.f32.mrb[96].mxu0 }
 0x2cd   :  { %14251 = vst [vmem:[#allocation54_spill] sm:$0xff] %v12582_v54  ;;  %v4801_v28 = vsel %vm4705_vm1, %v12582_v54, 0.0  ;;  %v9867_v50 = vpop.f32.mrb[97].mxu0  ;;  %14252 = vst [vmem:[#allocation55_spill] sm:$0xff] %v12587_v35  ;;  %v9401_v52 = vpop.f32.mrb[96].mxu1 }
 0x2ce   :  { %v4802_v58 = vadd.f32 %v4801_v28, %v4800_v20  ;;  %v4702_v8 = vpop.f32.mrb[98].mxu0  ;;  %v9402_v21 = vpop.f32.mrb[97].mxu1 }
 0x2cf   :  { %v9868_v26 = vpop.f32.mrb[99].mxu0  ;;  %v9403_v24 = vadd.f32 %v9402_v21, %v9401_v52  ;;  %v9404_v32 = vpop.f32.mrb[98].mxu1 }
 0x2d0   :  { %v4803_v63 = vrot.slane %v4802_v58, 4  ;;  %v9405_v56 = vpop.f32.mrb[99].mxu1 }
 0x2d1   :  { %v12590_v13 = vadd.f32 %v9403_v24, %v12295_v39  ;;  %v9406_v36 = vadd.f32 %v9405_v56, %v9404_v32 }
 0x2d2   :  { %v4804_v5 = vadd.f32 %v4803_v63, %v4802_v58 }
 0x2d3   :  { %14253 = vst [vmem:[#allocation56_spill] sm:$0xff] %v12590_v13  ;;  %v12593_v50 = vadd.f32 %v9406_v36, %v12303_v48 }
 0x2d4   :  { %v9465_v18 = vpop.f32.mrb[100].mxu0  ;;  %v4805_v39 = vrot.slane %v4804_v5, 2 }
 0x2d5   :  { %v9466_v53 = vpop.f32.mrb[101].mxu0  ;;  %14254 = vst [vmem:[#allocation57_spill] sm:$0xff] %v12593_v50  ;;  %v9407_v8 = vpop.f32.mrb[100].mxu1 }
 0x2d6   :  { %v9467_v57 = vadd.f32 %v9466_v53, %v9465_v18  ;;  %v9468_v20 = vpop.f32.mrb[102].mxu0  ;;  %v9408_v21 = vpop.f32.mrb[101].mxu1  ;;  %v4806_v56 = vadd.f32 %v4805_v39, %v4804_v5 }
 0x2d7   :  { %v9469_v28 = vpop.f32.mrb[103].mxu0  ;;  %v9409_v54 = vadd.f32 %v9408_v21, %v9407_v8  ;;  %v9410_v12 = vpop.f32.mrb[102].mxu1 }
 0x2d8   :  { %v12596_v26 = vadd.f32 %v9467_v57, %v12464_v11  ;;  %v9470_v52 = vadd.f32 %v9469_v28, %v9468_v20  ;;  %v9411_v24 = vpop.f32.mrb[103].mxu1 }
 0x2d9   :  { %v12602_v48 = vadd.f32 %v9409_v54, %v12319_v31  ;;  %v9412_v63 = vadd.f32 %v9411_v24, %v9410_v12  ;;  %v4807_v31 = vrot.slane %v4806_v56, 1 }
 0x2da   :  { %14255 = vst [vmem:[#allocation58_spill] sm:$0xff] %v12596_v26  ;;  %v12599_v32 = vadd.f32 %v9470_v52, %v12471_v9 }
 0x2db   :  { %14257 = vst [vmem:[#allocation60_spill] sm:$0xff] %v12602_v48  ;;  %v12609_v11 = vadd.f32 %v9412_v63, %v12327_v41  ;;  %v4808_v41 = vadd.f32 %v4807_v31, %v4806_v56 }
 0x2dc   :  { %14256 = vst [vmem:[#allocation59_spill] sm:$0xff] %v12599_v32  ;;  %v12604_v53 = vpop.f32.mrb[104].mxu0 }
 0x2dd   :  { %v12606_v58 = vpop.f32.mrb[105].mxu0  ;;  %14258 = vst [vmem:[#allocation61_spill] sm:$0xff] %v12609_v11  ;;  %v12615_v57 = vpop.f32.mrb[104].mxu1  ;;  %v12637_v24 = vmul.f32 0.0025510204, %v4808_v41 }
 0x2de   :  { %v12611_v36 = vpop.f32.mrb[106].mxu0  ;;  %v12617_v9 = vpop.f32.mrb[105].mxu1 }
 0x2df   :  { %v12613_v18 = vpop.f32.mrb[107].mxu0  ;;  %v12619_v20 = vpop.f32.mrb[106].mxu1  ;;  %v4810_v56 = vsub.f32 %v12089_v34, %v12637_v24  ;;  %v4811_v31 = vsub.f32 %v12091_v37, %v12637_v24  ;;  %v4812_v41 = vsub.f32 %v12113_v55, %v12637_v24  ;;  %v4813_v47 = vsub.f32 %v12117_v60, %v12637_v24 }
 0x2e0   :  { %v12621_v12 = vpop.f32.mrb[107].mxu1  ;;  %v4814_v37 = vsub.f32 %v12137_v14, %v12637_v24  ;;  %v4815_v55 = vsub.f32 %v12141_v19, %v12637_v24  ;;  %v4816_v14 = vsub.f32 %v12161_v38, %v12637_v24  ;;  %v4817_v19 = vsub.f32 %v12165_v43, %v12637_v24 }
 0x2e1   :  { %v4859_v34 = vmul.f32 %v4810_v56, %v4810_v56  ;;  %v4860_v45 = vmul.f32 %v4811_v31, %v4811_v31  ;;  %v4861_v1 = vmul.f32 %v4812_v41, %v4812_v41  ;;  %v4862_v3 = vmul.f32 %v4813_v47, %v4813_v47 }
 0x2e2   :  { %v4863_v41 = vmul.f32 %v4814_v37, %v4814_v37  ;;  %v4818_v47 = vsub.f32 %v12185_v0, %v12637_v24  ;;  %v4820_v38 = vsub.f32 %v12209_v27, %v12637_v24  ;;  %v4864_v37 = vmul.f32 %v4815_v55, %v4815_v55 }
 0x2e3   :  { %v4909_v60 = vsel %vm4705_vm1, %v4860_v45, 0.0  ;;  %v4911_v16 = vsel %vm4705_vm1, %v4861_v1, 0.0  ;;  %v4913_v1 = vsel %vm4705_vm1, %v4862_v3, 0.0  ;;  %v4821_v43 = vsub.f32 %v12213_v33, %v12637_v24 }
 0x2e4   :  { %v12623_v54 = vpop.f32.mrb[108].mxu0  ;;  %v4822_v0 = vsub.f32 %v12233_v59, %v12637_v24  ;;  %v4825_v27 = vsub.f32 %v12261_v40, %v12637_v24  ;;  %v4865_v55 = vmul.f32 %v4816_v14, %v4816_v14  ;;  %v4915_v3 = vsel %vm4705_vm1, %v4863_v41, 0.0 }
 0x2e5   :  { %v12625_v28 = vpop.f32.mrb[109].mxu0  ;;  %v12631_v52 = vpop.f32.mrb[108].mxu1  ;;  %v4826_v33 = vsub.f32 %v12281_v7, %v12637_v24  ;;  %v4827_v59 = vsub.f32 %v12285_v15, %v12637_v24  ;;  %v4867_v40 = vmul.f32 %v4818_v47, %v4818_v47  ;;  %v4917_v41 = vsel %vm4705_vm1, %v4864_v37, 0.0 }
 0x2e6   :  { %v12627_v8 = vpop.f32.mrb[110].mxu0  ;;  %v12633_v21 = vpop.f32.mrb[109].mxu1  ;;  %v4871_v7 = vmul.f32 %v4822_v0, %v4822_v0  ;;  %v4919_v47 = vsel %vm4705_vm1, %v4865_v55, 0.0  ;;  %v12740_v37 = vmul.f32 %v4825_v27, %v4825_v27 }
 0x2e7   :  { %v12629_v5 = vpop.f32.mrb[111].mxu0  ;;  %v12635_v39 = vpop.f32.mrb[110].mxu1 }
 0x2e8   :  { %v12639_v63 = vpop.f32.mrb[111].mxu1 }
 0x2ec   :  { %v12641_v11 = vpop.f32.mrb[112].mxu0 }
 0x2ed   :  { %v12643_v48 = vpop.f32.mrb[113].mxu0  ;;  %v12653_v32 = vpop.f32.mrb[112].mxu1 }
 0x2ee   :  { %v12649_v50 = vpop.f32.mrb[114].mxu0  ;;  %14259 = vst [vmem:[#allocation62_spill] sm:$0xff] %v12653_v32  ;;  %v12657_v35 = vpop.f32.mrb[113].mxu1 }
 0x2ef   :  { %v12651_v13 = vpop.f32.mrb[115].mxu0  ;;  %14260 = vst [vmem:[#allocation63_spill] sm:$0xff] %v12657_v35  ;;  %v12659_v26 = vpop.f32.mrb[114].mxu1 }
 0x2f0   :  { %14261 = vst [vmem:[#allocation64_spill] sm:$0xff] %v12659_v26  ;;  %v12663_v30 = vpop.f32.mrb[115].mxu1  ;;  %v4908_v26 = vsel %vm4705_vm1, %v4859_v34, 0.0  ;;  %v4819_v34 = vsub.f32 %v12189_v6, %v12637_v24  ;;  %v4824_v6 = vsub.f32 %v12257_v29, %v12637_v24 }
 0x2f1   :  { %14262 = vst [vmem:[#allocation65_spill] sm:$0xff] %v12663_v30  ;;  %v4910_v31 = vadd.f32 %v4909_v60, %v4908_v26 }
 0x2f2   :  { %v4868_v14 = vmul.f32 %v4819_v34, %v4819_v34 }
 0x2f3   :  { %v4912_v45 = vadd.f32 %v4911_v16, %v4910_v31  ;;  %v4823_v16 = vsub.f32 %v12237_v4, %v12637_v24  ;;  %v12718_v4 = vsub.f32 %v12305_v42, %v12637_v24  ;;  %v12731_v42 = vsub.f32 %v12309_v61, %v12637_v24 }
 0x2f4   :  { %v12667_v22 = vpop.f32.mrb[116].mxu0 }
 0x2f5   :  { %v12669_v2 = vpop.f32.mrb[117].mxu0  ;;  %v12679_v25 = vpop.f32.mrb[116].mxu1  ;;  %v4914_v31 = vadd.f32 %v4913_v1, %v4912_v45  ;;  %v4866_v1 = vmul.f32 %v4817_v19, %v4817_v19  ;;  %v4873_v19 = vmul.f32 %v4824_v6, %v4824_v6  ;;  %v4925_v6 = vsel %vm4705_vm1, %v4868_v14, 0.0 }
 0x2f6   :  { %v12675_v56 = vpop.f32.mrb[118].mxu0  ;;  %14263 = vst [vmem:[#allocation66_spill] sm:$0xff] %v12679_v25  ;;  %v12684_v35 = vpop.f32.mrb[117].mxu1  ;;  %v4870_v25 = vmul.f32 %v4821_v43, %v4821_v43  ;;  %v12742_v43 = vmul.f32 %v4826_v33, %v4826_v33  ;;  %v4931_v33 = vsel %vm4705_vm1, %v4871_v7, 0.0  ;;  %v9485_v7 = vadd.f32 %v12643_v48, %v12641_v11 }
 0x2f7   :  { %v12677_v30 = vpop.f32.mrb[119].mxu0  ;;  %14264 = vst [vmem:[#allocation67_spill] sm:$0xff] %v12684_v35  ;;  %v12690_v26 = vpop.f32.mrb[118].mxu1  ;;  %v4916_v45 = vadd.f32 %v4915_v3, %v4914_v31  ;;  %v4869_v35 = vmul.f32 %v4820_v38, %v4820_v38  ;;  %v4872_v31 = vmul.f32 %v4823_v16, %v4823_v16  ;;  %v12738_v38 = vsub.f32 %v12329_v17, %v12637_v24 }
 0x2f8   :  { %14265 = vst [vmem:[#allocation68_spill] sm:$0xff] %v12690_v26  ;;  %v12697_v60 = vpop.f32.mrb[119].mxu1  ;;  %v4921_v61 = vsel %vm4705_vm1, %v4866_v1, 0.0  ;;  %v4923_v16 = vsel %vm4705_vm1, %v4867_v40, 0.0  ;;  %v4929_v27 = vsel %vm4705_vm1, %v4870_v25, 0.0  ;;  %v9473_v1 = vadd.f32 %v12606_v58, %v12604_v53 }
 0x2f9   :  { %14266 = vst [vmem:[#allocation69_spill] sm:$0xff] %v12697_v60  ;;  %v4918_v32 = vadd.f32 %v4917_v41, %v4916_v45  ;;  %v12746_v45 = vmul.f32 %v4827_v59, %v4827_v59  ;;  %v4927_v17 = vsel %vm4705_vm1, %v4869_v35, 0.0  ;;  %v12758_v59 = vsel %vm4705_vm1, %v4873_v19, 0.0 }
 0x2fa   :  { %v9476_v40 = vadd.f32 %v12613_v18, %v12611_v36  ;;  %v9479_v35 = vadd.f32 %v12625_v28, %v12623_v54  ;;  %v9482_v25 = vadd.f32 %v12629_v5, %v12627_v8  ;;  %v12771_v19 = vadd.f32 %v9473_v1, %v12484_v10  ;;  %v14275_v1 = vld [vmem:[#allocation15_spill] sm:$0xff] }
 0x2fb   :  { %v4920_v0 = vadd.f32 %v4919_v47, %v4918_v32  ;;  %v4933_v32 = vsel %vm4705_vm1, %v4872_v31, 0.0  ;;  %v9488_v58 = vadd.f32 %v12651_v13, %v12649_v50  ;;  %v9415_v36 = vadd.f32 %v12617_v9, %v12615_v57  ;;  %v14268_v13 = vld [vmem:[#allocation10_spill] sm:$0xff] }
 0x2fc   :  { %v12710_v60 = vpop.f32.mrb[120].mxu0  ;;  %v12774_v53 = vadd.f32 %v9476_v40, %v12491_v62  ;;  %v12781_v28 = vadd.f32 %v9479_v35, %v12504_v46  ;;  %v12784_v48 = vadd.f32 %v9482_v25, %v12511_v23  ;;  %v12787_v10 = vadd.f32 %v9485_v7, %v12524_v44  ;;  %v10073_v23 = vld [vmem:[%s14166_s4 + $0x40] sm:$0xff]   ;;  %v14277_v35 = vld [vmem:[#allocation18_spill] sm:$0xff] }
 0x2fd   :  { %14267 = vst [vmem:[#allocation70_spill] sm:$0xff] %v12710_v60  ;;  %v12720_v29 = vpop.f32.mrb[121].mxu0  ;;  %v12727_v15 = vpop.f32.mrb[120].mxu1  ;;  %v4922_v41 = vadd.f32 %v4921_v61, %v4920_v0  ;;  %v12790_v8 = vadd.f32 %v9488_v58, %v12531_v49  ;;  %v12793_v50 = vadd.f32 %v9415_v36, %v14268_v13  ;;  %v9491_v57 = vadd.f32 %v12669_v2, %v12667_v22  ;;  %v14269_v2 = vld [vmem:[#allocation11_spill] sm:$0xff]  ;;  %v14278_v58 = vld [vmem:[#allocation64_spill] sm:$0xff] }
 0x2fe   :  { %v12723_v26 = vpop.f32.mrb[122].mxu0  ;;  %v12734_v34 = vpop.f32.mrb[121].mxu1  ;;  %v9418_v46 = vadd.f32 %v12621_v12, %v12619_v20  ;;  %v9494_v5 = vadd.f32 %v12677_v30, %v12675_v56  ;;  %v9421_v49 = vadd.f32 %v12633_v21, %v12631_v52  ;;  %v9424_v0 = vadd.f32 %v12639_v63, %v12635_v39  ;;  %9673 = vmatprep.subr.bf16.mxu0 %v10073_v23  ;;  %v10074_v52 = vld [vmem:[%s14166_s4] sm:$0xff]   ;;  %v14273_v39 = vld [vmem:[#allocation43_spill] sm:$0xff] }
 0x2ff   :  { %v12725_v60 = vpop.f32.mrb[123].mxu0  ;;  %v12744_v3 = vpop.f32.mrb[122].mxu1  ;;  %v4924_v47 = vadd.f32 %v4923_v16, %v4922_v41  ;;  %v12809_v22 = vadd.f32 %v9491_v57, %v12538_v51  ;;  %v14272_v41 = vld [vmem:[#allocation63_spill] sm:$0xff]  ;;  %v14274_v51 = vld [vmem:[#allocation14_spill] sm:$0xff]  ;;  %9674 = vmatpush3.bf16.msra.mxu0 %v10074_v52 }
 0x300   :  { %v12751_v55 = vpop.f32.mrb[123].mxu1  ;;  %v12812_v20 = vadd.f32 %v9418_v46, %v14269_v2  ;;  %v12822_v63 = vadd.f32 %v9494_v5, %v14273_v39  ;;  %v12825_v56 = vadd.f32 %v9421_v49, %v14274_v51  ;;  %v12828_v40 = vadd.f32 %v9424_v0, %v14275_v1  ;;  %v14280_v57 = vld [vmem:[#allocation66_spill] sm:$0xff]  ;;  %v14281_v46 = vld [vmem:[#allocation67_spill] sm:$0xff]  ;;  %v14283_v5 = vld [vmem:[#allocation69_spill] sm:$0xff] }
 0x301   :  { %v4926_v54 = vadd.f32 %v4925_v6, %v4924_v47  ;;  %v14271_v6 = vld [vmem:[#allocation62_spill] sm:$0xff]  ;;  %v9500_v7 = vadd.f32 %v12725_v60, %v12723_v26  ;;  %v9433_v23 = vadd.f32 %v14281_v46, %v14280_v57  ;;  %v9439_v26 = vadd.f32 %v12734_v34, %v12727_v15  ;;  %v14287_v51 = vld [vmem:[#allocation23_spill] sm:$0xff]  ;;  %v14288_v34 = vld [vmem:[#allocation49_spill] sm:$0xff] }
 0x303   :  { %v4928_v44 = vadd.f32 %v4927_v17, %v4926_v54  ;;  %v9427_v17 = vadd.f32 %v14272_v41, %v14271_v6  ;;  %v14285_v6 = vld [vmem:[#allocation19_spill] sm:$0xff] }
 0x304   :  { %v9501_v14 = vpop.f32.mrb[124].mxu0  ;;  %v14270_v12 = vld [vmem:[#allocation70_spill] sm:$0xff] }
 0x305   :  { %v9502_v31 = vpop.f32.mrb[125].mxu0  ;;  %v9443_v62 = vpop.f32.mrb[124].mxu1  ;;  %v9497_v16 = vadd.f32 %v12720_v29, %v14270_v12  ;;  %v4930_v21 = vadd.f32 %v4929_v27, %v4928_v44  ;;  %v14276_v29 = vld [vmem:[#allocation45_spill] sm:$0xff]  ;;  %v12834_v25 = vadd.f32 %v9427_v17, %v14277_v35  ;;  %v14282_v44 = vld [vmem:[#allocation68_spill] sm:$0xff]  ;;  %v14284_v12 = vld [vmem:[#allocation47_spill] sm:$0xff] }
 0x306   :  { %v9504_v18 = vpop.f32.mrb[126].mxu0  ;;  %v9444_v9 = vpop.f32.mrb[125].mxu1  ;;  %v14279_v27 = vld [vmem:[#allocation65_spill] sm:$0xff]  ;;  %v9436_v49 = vadd.f32 %v14283_v5, %v14282_v44  ;;  %v9503_v0 = vadd.f32 %v9502_v31, %v9501_v14  ;;  %v10077_v31 = vld [vmem:[%s14166_s4 + $0x50] sm:$0xff]  }
 0x307   :  { %v9505_v11 = vpop.f32.mrb[127].mxu0  ;;  %v9446_v61 = vpop.f32.mrb[126].mxu1  ;;  %v12831_v47 = vadd.f32 %v9497_v16, %v14276_v29  ;;  %v9430_v36 = vadd.f32 %v14279_v27, %v14278_v58  ;;  %v4932_v13 = vadd.f32 %v4931_v33, %v4930_v21  ;;  %v12845_v16 = vadd.f32 %v9500_v7, %v14284_v12  ;;  %v10075_v33 = vld [vmem:[%s14166_s4 + $0x48] sm:$0xff]   ;;  %v14286_v21 = vld [vmem:[#allocation22_spill] sm:$0xff]  ;;  %v14290_v7 = vld [vmem:[#allocation51_spill] sm:$0xff] }
 0x308   :  { %v9447_v30 = vpop.f32.mrb[127].mxu1  ;;  %v9506_v60 = vadd.f32 %v9505_v11, %v9504_v18  ;;  %v10076_v14 = vld [vmem:[%s14166_s4 + $0x8] sm:$0xff]   ;;  %v12862_v39 = vadd.f32 %v9433_v23, %v14286_v21  ;;  %v12865_v15 = vadd.f32 %v9436_v49, %v14287_v51  ;;  %v12868_v18 = vadd.f32 %v9503_v0, %v14288_v34  ;;  %v14289_v29 = vld [vmem:[#allocation26_spill] sm:$0xff]  ;;  %9675 = vmatprep.subr.bf16.mxu0 %v10075_v33  ;;  %v14291_v0 = vld [vmem:[#allocation27_spill] sm:$0xff] }
 0x309   :  { %v12848_v41 = vadd.f32 %v9430_v36, %v14285_v6  ;;  %v4934_v52 = vadd.f32 %v4933_v32, %v4932_v13  ;;  %v12871_v35 = vadd.f32 %v9439_v26, %v14289_v29  ;;  %v9442_v32 = vadd.f32 %v12751_v55, %v12744_v3  ;;  %9676 = vmatpush3.bf16.msra.mxu0 %v10076_v14  ;;  %v10078_v5 = vld [vmem:[%s14166_s4 + $0x10] sm:$0xff]   ;;  %v14296_v33 = vld [vmem:[#allocation55_spill] sm:$0xff]  ;;  %v14297_v21 = vld [vmem:[#allocation9_spill] sm:$0xff] }
 0x30a   :  { %v12874_v58 = vadd.f32 %v9506_v60, %v14290_v7  ;;  %v9445_v27 = vadd.f32 %v9444_v9, %v9443_v62  ;;  %v9448_v57 = vadd.f32 %v9447_v30, %v9446_v61  ;;  %v4937_v49 = vsel %vm4705_vm1, %v12740_v37, 0.0  ;;  %v14292_v3 = vld [vmem:[#allocation30_spill] sm:$0xff]  ;;  %9677 = vmatprep.subr.bf16.mxu0 %v10077_v31  ;;  %v10079_v9 = vld [vmem:[%s14166_s4 + $0x58] sm:$0xff]  }
 0x30b   :  { %v4936_v13 = vadd.f32 %v12758_v59, %v4934_v52  ;;  %v12885_v12 = vadd.f32 %v9442_v32, %v14291_v0  ;;  %v14293_v30 = vld [vmem:[#allocation31_spill] sm:$0xff]  ;;  %v14295_v37 = vld [vmem:[#allocation58_spill] sm:$0xff]  ;;  %v4877_v60 = vmul.f32 %v12718_v4, %v12718_v4  ;;  %v4831_v51 = vsub.f32 %v14297_v21, %v12637_v24 }
 0x30c   :  { %v9507_v54 = vpop.f32.mrb[128].mxu0  ;;  %v12888_v55 = vadd.f32 %v9445_v27, %v14292_v3  ;;  %v4878_v4 = vmul.f32 %v12731_v42, %v12731_v42  ;;  %v14298_v29 = vld [vmem:[#allocation59_spill] sm:$0xff]  ;;  %v4879_v42 = vmul.f32 %v12738_v38, %v12738_v38 }
 0x30d   :  { %v9508_v2 = vpop.f32.mrb[129].mxu0  ;;  %v9577_v11 = vpop.f32.mrb[128].mxu1  ;;  %v4938_v61 = vadd.f32 %v4937_v49, %v4936_v13  ;;  %9678 = vmatpush3.bf16.msra.mxu0 %v10078_v5  ;;  %v14299_v13 = vld [vmem:[#allocation12_spill] sm:$0xff] }
 0x30e   :  { %v9510_v17 = vpop.f32.mrb[130].mxu0  ;;  %v9578_v36 = vpop.f32.mrb[129].mxu1  ;;  %v9509_v46 = vadd.f32 %v9508_v2, %v9507_v54  ;;  %v12894_v54 = vadd.f32 %v9448_v57, %v14293_v30  ;;  %v14294_v2 = vld [vmem:[#allocation53_spill] sm:$0xff]  ;;  %9679 = vmatprep.subr.bf16.mxu0 %v10079_v9  ;;  %v4832_v57 = vsub.f32 %v14299_v13, %v12637_v24  ;;  %v14300_v5 = vld [vmem:[#allocation56_spill] sm:$0xff]  ;;  %v4945_v38 = vsel %vm4705_vm1, %v4878_v4, 0.0 }
 0x30f   :  { %v9511_v1 = vpop.f32.mrb[131].mxu0  ;;  %v9579_v23 = vadd.f32 %v9578_v36, %v9577_v11  ;;  %v9580_v44 = vpop.f32.mrb[130].mxu1  ;;  %v10081_v36 = vld [vmem:[%s14166_s4 + $0x60] sm:$0xff]   ;;  %v14301_v30 = vld [vmem:[#allocation13_spill] sm:$0xff]  ;;  %v4947_v4 = vsel %vm4705_vm1, %v4879_v42, 0.0 }
 0x310   :  { %v9512_v62 = vadd.f32 %v9511_v1, %v9510_v17  ;;  %v9581_v59 = vpop.f32.mrb[131].mxu1  ;;  %v12897_v6 = vadd.f32 %v9509_v46, %v14294_v2  ;;  %v4939_v17 = vsel %vm4705_vm1, %v12742_v43, 0.0  ;;  %v10080_v1 = vld [vmem:[%s14166_s4 + $0x18] sm:$0xff]   ;;  %v4941_v43 = vsel %vm4705_vm1, %v12746_v45, 0.0  ;;  %v14305_v42 = vld [vmem:[#allocation20_spill] sm:$0xff] }
 0x311   :  { %v12900_v26 = vadd.f32 %v9579_v23, %v14295_v37  ;;  %v9582_v31 = vadd.f32 %v9581_v59, %v9580_v44  ;;  %v4940_v34 = vadd.f32 %v4939_v17, %v4938_v61  ;;  %v4943_v45 = vsel %vm4705_vm1, %v4877_v60, 0.0  ;;  %9680 = vmatpush3.bf16.msra.mxu0 %v10080_v1  ;;  %v10082_v61 = vld [vmem:[%s14166_s4 + $0x20] sm:$0xff]   ;;  %v14302_v60 = vld [vmem:[#allocation57_spill] sm:$0xff] }
 0x312   :  { %v12907_v14 = vadd.f32 %v9512_v62, %v14296_v33  ;;  %v4833_v2 = vsub.f32 %v14301_v30, %v12637_v24  ;;  %v4880_v37 = vmul.f32 %v4831_v51, %v4831_v51  ;;  %9681 = vmatprep.subr.bf16.mxu0 %v10081_v36  ;;  %v4881_v51 = vmul.f32 %v4832_v57, %v4832_v57  ;;  %v10084_v36 = vld [vmem:[%s14166_s4 + $0x28] sm:$0xff]  }
 0x313   :  { %v12919_v7 = vadd.f32 %v9582_v31, %v14298_v29  ;;  %v4942_v46 = vadd.f32 %v4941_v43, %v4940_v34  ;;  %v10083_v31 = vld [vmem:[%s14166_s4 + $0x68] sm:$0xff]  }
 0x314   :  { %v9513_v52 = vpop.f32.mrb[132].mxu0 }
 0x315   :  { %v9514_v11 = vpop.f32.mrb[133].mxu0  ;;  %v9583_v23 = vpop.f32.mrb[132].mxu1  ;;  %v4944_v62 = vadd.f32 %v4943_v45, %v4942_v46  ;;  %9682 = vmatpush3.bf16.msra.mxu0 %v10082_v61  ;;  %v4882_v46 = vmul.f32 %v4833_v2, %v4833_v2  ;;  %v4836_v45 = vsub.f32 %v14305_v42, %v12637_v24 }
 0x316   :  { %v9515_v32 = vadd.f32 %v9514_v11, %v9513_v52  ;;  %v9516_v27 = vpop.f32.mrb[134].mxu0  ;;  %v9584_v0 = vpop.f32.mrb[133].mxu1  ;;  %v14303_v11 = vld [vmem:[#allocation16_spill] sm:$0xff]  ;;  %9683 = vmatprep.subr.bf16.mxu0 %v10083_v31 }
 0x317   :  { %v9517_v44 = vpop.f32.mrb[135].mxu0  ;;  %v9585_v59 = vadd.f32 %v9584_v0, %v9583_v23  ;;  %v9586_v9 = vpop.f32.mrb[134].mxu1  ;;  %v4946_v52 = vadd.f32 %v4945_v38, %v4944_v62  ;;  %v4834_v1 = vsub.f32 %v14303_v11, %v12637_v24  ;;  %v4949_v23 = vsel %vm4705_vm1, %v4880_v37, 0.0 }
 0x318   :  { %v12930_v49 = vadd.f32 %v9515_v32, %v14300_v5  ;;  %v9518_v3 = vadd.f32 %v9517_v44, %v9516_v27  ;;  %v9587_v33 = vpop.f32.mrb[135].mxu1  ;;  %v4951_v62 = vsel %vm4705_vm1, %v4881_v51, 0.0 }
 0x319   :  { %v12945_v21 = vadd.f32 %v9585_v59, %v12771_v19  ;;  %v9588_v34 = vadd.f32 %v9587_v33, %v9586_v9  ;;  %v4948_v29 = vadd.f32 %v4947_v4, %v4946_v52  ;;  %v14304_v19 = vld [vmem:[#allocation17_spill] sm:$0xff]  ;;  %v14306_v59 = vld [vmem:[#allocation60_spill] sm:$0xff]  ;;  %9684 = vmatpush3.bf16.msra.mxu0 %v10084_v36  ;;  %v4953_v52 = vsel %vm4705_vm1, %v4882_v46, 0.0 }
 0x31a   :  { %v12939_v17 = vadd.f32 %v9518_v3, %v14302_v60  ;;  %v4835_v13 = vsub.f32 %v14304_v19, %v12637_v24  ;;  %v4883_v3 = vmul.f32 %v4834_v1, %v4834_v1  ;;  %v14307_v60 = vld [vmem:[#allocation21_spill] sm:$0xff]  ;;  %v4885_v19 = vmul.f32 %v4836_v45, %v4836_v45 }
 0x31b   :  { %v12951_v32 = vadd.f32 %v9588_v34, %v12774_v53  ;;  %v4950_v53 = vadd.f32 %v4949_v23, %v4948_v29  ;;  %v4837_v33 = vsub.f32 %v14307_v60, %v12637_v24  ;;  %v14308_v34 = vld [vmem:[#allocation61_spill] sm:$0xff]  ;;  %v14309_v29 = vld [vmem:[#allocation24_spill] sm:$0xff] }
 0x31c   :  { %v9519_v43 = vpop.f32.mrb[136].mxu0  ;;  %v4884_v31 = vmul.f32 %v4835_v13, %v4835_v13  ;;  %v4955_v36 = vsel %vm4705_vm1, %v4883_v3, 0.0 }
 0x31d   :  { %v9520_v27 = vpop.f32.mrb[137].mxu0  ;;  %v9589_v5 = vpop.f32.mrb[136].mxu1  ;;  %v4952_v2 = vadd.f32 %v4951_v62, %v4950_v53  ;;  %v4886_v53 = vmul.f32 %v4837_v33, %v4837_v33  ;;  %v14311_v62 = vld [vmem:[#allocation28_spill] sm:$0xff] }
 0x31e   :  { %v9521_v57 = vadd.f32 %v9520_v27, %v9519_v43  ;;  %v9522_v44 = vpop.f32.mrb[138].mxu0  ;;  %v9590_v61 = vpop.f32.mrb[137].mxu1  ;;  %v4838_v27 = vsub.f32 %v14309_v29, %v12637_v24 }
 0x31f   :  { %v9523_v0 = vpop.f32.mrb[139].mxu0  ;;  %v9591_v38 = vadd.f32 %v9590_v61, %v9589_v5  ;;  %v9592_v37 = vpop.f32.mrb[138].mxu1  ;;  %v4954_v51 = vadd.f32 %v4953_v52, %v4952_v2  ;;  %v4959_v2 = vsel %vm4705_vm1, %v4885_v19, 0.0 }
 0x320   :  { %v12963_v9 = vadd.f32 %v9521_v57, %v14306_v59  ;;  %v9524_v30 = vadd.f32 %v9523_v0, %v9522_v44  ;;  %v9593_v1 = vpop.f32.mrb[139].mxu1  ;;  %v14310_v44 = vld [vmem:[#allocation25_spill] sm:$0xff]  ;;  %v4840_v59 = vsub.f32 %v14311_v62, %v12637_v24 }
 0x321   :  { %v12972_v4 = vadd.f32 %v9591_v38, %v12781_v28  ;;  %v9594_v43 = vadd.f32 %v9593_v1, %v9592_v37  ;;  %v4956_v57 = vadd.f32 %v4955_v36, %v4954_v51  ;;  %v4839_v42 = vsub.f32 %v14310_v44, %v12637_v24  ;;  %v14313_v36 = vld [vmem:[#allocation32_spill] sm:$0xff] }
 0x322   :  { %v12969_v11 = vadd.f32 %v9524_v30, %v14308_v34  ;;  %v4957_v28 = vsel %vm4705_vm1, %v4884_v31, 0.0  ;;  %v4887_v30 = vmul.f32 %v4838_v27, %v4838_v27  ;;  %v14312_v31 = vld [vmem:[#allocation29_spill] sm:$0xff]  ;;  %v4961_v51 = vsel %vm4705_vm1, %v4886_v53, 0.0 }
 0x323   :  { %v12978_v13 = vadd.f32 %v9594_v43, %v12784_v48  ;;  %v4958_v45 = vadd.f32 %v4957_v28, %v4956_v57  ;;  %v4841_v34 = vsub.f32 %v14312_v31, %v12637_v24  ;;  %v4888_v1 = vmul.f32 %v4839_v42, %v4839_v42 }
 0x324   :  { %v9525_v23 = vpop.f32.mrb[140].mxu0  ;;  %v4889_v57 = vmul.f32 %v4840_v59, %v4840_v59 }
 0x325   :  { %v9526_v46 = vpop.f32.mrb[141].mxu0  ;;  %v9595_v61 = vpop.f32.mrb[140].mxu1  ;;  %v4960_v60 = vadd.f32 %v4959_v2, %v4958_v45 }
 0x326   :  { %v9527_v5 = vadd.f32 %v9526_v46, %v9525_v23  ;;  %v9528_v0 = vpop.f32.mrb[142].mxu0  ;;  %v9596_v38 = vpop.f32.mrb[141].mxu1  ;;  %v4842_v23 = vsub.f32 %v14313_v36, %v12637_v24  ;;  %v4963_v46 = vsel %vm4705_vm1, %v4887_v30, 0.0 }
 0x327   :  { %v9529_v3 = vpop.f32.mrb[143].mxu0  ;;  %v9597_v33 = vadd.f32 %v9596_v38, %v9595_v61  ;;  %v9598_v52 = vpop.f32.mrb[142].mxu1  ;;  %v4962_v27 = vadd.f32 %v4961_v51, %v4960_v60  ;;  %v14315_v61 = vld [vmem:[#allocation34_spill] sm:$0xff] }
 0x328   :  { %v12987_v48 = vadd.f32 %v9527_v5, %v12793_v50  ;;  %v9530_v37 = vadd.f32 %v9529_v3, %v9528_v0  ;;  %v9599_v29 = vpop.f32.mrb[143].mxu1  ;;  %v4890_v0 = vmul.f32 %v4841_v34, %v4841_v34  ;;  %v4844_v3 = vsub.f32 %v14315_v61, %v12637_v24 }
 0x329   :  { %v12996_v19 = vadd.f32 %v9597_v33, %v12787_v10  ;;  %v9600_v50 = vadd.f32 %v9599_v29, %v9598_v52  ;;  %v4964_v28 = vadd.f32 %v4963_v46, %v4962_v27  ;;  %v4965_v10 = vsel %vm4705_vm1, %v4888_v1, 0.0  ;;  %v14316_v1 = vld [vmem:[#allocation35_spill] sm:$0xff]  ;;  %v14317_v46 = vld [vmem:[#allocation36_spill] sm:$0xff] }
 0x32a   :  { %v12993_v43 = vadd.f32 %v9530_v37, %v12812_v20  ;;  %v14314_v20 = vld [vmem:[#allocation33_spill] sm:$0xff]  ;;  %v4891_v38 = vmul.f32 %v4842_v23, %v4842_v23  ;;  %v4967_v37 = vsel %vm4705_vm1, %v4889_v57, 0.0  ;;  %v4845_v51 = vsub.f32 %v14316_v1, %v12637_v24 }
 0x32b   :  { %v13002_v42 = vadd.f32 %v9600_v50, %v12790_v8  ;;  %v4843_v5 = vsub.f32 %v14314_v20, %v12637_v24  ;;  %v4966_v59 = vadd.f32 %v4965_v10, %v4964_v28  ;;  %v4969_v27 = vsel %vm4705_vm1, %v4890_v0, 0.0 }
 0x32c   :  { %v9531_v44 = vpop.f32.mrb[144].mxu0  ;;  %v4893_v28 = vmul.f32 %v4844_v3, %v4844_v3 }
 0x32d   :  { %v9532_v53 = vpop.f32.mrb[145].mxu0  ;;  %v9601_v2 = vpop.f32.mrb[144].mxu1  ;;  %v4968_v52 = vadd.f32 %v4967_v37, %v4966_v59  ;;  %v4892_v29 = vmul.f32 %v4843_v5, %v4843_v5 }
 0x32e   :  { %v9533_v62 = vadd.f32 %v9532_v53, %v9531_v44  ;;  %v9534_v45 = vpop.f32.mrb[146].mxu0  ;;  %v9602_v60 = vpop.f32.mrb[145].mxu1  ;;  %v4846_v44 = vsub.f32 %v14317_v46, %v12637_v24  ;;  %v4971_v53 = vsel %vm4705_vm1, %v4891_v38, 0.0 }
 0x32f   :  { %v9535_v30 = vpop.f32.mrb[147].mxu0  ;;  %v9603_v31 = vadd.f32 %v9602_v60, %v9601_v2  ;;  %v9604_v34 = vpop.f32.mrb[146].mxu1  ;;  %v4970_v23 = vadd.f32 %v4969_v27, %v4968_v52  ;;  %v14319_v2 = vld [vmem:[#allocation38_spill] sm:$0xff] }
 0x330   :  { %v13011_v8 = vadd.f32 %v9533_v62, %v12825_v56  ;;  %v9536_v33 = vadd.f32 %v9535_v30, %v9534_v45  ;;  %v9605_v36 = vpop.f32.mrb[147].mxu1  ;;  %v4894_v45 = vmul.f32 %v4845_v51, %v4845_v51  ;;  %v4848_v30 = vsub.f32 %v14319_v2, %v12637_v24 }
 0x331   :  { %v13020_v57 = vadd.f32 %v9603_v31, %v12809_v22  ;;  %v9606_v56 = vadd.f32 %v9605_v36, %v9604_v34  ;;  %v4972_v10 = vadd.f32 %v4971_v53, %v4970_v23  ;;  %v4973_v22 = vsel %vm4705_vm1, %v4892_v29, 0.0  ;;  %v14320_v29 = vld [vmem:[#allocation39_spill] sm:$0xff]  ;;  %v14321_v53 = vld [vmem:[#allocation40_spill] sm:$0xff] }
 0x332   :  { %v13017_v50 = vadd.f32 %v9536_v33, %v12828_v40  ;;  %v14318_v40 = vld [vmem:[#allocation37_spill] sm:$0xff]  ;;  %v4895_v60 = vmul.f32 %v4846_v44, %v4846_v44  ;;  %v4975_v33 = vsel %vm4705_vm1, %v4893_v28, 0.0  ;;  %v4849_v27 = vsub.f32 %v14320_v29, %v12637_v24 }
 0x333   :  { %v13026_v5 = vadd.f32 %v9606_v56, %v12822_v63  ;;  %v4847_v62 = vsub.f32 %v14318_v40, %v12637_v24  ;;  %v4974_v3 = vadd.f32 %v4973_v22, %v4972_v10  ;;  %v4977_v23 = vsel %vm4705_vm1, %v4894_v45, 0.0 }
 0x334   :  { %v9537_v20 = vpop.f32.mrb[148].mxu0  ;;  %v4897_v10 = vmul.f32 %v4848_v30, %v4848_v30 }
 0x335   :  { %v9538_v0 = vpop.f32.mrb[149].mxu0  ;;  %v9607_v37 = vpop.f32.mrb[148].mxu1  ;;  %v4976_v34 = vadd.f32 %v4975_v33, %v4974_v3  ;;  %v4896_v36 = vmul.f32 %v4847_v62, %v4847_v62 }
 0x336   :  { %v9539_v61 = vadd.f32 %v9538_v0, %v9537_v20  ;;  %v9540_v59 = vpop.f32.mrb[150].mxu0  ;;  %v9608_v52 = vpop.f32.mrb[149].mxu1  ;;  %v4850_v20 = vsub.f32 %v14321_v53, %v12637_v24  ;;  %v4979_v0 = vsel %vm4705_vm1, %v4895_v60, 0.0 }
 0x337   :  { %v9541_v38 = vpop.f32.mrb[151].mxu0  ;;  %v9609_v1 = vadd.f32 %v9608_v52, %v9607_v37  ;;  %v9610_v51 = vpop.f32.mrb[150].mxu1  ;;  %v4978_v44 = vadd.f32 %v4977_v23, %v4976_v34  ;;  %v14323_v37 = vld [vmem:[#allocation42_spill] sm:$0xff] }
 0x338   :  { %v13035_v63 = vadd.f32 %v9539_v61, %v12834_v25  ;;  %v9542_v31 = vadd.f32 %v9541_v38, %v9540_v59  ;;  %v9611_v46 = vpop.f32.mrb[151].mxu1  ;;  %v4898_v59 = vmul.f32 %v4849_v27, %v4849_v27  ;;  %v4852_v38 = vsub.f32 %v14323_v37, %v12637_v24 }
 0x339   :  { %v13044_v28 = vadd.f32 %v9609_v1, %v12831_v47  ;;  %v9612_v25 = vadd.f32 %v9611_v46, %v9610_v51  ;;  %v4980_v22 = vadd.f32 %v4979_v0, %v4978_v44  ;;  %v4981_v47 = vsel %vm4705_vm1, %v4896_v36, 0.0  ;;  %v14324_v36 = vld [vmem:[#allocation44_spill] sm:$0xff]  ;;  %v14325_v0 = vld [vmem:[#allocation46_spill] sm:$0xff] }
 0x33a   :  { %v13041_v56 = vadd.f32 %v9542_v31, %v12848_v41  ;;  %v14322_v41 = vld [vmem:[#allocation41_spill] sm:$0xff]  ;;  %v4899_v52 = vmul.f32 %v4850_v20, %v4850_v20  ;;  %v4983_v31 = vsel %vm4705_vm1, %v4897_v10, 0.0  ;;  %v4853_v23 = vsub.f32 %v14324_v36, %v12637_v24 }
 0x33b   :  { %v13050_v62 = vadd.f32 %v9612_v25, %v12845_v16  ;;  %v4851_v61 = vsub.f32 %v14322_v41, %v12637_v24  ;;  %v4982_v30 = vadd.f32 %v4981_v47, %v4980_v22  ;;  %v4985_v44 = vsel %vm4705_vm1, %v4898_v59, 0.0 }
 0x33c   :  { %v9543_v40 = vpop.f32.mrb[152].mxu0  ;;  %v4901_v22 = vmul.f32 %v4852_v38, %v4852_v38 }
 0x33d   :  { %v9544_v45 = vpop.f32.mrb[153].mxu0  ;;  %v9613_v33 = vpop.f32.mrb[152].mxu1  ;;  %v4984_v51 = vadd.f32 %v4983_v31, %v4982_v30  ;;  %v4900_v46 = vmul.f32 %v4851_v61, %v4851_v61 }
 0x33e   :  { %v9545_v2 = vadd.f32 %v9544_v45, %v9543_v40  ;;  %v9546_v3 = vpop.f32.mrb[154].mxu0  ;;  %v9614_v34 = vpop.f32.mrb[153].mxu1  ;;  %v4854_v40 = vsub.f32 %v14325_v0, %v12637_v24  ;;  %v4987_v45 = vsel %vm4705_vm1, %v4899_v52, 0.0 }
 0x33f   :  { %v9547_v60 = vpop.f32.mrb[155].mxu0  ;;  %v9615_v29 = vadd.f32 %v9614_v34, %v9613_v33  ;;  %v9616_v27 = vpop.f32.mrb[154].mxu1  ;;  %v4986_v20 = vadd.f32 %v4985_v44, %v4984_v51  ;;  %v14327_v33 = vld [vmem:[#allocation50_spill] sm:$0xff] }
 0x340   :  { %v13059_v16 = vadd.f32 %v9545_v2, %v12862_v39  ;;  %v9548_v1 = vadd.f32 %v9547_v60, %v9546_v3  ;;  %v9617_v53 = vpop.f32.mrb[155].mxu1  ;;  %v4902_v3 = vmul.f32 %v4853_v23, %v4853_v23  ;;  %v4856_v60 = vsub.f32 %v14327_v33, %v12637_v24 }
 0x341   :  { %v13068_v10 = vadd.f32 %v9615_v29, %v12868_v18  ;;  %v9618_v39 = vadd.f32 %v9617_v53, %v9616_v27  ;;  %v4988_v47 = vadd.f32 %v4987_v45, %v4986_v20  ;;  %v4989_v18 = vsel %vm4705_vm1, %v4900_v46, 0.0  ;;  %v14328_v46 = vld [vmem:[#allocation52_spill] sm:$0xff]  ;;  %v14329_v45 = vld [vmem:[#allocation54_spill] sm:$0xff] }
 0x342   :  { %v13065_v25 = vadd.f32 %v9548_v1, %v12865_v15  ;;  %v14326_v15 = vld [vmem:[#allocation48_spill] sm:$0xff]  ;;  %v4903_v34 = vmul.f32 %v4854_v40, %v4854_v40  ;;  %v4991_v1 = vsel %vm4705_vm1, %v4901_v22, 0.0  ;;  %v4857_v44 = vsub.f32 %v14328_v46, %v12637_v24 }
 0x343   :  { %v13074_v61 = vadd.f32 %v9618_v39, %v12874_v58  ;;  %v4855_v2 = vsub.f32 %v14326_v15, %v12637_v24  ;;  %v4990_v38 = vadd.f32 %v4989_v18, %v4988_v47  ;;  %v4993_v20 = vsel %vm4705_vm1, %v4902_v3, 0.0 }
 0x344   :  { %v9549_v41 = vpop.f32.mrb[156].mxu0  ;;  %v4905_v47 = vmul.f32 %v4856_v60, %v4856_v60 }
 0x345   :  { %v9550_v59 = vpop.f32.mrb[157].mxu0  ;;  %v9619_v31 = vpop.f32.mrb[156].mxu1  ;;  %v4992_v27 = vadd.f32 %v4991_v1, %v4990_v38  ;;  %v4904_v53 = vmul.f32 %v4855_v2, %v4855_v2 }
 0x346   :  { %v9551_v37 = vadd.f32 %v9550_v59, %v9549_v41  ;;  %v9552_v30 = vpop.f32.mrb[158].mxu0  ;;  %v9620_v51 = vpop.f32.mrb[157].mxu1  ;;  %v4858_v41 = vsub.f32 %v14329_v45, %v12637_v24  ;;  %v4995_v59 = vsel %vm4705_vm1, %v4903_v34, 0.0  ;;  %v4999_v1 = vsel %vm4705_vm1, %v4905_v47, 0.0 }
 0x347   :  { %v9553_v52 = vpop.f32.mrb[159].mxu0  ;;  %v9621_v36 = vadd.f32 %v9620_v51, %v9619_v31  ;;  %v9622_v23 = vpop.f32.mrb[158].mxu1  ;;  %v4994_v40 = vadd.f32 %v4993_v20, %v4992_v27 }
 0x348   :  { %v13083_v58 = vadd.f32 %v9551_v37, %v12871_v35  ;;  %v9554_v29 = vadd.f32 %v9553_v52, %v9552_v30  ;;  %v9623_v0 = vpop.f32.mrb[159].mxu1  ;;  %v4997_v37 = vsel %vm4705_vm1, %v4904_v53, 0.0  ;;  %v4907_v52 = vmul.f32 %v4858_v41, %v4858_v41 }
 0x349   :  { %v13092_v22 = vadd.f32 %v9621_v36, %v12897_v6  ;;  %v9624_v35 = vadd.f32 %v9623_v0, %v9622_v23  ;;  %v4996_v18 = vadd.f32 %v4995_v59, %v4994_v40 }
 0x34a   :  { %v13089_v39 = vadd.f32 %v9554_v29, %v12885_v12  ;;  %v4906_v12 = vmul.f32 %v4857_v44, %v4857_v44  ;;  %v5003_v0 = vsel %vm4705_vm1, %v4907_v52, 0.0 }
 0x34b   :  { %v13098_v2 = vadd.f32 %v9624_v35, %v12907_v14  ;;  %v4998_v6 = vadd.f32 %v4997_v37, %v4996_v18 }
 0x34c   :  { %v9555_v15 = vpop.f32.mrb[160].mxu0  ;;  %v5001_v36 = vsel %vm4705_vm1, %v4906_v12, 0.0 }
 0x34d   :  { %v9556_v3 = vpop.f32.mrb[161].mxu0  ;;  %v9625_v38 = vpop.f32.mrb[160].mxu1  ;;  %v5000_v29 = vadd.f32 %v4999_v1, %v4998_v6 }
 0x34e   :  { %v9557_v30 = vadd.f32 %v9556_v3, %v9555_v15  ;;  %v9558_v33 = vpop.f32.mrb[162].mxu0  ;;  %v9626_v34 = vpop.f32.mrb[161].mxu1 }
 0x34f   :  { %v9559_v31 = vpop.f32.mrb[163].mxu0  ;;  %v9627_v14 = vadd.f32 %v9626_v34, %v9625_v38  ;;  %v9628_v27 = vpop.f32.mrb[162].mxu1  ;;  %v5002_v44 = vadd.f32 %v5001_v36, %v5000_v29 }
 0x350   :  { %v13103_v60 = vadd.f32 %v9557_v30, %v12888_v55  ;;  %v9560_v51 = vadd.f32 %v9559_v31, %v9558_v33  ;;  %v9629_v46 = vpop.f32.mrb[163].mxu1 }
 0x351   :  { %v13110_v53 = vadd.f32 %v9627_v14, %v12930_v49  ;;  %v9630_v20 = vadd.f32 %v9629_v46, %v9628_v27  ;;  %v5004_v55 = vadd.f32 %v5003_v0, %v5002_v44  ;;  %v6979_v0 = vlaneseq }
 0x352   :  { %v13107_v23 = vadd.f32 %v9560_v51, %v12894_v54 }
 0x353   :  { %v13114_v40 = vadd.f32 %v9630_v20, %v12939_v17  ;;  %v5005_v35 = vrot.slane %v5004_v55, 4 }
 0x355   :  { %v9631_v45 = vpop.f32.mrb[164].mxu1  ;;  %v5006_v47 = vadd.f32 %v5005_v35, %v5004_v55  ;;  %v5014_v35 = vld [vmem:[%s14167_s5] sm:$0x1]  ;;  %s10137_s5 = smov 48  }
 0x356   :  { %v9632_v41 = vpop.f32.mrb[165].mxu1 }
 0x357   :  { %v9633_v59 = vadd.f32 %v9632_v41, %v9631_v45  ;;  %v9634_v15 = vpop.f32.mrb[166].mxu1  ;;  %v5007_v18 = vrot.slane %v5006_v47, 2  ;;  %v13144_v41 = vshrl.u32 %v6979_v0, 7 }
 0x358   :  { %v9635_v54 = vpop.f32.mrb[167].mxu1 }
 0x359   :  { %v13117_v3 = vadd.f32 %v9633_v59, %v12963_v9  ;;  %v9636_v49 = vadd.f32 %v9635_v54, %v9634_v15  ;;  %v5008_v12 = vadd.f32 %v5007_v18, %v5006_v47 }
 0x35b   :  { %v13120_v37 = vadd.f32 %v9636_v49, %v12969_v11  ;;  %v5009_v30 = vrot.slane %v5008_v12, 1  ;;  %v10085_v11 = vld [vmem:[%s14166_s4 + $0x70] sm:$0xff]  }
 0x35c   :  { %9685 = vmatprep.subr.bf16.mxu0 %v10085_v11 }
 0x35d   :  { %v9637_v33 = vpop.f32.mrb[168].mxu1  ;;  %v5010_v6 = vadd.f32 %v5009_v30, %v5008_v12 }
 0x35e   :  { %v9638_v17 = vpop.f32.mrb[169].mxu1 }
 0x35f   :  { %v9639_v38 = vadd.f32 %v9638_v17, %v9637_v33  ;;  %v9640_v31 = vpop.f32.mrb[170].mxu1  ;;  %v5011_v1 = vmul.f32 0.0025510204, %v5010_v6  ;;  %v13160_v33 = vsub.s32 0, %v13144_v41 }
 0x360   :  { %v9641_v52 = vpop.f32.mrb[171].mxu1 }
 0x361   :  { %v13123_v34 = vadd.f32 %v9639_v38, %v12987_v48  ;;  %v9642_v51 = vadd.f32 %v9641_v52, %v9640_v31  ;;  %v5012_v29 = vadd.f32 1e-05, %v5011_v1 }
 0x363   :  { %v13126_v9 = vadd.f32 %v9642_v51, %v12993_v43  ;;  %10105 = vrsqrt.f32 %v5012_v29  ;;  %v10086_v43 = vld [vmem:[%s14166_s4 + $0x30] sm:$0xff]  }
 0x364   :  { %9686 = vmatpush3.bf16.msra.mxu0 %v10086_v43  ;;  %v10088_v43 = vld [vmem:[%s14166_s4 + $0x38] sm:$0xff]  }
 0x365   :  { %v9643_v14 = vpop.f32.mrb[172].mxu1 }
 0x366   :  { %v9644_v27 = vpop.f32.mrb[173].mxu1 }
 0x367   :  { %v9645_v36 = vadd.f32 %v9644_v27, %v9643_v14  ;;  %v9646_v46 = vpop.f32.mrb[174].mxu1 }
 0x368   :  { %v9647_v44 = vpop.f32.mrb[175].mxu1 }
 0x369   :  { %v13132_v20 = vadd.f32 %v9645_v36, %v13011_v8  ;;  %v9648_v48 = vadd.f32 %v9647_v44, %v9646_v46 }
 0x36b   :  { %v13138_v55 = vadd.f32 %v9648_v48, %v13017_v50  ;;  %v5016_v50 = vld [vmem:[%s14168_s6] sm:$0x1]  ;;  %s10139_s6 = smov 32  }
 0x36d   :  { %v9649_v45 = vpop.f32.mrb[176].mxu1  ;;  %v10106_v47 = vpop.eup %10105 }
 0x36e   :  { %v9650_v8 = vpop.f32.mrb[177].mxu1  ;;  %v13146_v54 = vmul.f32 %v10106_v47, %v5014_v35 }
 0x36f   :  { %v9651_v59 = vadd.f32 %v9650_v8, %v9649_v45  ;;  %v9652_v15 = vpop.f32.mrb[178].mxu1 }
 0x370   :  { %v9653_v18 = vpop.f32.mrb[179].mxu1  ;;  %6950 = vrot.lane.b32.xlu1 %v13146_v54, %s10137_s5  ;;  %6944 = vrot.lane.b32.xlu0 %v13146_v54, %s10138_s12  ;;  %v5017_v30 = vmul.f32 %v13146_v54, %v12637_v24  ;;  %v10087_v24 = vld [vmem:[%s14166_s4 + $0x78] sm:$0xff]  }
 0x371   :  { %v13152_v49 = vadd.f32 %v9651_v59, %v13035_v63  ;;  %v9654_v12 = vadd.f32 %v9653_v18, %v9652_v15  ;;  %9687 = vmatprep.subr.bf16.mxu0 %v10087_v24  ;;  %v10089_v18 = vld [vmem:[%s14166_s4 + $0xc0] sm:$0xff]  }
 0x372   :  { %v13165_v6 = vsub.f32 %v5016_v50, %v5017_v30  ;;  %9688 = vmatpush3.bf16.msra.mxu0 %v10088_v43 }
 0x373   :  { %v13163_v17 = vadd.f32 %v9654_v12, %v13041_v56  ;;  %9713 = vmatprep.subr.bf16.mxu0 %v10089_v18 }
 0x374   :  { %6947 = vrot.lane.b32.xlu0 %v13146_v54, %s10139_s6  ;;  %v6982_v38 = vrot.slane %v13165_v6, %v13160_v33 }
 0x375   :  { %v9655_v63 = vpop.f32.mrb[180].mxu1 }
 0x376   :  { %v9656_v31 = vpop.f32.mrb[181].mxu1  ;;  %6983 = vrot.lane.b32.xlu1 %v6982_v38, %s10138_s12 }
 0x377   :  { %v9657_v52 = vadd.f32 %v9656_v31, %v9655_v63  ;;  %v9658_v1 = vpop.f32.mrb[182].mxu1 }
 0x378   :  { %v9659_v56 = vpop.f32.mrb[183].mxu1  ;;  %6953 = vrot.lane.b32.xlu0 %v13146_v54, %s10140_s14 }
 0x379   :  { %v13175_v51 = vadd.f32 %v9657_v52, %v13059_v16  ;;  %v9660_v29 = vadd.f32 %v9659_v56, %v9658_v1 }
 0x37a   :  { %6986 = vrot.lane.b32.xlu1 %v6982_v38, %s10139_s6 }
 0x37b   :  { %v13180_v14 = vadd.f32 %v9660_v29, %v13065_v25 }
 0x37c   :  { %6956 = vrot.lane.b32.xlu0 %v13146_v54, %s10141_s15 }
 0x37d   :  { %v9661_v11 = vpop.f32.mrb[184].mxu1 }
 0x37e   :  { %v9662_v27 = vpop.f32.mrb[185].mxu1  ;;  %6989 = vrot.lane.b32.xlu1 %v6982_v38, %s10137_s5 }
 0x37f   :  { %v9663_v36 = vadd.f32 %v9662_v27, %v9661_v11  ;;  %v9664_v46 = vpop.f32.mrb[186].mxu1 }
 0x380   :  { %v9665_v16 = vpop.f32.mrb[187].mxu1  ;;  %6959 = vrot.lane.b32.xlu0 %v13146_v54, %s10142_s16 }
 0x381   :  { %v13186_v44 = vadd.f32 %v9663_v36, %v13083_v58  ;;  %v9666_v48 = vadd.f32 %v9665_v16, %v9664_v46 }
 0x382   :  { %6992 = vrot.lane.b32.xlu1 %v6982_v38, %s10140_s14 }
 0x383   :  { %v13191_v25 = vadd.f32 %v9666_v48, %v13089_v39 }
 0x384   :  { %6962 = vrot.lane.b32.xlu0 %v13146_v54, %s10143_s18 }
 0x385   :  { %v9667_v35 = vpop.f32.mrb[188].mxu1 }
 0x386   :  { %v9668_v58 = vpop.f32.mrb[189].mxu1  ;;  %6995 = vrot.lane.b32.xlu1 %v6982_v38, %s10141_s15 }
 0x387   :  { %v9669_v45 = vadd.f32 %v9668_v58, %v9667_v35  ;;  %v9670_v8 = vpop.f32.mrb[190].mxu1 }
 0x388   :  { %v9671_v47 = vpop.f32.mrb[191].mxu1  ;;  %6998 = vrot.lane.b32.xlu0 %v6982_v38, %s10142_s16 }
 0x389   :  { %v13199_v59 = vadd.f32 %v9669_v45, %v13103_v60  ;;  %v9672_v39 = vadd.f32 %v9671_v47, %v9670_v8 }
 0x38a   :  { %7001 = vrot.lane.b32.xlu1 %v6982_v38, %s10143_s18 }
 0x38b   :  { %v13203_v15 = vadd.f32 %v9672_v39, %v13107_v23 }
 0x3e2   :  { %v6945_v50 = vpop.permute.xlu0 %6944  ;;  %v6951_v12 = vpop.permute.xlu1 %6950 }
 0x3e3   :  { %v6965_v1 = vsel %vm4705_vm1, %v13146_v54, %v6945_v50 }
 0x3e6   :  { %v6948_v30 = vpop.permute.xlu0 %6947 }
 0x3e7   :  { %v6967_v23 = vsel %vm14205_vm2, %v6965_v1, %v6948_v30 }
 0x3e8   :  { %v6984_v63 = vpop.permute.xlu1 %6983  ;;  %v6969_v56 = vsel %vm6968_vm3, %v6967_v23, %v6951_v12 }
 0x3e9   :  { %v7004_v16 = vsel %vm4705_vm1, %v13165_v6, %v6984_v63 }
 0x3ea   :  { %v6954_v31 = vpop.permute.xlu0 %6953 }
 0x3eb   :  { %v6971_v29 = vsel %vm14204_vm4, %v6969_v56, %v6954_v31 }
 0x3ec   :  { %v6987_v52 = vpop.permute.xlu1 %6986 }
 0x3ed   :  { %v7005_v43 = vsel %vm14205_vm2, %v7004_v16, %v6987_v52 }
 0x3ee   :  { %v6957_v60 = vpop.permute.xlu0 %6956 }
 0x3ef   :  { %v6973_v27 = vsel %vm6972_vm5, %v6971_v29, %v6957_v60 }
 0x3f0   :  { %v6990_v38 = vpop.permute.xlu1 %6989 }
 0x3f1   :  { %v7006_v58 = vsel %vm6968_vm3, %v7005_v43, %v6990_v38 }
 0x3f2   :  { %v6960_v24 = vpop.permute.xlu0 %6959 }
 0x3f3   :  { %v6975_v36 = vsel %vm14203_vm6, %v6973_v27, %v6960_v24 }
 0x3f4   :  { %v6993_v11 = vpop.permute.xlu1 %6992 }
 0x3f5   :  { %v7007_v45 = vsel %vm14204_vm4, %v7006_v58, %v6993_v11  ;;  %v10090_v58 = vld [vmem:[%s14166_s4 + $0x80] sm:$0xff]  }
 0x3f6   :  { %v6963_v46 = vpop.permute.xlu0 %6962 }
 0x3f7   :  { %v6977_v54 = vsel %vm6976_vm7, %v6975_v36, %v6963_v46 }
 0x3f8   :  { %v7014_v48 = vrot.slane %v6977_v54, %v13160_v33  ;;  %v6996_v35 = vpop.permute.xlu1 %6995 }
 0x3f9   :  { %v7008_v18 = vsel %vm6972_vm5, %v7007_v45, %v6996_v35 }
 0x3fa   :  { %v7015_v8 = vmul.f32 %v7014_v48, %v12900_v26  ;;  %v7016_v47 = vmul.f32 %v7014_v48, %v12919_v7  ;;  %v7017_v39 = vmul.f32 %v7014_v48, %v12945_v21  ;;  %v7018_v50 = vmul.f32 %v7014_v48, %v12951_v32  ;;  %v6999_v31 = vpop.permute.xlu0 %6998 }
 0x3fb   :  { %v7019_v6 = vmul.f32 %v7014_v48, %v12972_v4  ;;  %v7020_v12 = vmul.f32 %v7014_v48, %v12978_v13  ;;  %v13230_v30 = vmul.f32 %v7014_v48, %v12996_v19  ;;  %v13233_v63 = vmul.f32 %v7014_v48, %v13002_v42 }
 0x3fc   :  { %v7023_v26 = vmul.f32 %v7014_v48, %v13020_v57  ;;  %v7024_v7 = vmul.f32 %v7014_v48, %v13026_v5  ;;  %v7025_v21 = vmul.f32 %v7014_v48, %v13044_v28  ;;  %v7026_v52 = vmul.f32 %v7014_v48, %v13050_v62  ;;  %v7002_v19 = vpop.permute.xlu1 %7001 }
 0x3fd   :  { %v7027_v32 = vmul.f32 %v7014_v48, %v13068_v10  ;;  %v7028_v4 = vmul.f32 %v7014_v48, %v13074_v61  ;;  %v7029_v13 = vmul.f32 %v7014_v48, %v13092_v22  ;;  %v7030_v60 = vmul.f32 %v7014_v48, %v13098_v2 }
 0x3fe   :  { %v7031_v42 = vmul.f32 %v7014_v48, %v13110_v53  ;;  %v7032_v57 = vmul.f32 %v7014_v48, %v13114_v40  ;;  %v13246_v5 = vmul.f32 %v7014_v48, %v13117_v3  ;;  %v13249_v28 = vmul.f32 %v7014_v48, %v13120_v37 }
 0x3ff   :  { %v13252_v62 = vmul.f32 %v7014_v48, %v13123_v34  ;;  %v13255_v10 = vmul.f32 %v7014_v48, %v13126_v9  ;;  %v7009_v61 = vsel %vm14203_vm6, %v7008_v18, %v6999_v31  ;;  %v13259_v22 = vmul.f32 %v7014_v48, %v13132_v20  ;;  %v10091_v18 = vld [vmem:[%s14166_s4 + $0xc8] sm:$0xff]  }
 0x400   :  { %v13262_v2 = vmul.f32 %v7014_v48, %v13138_v55  ;;  %v7039_v53 = vmul.f32 %v7014_v48, %v13152_v49  ;;  %v7010_v40 = vsel %vm6976_vm7, %v7009_v61, %v7002_v19  ;;  %v7040_v3 = vmul.f32 %v7014_v48, %v13163_v17 }
 0x401   :  { %v7041_v37 = vmul.f32 %v7014_v48, %v13175_v51  ;;  %v7042_v34 = vmul.f32 %v7014_v48, %v13180_v14  ;;  %v13270_v9 = vrot.slane %v7010_v40, %v13160_v33  ;;  %v13273_v1 = vmul.f32 %v7014_v48, %v13186_v44 }
 0x402   :  { %v13276_v20 = vmul.f32 %v7014_v48, %v13191_v25  ;;  %v13279_v55 = vmul.f32 %v7014_v48, %v13199_v59  ;;  %v13282_v49 = vmul.f32 %v7014_v48, %v13203_v15 }
 0x403   :  { %v7051_v17 = vadd.f32 %v13270_v9, %v7015_v8  ;;  %v7052_v51 = vadd.f32 %v13270_v9, %v7016_v47  ;;  %v7067_v14 = vadd.f32 %v13270_v9, %v7031_v42  ;;  %v7068_v23 = vadd.f32 %v13270_v9, %v7032_v57 }
 0x404   :  { %v7059_v44 = vadd.f32 %v13270_v9, %v7023_v26  ;;  %v7060_v38 = vadd.f32 %v13270_v9, %v7024_v7  ;;  %v7061_v25 = vadd.f32 %v13270_v9, %v7025_v21  ;;  %v7062_v59 = vadd.f32 %v13270_v9, %v7026_v52 }
 0x405   :  { %v7083_v24 = vmax.f32 %v7051_v17, 0.0  ;;  %v7084_v56 = vmax.f32 %v7052_v51, 0.0  ;;  %v7099_v15 = vmax.f32 %v7067_v14, 0.0  ;;  %v7100_v29 = vmax.f32 %v7068_v23, 0.0 }
 0x406   :  { %v7091_v11 = vmax.f32 %v7059_v44, 0.0  ;;  %v7092_v27 = vmax.f32 %v7060_v38, 0.0  ;;  %v7093_v36 = vmax.f32 %v7061_v25, 0.0  ;;  %v7094_v46 = vmax.f32 %v7062_v59, 0.0 }
 0x407   :  { %v7115_v54 = vpack.c.bf16 %v7084_v56, %v7083_v24  ;;  %v13292_v16 = vpack.c.bf16 %v7100_v29, %v7099_v15  ;;  %v7053_v48 = vadd.f32 %v13270_v9, %v7017_v39  ;;  %v7054_v43 = vadd.f32 %v13270_v9, %v7018_v50 }
 0x408   :  { %v7119_v35 = vpack.c.bf16 %v7092_v27, %v7091_v11  ;;  %v7120_v45 = vpack.c.bf16 %v7094_v46, %v7093_v36  ;;  %v7063_v8 = vadd.f32 %v13270_v9, %v7027_v32  ;;  %v7064_v47 = vadd.f32 %v13270_v9, %v7028_v4 }
 0x409   :  { %v7085_v26 = vmax.f32 %v7053_v48, 0.0  ;;  %v7086_v7 = vmax.f32 %v7054_v43, 0.0  ;;  %v7055_v39 = vadd.f32 %v13270_v9, %v7019_v6  ;;  %v7056_v50 = vadd.f32 %v13270_v9, %v7020_v12  ;;  %v10092_v6 = vld [vmem:[%s14166_s4 + $0x88] sm:$0xff]  }
 0x40a   :  { %7419 = vmatprep.mubr.bf16.mxu0 %v7119_v35  ;;  %v7095_v21 = vmax.f32 %v7063_v8, 0.0  ;;  %v7096_v31 = vmax.f32 %v7064_v47, 0.0  ;;  %v7065_v52 = vadd.f32 %v13270_v9, %v7029_v13  ;;  %v7066_v19 = vadd.f32 %v13270_v9, %v7030_v60  ;;  %v10093_v60 = vld [vmem:[%s14166_s4 + $0xd0] sm:$0xff]  }
 0x40b   :  { %7420 = vmatmul.mubr.bf16.vlgmr.msra.gmra.mrb[164].mxu0 %v7115_v54  ;;  %v7116_v32 = vpack.c.bf16 %v7086_v7, %v7085_v26  ;;  %v7087_v4 = vmax.f32 %v7055_v39, 0.0  ;;  %v7088_v42 = vmax.f32 %v7056_v50, 0.0  ;;  %v7057_v57 = vadd.f32 %v13270_v9, %v13230_v30 }
 0x40c   :  { %9714 = vmatpush3.bf16.msra.mxu0 %v10090_v58  ;;  %7427 = vmatprep.mubr.bf16.mxu0 %v7120_v45  ;;  %v7121_v12 = vpack.c.bf16 %v7096_v31, %v7095_v21  ;;  %v7097_v61 = vmax.f32 %v7065_v52, 0.0  ;;  %v7098_v40 = vmax.f32 %v7066_v19, 0.0  ;;  %v7058_v13 = vadd.f32 %v13270_v9, %v13233_v63  ;;  %v10101_v31 = vld [vmem:[%s14166_s4 + $0xf0] sm:$0xff]   ;;  %v10103_v19 = vld [vmem:[%s14166_s4 + $0xf8] sm:$0xff]  }
 0x40d   :  { %9715 = vmatprep.subr.bf16.mxu0 %v10091_v18  ;;  %v7117_v17 = vpack.c.bf16 %v7088_v42, %v7087_v4  ;;  %v7089_v51 = vmax.f32 %v7057_v57, 0.0  ;;  %v7075_v30 = vadd.f32 %v13270_v9, %v7039_v53  ;;  %v7076_v14 = vadd.f32 %v13270_v9, %v7040_v3  ;;  %v10094_v53 = vld [vmem:[%s14166_s4 + $0x90] sm:$0xff]  }
 0x40e   :  { %v7122_v23 = vpack.c.bf16 %v7098_v40, %v7097_v61  ;;  %v7090_v44 = vmax.f32 %v7058_v13, 0.0  ;;  %v7077_v38 = vadd.f32 %v13270_v9, %v7041_v37  ;;  %v7078_v25 = vadd.f32 %v13270_v9, %v7042_v34  ;;  %v10095_v34 = vld [vmem:[%s14166_s4 + $0xd8] sm:$0xff]   ;;  %v10102_v52 = vld [vmem:[%s14166_s4 + $0xb0] sm:$0xff]  }
 0x40f   :  { %v7107_v59 = vmax.f32 %v7075_v30, 0.0  ;;  %v7108_v24 = vmax.f32 %v7076_v14, 0.0  ;;  %v7069_v63 = vadd.f32 %v13270_v9, %v13246_v5  ;;  %v7070_v56 = vadd.f32 %v13270_v9, %v13249_v28 }
 0x410   :  { %9716 = vmatpush3.bf16.msra.mxu0 %v10092_v6  ;;  %v7118_v3 = vpack.c.bf16 %v7090_v44, %v7089_v51  ;;  %v7109_v15 = vmax.f32 %v7077_v38, 0.0  ;;  %v7110_v29 = vmax.f32 %v7078_v25, 0.0  ;;  %v7079_v37 = vadd.f32 %v13270_v9, %v13273_v1 }
 0x411   :  { %9717 = vmatprep.subr.bf16.mxu0 %v10093_v60  ;;  %v7127_v5 = vpack.c.bf16 %v7108_v24, %v7107_v59  ;;  %v7101_v11 = vmax.f32 %v7069_v63, 0.0  ;;  %v7102_v27 = vmax.f32 %v7070_v56, 0.0  ;;  %v7080_v28 = vadd.f32 %v13270_v9, %v13276_v20  ;;  %v10096_v20 = vld [vmem:[%s14166_s4 + $0x98] sm:$0xff]  }
 0x412   :  { %v7128_v36 = vpack.c.bf16 %v7110_v29, %v7109_v15  ;;  %v7111_v46 = vmax.f32 %v7079_v37, 0.0  ;;  %v7071_v54 = vadd.f32 %v13270_v9, %v13252_v62  ;;  %v7072_v48 = vadd.f32 %v13270_v9, %v13255_v10 }
 0x413   :  { %7428 = vmatmul.mubr.bf16.gmra.mrb[168].mxu0 %v7116_v32  ;;  %v7124_v1 = vpack.c.bf16 %v7102_v27, %v7101_v11  ;;  %v7112_v43 = vmax.f32 %v7080_v28, 0.0  ;;  %v7081_v35 = vadd.f32 %v13270_v9, %v13279_v55  ;;  %v7082_v58 = vadd.f32 %v13270_v9, %v13282_v49  ;;  %v10097_v55 = vld [vmem:[%s14166_s4 + $0xe0] sm:$0xff]   ;;  %v10104_v32 = vld [vmem:[%s14166_s4 + $0xb8] sm:$0xff]  }
 0x414   :  { %9718 = vmatpush3.bf16.msra.mxu0 %v10094_v53  ;;  %7435 = vmatprep.mubr.bf16.mxu0 %v7121_v12  ;;  %v7103_v45 = vmax.f32 %v7071_v54, 0.0  ;;  %v7104_v62 = vmax.f32 %v7072_v48, 0.0  ;;  %v7073_v10 = vadd.f32 %v13270_v9, %v13259_v22  ;;  %v7074_v8 = vadd.f32 %v13270_v9, %v13262_v2  ;;  %v10098_v22 = vld [vmem:[%s14166_s4 + $0xa0] sm:$0xff]   ;;  %v10099_v2 = vld [vmem:[%s14166_s4 + $0xe8] sm:$0xff]  }
 0x415   :  { %9719 = vmatprep.subr.bf16.mxu0 %v10095_v34  ;;  %v7129_v49 = vpack.c.bf16 %v7112_v43, %v7111_v46  ;;  %v7113_v47 = vmax.f32 %v7081_v35, 0.0  ;;  %v7114_v18 = vmax.f32 %v7082_v58, 0.0  ;;  %v10100_v9 = vld [vmem:[%s14166_s4 + $0xa8] sm:$0xff]   ;;  %v7521_v28 = vadd.s32 24, %v13144_v41 }
 0x416   :  { %v7125_v26 = vpack.c.bf16 %v7104_v62, %v7103_v45  ;;  %v7105_v7 = vmax.f32 %v7073_v10, 0.0  ;;  %v7106_v39 = vmax.f32 %v7074_v8, 0.0  ;;  %v14330_v62 = vmov 0.0  }
 0x417   :  { %v7130_v50 = vpack.c.bf16 %v7114_v18, %v7113_v47  ;;  %v13381_v54 = vand.u32 31, %v7521_v28 }
 0x418   :  { %9720 = vmatpush3.bf16.msra.mxu0 %v10096_v20  ;;  %v7126_v21 = vpack.c.bf16 %v7106_v39, %v7105_v7  ;;  %v7525_v7 = vadd.s32 56, %v13144_v41 }
 0x419   :  { %9721 = vmatprep.subr.bf16.mxu0 %v10097_v55  ;;  %vm7537_vm8 = vcmp.lt.s32.totalorder %v13381_v54, 25 }
 0x41a   :  { %v13389_v10 = vsel %vm7537_vm8, 1.0, %v14330_v62 }
 0x41b   :  { %7436 = vmatmul.mubr.bf16.gmra.mrb[172].mxu0 %v7117_v17 }
 0x41c   :  { %9722 = vmatpush3.bf16.msra.mxu0 %v10098_v22  ;;  %7443 = vmatprep.mubr.bf16.mxu0 %v7122_v23 }
 0x41d   :  { %9723 = vmatprep.subr.bf16.mxu0 %v10099_v2 }
 0x420   :  { %9724 = vmatpush3.bf16.msra.mxu0 %v10100_v9 }
 0x421   :  { %9725 = vmatprep.subr.bf16.mxu0 %v10101_v31 }
 0x423   :  { %7444 = vmatmul.mubr.bf16.gmra.mrb[176].mxu0 %v7118_v3 }
 0x424   :  { %9726 = vmatpush3.bf16.msra.mxu0 %v10102_v52  ;;  %7484 = vmatprep.mubr.bf16.mxu0 %v7127_v5 }
 0x425   :  { %9727 = vmatprep.subr.bf16.mxu0 %v10103_v19  ;;  %v13405_v19 = vand.u32 31, %v7525_v7 }
 0x427   :  { %vm7541_vm9 = vcmp.lt.s32.totalorder %v13405_v19, 25 }
 0x428   :  { %9728 = vmatpush3.bf16.msra.mxu0 %v10104_v32 }
 0x42b   :  { %7485 = vmatmul.mubr.bf16.vlgmr.msra.gmra.mrb[180].mxu0 %v13292_v16 }
 0x42c   :  { %7492 = vmatprep.mubr.bf16.mxu0 %v7128_v36 }
 0x433   :  { %7493 = vmatmul.mubr.bf16.gmra.mrb[184].mxu0 %v7124_v1 }
 0x434   :  { %7500 = vmatprep.mubr.bf16.mxu0 %v7129_v49 }
 0x43b   :  { %7501 = vmatmul.mubr.bf16.gmra.mrb[188].mxu0 %v7125_v26 }
 0x43c   :  { %7508 = vmatprep.mubr.bf16.mxu0 %v7130_v50 }
 0x443   :  { %7509 = vmatmul.mubr.bf16.gmra.mrb[192].mxu0 %v7126_v21 }
 0x4de   :  { %v9689_v4 = vpop.f32.mrb[164].mxu0 }
 0x4df   :  { %v9690_v42 = vpop.f32.mrb[165].mxu0 }
 0x4e0   :  { %v9691_v57 = vadd.f32 %v9690_v42, %v9689_v4  ;;  %v9692_v6 = vpop.f32.mrb[166].mxu0 }
 0x4e1   :  { %v9693_v12 = vpop.f32.mrb[167].mxu0 }
 0x4e2   :  { %v9694_v61 = vadd.f32 %v9693_v12, %v9692_v6 }
 0x4e6   :  { %v9695_v40 = vpop.f32.mrb[168].mxu0 }
 0x4e7   :  { %v9696_v13 = vpop.f32.mrb[169].mxu0 }
 0x4e8   :  { %v9697_v60 = vadd.f32 %v9696_v13, %v9695_v40  ;;  %v9698_v17 = vpop.f32.mrb[170].mxu0 }
 0x4e9   :  { %v9699_v51 = vpop.f32.mrb[171].mxu0 }
 0x4ea   :  { %v9700_v30 = vadd.f32 %v9699_v51, %v9698_v17 }
 0x4ee   :  { %v9701_v14 = vpop.f32.mrb[172].mxu0 }
 0x4ef   :  { %v9702_v16 = vpop.f32.mrb[173].mxu0 }
 0x4f0   :  { %v9703_v23 = vadd.f32 %v9702_v16, %v9701_v14  ;;  %v9704_v44 = vpop.f32.mrb[174].mxu0 }
 0x4f1   :  { %v9705_v38 = vpop.f32.mrb[175].mxu0 }
 0x4f2   :  { %v9706_v25 = vadd.f32 %v9705_v38, %v9704_v44 }
 0x4f6   :  { %v9707_v59 = vpop.f32.mrb[176].mxu0 }
 0x4f7   :  { %v9708_v24 = vpop.f32.mrb[177].mxu0 }
 0x4f8   :  { %v9709_v63 = vadd.f32 %v9708_v24, %v9707_v59  ;;  %v9710_v56 = vpop.f32.mrb[178].mxu0 }
 0x4f9   :  { %v9711_v53 = vpop.f32.mrb[179].mxu0 }
 0x4fa   :  { %v9712_v3 = vadd.f32 %v9711_v53, %v9710_v56 }
 0x4fe   :  { %v9729_v15 = vpop.f32.mrb[180].mxu0 }
 0x4ff   :  { %v9730_v29 = vpop.f32.mrb[181].mxu0 }
 0x500   :  { %v9731_v37 = vadd.f32 %v9730_v29, %v9729_v15  ;;  %v9732_v34 = vpop.f32.mrb[182].mxu0 }
 0x501   :  { %v9733_v5 = vpop.f32.mrb[183].mxu0 }
 0x502   :  { %v13376_v11 = vadd.f32 %v9731_v37, %v9691_v57  ;;  %v9734_v27 = vadd.f32 %v9733_v5, %v9732_v34 }
 0x504   :  { %v13379_v36 = vadd.f32 %v9734_v27, %v9694_v61  ;;  %v7566_v50 = vsel %vm14205_vm2, %v13376_v11, 0.0 }
 0x506   :  { %v9735_v46 = vpop.f32.mrb[184].mxu0  ;;  %v7567_v49 = vsel %vm14205_vm2, %v13379_v36, 0.0 }
 0x507   :  { %v9736_v48 = vpop.f32.mrb[185].mxu0  ;;  %v7568_v9 = vadd.f32 %v7567_v49, %v7566_v50 }
 0x508   :  { %v9737_v1 = vadd.f32 %v9736_v48, %v9735_v46  ;;  %v9738_v43 = vpop.f32.mrb[186].mxu0 }
 0x509   :  { %v9739_v35 = vpop.f32.mrb[187].mxu0 }
 0x50a   :  { %v13383_v58 = vadd.f32 %v9737_v1, %v9697_v60  ;;  %v9740_v20 = vadd.f32 %v9739_v35, %v9738_v43 }
 0x50c   :  { %v13386_v45 = vadd.f32 %v9740_v20, %v9700_v30  ;;  %v7569_v22 = vsel %vm14205_vm2, %v13383_v58, 0.0  ;;  %v13415_v30 = vsel %vm7541_vm9, 1.0, %v14330_v62 }
 0x50d   :  { %v7570_v32 = vadd.f32 %v7569_v22, %v7568_v9 }
 0x50e   :  { %v9741_v8 = vpop.f32.mrb[188].mxu0  ;;  %v7561_v47 = vmul.f32 %v13389_v10, %v13386_v45 }
 0x50f   :  { %v9742_v55 = vpop.f32.mrb[189].mxu0 }
 0x510   :  { %v9743_v18 = vadd.f32 %v9742_v55, %v9741_v8  ;;  %v9744_v26 = vpop.f32.mrb[190].mxu0  ;;  %v7571_v31 = vsel %vm14205_vm2, %v7561_v47, 0.0 }
 0x511   :  { %v9745_v39 = vpop.f32.mrb[191].mxu0  ;;  %v7572_v57 = vadd.f32 %v7571_v31, %v7570_v32 }
 0x512   :  { %v13400_v21 = vadd.f32 %v9743_v18, %v9703_v23  ;;  %v9746_v2 = vadd.f32 %v9745_v39, %v9744_v26 }
 0x514   :  { %v13403_v52 = vadd.f32 %v9746_v2, %v9706_v25  ;;  %v7573_v4 = vsel %vm14205_vm2, %v13400_v21, 0.0 }
 0x515   :  { %v7574_v40 = vadd.f32 %v7573_v4, %v7572_v57 }
 0x516   :  { %v9747_v42 = vpop.f32.mrb[192].mxu0  ;;  %v7575_v60 = vsel %vm14205_vm2, %v13403_v52, 0.0 }
 0x517   :  { %v9748_v6 = vpop.f32.mrb[193].mxu0  ;;  %v7576_v23 = vadd.f32 %v7575_v60, %v7574_v40 }
 0x518   :  { %v9749_v12 = vadd.f32 %v9748_v6, %v9747_v42  ;;  %v9750_v61 = vpop.f32.mrb[194].mxu0 }
 0x519   :  { %v9751_v13 = vpop.f32.mrb[195].mxu0 }
 0x51a   :  { %v13412_v17 = vadd.f32 %v9749_v12, %v9709_v63  ;;  %v9752_v51 = vadd.f32 %v9751_v13, %v9750_v61 }
 0x51c   :  { %v7577_v14 = vsel %vm14205_vm2, %v13412_v17, 0.0  ;;  %v7514_v16 = vadd.f32 %v9752_v51, %v9712_v3 }
 0x51d   :  { %v7578_v38 = vadd.f32 %v7577_v14, %v7576_v23 }
 0x51e   :  { %v7565_v44 = vmul.f32 %v13415_v30, %v7514_v16 }
 0x520   :  { %v7579_v25 = vsel %vm14205_vm2, %v7565_v44, 0.0 }
 0x521   :  { %v7580_v59 = vadd.f32 %v7579_v25, %v7578_v38 }
 0x523   :  { %v7581_v24 = vrot.slane %v7580_v59, 4 }
 0x525   :  { %v7582_v56 = vadd.f32 %v7581_v24, %v7580_v59  ;;  %v7636_v59 = vld [vmem:[%s14169_s7] sm:$0x1] }
 0x527   :  { %v7583_v53 = vrot.slane %v7582_v56, 2 }
 0x529   :  { %v7584_v63 = vadd.f32 %v7583_v53, %v7582_v56  ;;  %v7638_v53 = vld [vmem:[%s14170_s8] sm:$0x1] }
 0x52b   :  { %v7585_v15 = vrot.slane %v7584_v63, 1 }
 0x52d   :  { %v7586_v29 = vadd.f32 %v7585_v15, %v7584_v63 }
 0x52f   :  { %v7587_v37 = vmul.f32 0.02, %v7586_v29 }
 0x531   :  { %v7588_v34 = vsub.f32 %v13376_v11, %v7587_v37  ;;  %v7589_v5 = vsub.f32 %v13379_v36, %v7587_v37  ;;  %v7590_v3 = vsub.f32 %v13383_v58, %v7587_v37  ;;  %v7591_v27 = vsub.f32 %v13386_v45, %v7587_v37 }
 0x532   :  { %v7592_v28 = vsub.f32 %v13400_v21, %v7587_v37  ;;  %v7593_v35 = vsub.f32 %v13403_v52, %v7587_v37  ;;  %v7595_v20 = vsub.f32 %v7514_v16, %v7587_v37  ;;  %v7594_v47 = vsub.f32 %v13412_v17, %v7587_v37 }
 0x533   :  { %v7599_v46 = vmul.f32 %v13389_v10, %v7591_v27  ;;  %v7604_v48 = vmul.f32 %v7588_v34, %v7588_v34  ;;  %v7605_v1 = vmul.f32 %v7589_v5, %v7589_v5  ;;  %v7606_v43 = vmul.f32 %v7590_v3, %v7590_v3 }
 0x534   :  { %v7608_v18 = vmul.f32 %v7592_v28, %v7592_v28  ;;  %v7603_v39 = vmul.f32 %v13415_v30, %v7595_v20  ;;  %v7609_v50 = vmul.f32 %v7593_v35, %v7593_v35  ;;  %v7610_v9 = vmul.f32 %v7594_v47, %v7594_v47 }
 0x535   :  { %v7607_v62 = vmul.f32 %v7599_v46, %v7599_v46  ;;  %v7612_v8 = vsel %vm14205_vm2, %v7604_v48, 0.0  ;;  %v7613_v55 = vsel %vm14205_vm2, %v7605_v1, 0.0  ;;  %v7615_v26 = vsel %vm14205_vm2, %v7606_v43, 0.0 }
 0x536   :  { %v7614_v49 = vadd.f32 %v7613_v55, %v7612_v8  ;;  %v7619_v31 = vsel %vm14205_vm2, %v7608_v18, 0.0  ;;  %v7611_v4 = vmul.f32 %v7603_v39, %v7603_v39  ;;  %v7621_v42 = vsel %vm14205_vm2, %v7609_v50, 0.0 }
 0x537   :  { %v7617_v22 = vsel %vm14205_vm2, %v7607_v62, 0.0  ;;  %v7623_v6 = vsel %vm14205_vm2, %v7610_v9, 0.0 }
 0x538   :  { %v7616_v7 = vadd.f32 %v7615_v26, %v7614_v49  ;;  %v7625_v61 = vsel %vm14205_vm2, %v7611_v4, 0.0 }
 0x53a   :  { %v7618_v2 = vadd.f32 %v7617_v22, %v7616_v7 }
 0x53c   :  { %v7620_v32 = vadd.f32 %v7619_v31, %v7618_v2 }
 0x53e   :  { %v7622_v57 = vadd.f32 %v7621_v42, %v7620_v32  ;;  %v7519_v42 = vadd.s32 8, %v13144_v41 }
 0x540   :  { %v7624_v12 = vadd.f32 %v7623_v6, %v7622_v57  ;;  %v13490_v6 = vand.u32 31, %v13144_v41 }
 0x542   :  { %v7626_v40 = vadd.f32 %v7625_v61, %v7624_v12 }
 0x544   :  { %v7627_v13 = vrot.slane %v7626_v40, 4 }
 0x546   :  { %v7628_v60 = vadd.f32 %v7627_v13, %v7626_v40 }
 0x548   :  { %v7629_v51 = vrot.slane %v7628_v60, 2 }
 0x54a   :  { %v7630_v14 = vadd.f32 %v7629_v51, %v7628_v60 }
 0x54c   :  { %v7631_v23 = vrot.slane %v7630_v14, 1 }
 0x54e   :  { %v7632_v44 = vadd.f32 %v7631_v23, %v7630_v14  ;;  %v7527_v14 = vand.u32 31, %v7519_v42 }
 0x550   :  { %v7633_v38 = vmul.f32 0.02, %v7632_v44  ;;  %v7520_v44 = vadd.s32 16, %v13144_v41 }
 0x552   :  { %v7634_v25 = vadd.f32 1e-05, %v7633_v38 }
 0x554   :  { %10107 = vrsqrt.f32 %v7634_v25  ;;  %v7522_v25 = vadd.s32 32, %v13144_v41 }
 0x55e   :  { %v10108_v24 = vpop.eup %10107 }
 0x55f   :  { %v7637_v56 = vmul.f32 %v10108_v24, %v7636_v59  ;;  %v7528_v59 = vand.u32 31, %v7520_v44  ;;  %v7523_v24 = vadd.s32 40, %v13144_v41 }
 0x561   :  { %v7639_v63 = vmul.f32 %v7637_v56, %v7587_v37  ;;  %v7644_v15 = vrot.slane %v7637_v56, %v13160_v33 }
 0x563   :  { %v7640_v29 = vsub.f32 %v7638_v53, %v7639_v63  ;;  %v7652_v34 = vmul.f32 %v7644_v15, %v7514_v16  ;;  %v7645_v3 = vmul.f32 %v7644_v15, %v13376_v11  ;;  %v7646_v27 = vmul.f32 %v7644_v15, %v13379_v36 }
 0x564   :  { %v7647_v28 = vmul.f32 %v7644_v15, %v13383_v58  ;;  %v7648_v46 = vmul.f32 %v7644_v15, %v13386_v45  ;;  %v7649_v48 = vmul.f32 %v7644_v15, %v13400_v21  ;;  %v7650_v1 = vmul.f32 %v7644_v15, %v13403_v52 }
 0x565   :  { %v7657_v5 = vrot.slane %v7640_v29, %v13160_v33  ;;  %v7651_v36 = vmul.f32 %v7644_v15, %v13412_v17  ;;  %v7524_v63 = vadd.s32 48, %v13144_v41  ;;  %v13554_v15 = vand.u32 31, %v7522_v25 }
 0x566   :  { %v13561_v29 = vand.u32 31, %v7523_v24 }
 0x567   :  { %v7666_v43 = vadd.f32 %v7657_v5, %v7652_v34  ;;  %v7659_v37 = vadd.f32 %v7657_v5, %v7645_v3  ;;  %v7660_v35 = vadd.f32 %v7657_v5, %v7646_v27  ;;  %v7661_v20 = vadd.f32 %v7657_v5, %v7647_v28 }
 0x568   :  { %v7662_v62 = vadd.f32 %v7657_v5, %v7648_v46  ;;  %v7663_v16 = vadd.f32 %v7657_v5, %v7649_v48  ;;  %v7664_v8 = vadd.f32 %v7657_v5, %v7650_v1  ;;  %v7665_v26 = vadd.f32 %v7657_v5, %v7651_v36 }
 0x569   :  { %v7667_v55 = vmax.f32 %v7659_v37, 0.0  ;;  %v7668_v49 = vmax.f32 %v7660_v35, 0.0  ;;  %v7674_v11 = vmax.f32 %v7666_v43, 0.0  ;;  %v7669_v21 = vmax.f32 %v7661_v20, 0.0 }
 0x56a   :  { %v7670_v47 = vmax.f32 %v7662_v62, 0.0  ;;  %v7671_v45 = vmax.f32 %v7663_v16, 0.0  ;;  %v7672_v18 = vmax.f32 %v7664_v8, 0.0  ;;  %v7673_v17 = vmax.f32 %v7665_v26, 0.0 }
 0x56b   :  { %v13453_v58 = vpack.c.bf16 %v7668_v49, %v7667_v55  ;;  %v7682_v39 = vmul.f32 %v13415_v30, %v7674_v11  ;;  %v13637_v37 = vand.u32 31, %v7524_v63  ;;  %v14351_v35 = vmov 0 }
 0x56c   :  { %v7678_v52 = vmul.f32 %v13389_v10, %v7670_v47  ;;  %v13461_v50 = vpack.c.bf16 %v7672_v18, %v7671_v45  ;;  %v7748_v10 = vand.u32 127, %v6979_v0  ;;  %v14354_v20 = vmov 0 }
 0x56d   :  { %7691 = vrot.lane.b32.xlu0 %v13453_v58, %s10139_s6  ;;  %v13467_v22 = vpack.c.bf16 %v7682_v39, %v7673_v17  ;;  %v14358_v62 = vmov 0  ;;  %v14362_v16 = vmov 0  ;;  %v14366_v8 = vmov 0 }
 0x56e   :  { %v13458_v7 = vpack.c.bf16 %v7678_v52, %v7669_v21  ;;  %v7749_v30 = vadd.s32 128, %v7748_v10  ;;  %v7750_v2 = vadd.s32 256, %v7748_v10  ;;  %v7751_v9 = vadd.s32 384, %v7748_v10 }
 0x56f   :  { %v7752_v31 = vadd.s32 512, %v7748_v10  ;;  %v7753_v32 = vadd.s32 640, %v7748_v10  ;;  %v7754_v4 = vadd.s32 768, %v7748_v10  ;;  %v7755_v57 = vadd.s32 896, %v7748_v10 }
 0x570   :  { %7693 = vrot.lane.b32.xlu1 %v13458_v7, %s10139_s6  ;;  %v13492_v12 = vshra.s32 %v7748_v10, 5  ;;  %v13494_v61 = vshra.s32 %v7749_v30, 5  ;;  %v13496_v40 = vshra.s32 %v7750_v2, 5  ;;  %v13498_v13 = vshra.s32 %v7751_v9, 5 }
 0x571   :  { %7695 = vrot.lane.b32.xlu0 %v13461_v50, %s10139_s6  ;;  %v13500_v0 = vshra.s32 %v7752_v31, 5  ;;  %v13502_v60 = vshra.s32 %v7753_v32, 5  ;;  %v13504_v51 = vshra.s32 %v7754_v4, 5  ;;  %v13506_v23 = vshra.s32 %v7755_v57, 5 }
 0x572   :  { %vm7764_vm10 = vcmp.eq.s32.totalorder %v13492_v12, %v13490_v6  ;;  %vm7765_vm11 = vcmp.eq.s32.totalorder %v13494_v61, %v13490_v6  ;;  %vm7766_vm12 = vcmp.eq.s32.totalorder %v13496_v40, %v13490_v6  ;;  %vm7767_vm13 = vcmp.eq.s32.totalorder %v13498_v13, %v13490_v6 }
 0x573   :  { %vm7768_vm14 = vcmp.eq.s32.totalorder %v13500_v0, %v13490_v6  ;;  %vm7772_vm3 = vcmp.eq.s32.totalorder %v13492_v12, %v7527_v14  ;;  %vm7773_vm5 = vcmp.eq.s32.totalorder %v13494_v61, %v7527_v14  ;;  %vm7774_vm7 = vcmp.eq.s32.totalorder %v13496_v40, %v7527_v14 }
 0x574   :  { %7697 = vrot.lane.b32.xlu1 %v13467_v22, %s10139_s6  ;;  %vm7775_vm8 = vcmp.eq.s32.totalorder %v13498_v13, %v7527_v14  ;;  %vm7776_vm9 = vcmp.eq.s32.totalorder %v13500_v0, %v7527_v14  ;;  %vm7780_vm1 = vcmp.eq.s32.totalorder %v13492_v12, %v7528_v59  ;;  %vm13570_vm2 = vmpackc.low %vm7772_vm3, %vm7764_vm10  ;;  %vm14342_vm4 = vcmp.eq.s32.totalorder %v13502_v60, %v7527_v14 }
 0x575   :  { %7699 = vrot.lane.b32.xlu0 %v13453_v58, %s10140_s14  ;;  %vm13579_vm0 = vmpackc.low %vm7773_vm5, %vm7765_vm11  ;;  %vm14361_vm3 = vcmp.eq.s32.totalorder %v13496_v40, %v13381_v54  ;;  %v14374_v11 = vmov 0  ;;  %v14378_v47 = vmov 0  ;;  %v14382_v45 = vmov 0 }
 0x576   :  { %vm13588_vm15 = vmpackc.low %vm7774_vm7, %vm7766_vm12  ;;  %vm14345_vm7 = vcmp.eq.s32.totalorder %v13504_v51, %v13490_v6  ;;  %vm14346_vm12 = vcmp.eq.s32.totalorder %v13504_v51, %v7527_v14  ;;  %v14390_v18 = vmov 0  ;;  %v14394_v21 = vmov 0 }
 0x577   :  { %vm13597_vm10 = vmpackc.low %vm7775_vm8, %vm7767_vm13  ;;  %vm14341_vm8 = vcmp.eq.s32.totalorder %v13502_v60, %v13490_v6  ;;  %v14398_v52 = vmov 0  ;;  %v14402_v26 = vmov 0  ;;  %v14407_v10 = vmov 0 }
 0x578   :  { %7701 = vrot.lane.b32.xlu1 %v13458_v7, %s10140_s14  ;;  %vm13612_vm13 = vmpackc.low %vm7776_vm9, %vm7768_vm14  ;;  %vm14360_vm9 = vcmp.eq.s32.totalorder %v13496_v40, %v7528_v59  ;;  %v14413_v9 = vmov 0 }
 0x579   :  { %7703 = vrot.lane.b32.xlu0 %v13461_v50, %s10140_s14  ;;  %vm13621_vm6 = vmpackc.low %vm14342_vm4, %vm14341_vm8  ;;  %vm14349_vm4 = vcmp.eq.s32.totalorder %v13506_v23, %v13490_v6  ;;  %vm14350_vm8 = vcmp.eq.s32.totalorder %v13506_v23, %v7527_v14 }
 0x57a   :  { %vm13630_vm5 = vmpackc.low %vm14346_vm12, %vm14345_vm7  ;;  %vm14356_vm12 = vcmp.eq.s32.totalorder %v13494_v61, %v7528_v59  ;;  %vm14357_vm7 = vcmp.eq.s32.totalorder %v13494_v61, %v13381_v54 }
 0x57b   :  { %vm13644_vm11 = vmpackc.low %vm14350_vm8, %vm14349_vm4  ;;  %vm14353_vm4 = vcmp.eq.s32.totalorder %v13492_v12, %v13381_v54 }
 0x57c   :  { %7705 = vrot.lane.b32.xlu1 %v13467_v22, %s10140_s14  ;;  %v14352_v35 = vsel %vm13644_vm11, 4294967295, %v14351_v35  ;;  %vm13661_vm8 = vmpackc.low %vm14353_vm4, %vm7780_vm1  ;;  %vm14364_vm1 = vcmp.eq.s32.totalorder %v13498_v13, %v7528_v59  ;;  %vm14365_vm4 = vcmp.eq.s32.totalorder %v13498_v13, %v13381_v54 }
 0x57d   :  { %7707 = vrot.lane.b32.xlu0 %v13453_v58, %s10142_s16  ;;  %v14355_v20 = vsel %vm13661_vm8, 4294967295, %v14354_v20  ;;  %vm13670_vm14 = vmpackc.low %vm14357_vm7, %vm14356_vm12  ;;  %vm14372_vm12 = vcmp.eq.s32.totalorder %v13502_v60, %v7528_v59  ;;  %vm14373_vm7 = vcmp.eq.s32.totalorder %v13502_v60, %v13381_v54 }
 0x57e   :  { %v14359_v62 = vsel %vm13670_vm14, 4294967295, %v14358_v62  ;;  %vm13679_vm11 = vmpackc.low %vm14361_vm3, %vm14360_vm9  ;;  %vm14376_vm9 = vcmp.eq.s32.totalorder %v13504_v51, %v7528_v59  ;;  %vm14377_vm3 = vcmp.eq.s32.totalorder %v13504_v51, %v13381_v54 }
 0x57f   :  { %v14363_v16 = vsel %vm13679_vm11, 4294967295, %v14362_v16  ;;  %vm13688_vm8 = vmpackc.low %vm14365_vm4, %vm14364_vm1  ;;  %vm14368_vm11 = vcmp.eq.s32.totalorder %v13500_v0, %v7528_v59  ;;  %vm14369_vm1 = vcmp.eq.s32.totalorder %v13500_v0, %v13381_v54 }
 0x580   :  { %7709 = vrot.lane.b32.xlu1 %v13458_v7, %s10142_s16  ;;  %v14367_v8 = vsel %vm13688_vm8, 4294967295, %v14366_v8  ;;  %vm13705_vm4 = vmpackc.low %vm14369_vm1, %vm14368_vm11  ;;  %vm14384_vm11 = vcmp.eq.s32.totalorder %v13492_v12, %v13554_v15  ;;  %vm14385_vm1 = vcmp.eq.s32.totalorder %v13492_v12, %v13561_v29 }
 0x581   :  { %7711 = vrot.lane.b32.xlu0 %v13461_v50, %s10142_s16  ;;  %vm13714_vm8 = vmpackc.low %vm14373_vm7, %vm14372_vm12  ;;  %vm14388_vm7 = vcmp.eq.s32.totalorder %v13494_v61, %v13554_v15  ;;  %vm14389_vm12 = vcmp.eq.s32.totalorder %v13494_v61, %v13561_v29 }
 0x582   :  { %v14375_v11 = vsel %vm13714_vm8, 4294967295, %v14374_v11  ;;  %vm13723_vm14 = vmpackc.low %vm14377_vm3, %vm14376_vm9  ;;  %vm14380_vm8 = vcmp.eq.s32.totalorder %v13506_v23, %v7528_v59  ;;  %vm14381_vm3 = vcmp.eq.s32.totalorder %v13506_v23, %v13381_v54  ;;  %v14386_v54 = vmov 0 }
 0x583   :  { %v14379_v47 = vsel %vm13723_vm14, 4294967295, %v14378_v47  ;;  %vm13740_vm9 = vmpackc.low %vm14381_vm3, %vm14380_vm8  ;;  %vm14392_vm3 = vcmp.eq.s32.totalorder %v13496_v40, %v13554_v15  ;;  %vm14393_vm14 = vcmp.eq.s32.totalorder %v13496_v40, %v13561_v29 }
 0x584   :  { %7713 = vrot.lane.b32.xlu1 %v13467_v22, %s10142_s16  ;;  %v14383_v45 = vsel %vm13740_vm9, 4294967295, %v14382_v45  ;;  %vm13764_vm9 = vmpackc.low %vm14385_vm1, %vm14384_vm11  ;;  %vm14396_vm1 = vcmp.eq.s32.totalorder %v13498_v13, %v13554_v15 }
 0x585   :  { %v14387_v54 = vsel %vm13764_vm9, 4294967295, %v14386_v54  ;;  %vm13774_vm8 = vmpackc.low %vm14389_vm12, %vm14388_vm7  ;;  %vm14397_vm9 = vcmp.eq.s32.totalorder %v13498_v13, %v13561_v29  ;;  %vm7826_vm7 = vcmp.eq.s32.totalorder %v13504_v51, %v13405_v19 }
 0x586   :  { %v14391_v18 = vsel %vm13774_vm8, 4294967295, %v14390_v18  ;;  %vm13784_vm11 = vmpackc.low %vm14393_vm14, %vm14392_vm3  ;;  %vm14400_vm14 = vcmp.eq.s32.totalorder %v13500_v0, %v13554_v15  ;;  %vm14401_vm3 = vcmp.eq.s32.totalorder %v13500_v0, %v13561_v29  ;;  %vm14404_vm8 = vcmask 261120  }
 0x587   :  { %v14395_v21 = vsel %vm13784_vm11, 4294967295, %v14394_v21  ;;  %vm13794_vm12 = vmpackc.low %vm14397_vm9, %vm14396_vm1 }
 0x588   :  { %v14399_v52 = vsel %vm13794_vm12, 4294967295, %v14398_v52  ;;  %vm13808_vm11 = vmpackc.low %vm14401_vm3, %vm14400_vm14  ;;  %vm14405_vm14 = vcmp.eq.s32.totalorder %v13502_v60, %v13554_v15  ;;  %vm14406_vm3 = vcmp.eq.s32.totalorder %v13502_v60, %v13561_v29  ;;  %vm14410_vm12 = vcmask 523264  }
 0x589   :  { %v14403_v26 = vsel %vm13808_vm11, 4294967295, %v14402_v26  ;;  %vm13827_vm11 = vmpackc.low %vm14406_vm3, %vm14405_vm14  ;;  %vm14411_vm14 = vcmp.eq.s32.totalorder %v13504_v51, %v13554_v15  ;;  %vm14412_vm3 = vcmp.eq.s32.totalorder %v13504_v51, %v13561_v29 }
 0x58a   :  { %v14408_v10 = vsel %vm13827_vm11, 4294967295, %v14407_v10  ;;  %vm14409_vm9 = vmmov %vm14404_vm8  ;;  %vm14417_vm11 = vcmask 785408  }
 0x58b   :  { %vm13847_vm1 = vmpackc.low %vm14412_vm3, %vm14411_vm14  ;;  %vm14418_vm14 = vcmp.eq.s32.totalorder %v13506_v23, %v13554_v15  ;;  %vm14419_vm3 = vcmp.eq.s32.totalorder %v13506_v23, %v13561_v29 }
 0x58c   :  { %v14414_v9 = vsel %vm13847_vm1, 4294967295, %v14413_v9  ;;  %vm13866_vm1 = vmpackc.low %vm14419_vm3, %vm14418_vm14  ;;  %vm7827_vm14 = vcmp.eq.s32.totalorder %v13506_v23, %v13405_v19  ;;  %vm14434_vm3 = vcmp.eq.s32.totalorder %v13496_v40, %v13637_v37 }
 0x5df   :  { %v13515_v38 = vpop.permute.xlu0 %7691 }
 0x5e0   :  { %v7717_v39 = vsel %vm14404_vm8, %v13453_v58, %v13515_v38  ;;  %vm7818_vm8 = vcmp.eq.s32.totalorder %v13504_v51, %v13637_v37 }
 0x5e2   :  { %v13533_v56 = vpop.permute.xlu1 %7693 }
 0x5e3   :  { %v13539_v53 = vpop.permute.xlu0 %7695  ;;  %v7720_v58 = vsel %vm14409_vm9, %v13458_v7, %v13533_v56 }
 0x5e6   :  { %v13563_v34 = vpop.permute.xlu1 %7697 }
 0x5e7   :  { %v7700_v46 = vpop.permute.xlu0 %7699 }
 0x5e8   :  { %v7728_v30 = vsel %vm14410_vm12, %v7717_v39, %v7700_v46  ;;  %vm14415_vm12 = vmmov %vm14409_vm9  ;;  %vm14416_vm9 = vcmask 523264  }
 0x5e9   :  { %v7723_v7 = vsel %vm14415_vm12, %v13461_v50, %v13539_v53  ;;  %vm14423_vm12 = vcmp.eq.s32.totalorder %v13492_v12, %v13405_v19 }
 0x5ea   :  { %v7702_v55 = vpop.permute.xlu1 %7701 }
 0x5eb   :  { %v7704_v36 = vpop.permute.xlu0 %7703  ;;  %v7730_v31 = vsel %vm14416_vm9, %v7720_v58, %v7702_v55 }
 0x5ee   :  { %v7706_v17 = vpop.permute.xlu1 %7705 }
 0x5ef   :  { %v7708_v2 = vpop.permute.xlu0 %7707 }
 0x5f0   :  { %v7736_v32 = vsel %vm14417_vm11, %v7728_v30, %v7708_v2  ;;  %vm14422_vm11 = vcmp.eq.s32.totalorder %v13492_v12, %v13637_v37 }
 0x5f1   :  { %v13874_v50 = vsel %vm13570_vm2, %v7736_v32, 0  ;;  %v7861_v42 = vsel %vm13579_vm0, %v7736_v32, 0  ;;  %v13880_v57 = vsel %vm13588_vm15, %v7736_v32, 0  ;;  %v13884_v6 = vsel %vm13597_vm10, %v7736_v32, 0  ;;  %vm13892_vm9 = vmpackc.low %vm14423_vm12, %vm14422_vm11 }
 0x5f2   :  { %v13898_v44 = vsel %vm13612_vm13, %v7736_v32, 0  ;;  %v13902_v38 = vsel %vm13621_vm6, %v7736_v32, 0  ;;  %v13906_v25 = vsel %vm13630_vm5, %v7736_v32, 0  ;;  %vm14426_vm2 = vnez %v14352_v35  ;;  %v7710_v12 = vpop.permute.xlu1 %7709 }
 0x5f3   :  { %v13910_v59 = vsel %vm14426_vm2, %v7736_v32, 0  ;;  %vm14427_vm15 = vcmp.eq.s32.totalorder %v13494_v61, %v13637_v37  ;;  %vm14428_vm0 = vcmp.eq.s32.totalorder %v13494_v61, %v13405_v19  ;;  %vm14431_vm6 = vcmask 261120   ;;  %v7712_v15 = vpop.permute.xlu0 %7711 }
 0x5f4   :  { %vm13918_vm10 = vmpackc.low %vm14428_vm0, %vm14427_vm15  ;;  %v7726_v56 = vsel %vm14431_vm6, %v13467_v22, %v13563_v34  ;;  %vm14432_vm5 = vcmask 523264   ;;  %vm14433_vm13 = vcmask 785408   ;;  %vm14435_vm11 = vcmp.eq.s32.totalorder %v13496_v40, %v13405_v19 }
 0x5f5   :  { %v7732_v53 = vsel %vm14432_vm5, %v7723_v7, %v7704_v36  ;;  %v7739_v63 = vsel %vm14433_vm13, %v7730_v31, %v7710_v12  ;;  %vm13935_vm12 = vmpackc.low %vm14435_vm11, %vm14434_vm3  ;;  %vm14438_vm2 = vnez %v14355_v20  ;;  %vm14439_vm15 = vnez %v14359_v62 }
 0x5f6   :  { %v13941_v22 = vsel %vm14438_vm2, %v7739_v63, 0  ;;  %v13945_v29 = vsel %vm14439_vm15, %v7739_v63, 0  ;;  %vm14440_vm0 = vnez %v14363_v16  ;;  %vm14441_vm6 = vnez %v14367_v8  ;;  %v7714_v35 = vpop.permute.xlu1 %7713 }
 0x5f7   :  { %v13949_v34 = vsel %vm14440_vm0, %v7739_v63, 0  ;;  %v13953_v5 = vsel %vm14441_vm6, %v7739_v63, 0  ;;  %vm14442_vm5 = vcmp.eq.s32.totalorder %v13498_v13, %v13637_v37  ;;  %vm14443_vm13 = vcmp.eq.s32.totalorder %v13498_v13, %v13405_v19 }
 0x5f8   :  { %vm13961_vm3 = vmpackc.low %vm14443_vm13, %vm14442_vm5  ;;  %v13967_v3 = vsel %vm13705_vm4, %v7739_v63, 0  ;;  %vm14446_vm11 = vnez %v14375_v11  ;;  %vm14447_vm2 = vnez %v14379_v47  ;;  %vm14448_vm15 = vnez %v14383_v45 }
 0x5f9   :  { %v13971_v27 = vsel %vm14446_vm11, %v7739_v63, 0  ;;  %v13975_v28 = vsel %vm14447_vm2, %v7739_v63, 0  ;;  %v13979_v46 = vsel %vm14448_vm15, %v7739_v63, 0  ;;  %vm14449_vm0 = vcmp.eq.s32.totalorder %v13500_v0, %v13637_v37 }
 0x5fa   :  { %vm14450_vm6 = vcmp.eq.s32.totalorder %v13500_v0, %v13405_v19  ;;  %vm14453_vm5 = vcmask 523264   ;;  %vm14454_vm13 = vcmask 785408   ;;  %vm14455_vm11 = vcmp.eq.s32.totalorder %v13502_v60, %v13637_v37 }
 0x5fb   :  { %vm13987_vm4 = vmpackc.low %vm14450_vm6, %vm14449_vm0  ;;  %v7734_v48 = vsel %vm14453_vm5, %v7726_v56, %v7706_v17  ;;  %v7742_v1 = vsel %vm14454_vm13, %v7732_v53, %v7712_v15  ;;  %vm14456_vm2 = vcmp.eq.s32.totalorder %v13502_v60, %v13405_v19  ;;  %vm14459_vm0 = vnez %v14387_v54 }
 0x5fc   :  { %vm13999_vm15 = vmpackc.low %vm14456_vm2, %vm14455_vm11  ;;  %v14005_v0 = vsel %vm14459_vm0, %v7742_v1, 0  ;;  %vm14460_vm6 = vnez %v14391_v18  ;;  %vm14461_vm5 = vnez %v14395_v21  ;;  %vm14462_vm13 = vnez %v14399_v52 }
 0x5fd   :  { %v14009_v20 = vsel %vm14460_vm6, %v7742_v1, 0  ;;  %v14013_v62 = vsel %vm14461_vm5, %v7742_v1, 0  ;;  %v14017_v60 = vsel %vm14462_vm13, %v7742_v1, 0  ;;  %vm7858_vm11 = vmpackc.low %vm7826_vm7, %vm7818_vm8  ;;  %vm14463_vm2 = vnez %v14403_v26 }
 0x5fe   :  { %v14027_v16 = vsel %vm14463_vm2, %v7742_v1, 0  ;;  %vm14464_vm0 = vnez %v14408_v10  ;;  %vm14465_vm6 = vnez %v14414_v9  ;;  %v14039_v49 = vsel %vm13866_vm1, %v7742_v1, 0 }
 0x5ff   :  { %v14031_v8 = vsel %vm14464_vm0, %v7742_v1, 0  ;;  %v14035_v55 = vsel %vm14465_vm6, %v7742_v1, 0  ;;  %vm14466_vm5 = vcmp.eq.s32.totalorder %v13506_v23, %v13637_v37  ;;  %vm14467_vm8 = vcmask 785408  }
 0x600   :  { %vm7859_vm7 = vmpackc.low %vm7827_vm14, %vm14466_vm5  ;;  %v7745_v51 = vsel %vm14467_vm8, %v7734_v48, %v7714_v35 }
 0x601   :  { %v14050_v11 = vsel %vm13892_vm9, %v7745_v51, 0  ;;  %v14054_v47 = vsel %vm13918_vm10, %v7745_v51, 0  ;;  %v14058_v36 = vsel %vm13935_vm12, %v7745_v51, 0  ;;  %v14062_v37 = vsel %vm13961_vm3, %v7745_v51, 0 }
 0x602   :  { %v14066_v19 = vsel %vm13987_vm4, %v7745_v51, 0  ;;  %v14070_v23 = vsel %vm13999_vm15, %v7745_v51, 0  ;;  %v14072_v45 = vsel %vm7858_vm11, %v7745_v51, 0  ;;  %v14074_v54 = vsel %vm7859_vm7, %v7745_v51, 0 }
 0x603   :  { %10131 = dma.done.wait [#allocation3], 32768 }
 0x604   :  { %10132 = vsyncadd [#allocation3], 4294934528  ;;  %8184 = vmatprep.mubr.bf16.mxu1 %v7861_v42  ;;  %8476 = vmatprep.mubr.bf16.mxu0 %v7861_v42  ;;  %v7897_v18 = vld [vmem:[#allocation2 + $0x8] sm:$0xff]  ;;  %v7899_v21 = vld [vmem:[#allocation2 + $0x18] sm:$0xff]  ;;  %vm8808_vm1 = vcmask 1040384  }
 0x605   :  { %v7896_v52 = vld [vmem:[#allocation2] sm:$0xff]  ;;  %8152 = vmatprep.subr.bf16.mxu1 %v7897_v18  ;;  %8444 = vmatprep.subr.bf16.mxu0 %v7899_v21  ;;  %v7898_v26 = vld [vmem:[#allocation2 + $0x10] sm:$0xff]  ;;  %v7901_v39 = vld [vmem:[#allocation2 + $0x28] sm:$0xff] }
 0x606   :  { %v7903_v17 = vld [vmem:[#allocation2 + $0x38] sm:$0xff]  ;;  %8153 = vmatpush1.bf16.msra.mxu1 %v7896_v52  ;;  %8445 = vmatpush1.bf16.msra.mxu0 %v7898_v26  ;;  %v7900_v10 = vld [vmem:[#allocation2 + $0x20] sm:$0xff]  ;;  %v7902_v58 = vld [vmem:[#allocation2 + $0x30] sm:$0xff] }
 0x607   :  { %8154 = vmatprep.subr.bf16.mxu1 %v7901_v39  ;;  %8446 = vmatprep.subr.bf16.mxu0 %v7903_v17  ;;  %v7905_v30 = vld [vmem:[#allocation2 + $0x48] sm:$0xff]  ;;  %v7907_v2 = vld [vmem:[#allocation2 + $0x58] sm:$0xff]  ;;  %v7904_v9 = vld [vmem:[#allocation2 + $0x40] sm:$0xff] }
 0x608   :  { %v7906_v7 = vld [vmem:[#allocation2 + $0x50] sm:$0xff]  ;;  %v7909_v31 = vld [vmem:[#allocation2 + $0x68] sm:$0xff]  ;;  %v7911_v32 = vld [vmem:[#allocation2 + $0x78] sm:$0xff] }
 0x609   :  { %v7908_v4 = vld [vmem:[#allocation2 + $0x60] sm:$0xff]  ;;  %v7910_v42 = vld [vmem:[#allocation2 + $0x70] sm:$0xff]  ;;  %v7913_v14 = vld [vmem:[#allocation2 + $0x88] sm:$0xff] }
 0x60a   :  { %8155 = vmatpush1.bf16.msra.mxu1 %v7900_v10  ;;  %8447 = vmatpush1.bf16.msra.mxu0 %v7902_v58  ;;  %v7915_v12 = vld [vmem:[#allocation2 + $0x98] sm:$0xff]  ;;  %v7912_v24 = vld [vmem:[#allocation2 + $0x80] sm:$0xff]  ;;  %v7914_v56 = vld [vmem:[#allocation2 + $0x90] sm:$0xff] }
 0x60b   :  { %8156 = vmatprep.subr.bf16.mxu1 %v7905_v30  ;;  %8448 = vmatprep.subr.bf16.mxu0 %v7907_v2  ;;  %v7917_v53 = vld [vmem:[#allocation2 + $0xa8] sm:$0xff]  ;;  %v7919_v63 = vld [vmem:[#allocation2 + $0xb8] sm:$0xff]  ;;  %v7916_v15 = vld [vmem:[#allocation2 + $0xa0] sm:$0xff] }
 0x60c   :  { %v7918_v61 = vld [vmem:[#allocation2 + $0xb0] sm:$0xff]  ;;  %v7921_v40 = vld [vmem:[#allocation2 + $0xc8] sm:$0xff]  ;;  %v7923_v13 = vld [vmem:[#allocation2 + $0xd8] sm:$0xff] }
 0x60d   :  { %v7920_v48 = vld [vmem:[#allocation2 + $0xc0] sm:$0xff]  ;;  %v7922_v1 = vld [vmem:[#allocation2 + $0xd0] sm:$0xff]  ;;  %v7925_v43 = vld [vmem:[#allocation2 + $0xe8] sm:$0xff] }
 0x60e   :  { %8157 = vmatpush1.bf16.msra.mxu1 %v7904_v9  ;;  %8449 = vmatpush1.bf16.msra.mxu0 %v7906_v7  ;;  %v7927_v35 = vld [vmem:[#allocation2 + $0xf8] sm:$0xff]  ;;  %v7924_v51 = vld [vmem:[#allocation2 + $0xe0] sm:$0xff]  ;;  %v7926_v18 = vld [vmem:[#allocation2 + $0xf0] sm:$0xff] }
 0x60f   :  { %8158 = vmatprep.subr.bf16.mxu1 %v7909_v31  ;;  %8450 = vmatprep.subr.bf16.mxu0 %v7911_v32  ;;  %v7929_v21 = vld [vmem:[#allocation2 + $0x108] sm:$0xff]  ;;  %v7931_v52 = vld [vmem:[#allocation2 + $0x118] sm:$0xff]  ;;  %v7928_v26 = vld [vmem:[#allocation2 + $0x100] sm:$0xff] }
 0x610   :  { %v7930_v39 = vld [vmem:[#allocation2 + $0x110] sm:$0xff]  ;;  %v7933_v17 = vld [vmem:[#allocation2 + $0x128] sm:$0xff]  ;;  %v7935_v10 = vld [vmem:[#allocation2 + $0x138] sm:$0xff] }
 0x611   :  { %v7932_v58 = vld [vmem:[#allocation2 + $0x120] sm:$0xff]  ;;  %v7934_v30 = vld [vmem:[#allocation2 + $0x130] sm:$0xff]  ;;  %v7937_v2 = vld [vmem:[#allocation2 + $0x148] sm:$0xff] }
 0x612   :  { %8159 = vmatpush1.bf16.msra.mxu1 %v7908_v4  ;;  %8451 = vmatpush1.bf16.msra.mxu0 %v7910_v42  ;;  %v7939_v9 = vld [vmem:[#allocation2 + $0x158] sm:$0xff]  ;;  %v7936_v7 = vld [vmem:[#allocation2 + $0x140] sm:$0xff]  ;;  %v7938_v31 = vld [vmem:[#allocation2 + $0x150] sm:$0xff] }
 0x613   :  { %8160 = vmatprep.subr.bf16.mxu1 %v7913_v14  ;;  %8452 = vmatprep.subr.bf16.mxu0 %v7915_v12  ;;  %v7941_v32 = vld [vmem:[#allocation2 + $0x168] sm:$0xff]  ;;  %v7943_v4 = vld [vmem:[#allocation2 + $0x178] sm:$0xff]  ;;  %v7940_v42 = vld [vmem:[#allocation2 + $0x160] sm:$0xff] }
 0x614   :  { %v7942_v14 = vld [vmem:[#allocation2 + $0x170] sm:$0xff]  ;;  %v7945_v12 = vld [vmem:[#allocation2 + $0x188] sm:$0xff] }
 0x616   :  { %8161 = vmatpush1.bf16.msra.mxu1 %v7912_v24  ;;  %8453 = vmatpush1.bf16.msra.mxu0 %v7914_v56  ;;  %v7947_v24 = vld [vmem:[#allocation2 + $0x198] sm:$0xff]  ;;  %v7944_v56 = vld [vmem:[#allocation2 + $0x180] sm:$0xff] }
 0x617   :  { %8162 = vmatprep.subr.bf16.mxu1 %v7917_v53  ;;  %8454 = vmatprep.subr.bf16.mxu0 %v7919_v63  ;;  %v7946_v53 = vld [vmem:[#allocation2 + $0x190] sm:$0xff]  ;;  %v7949_v63 = vld [vmem:[#allocation2 + $0x1a8] sm:$0xff] }
 0x61a   :  { %8163 = vmatpush1.bf16.msra.mxu1 %v7916_v15  ;;  %8455 = vmatpush1.bf16.msra.mxu0 %v7918_v61  ;;  %v7951_v15 = vld [vmem:[#allocation2 + $0x1b8] sm:$0xff]  ;;  %v7948_v61 = vld [vmem:[#allocation2 + $0x1a0] sm:$0xff] }
 0x61b   :  { %8164 = vmatprep.subr.bf16.mxu1 %v7921_v40  ;;  %8456 = vmatprep.subr.bf16.mxu0 %v7923_v13  ;;  %v7950_v40 = vld [vmem:[#allocation2 + $0x1b0] sm:$0xff]  ;;  %v7953_v13 = vld [vmem:[#allocation2 + $0x1c8] sm:$0xff] }
 0x61e   :  { %8165 = vmatpush1.bf16.msra.mxu1 %v7920_v48  ;;  %8457 = vmatpush1.bf16.msra.mxu0 %v7922_v1  ;;  %v7955_v48 = vld [vmem:[#allocation2 + $0x1d8] sm:$0xff]  ;;  %v7952_v1 = vld [vmem:[#allocation2 + $0x1c0] sm:$0xff] }
 0x61f   :  { %8166 = vmatprep.subr.bf16.mxu1 %v7925_v43  ;;  %8458 = vmatprep.subr.bf16.mxu0 %v7927_v35  ;;  %v7954_v43 = vld [vmem:[#allocation2 + $0x1d0] sm:$0xff]  ;;  %v7957_v35 = vld [vmem:[#allocation2 + $0x1e8] sm:$0xff] }
 0x622   :  { %8167 = vmatpush1.bf16.msra.mxu1 %v7924_v51  ;;  %8459 = vmatpush1.bf16.msra.mxu0 %v7926_v18  ;;  %v7959_v51 = vld [vmem:[#allocation2 + $0x1f8] sm:$0xff]  ;;  %v7956_v18 = vld [vmem:[#allocation2 + $0x1e0] sm:$0xff] }
 0x623   :  { %8168 = vmatprep.subr.bf16.mxu1 %v7929_v21  ;;  %8460 = vmatprep.subr.bf16.mxu0 %v7931_v52  ;;  %v7958_v21 = vld [vmem:[#allocation2 + $0x1f0] sm:$0xff]  ;;  %v7961_v52 = vld [vmem:[#allocation2 + $0x208] sm:$0xff] }
 0x626   :  { %8169 = vmatpush1.bf16.msra.mxu1 %v7928_v26  ;;  %8461 = vmatpush1.bf16.msra.mxu0 %v7930_v39  ;;  %v7963_v26 = vld [vmem:[#allocation2 + $0x218] sm:$0xff]  ;;  %v7960_v39 = vld [vmem:[#allocation2 + $0x200] sm:$0xff] }
 0x627   :  { %8170 = vmatprep.subr.bf16.mxu1 %v7933_v17  ;;  %8462 = vmatprep.subr.bf16.mxu0 %v7935_v10  ;;  %v7962_v17 = vld [vmem:[#allocation2 + $0x210] sm:$0xff]  ;;  %v7965_v10 = vld [vmem:[#allocation2 + $0x228] sm:$0xff] }
 0x62a   :  { %8171 = vmatpush1.bf16.msra.mxu1 %v7932_v58  ;;  %8463 = vmatpush1.bf16.msra.mxu0 %v7934_v30  ;;  %v7967_v58 = vld [vmem:[#allocation2 + $0x238] sm:$0xff]  ;;  %v7964_v30 = vld [vmem:[#allocation2 + $0x220] sm:$0xff] }
 0x62b   :  { %8172 = vmatprep.subr.bf16.mxu1 %v7937_v2  ;;  %8464 = vmatprep.subr.bf16.mxu0 %v7939_v9  ;;  %v7966_v2 = vld [vmem:[#allocation2 + $0x230] sm:$0xff]  ;;  %v7969_v9 = vld [vmem:[#allocation2 + $0x248] sm:$0xff] }
 0x62e   :  { %8173 = vmatpush1.bf16.msra.mxu1 %v7936_v7  ;;  %8465 = vmatpush1.bf16.msra.mxu0 %v7938_v31  ;;  %v7971_v7 = vld [vmem:[#allocation2 + $0x258] sm:$0xff]  ;;  %v7968_v31 = vld [vmem:[#allocation2 + $0x240] sm:$0xff] }
 0x62f   :  { %8174 = vmatprep.subr.bf16.mxu1 %v7941_v32  ;;  %8466 = vmatprep.subr.bf16.mxu0 %v7943_v4  ;;  %v7970_v32 = vld [vmem:[#allocation2 + $0x250] sm:$0xff]  ;;  %v7973_v4 = vld [vmem:[#allocation2 + $0x268] sm:$0xff] }
 0x632   :  { %8175 = vmatpush1.bf16.msra.mxu1 %v7940_v42  ;;  %8467 = vmatpush1.bf16.msra.mxu0 %v7942_v14  ;;  %v7972_v42 = vld [vmem:[#allocation2 + $0x260] sm:$0xff]  ;;  %v7974_v14 = vld [vmem:[#allocation2 + $0x270] sm:$0xff] }
 0x633   :  { %8176 = vmatprep.subr.bf16.mxu1 %v7945_v12  ;;  %8468 = vmatprep.subr.bf16.mxu0 %v7947_v24  ;;  %v7977_v12 = vld [vmem:[#allocation2 + $0x288] sm:$0xff]  ;;  %v7976_v24 = vld [vmem:[#allocation2 + $0x280] sm:$0xff] }
 0x636   :  { %8177 = vmatpush1.bf16.msra.mxu1 %v7944_v56  ;;  %8469 = vmatpush1.bf16.msra.mxu0 %v7946_v53  ;;  %v7978_v56 = vld [vmem:[#allocation2 + $0x290] sm:$0xff]  ;;  %v7981_v53 = vld [vmem:[#allocation2 + $0x2a8] sm:$0xff] }
 0x637   :  { %8178 = vmatprep.subr.bf16.mxu1 %v7949_v63  ;;  %8470 = vmatprep.subr.bf16.mxu0 %v7951_v15  ;;  %v7980_v63 = vld [vmem:[#allocation2 + $0x2a0] sm:$0xff]  ;;  %v7982_v15 = vld [vmem:[#allocation2 + $0x2b0] sm:$0xff] }
 0x63a   :  { %8179 = vmatpush1.bf16.msra.mxu1 %v7948_v61  ;;  %8471 = vmatpush1.bf16.msra.mxu0 %v7950_v40  ;;  %v7985_v61 = vld [vmem:[#allocation2 + $0x2c8] sm:$0xff]  ;;  %v7984_v40 = vld [vmem:[#allocation2 + $0x2c0] sm:$0xff] }
 0x63b   :  { %8180 = vmatprep.subr.bf16.mxu1 %v7953_v13  ;;  %8472 = vmatprep.subr.bf16.mxu0 %v7955_v48  ;;  %v7986_v13 = vld [vmem:[#allocation2 + $0x2d0] sm:$0xff]  ;;  %v7989_v48 = vld [vmem:[#allocation2 + $0x2e8] sm:$0xff] }
 0x63e   :  { %8181 = vmatpush1.bf16.msra.mxu1 %v7952_v1  ;;  %8473 = vmatpush1.bf16.msra.mxu0 %v7954_v43  ;;  %v7988_v1 = vld [vmem:[#allocation2 + $0x2e0] sm:$0xff]  ;;  %v7990_v43 = vld [vmem:[#allocation2 + $0x2f0] sm:$0xff] }
 0x63f   :  { %8182 = vmatprep.subr.bf16.mxu1 %v7957_v35  ;;  %8474 = vmatprep.subr.bf16.mxu0 %v7959_v51  ;;  %v7993_v35 = vld [vmem:[#allocation2 + $0x308] sm:$0xff]  ;;  %v7992_v51 = vld [vmem:[#allocation2 + $0x300] sm:$0xff] }
 0x642   :  { %8183 = vmatpush1.bf16.msra.mxu1 %v7956_v18  ;;  %8475 = vmatpush1.bf16.msra.mxu0 %v7958_v21  ;;  %v7994_v18 = vld [vmem:[#allocation2 + $0x310] sm:$0xff]  ;;  %v7997_v21 = vld [vmem:[#allocation2 + $0x328] sm:$0xff] }
 0x643   :  { %8225 = vmatprep.subr.bf16.mxu1 %v7961_v52  ;;  %8517 = vmatprep.subr.bf16.mxu0 %v7963_v26  ;;  %v7996_v52 = vld [vmem:[#allocation2 + $0x320] sm:$0xff]  ;;  %v7998_v26 = vld [vmem:[#allocation2 + $0x330] sm:$0xff] }
 0x645   :  { %8185 = vmatmul.mubr.bf16.vlgmr.msra.gmra.mrb[192].mxu1 %v13874_v50  ;;  %8477 = vmatmul.mubr.bf16.vlgmr.msra.gmra.mrb[196].mxu0 %v13874_v50  ;;  %v7975_v50 = vld [vmem:[#allocation2 + $0x278] sm:$0xff] }
 0x646   :  { %8226 = vmatpush1.bf16.msra.mxu1 %v7960_v39  ;;  %8518 = vmatpush1.bf16.msra.mxu0 %v7962_v17  ;;  %v8001_v39 = vld [vmem:[#allocation2 + $0x348] sm:$0xff]  ;;  %v8003_v17 = vld [vmem:[#allocation2 + $0x358] sm:$0xff] }
 0x647   :  { %8227 = vmatprep.subr.bf16.mxu1 %v7965_v10  ;;  %8519 = vmatprep.subr.bf16.mxu0 %v7967_v58  ;;  %v8002_v10 = vld [vmem:[#allocation2 + $0x350] sm:$0xff]  ;;  %v8005_v58 = vld [vmem:[#allocation2 + $0x368] sm:$0xff] }
 0x648   :  { %8194 = vmatprep.mubr.bf16.mxu1 %v13945_v29  ;;  %8486 = vmatprep.mubr.bf16.mxu0 %v13945_v29  ;;  %v7979_v29 = vld [vmem:[#allocation2 + $0x298] sm:$0xff] }
 0x64a   :  { %8228 = vmatpush1.bf16.msra.mxu1 %v7964_v30  ;;  %8520 = vmatpush1.bf16.msra.mxu0 %v7966_v2  ;;  %v8007_v30 = vld [vmem:[#allocation2 + $0x378] sm:$0xff]  ;;  %v8004_v2 = vld [vmem:[#allocation2 + $0x360] sm:$0xff] }
 0x64b   :  { %8229 = vmatprep.subr.bf16.mxu1 %v7969_v9  ;;  %8521 = vmatprep.subr.bf16.mxu0 %v7971_v7  ;;  %v8006_v9 = vld [vmem:[#allocation2 + $0x370] sm:$0xff]  ;;  %v8009_v7 = vld [vmem:[#allocation2 + $0x388] sm:$0xff] }
 0x64d   :  { %8195 = vmatmul.mubr.bf16.gmra.mrb[196].mxu1 %v13941_v22  ;;  %8487 = vmatmul.mubr.bf16.gmra.mrb[200].mxu0 %v13941_v22  ;;  %v7983_v22 = vld [vmem:[#allocation2 + $0x2b8] sm:$0xff] }
 0x64e   :  { %8230 = vmatpush1.bf16.msra.mxu1 %v7968_v31  ;;  %8522 = vmatpush1.bf16.msra.mxu0 %v7970_v32  ;;  %v8011_v31 = vld [vmem:[#allocation2 + $0x398] sm:$0xff]  ;;  %v8008_v32 = vld [vmem:[#allocation2 + $0x380] sm:$0xff] }
 0x64f   :  { %8231 = vmatprep.subr.bf16.mxu1 %v7973_v4  ;;  %8523 = vmatprep.subr.bf16.mxu0 %v7975_v50  ;;  %v8010_v4 = vld [vmem:[#allocation2 + $0x390] sm:$0xff]  ;;  %v8013_v50 = vld [vmem:[#allocation2 + $0x3a8] sm:$0xff] }
 0x650   :  { %8204 = vmatprep.mubr.bf16.mxu1 %v14009_v20  ;;  %8496 = vmatprep.mubr.bf16.mxu0 %v14009_v20  ;;  %v7987_v20 = vld [vmem:[#allocation2 + $0x2d8] sm:$0xff] }
 0x652   :  { %8232 = vmatpush1.bf16.msra.mxu1 %v7972_v42  ;;  %8524 = vmatpush1.bf16.msra.mxu0 %v7974_v14  ;;  %v8015_v42 = vld [vmem:[#allocation2 + $0x3b8] sm:$0xff]  ;;  %v8012_v14 = vld [vmem:[#allocation2 + $0x3a0] sm:$0xff] }
 0x653   :  { %8233 = vmatprep.subr.bf16.mxu1 %v7977_v12  ;;  %8525 = vmatprep.subr.bf16.mxu0 %v7979_v29  ;;  %v8014_v12 = vld [vmem:[#allocation2 + $0x3b0] sm:$0xff]  ;;  %v8017_v29 = vld [vmem:[#allocation2 + $0x3c8] sm:$0xff] }
 0x655   :  { %8205 = vmatmul.mubr.bf16.gmra.mrb[200].mxu1 %v14005_v0  ;;  %8497 = vmatmul.mubr.bf16.gmra.mrb[204].mxu0 %v14005_v0  ;;  %v7991_v0 = vld [vmem:[#allocation2 + $0x2f8] sm:$0xff] }
 0x656   :  { %8234 = vmatpush1.bf16.msra.mxu1 %v7976_v24  ;;  %8526 = vmatpush1.bf16.msra.mxu0 %v7978_v56  ;;  %v8019_v24 = vld [vmem:[#allocation2 + $0x3d8] sm:$0xff]  ;;  %v8016_v56 = vld [vmem:[#allocation2 + $0x3c0] sm:$0xff] }
 0x657   :  { %8235 = vmatprep.subr.bf16.mxu1 %v7981_v53  ;;  %8527 = vmatprep.subr.bf16.mxu0 %v7983_v22  ;;  %v8018_v53 = vld [vmem:[#allocation2 + $0x3d0] sm:$0xff]  ;;  %v8021_v22 = vld [vmem:[#allocation2 + $0x3e8] sm:$0xff] }
 0x658   :  { %8214 = vmatprep.mubr.bf16.mxu1 %v14054_v47  ;;  %8506 = vmatprep.mubr.bf16.mxu0 %v14054_v47  ;;  %v7995_v47 = vld [vmem:[#allocation2 + $0x318] sm:$0xff] }
 0x65a   :  { %8236 = vmatpush1.bf16.msra.mxu1 %v7980_v63  ;;  %8528 = vmatpush1.bf16.msra.mxu0 %v7982_v15  ;;  %v8023_v63 = vld [vmem:[#allocation2 + $0x3f8] sm:$0xff]  ;;  %v8020_v15 = vld [vmem:[#allocation2 + $0x3e0] sm:$0xff] }
 0x65b   :  { %8237 = vmatprep.subr.bf16.mxu1 %v7985_v61  ;;  %8529 = vmatprep.subr.bf16.mxu0 %v7987_v20  ;;  %v8022_v61 = vld [vmem:[#allocation2 + $0x3f0] sm:$0xff]  ;;  %v8025_v20 = vld [vmem:[#allocation2 + $0x408] sm:$0xff] }
 0x65d   :  { %8215 = vmatmul.mubr.bf16.gmra.mrb[204].mxu1 %v14050_v11  ;;  %8507 = vmatmul.mubr.bf16.gmra.mrb[208].mxu0 %v14050_v11  ;;  %v7999_v11 = vld [vmem:[#allocation2 + $0x338] sm:$0xff] }
 0x65e   :  { %8238 = vmatpush1.bf16.msra.mxu1 %v7984_v40  ;;  %8530 = vmatpush1.bf16.msra.mxu0 %v7986_v13  ;;  %v8027_v40 = vld [vmem:[#allocation2 + $0x418] sm:$0xff]  ;;  %v8024_v13 = vld [vmem:[#allocation2 + $0x400] sm:$0xff] }
 0x65f   :  { %8239 = vmatprep.subr.bf16.mxu1 %v7989_v48  ;;  %8531 = vmatprep.subr.bf16.mxu0 %v7991_v0  ;;  %v8026_v48 = vld [vmem:[#allocation2 + $0x410] sm:$0xff]  ;;  %v8029_v0 = vld [vmem:[#allocation2 + $0x428] sm:$0xff] }
 0x660   :  { %8257 = vmatprep.mubr.bf16.mxu1 %v13884_v6  ;;  %8549 = vmatprep.mubr.bf16.mxu0 %v13884_v6  ;;  %v8000_v6 = vld [vmem:[#allocation2 + $0x340] sm:$0xff] }
 0x662   :  { %8240 = vmatpush1.bf16.msra.mxu1 %v7988_v1  ;;  %8532 = vmatpush1.bf16.msra.mxu0 %v7990_v43  ;;  %v8031_v1 = vld [vmem:[#allocation2 + $0x438] sm:$0xff]  ;;  %v8028_v43 = vld [vmem:[#allocation2 + $0x420] sm:$0xff] }
 0x663   :  { %8241 = vmatprep.subr.bf16.mxu1 %v7993_v35  ;;  %8533 = vmatprep.subr.bf16.mxu0 %v7995_v47  ;;  %v8030_v35 = vld [vmem:[#allocation2 + $0x430] sm:$0xff]  ;;  %v8033_v47 = vld [vmem:[#allocation2 + $0x448] sm:$0xff] }
 0x666   :  { %8242 = vmatpush1.bf16.msra.mxu1 %v7992_v51  ;;  %8534 = vmatpush1.bf16.msra.mxu0 %v7994_v18  ;;  %v8035_v51 = vld [vmem:[#allocation2 + $0x458] sm:$0xff]  ;;  %v8032_v18 = vld [vmem:[#allocation2 + $0x440] sm:$0xff] }
 0x667   :  { %8243 = vmatprep.subr.bf16.mxu1 %v7997_v21  ;;  %8535 = vmatprep.subr.bf16.mxu0 %v7999_v11  ;;  %v8034_v21 = vld [vmem:[#allocation2 + $0x450] sm:$0xff]  ;;  %v8037_v11 = vld [vmem:[#allocation2 + $0x468] sm:$0xff] }
 0x66a   :  { %8244 = vmatpush1.bf16.msra.mxu1 %v7996_v52  ;;  %8536 = vmatpush1.bf16.msra.mxu0 %v7998_v26  ;;  %v8036_v52 = vld [vmem:[#allocation2 + $0x460] sm:$0xff]  ;;  %v8038_v26 = vld [vmem:[#allocation2 + $0x470] sm:$0xff] }
 0x66b   :  { %8245 = vmatprep.subr.bf16.mxu1 %v8001_v39  ;;  %8537 = vmatprep.subr.bf16.mxu0 %v8003_v17  ;;  %v8041_v39 = vld [vmem:[#allocation2 + $0x488] sm:$0xff]  ;;  %v8040_v17 = vld [vmem:[#allocation2 + $0x480] sm:$0xff] }
 0x66e   :  { %8246 = vmatpush1.bf16.msra.mxu1 %v8000_v6  ;;  %8538 = vmatpush1.bf16.msra.mxu0 %v8002_v10  ;;  %v8042_v6 = vld [vmem:[#allocation2 + $0x490] sm:$0xff]  ;;  %v8045_v10 = vld [vmem:[#allocation2 + $0x4a8] sm:$0xff] }
 0x66f   :  { %8247 = vmatprep.subr.bf16.mxu1 %v8005_v58  ;;  %8539 = vmatprep.subr.bf16.mxu0 %v8007_v30  ;;  %v8044_v58 = vld [vmem:[#allocation2 + $0x4a0] sm:$0xff]  ;;  %v8046_v30 = vld [vmem:[#allocation2 + $0x4b0] sm:$0xff] }
 0x672   :  { %8248 = vmatpush1.bf16.msra.mxu1 %v8004_v2  ;;  %8540 = vmatpush1.bf16.msra.mxu0 %v8006_v9  ;;  %v8049_v2 = vld [vmem:[#allocation2 + $0x4c8] sm:$0xff]  ;;  %v8048_v9 = vld [vmem:[#allocation2 + $0x4c0] sm:$0xff] }
 0x673   :  { %8249 = vmatprep.subr.bf16.mxu1 %v8009_v7  ;;  %8541 = vmatprep.subr.bf16.mxu0 %v8011_v31  ;;  %v8050_v7 = vld [vmem:[#allocation2 + $0x4d0] sm:$0xff]  ;;  %v8053_v31 = vld [vmem:[#allocation2 + $0x4e8] sm:$0xff] }
 0x676   :  { %8250 = vmatpush1.bf16.msra.mxu1 %v8008_v32  ;;  %8542 = vmatpush1.bf16.msra.mxu0 %v8010_v4  ;;  %v8052_v32 = vld [vmem:[#allocation2 + $0x4e0] sm:$0xff]  ;;  %v8054_v4 = vld [vmem:[#allocation2 + $0x4f0] sm:$0xff] }
 0x677   :  { %8251 = vmatprep.subr.bf16.mxu1 %v8013_v50  ;;  %8543 = vmatprep.subr.bf16.mxu0 %v8015_v42  ;;  %v8057_v50 = vld [vmem:[#allocation2 + $0x508] sm:$0xff]  ;;  %v8056_v42 = vld [vmem:[#allocation2 + $0x500] sm:$0xff] }
 0x67a   :  { %8252 = vmatpush1.bf16.msra.mxu1 %v8012_v14  ;;  %8544 = vmatpush1.bf16.msra.mxu0 %v8014_v12  ;;  %v8058_v14 = vld [vmem:[#allocation2 + $0x510] sm:$0xff]  ;;  %v8061_v12 = vld [vmem:[#allocation2 + $0x528] sm:$0xff] }
 0x67b   :  { %8253 = vmatprep.subr.bf16.mxu1 %v8017_v29  ;;  %8545 = vmatprep.subr.bf16.mxu0 %v8019_v24  ;;  %v8060_v29 = vld [vmem:[#allocation2 + $0x520] sm:$0xff]  ;;  %v8062_v24 = vld [vmem:[#allocation2 + $0x530] sm:$0xff] }
 0x67e   :  { %8254 = vmatpush1.bf16.msra.mxu1 %v8016_v56  ;;  %8546 = vmatpush1.bf16.msra.mxu0 %v8018_v53  ;;  %v8065_v56 = vld [vmem:[#allocation2 + $0x548] sm:$0xff]  ;;  %v8067_v53 = vld [vmem:[#allocation2 + $0x558] sm:$0xff] }
 0x67f   :  { %8255 = vmatprep.subr.bf16.mxu1 %v8021_v22  ;;  %8547 = vmatprep.subr.bf16.mxu0 %v8023_v63  ;;  %v8066_v22 = vld [vmem:[#allocation2 + $0x550] sm:$0xff]  ;;  %v8069_v63 = vld [vmem:[#allocation2 + $0x568] sm:$0xff] }
 0x682   :  { %8256 = vmatpush1.bf16.msra.mxu1 %v8020_v15  ;;  %8548 = vmatpush1.bf16.msra.mxu0 %v8022_v61  ;;  %v8071_v15 = vld [vmem:[#allocation2 + $0x578] sm:$0xff]  ;;  %v8068_v61 = vld [vmem:[#allocation2 + $0x560] sm:$0xff] }
 0x683   :  { %8298 = vmatprep.subr.bf16.mxu1 %v8025_v20  ;;  %8590 = vmatprep.subr.bf16.mxu0 %v8027_v40  ;;  %v8070_v20 = vld [vmem:[#allocation2 + $0x570] sm:$0xff]  ;;  %v8073_v40 = vld [vmem:[#allocation2 + $0x588] sm:$0xff] }
 0x685   :  { %8258 = vmatmul.mubr.bf16.vlgmr.msra.gmra.mrb[192].mxu1 %v13880_v57  ;;  %8550 = vmatmul.mubr.bf16.vlgmr.msra.gmra.mrb[196].mxu0 %v13880_v57  ;;  %v8039_v57 = vld [vmem:[#allocation2 + $0x478] sm:$0xff] }
 0x686   :  { %8299 = vmatpush1.bf16.msra.mxu1 %v8024_v13  ;;  %8591 = vmatpush1.bf16.msra.mxu0 %v8026_v48  ;;  %v8075_v13 = vld [vmem:[#allocation2 + $0x598] sm:$0xff]  ;;  %v8072_v48 = vld [vmem:[#allocation2 + $0x580] sm:$0xff] }
 0x687   :  { %8300 = vmatprep.subr.bf16.mxu1 %v8029_v0  ;;  %8592 = vmatprep.subr.bf16.mxu0 %v8031_v1  ;;  %v8074_v0 = vld [vmem:[#allocation2 + $0x590] sm:$0xff]  ;;  %v8077_v1 = vld [vmem:[#allocation2 + $0x5a8] sm:$0xff] }
 0x688   :  { %8267 = vmatprep.mubr.bf16.mxu1 %v13953_v5  ;;  %8559 = vmatprep.mubr.bf16.mxu0 %v13953_v5  ;;  %v8043_v5 = vld [vmem:[#allocation2 + $0x498] sm:$0xff] }
 0x68a   :  { %8301 = vmatpush1.bf16.msra.mxu1 %v8028_v43  ;;  %8593 = vmatpush1.bf16.msra.mxu0 %v8030_v35  ;;  %v8079_v43 = vld [vmem:[#allocation2 + $0x5b8] sm:$0xff]  ;;  %v8076_v35 = vld [vmem:[#allocation2 + $0x5a0] sm:$0xff] }
 0x68b   :  { %8302 = vmatprep.subr.bf16.mxu1 %v8033_v47  ;;  %8594 = vmatprep.subr.bf16.mxu0 %v8035_v51  ;;  %v8078_v47 = vld [vmem:[#allocation2 + $0x5b0] sm:$0xff]  ;;  %v8081_v51 = vld [vmem:[#allocation2 + $0x5c8] sm:$0xff] }
 0x68d   :  { %8268 = vmatmul.mubr.bf16.gmra.mrb[196].mxu1 %v13949_v34  ;;  %8560 = vmatmul.mubr.bf16.gmra.mrb[200].mxu0 %v13949_v34  ;;  %v8047_v34 = vld [vmem:[#allocation2 + $0x4b8] sm:$0xff] }
 0x68e   :  { %8303 = vmatpush1.bf16.msra.mxu1 %v8032_v18  ;;  %8595 = vmatpush1.bf16.msra.mxu0 %v8034_v21  ;;  %v8083_v18 = vld [vmem:[#allocation2 + $0x5d8] sm:$0xff]  ;;  %v8080_v21 = vld [vmem:[#allocation2 + $0x5c0] sm:$0xff] }
 0x68f   :  { %8304 = vmatprep.subr.bf16.mxu1 %v8037_v11  ;;  %8596 = vmatprep.subr.bf16.mxu0 %v8039_v57  ;;  %v8082_v11 = vld [vmem:[#allocation2 + $0x5d0] sm:$0xff]  ;;  %v8085_v57 = vld [vmem:[#allocation2 + $0x5e8] sm:$0xff] }
 0x690   :  { %8277 = vmatprep.mubr.bf16.mxu1 %v14017_v60  ;;  %8569 = vmatprep.mubr.bf16.mxu0 %v14017_v60  ;;  %v8051_v60 = vld [vmem:[#allocation2 + $0x4d8] sm:$0xff] }
 0x692   :  { %8305 = vmatpush1.bf16.msra.mxu1 %v8036_v52  ;;  %8597 = vmatpush1.bf16.msra.mxu0 %v8038_v26  ;;  %v8087_v52 = vld [vmem:[#allocation2 + $0x5f8] sm:$0xff]  ;;  %v8084_v26 = vld [vmem:[#allocation2 + $0x5e0] sm:$0xff] }
 0x693   :  { %8306 = vmatprep.subr.bf16.mxu1 %v8041_v39  ;;  %8598 = vmatprep.subr.bf16.mxu0 %v8043_v5  ;;  %v8086_v39 = vld [vmem:[#allocation2 + $0x5f0] sm:$0xff]  ;;  %v8089_v5 = vld [vmem:[#allocation2 + $0x608] sm:$0xff] }
 0x695   :  { %8278 = vmatmul.mubr.bf16.gmra.mrb[200].mxu1 %v14013_v62  ;;  %8570 = vmatmul.mubr.bf16.gmra.mrb[204].mxu0 %v14013_v62  ;;  %v8055_v62 = vld [vmem:[#allocation2 + $0x4f8] sm:$0xff] }
 0x696   :  { %8307 = vmatpush1.bf16.msra.mxu1 %v8040_v17  ;;  %8599 = vmatpush1.bf16.msra.mxu0 %v8042_v6  ;;  %v8091_v17 = vld [vmem:[#allocation2 + $0x618] sm:$0xff]  ;;  %v8088_v6 = vld [vmem:[#allocation2 + $0x600] sm:$0xff] }
 0x697   :  { %8308 = vmatprep.subr.bf16.mxu1 %v8045_v10  ;;  %8600 = vmatprep.subr.bf16.mxu0 %v8047_v34  ;;  %v8090_v10 = vld [vmem:[#allocation2 + $0x610] sm:$0xff]  ;;  %v8093_v34 = vld [vmem:[#allocation2 + $0x628] sm:$0xff] }
 0x698   :  { %8287 = vmatprep.mubr.bf16.mxu1 %v14062_v37  ;;  %8579 = vmatprep.mubr.bf16.mxu0 %v14062_v37  ;;  %v8059_v37 = vld [vmem:[#allocation2 + $0x518] sm:$0xff] }
 0x69a   :  { %8309 = vmatpush1.bf16.msra.mxu1 %v8044_v58  ;;  %8601 = vmatpush1.bf16.msra.mxu0 %v8046_v30  ;;  %v8095_v58 = vld [vmem:[#allocation2 + $0x638] sm:$0xff]  ;;  %v8092_v30 = vld [vmem:[#allocation2 + $0x620] sm:$0xff] }
 0x69b   :  { %8310 = vmatprep.subr.bf16.mxu1 %v8049_v2  ;;  %8602 = vmatprep.subr.bf16.mxu0 %v8051_v60  ;;  %v8094_v2 = vld [vmem:[#allocation2 + $0x630] sm:$0xff]  ;;  %v8097_v60 = vld [vmem:[#allocation2 + $0x648] sm:$0xff] }
 0x69d   :  { %8288 = vmatmul.mubr.bf16.gmra.mrb[204].mxu1 %v14058_v36  ;;  %8580 = vmatmul.mubr.bf16.gmra.mrb[208].mxu0 %v14058_v36  ;;  %v8063_v36 = vld [vmem:[#allocation2 + $0x538] sm:$0xff] }
 0x69e   :  { %8311 = vmatpush1.bf16.msra.mxu1 %v8048_v9  ;;  %8603 = vmatpush1.bf16.msra.mxu0 %v8050_v7  ;;  %v8099_v9 = vld [vmem:[#allocation2 + $0x658] sm:$0xff]  ;;  %v8096_v7 = vld [vmem:[#allocation2 + $0x640] sm:$0xff] }
 0x69f   :  { %8312 = vmatprep.subr.bf16.mxu1 %v8053_v31  ;;  %8604 = vmatprep.subr.bf16.mxu0 %v8055_v62  ;;  %v8098_v31 = vld [vmem:[#allocation2 + $0x650] sm:$0xff]  ;;  %v8101_v62 = vld [vmem:[#allocation2 + $0x668] sm:$0xff] }
 0x6a0   :  { %8330 = vmatprep.mubr.bf16.mxu1 %v13902_v38  ;;  %8622 = vmatprep.mubr.bf16.mxu0 %v13902_v38  ;;  %v8064_v38 = vld [vmem:[#allocation2 + $0x540] sm:$0xff] }
 0x6a2   :  { %8313 = vmatpush1.bf16.msra.mxu1 %v8052_v32  ;;  %8605 = vmatpush1.bf16.msra.mxu0 %v8054_v4  ;;  %v8100_v32 = vld [vmem:[#allocation2 + $0x660] sm:$0xff]  ;;  %v8102_v4 = vld [vmem:[#allocation2 + $0x670] sm:$0xff] }
 0x6a3   :  { %8314 = vmatprep.subr.bf16.mxu1 %v8057_v50  ;;  %8606 = vmatprep.subr.bf16.mxu0 %v8059_v37  ;;  %v8105_v50 = vld [vmem:[#allocation2 + $0x688] sm:$0xff]  ;;  %v8104_v37 = vld [vmem:[#allocation2 + $0x680] sm:$0xff] }
 0x6a6   :  { %8315 = vmatpush1.bf16.msra.mxu1 %v8056_v42  ;;  %8607 = vmatpush1.bf16.msra.mxu0 %v8058_v14  ;;  %v8106_v42 = vld [vmem:[#allocation2 + $0x690] sm:$0xff]  ;;  %v8109_v14 = vld [vmem:[#allocation2 + $0x6a8] sm:$0xff] }
 0x6a7   :  { %8316 = vmatprep.subr.bf16.mxu1 %v8061_v12  ;;  %8608 = vmatprep.subr.bf16.mxu0 %v8063_v36  ;;  %v8108_v12 = vld [vmem:[#allocation2 + $0x6a0] sm:$0xff]  ;;  %v8110_v36 = vld [vmem:[#allocation2 + $0x6b0] sm:$0xff] }
 0x6aa   :  { %8317 = vmatpush1.bf16.msra.mxu1 %v8060_v29  ;;  %8609 = vmatpush1.bf16.msra.mxu0 %v8062_v24  ;;  %v8113_v29 = vld [vmem:[#allocation2 + $0x6c8] sm:$0xff]  ;;  %v8112_v24 = vld [vmem:[#allocation2 + $0x6c0] sm:$0xff] }
 0x6ab   :  { %8318 = vmatprep.subr.bf16.mxu1 %v8065_v56  ;;  %8610 = vmatprep.subr.bf16.mxu0 %v8067_v53  ;;  %v8114_v56 = vld [vmem:[#allocation2 + $0x6d0] sm:$0xff]  ;;  %v8117_v53 = vld [vmem:[#allocation2 + $0x6e8] sm:$0xff] }
 0x6ae   :  { %8319 = vmatpush1.bf16.msra.mxu1 %v8064_v38  ;;  %8611 = vmatpush1.bf16.msra.mxu0 %v8066_v22  ;;  %v8116_v38 = vld [vmem:[#allocation2 + $0x6e0] sm:$0xff]  ;;  %v8118_v22 = vld [vmem:[#allocation2 + $0x6f0] sm:$0xff] }
 0x6af   :  { %8320 = vmatprep.subr.bf16.mxu1 %v8069_v63  ;;  %8612 = vmatprep.subr.bf16.mxu0 %v8071_v15  ;;  %v8121_v63 = vld [vmem:[#allocation2 + $0x708] sm:$0xff]  ;;  %v8120_v15 = vld [vmem:[#allocation2 + $0x700] sm:$0xff] }
 0x6b2   :  { %8321 = vmatpush1.bf16.msra.mxu1 %v8068_v61  ;;  %8613 = vmatpush1.bf16.msra.mxu0 %v8070_v20  ;;  %v8122_v61 = vld [vmem:[#allocation2 + $0x710] sm:$0xff]  ;;  %v8125_v20 = vld [vmem:[#allocation2 + $0x728] sm:$0xff] }
 0x6b3   :  { %8322 = vmatprep.subr.bf16.mxu1 %v8073_v40  ;;  %8614 = vmatprep.subr.bf16.mxu0 %v8075_v13  ;;  %v8124_v40 = vld [vmem:[#allocation2 + $0x720] sm:$0xff]  ;;  %v8126_v13 = vld [vmem:[#allocation2 + $0x730] sm:$0xff] }
 0x6b6   :  { %8323 = vmatpush1.bf16.msra.mxu1 %v8072_v48  ;;  %8615 = vmatpush1.bf16.msra.mxu0 %v8074_v0  ;;  %v8129_v48 = vld [vmem:[#allocation2 + $0x748] sm:$0xff]  ;;  %v8131_v0 = vld [vmem:[#allocation2 + $0x758] sm:$0xff] }
 0x6b7   :  { %8324 = vmatprep.subr.bf16.mxu1 %v8077_v1  ;;  %8616 = vmatprep.subr.bf16.mxu0 %v8079_v43  ;;  %v8130_v1 = vld [vmem:[#allocation2 + $0x750] sm:$0xff]  ;;  %v8133_v43 = vld [vmem:[#allocation2 + $0x768] sm:$0xff] }
 0x6ba   :  { %8325 = vmatpush1.bf16.msra.mxu1 %v8076_v35  ;;  %8617 = vmatpush1.bf16.msra.mxu0 %v8078_v47  ;;  %v8135_v35 = vld [vmem:[#allocation2 + $0x778] sm:$0xff]  ;;  %v8132_v47 = vld [vmem:[#allocation2 + $0x760] sm:$0xff] }
 0x6bb   :  { %8326 = vmatprep.subr.bf16.mxu1 %v8081_v51  ;;  %8618 = vmatprep.subr.bf16.mxu0 %v8083_v18  ;;  %v8134_v51 = vld [vmem:[#allocation2 + $0x770] sm:$0xff]  ;;  %v8137_v18 = vld [vmem:[#allocation2 + $0x788] sm:$0xff] }
 0x6be   :  { %8327 = vmatpush1.bf16.msra.mxu1 %v8080_v21  ;;  %8619 = vmatpush1.bf16.msra.mxu0 %v8082_v11  ;;  %v8139_v21 = vld [vmem:[#allocation2 + $0x798] sm:$0xff]  ;;  %v8136_v11 = vld [vmem:[#allocation2 + $0x780] sm:$0xff] }
 0x6bf   :  { %8328 = vmatprep.subr.bf16.mxu1 %v8085_v57  ;;  %8620 = vmatprep.subr.bf16.mxu0 %v8087_v52  ;;  %v8138_v57 = vld [vmem:[#allocation2 + $0x790] sm:$0xff]  ;;  %v8141_v52 = vld [vmem:[#allocation2 + $0x7a8] sm:$0xff] }
 0x6c2   :  { %8329 = vmatpush1.bf16.msra.mxu1 %v8084_v26  ;;  %8621 = vmatpush1.bf16.msra.mxu0 %v8086_v39  ;;  %v8143_v26 = vld [vmem:[#allocation2 + $0x7b8] sm:$0xff]  ;;  %v8140_v39 = vld [vmem:[#allocation2 + $0x7a0] sm:$0xff] }
 0x6c3   :  { %8371 = vmatprep.subr.bf16.mxu1 %v8089_v5  ;;  %8663 = vmatprep.subr.bf16.mxu0 %v8091_v17  ;;  %v8142_v5 = vld [vmem:[#allocation2 + $0x7b0] sm:$0xff]  ;;  %v8145_v17 = vld [vmem:[#allocation2 + $0x7c8] sm:$0xff] }
 0x6c5   :  { %8331 = vmatmul.mubr.bf16.vlgmr.msra.gmra.mrb[192].mxu1 %v13898_v44  ;;  %8623 = vmatmul.mubr.bf16.vlgmr.msra.gmra.mrb[196].mxu0 %v13898_v44  ;;  %v8103_v44 = vld [vmem:[#allocation2 + $0x678] sm:$0xff] }
 0x6c6   :  { %8372 = vmatpush1.bf16.msra.mxu1 %v8088_v6  ;;  %8664 = vmatpush1.bf16.msra.mxu0 %v8090_v10  ;;  %v8147_v6 = vld [vmem:[#allocation2 + $0x7d8] sm:$0xff]  ;;  %v8144_v10 = vld [vmem:[#allocation2 + $0x7c0] sm:$0xff] }
 0x6c7   :  { %8373 = vmatprep.subr.bf16.mxu1 %v8093_v34  ;;  %8665 = vmatprep.subr.bf16.mxu0 %v8095_v58  ;;  %v8146_v34 = vld [vmem:[#allocation2 + $0x7d0] sm:$0xff]  ;;  %v8149_v58 = vld [vmem:[#allocation2 + $0x7e8] sm:$0xff] }
 0x6c8   :  { %8340 = vmatprep.mubr.bf16.mxu1 %v13971_v27  ;;  %8632 = vmatprep.mubr.bf16.mxu0 %v13971_v27  ;;  %v8107_v27 = vld [vmem:[#allocation2 + $0x698] sm:$0xff] }
 0x6ca   :  { %8374 = vmatpush1.bf16.msra.mxu1 %v8092_v30  ;;  %8666 = vmatpush1.bf16.msra.mxu0 %v8094_v2  ;;  %v8151_v30 = vld [vmem:[#allocation2 + $0x7f8] sm:$0xff]  ;;  %v8148_v2 = vld [vmem:[#allocation2 + $0x7e0] sm:$0xff] }
 0x6cb   :  { %8375 = vmatprep.subr.bf16.mxu1 %v8097_v60  ;;  %8667 = vmatprep.subr.bf16.mxu0 %v8099_v9  ;;  %v8150_v60 = vld [vmem:[#allocation2 + $0x7f0] sm:$0xff] }
 0x6cd   :  { %8341 = vmatmul.mubr.bf16.gmra.mrb[196].mxu1 %v13967_v3  ;;  %8633 = vmatmul.mubr.bf16.gmra.mrb[200].mxu0 %v13967_v3  ;;  %v8111_v3 = vld [vmem:[#allocation2 + $0x6b8] sm:$0xff] }
 0x6ce   :  { %8376 = vmatpush1.bf16.msra.mxu1 %v8096_v7  ;;  %8668 = vmatpush1.bf16.msra.mxu0 %v8098_v31 }
 0x6cf   :  { %8377 = vmatprep.subr.bf16.mxu1 %v8101_v62  ;;  %8669 = vmatprep.subr.bf16.mxu0 %v8103_v44 }
 0x6d0   :  { %8350 = vmatprep.mubr.bf16.mxu1 %v14031_v8  ;;  %8642 = vmatprep.mubr.bf16.mxu0 %v14031_v8  ;;  %v8115_v8 = vld [vmem:[#allocation2 + $0x6d8] sm:$0xff] }
 0x6d2   :  { %8378 = vmatpush1.bf16.msra.mxu1 %v8100_v32  ;;  %8670 = vmatpush1.bf16.msra.mxu0 %v8102_v4 }
 0x6d3   :  { %8379 = vmatprep.subr.bf16.mxu1 %v8105_v50  ;;  %8671 = vmatprep.subr.bf16.mxu0 %v8107_v27 }
 0x6d5   :  { %8351 = vmatmul.mubr.bf16.gmra.mrb[200].mxu1 %v14027_v16  ;;  %8643 = vmatmul.mubr.bf16.gmra.mrb[204].mxu0 %v14027_v16  ;;  %v8119_v16 = vld [vmem:[#allocation2 + $0x6f8] sm:$0xff] }
 0x6d6   :  { %8380 = vmatpush1.bf16.msra.mxu1 %v8104_v37  ;;  %8672 = vmatpush1.bf16.msra.mxu0 %v8106_v42 }
 0x6d7   :  { %8381 = vmatprep.subr.bf16.mxu1 %v8109_v14  ;;  %8673 = vmatprep.subr.bf16.mxu0 %v8111_v3 }
 0x6d8   :  { %8360 = vmatprep.mubr.bf16.mxu1 %v14070_v23  ;;  %8652 = vmatprep.mubr.bf16.mxu0 %v14070_v23  ;;  %v8123_v23 = vld [vmem:[#allocation2 + $0x718] sm:$0xff] }
 0x6da   :  { %8382 = vmatpush1.bf16.msra.mxu1 %v8108_v12  ;;  %8674 = vmatpush1.bf16.msra.mxu0 %v8110_v36 }
 0x6db   :  { %8383 = vmatprep.subr.bf16.mxu1 %v8113_v29  ;;  %8675 = vmatprep.subr.bf16.mxu0 %v8115_v8 }
 0x6dd   :  { %8361 = vmatmul.mubr.bf16.gmra.mrb[204].mxu1 %v14066_v19  ;;  %8653 = vmatmul.mubr.bf16.gmra.mrb[208].mxu0 %v14066_v19  ;;  %v8127_v19 = vld [vmem:[#allocation2 + $0x738] sm:$0xff] }
 0x6de   :  { %8384 = vmatpush1.bf16.msra.mxu1 %v8112_v24  ;;  %8676 = vmatpush1.bf16.msra.mxu0 %v8114_v56 }
 0x6df   :  { %8385 = vmatprep.subr.bf16.mxu1 %v8117_v53  ;;  %8677 = vmatprep.subr.bf16.mxu0 %v8119_v16 }
 0x6e0   :  { %8403 = vmatprep.mubr.bf16.mxu1 %v13910_v59  ;;  %8695 = vmatprep.mubr.bf16.mxu0 %v13910_v59  ;;  %v8128_v59 = vld [vmem:[#allocation2 + $0x740] sm:$0xff] }
 0x6e2   :  { %8386 = vmatpush1.bf16.msra.mxu1 %v8116_v38  ;;  %8678 = vmatpush1.bf16.msra.mxu0 %v8118_v22 }
 0x6e3   :  { %8387 = vmatprep.subr.bf16.mxu1 %v8121_v63  ;;  %8679 = vmatprep.subr.bf16.mxu0 %v8123_v23 }
 0x6e6   :  { %8388 = vmatpush1.bf16.msra.mxu1 %v8120_v15  ;;  %8680 = vmatpush1.bf16.msra.mxu0 %v8122_v61 }
 0x6e7   :  { %8389 = vmatprep.subr.bf16.mxu1 %v8125_v20  ;;  %8681 = vmatprep.subr.bf16.mxu0 %v8127_v19 }
 0x6ea   :  { %8390 = vmatpush1.bf16.msra.mxu1 %v8124_v40  ;;  %8682 = vmatpush1.bf16.msra.mxu0 %v8126_v13 }
 0x6eb   :  { %8391 = vmatprep.subr.bf16.mxu1 %v8129_v48  ;;  %8683 = vmatprep.subr.bf16.mxu0 %v8131_v0 }
 0x6ee   :  { %8392 = vmatpush1.bf16.msra.mxu1 %v8128_v59  ;;  %8684 = vmatpush1.bf16.msra.mxu0 %v8130_v1 }
 0x6ef   :  { %8393 = vmatprep.subr.bf16.mxu1 %v8133_v43  ;;  %8685 = vmatprep.subr.bf16.mxu0 %v8135_v35 }
 0x6f2   :  { %8394 = vmatpush1.bf16.msra.mxu1 %v8132_v47  ;;  %8686 = vmatpush1.bf16.msra.mxu0 %v8134_v51 }
 0x6f3   :  { %8395 = vmatprep.subr.bf16.mxu1 %v8137_v18  ;;  %8687 = vmatprep.subr.bf16.mxu0 %v8139_v21 }
 0x6f6   :  { %8396 = vmatpush1.bf16.msra.mxu1 %v8136_v11  ;;  %8688 = vmatpush1.bf16.msra.mxu0 %v8138_v57 }
 0x6f7   :  { %8397 = vmatprep.subr.bf16.mxu1 %v8141_v52  ;;  %8689 = vmatprep.subr.bf16.mxu0 %v8143_v26 }
 0x6fa   :  { %8398 = vmatpush1.bf16.msra.mxu1 %v8140_v39  ;;  %8690 = vmatpush1.bf16.msra.mxu0 %v8142_v5 }
 0x6fb   :  { %8399 = vmatprep.subr.bf16.mxu1 %v8145_v17  ;;  %8691 = vmatprep.subr.bf16.mxu0 %v8147_v6 }
 0x6fe   :  { %8400 = vmatpush1.bf16.msra.mxu1 %v8144_v10  ;;  %8692 = vmatpush1.bf16.msra.mxu0 %v8146_v34 }
 0x6ff   :  { %8401 = vmatprep.subr.bf16.mxu1 %v8149_v58  ;;  %8693 = vmatprep.subr.bf16.mxu0 %v8151_v30 }
 0x702   :  { %8402 = vmatpush1.bf16.msra.mxu1 %v8148_v2  ;;  %8694 = vmatpush1.bf16.msra.mxu0 %v8150_v60 }
 0x705   :  { %8404 = vmatmul.mubr.bf16.vlgmr.msra.gmra.mrb[192].mxu1 %v13906_v25  ;;  %8696 = vmatmul.mubr.bf16.vlgmr.msra.gmra.mrb[196].mxu0 %v13906_v25 }
 0x706   :  { %8413 = vmatprep.mubr.bf16.mxu1 %v13979_v46  ;;  %8705 = vmatprep.mubr.bf16.mxu0 %v13979_v46 }
 0x70d   :  { %8414 = vmatmul.mubr.bf16.gmra.mrb[196].mxu1 %v13975_v28  ;;  %8706 = vmatmul.mubr.bf16.gmra.mrb[200].mxu0 %v13975_v28 }
 0x70e   :  { %8423 = vmatprep.mubr.bf16.mxu1 %v14039_v49  ;;  %8715 = vmatprep.mubr.bf16.mxu0 %v14039_v49 }
 0x715   :  { %8424 = vmatmul.mubr.bf16.gmra.mrb[200].mxu1 %v14035_v55  ;;  %8716 = vmatmul.mubr.bf16.gmra.mrb[204].mxu0 %v14035_v55 }
 0x716   :  { %8433 = vmatprep.mubr.bf16.mxu1 %v14074_v54  ;;  %8725 = vmatprep.mubr.bf16.mxu0 %v14074_v54 }
 0x71d   :  { %8434 = vmatmul.mubr.bf16.gmra.mrb[204].mxu1 %v14072_v45  ;;  %8726 = vmatmul.mubr.bf16.gmra.mrb[208].mxu0 %v14072_v45 }
 0x7d8   :  { %v8405_v25 = vpop.f32.mrb[192].mxu1  ;;  %v8697_v46 = vpop.f32.mrb[196].mxu0 }
 0x7d9   :  { %v8407_v9 = vpop.f32.mrb[193].mxu1  ;;  %v8699_v28 = vpop.f32.mrb[197].mxu0 }
 0x7da   :  { %v8409_v7 = vpop.f32.mrb[194].mxu1  ;;  %v8701_v31 = vpop.f32.mrb[198].mxu0 }
 0x7db   :  { %v8736_v62 = vadd.f32 %v8409_v7, %v8405_v25  ;;  %v8754_v49 = vadd.f32 %v8701_v31, %v8697_v46  ;;  %v8411_v44 = vpop.f32.mrb[195].mxu1  ;;  %v8703_v32 = vpop.f32.mrb[199].mxu0 }
 0x7dc   :  { %v8745_v4 = vadd.f32 %v8411_v44, %v8407_v9  ;;  %v8763_v55 = vadd.f32 %v8703_v32, %v8699_v28  ;;  %v8825_v44 = vsub.s32 2, %v13144_v41 }
 0x7e0   :  { %v8415_v50 = vpop.f32.mrb[196].mxu1  ;;  %v8707_v27 = vpop.f32.mrb[200].mxu0 }
 0x7e1   :  { %v8737_v37 = vadd.f32 %v8736_v62, %v8415_v50  ;;  %v8755_v54 = vadd.f32 %v8754_v49, %v8707_v27  ;;  %v8417_v42 = vpop.f32.mrb[197].mxu1  ;;  %v8709_v14 = vpop.f32.mrb[201].mxu0 }
 0x7e2   :  { %v8746_v3 = vadd.f32 %v8745_v4, %v8417_v42  ;;  %v8764_v45 = vadd.f32 %v8763_v55, %v8709_v14  ;;  %v8419_v12 = vpop.f32.mrb[198].mxu1  ;;  %v8711_v36 = vpop.f32.mrb[202].mxu0  ;;  %v8821_v55 = vsub.s32 1, %v13144_v41  ;;  %v8813_v42 = vld [vmem:[%s14171_s9] sm:$0xf]  ;;  %s10145_s9 = smov [#allocation4]  }
 0x7e3   :  { %v8738_v29 = vadd.f32 %v8737_v37, %v8419_v12  ;;  %v8756_v8 = vadd.f32 %v8755_v54, %v8711_v36  ;;  %v8421_v24 = vpop.f32.mrb[199].mxu1  ;;  %v8713_v56 = vpop.f32.mrb[203].mxu0  ;;  %s8868_s6 = sshll.u32 %s10145_s9, 4  ;;  %s8869_s6 = int_to_ptr.vmem [resolvable:$true] %s8868_s6 }
 0x7e4   :  { %v8747_v53 = vadd.f32 %v8746_v3, %v8421_v24  ;;  %v8765_v16 = vadd.f32 %v8764_v45, %v8713_v56  ;;  %s10109_s14 = scalar_lea.vmem %s8869_s6, 128  ;;  %p10114_p1 = scmp.lt.s32.totalorder %s8869_s6, %s8869_s6 }
 0x7e5   :  { %v8739_v20 = vrot.slane %v8738_v29, 4  ;;  %v8757_v19 = vrot.slane %v8756_v8, 4  ;;  %p10110_p0 = scmp.ne.s32.totalorder %s8869_s6, %s10109_s14  ;;  %p10115_p2 = scmp.lt.s32.totalorder %s10109_s14, %s10109_s14 }
 0x7e6   :  { %v8748_v59 = vrot.slane %v8747_v53, 4  ;;  %v8766_v1 = vrot.slane %v8765_v16, 4 }
 0x7e7   :  { %v8740_v47 = vadd.f32 %v8739_v20, %v8738_v29  ;;  %v8758_v51 = vadd.f32 %v8757_v19, %v8756_v8  ;;  %v8829_v8 = vsub.s32 3, %v13144_v41  ;;  %p10116_p3 = por %p10115_p2, %p10114_p1 }
 0x7e8   :  { %v8425_v38 = vpop.f32.mrb[200].mxu1  ;;  %v8717_v22 = vpop.f32.mrb[204].mxu0  ;;  %v8749_v18 = vadd.f32 %v8748_v59, %v8747_v53  ;;  %v8767_v21 = vadd.f32 %v8766_v1, %v8765_v16  ;;  %v8818_v53 = vrot.slane %v8813_v42, %v13160_v33  ;;  %v10144_v16 = vmov 1983009808  }
 0x7e9   :  { %v8427_v63 = vpop.f32.mrb[201].mxu1  ;;  %v8719_v23 = vpop.f32.mrb[205].mxu0  ;;  %v8741_v58 = vrot.slane %v8740_v47, 2  ;;  %v8759_v30 = vrot.slane %v8758_v51, 2  ;;  %v8826_v59 = vrot.slane %v8813_v42, %v8825_v44  ;;  %p10117_p4 = pnand %p10116_p3, %p10110_p0 }
 0x7ea   :  { %v8429_v15 = vpop.f32.mrb[202].mxu1  ;;  %v8721_v61 = vpop.f32.mrb[206].mxu0  ;;  %v8750_v9 = vrot.slane %v8749_v18, 2  ;;  %v8768_v28 = vrot.slane %v8767_v21, 2 }
 0x7eb   :  { %v8772_v40 = vadd.f32 %v8429_v15, %v8425_v38  ;;  %v8790_v13 = vadd.f32 %v8721_v61, %v8717_v22  ;;  %v8431_v48 = vpop.f32.mrb[203].mxu1  ;;  %v8723_v0 = vpop.f32.mrb[207].mxu0  ;;  %v8742_v50 = vadd.f32 %v8741_v58, %v8740_v47  ;;  %v8760_v27 = vadd.f32 %v8759_v30, %v8758_v51 }
 0x7ec   :  { %v8781_v43 = vadd.f32 %v8431_v48, %v8427_v63  ;;  %v8799_v35 = vadd.f32 %v8723_v0, %v8719_v23  ;;  %v8751_v14 = vadd.f32 %v8750_v9, %v8749_v18  ;;  %v8769_v3 = vadd.f32 %v8768_v28, %v8767_v21 }
 0x7ed   :  { %v8846_v38 = vunpack.c.l.s4 %v10144_v16  ;;  %v8743_v22 = vrot.slane %v8742_v50, 1  ;;  %v8761_v63 = vrot.slane %v8760_v27, 1  ;;  %v8822_v0 = vrot.slane %v8813_v42, %v8821_v55 }
 0x7ee   :  { %v8752_v61 = vrot.slane %v8751_v14, 1  ;;  %v8770_v20 = vrot.slane %v8769_v3, 1 }
 0x7ef   :  { %v8847_v47 = vunpack.c.0.s8 %v8846_v38  ;;  %v8744_v51 = vadd.f32 %v8743_v22, %v8742_v50  ;;  %v8762_v33 = vadd.f32 %v8761_v63, %v8760_v27 }
 0x7f0   :  { %v8435_v11 = vpop.f32.mrb[204].mxu1  ;;  %v8727_v57 = vpop.f32.mrb[208].mxu0 }
 0x7f1   :  { %v8773_v52 = vadd.f32 %v8772_v40, %v8435_v11  ;;  %v8791_v26 = vadd.f32 %v8790_v13, %v8727_v57  ;;  %v8437_v39 = vpop.f32.mrb[205].mxu1  ;;  %v8729_v5 = vpop.f32.mrb[209].mxu0  ;;  %v8753_v11 = vadd.f32 %v8752_v61, %v8751_v14  ;;  %v8771_v57 = vadd.f32 %v8770_v20, %v8769_v3 }
 0x7f2   :  { %v8782_v17 = vadd.f32 %v8781_v43, %v8437_v39  ;;  %v8800_v6 = vadd.f32 %v8799_v35, %v8729_v5  ;;  %v8439_v10 = vpop.f32.mrb[206].mxu1  ;;  %v8731_v34 = vpop.f32.mrb[210].mxu0  ;;  %v8830_v35 = vrot.slane %v8813_v42, %v8829_v8 }
 0x7f3   :  { %v8774_v2 = vadd.f32 %v8773_v52, %v8439_v10  ;;  %v8792_v60 = vadd.f32 %v8791_v26, %v8731_v34  ;;  %v8441_v25 = vpop.f32.mrb[207].mxu1  ;;  %v8733_v46 = vpop.f32.mrb[211].mxu0 }
 0x7f4   :  { %v8783_v7 = vadd.f32 %v8782_v17, %v8441_v25  ;;  %v8801_v31 = vadd.f32 %v8800_v6, %v8733_v46 }
 0x7f5   :  { %v8775_v62 = vrot.slane %v8774_v2, 4  ;;  %v8793_v49 = vrot.slane %v8792_v60, 4 }
 0x7f6   :  { %v8784_v32 = vrot.slane %v8783_v7, 4  ;;  %v8802_v4 = vrot.slane %v8801_v31, 4 }
 0x7f7   :  { %v8776_v37 = vadd.f32 %v8775_v62, %v8774_v2  ;;  %v8794_v54 = vadd.f32 %v8793_v49, %v8792_v60  ;;  %v8850_v2 = vsub.s32 %v8847_v47, %v13144_v41 }
 0x7f8   :  { %v8785_v45 = vadd.f32 %v8784_v32, %v8783_v7  ;;  %v8803_v12 = vadd.f32 %v8802_v4, %v8801_v31 }
 0x7f9   :  { %v8777_v36 = vrot.slane %v8776_v37, 2  ;;  %v8795_v29 = vrot.slane %v8794_v54, 2 }
 0x7fa   :  { %v8786_v24 = vrot.slane %v8785_v45, 2  ;;  %v8804_v56 = vrot.slane %v8803_v12, 2 }
 0x7fb   :  { %v8778_v23 = vadd.f32 %v8777_v36, %v8776_v37  ;;  %v8796_v15 = vadd.f32 %v8795_v29, %v8794_v54 }
 0x7fc   :  { %v8787_v19 = vadd.f32 %v8786_v24, %v8785_v45  ;;  %v8805_v40 = vadd.f32 %v8804_v56, %v8803_v12 }
 0x7fd   :  { %v8779_v13 = vrot.slane %v8778_v23, 1  ;;  %v8797_v48 = vrot.slane %v8796_v15, 1 }
 0x7fe   :  { %v8788_v1 = vrot.slane %v8787_v19, 1  ;;  %v8806_v43 = vrot.slane %v8805_v40, 1 }
 0x7ff   :  { %v8780_v18 = vadd.f32 %v8779_v13, %v8778_v23  ;;  %v8798_v21 = vadd.f32 %v8797_v48, %v8796_v15 }
 0x800   :  { %v8789_v52 = vadd.f32 %v8788_v1, %v8787_v19  ;;  %v8807_v26 = vadd.f32 %v8806_v43, %v8805_v40 }
 0x801   :  { %v8809_v39 = vsel %vm8808_vm1, %v8744_v51, %v8780_v18  ;;  %v8811_v5 = vsel %vm8808_vm1, %v8762_v33, %v8798_v21 }
 0x802   :  { %v8810_v17 = vsel %vm8808_vm1, %v8753_v11, %v8789_v52  ;;  %v8812_v6 = vsel %vm8808_vm1, %v8771_v57, %v8807_v26  ;;  %v8835_v10 = vadd.f32 %v8818_v53, %v8809_v39  ;;  %v8837_v34 = vadd.f32 %v8826_v59, %v8811_v5 }
 0x803   :  { %v8836_v58 = vadd.f32 %v8822_v0, %v8810_v17  ;;  %v8838_v30 = vadd.f32 %v8830_v35, %v8812_v6 }
 0x805   :  { %v8843_v60 = vcombine.low %v8835_v10, %v8836_v58  ;;  %v8844_v25 = vcombine.low %v8837_v34, %v8838_v30 }
 0x807   :  { %v8851_v46 = vrot.slane %v8843_v60, %v8850_v2  ;;  %v8858_v9 = vrot.slane %v8844_v25, %v8850_v2 }
 0x809   :  { %v8859_v28 = vcombine.low %v8851_v46, %v8858_v9 }
 0x80b   :  { %8861 = vst [vmem:[#allocation4] sm:$0xff] %v8859_v28 }
 0x80c   :  { %10120 = shalt.err (!%p10117_p4)
}
 0x80d   :  { %s10121_s30 = scalar_lea.hbm %s14172_s10, 128 }
 0x80e   :  { %p10122_p5 = scmp.ne.s32.totalorder %s14172_s10, %s10121_s30  ;;  %p10125_p6 = scmp.lt.u32.totalorder %s10121_s30, %s14172_s10 }
 0x810   :  { %p10127_p7 = pnand %p10125_p6, %p10122_p5 }
 0x812   :  { %10130 = shalt.err (!%p10127_p7)
}
 0x813   :  { %8871 = dma.vmem_to_hbm [thread:$0]  %s8869_s6, 128, %s14172_s10, [#allocation5]  }
 0x814   :  { %10133 = dma.done.wait [#allocation5], 128  }
 0x815   :  { %10134 = vsyncadd [#allocation5], 4294967168 }
 0x816   :  { %8875 = vsyncpa [#allocation5], 1 }
 0x817   :  { %8876 = vsyncmov [#allocation3] }
 0x81a   :  { %s8877_s2 = vpop.sfrf %8876 }
 0x81b   :  { %p9191_p8 = scmp.ne.s32.totalorder %s8877_s2, 0 }
 0x81d   :  { %8881 = shalt.err (%p9191_p8)  }

</bundles_post_ra>
